<compile_context>
chip_gen: v7x
topology: tpu7x:2x2x1
jax: 0.10.0
libtpu: 0.0.40
codegen_flags: <defaults>
</compile_context>

<pallas_src>
import jax
import jax.numpy as jnp
from jax.experimental import pallas as pl
from jax.experimental.pallas import tpu as pltpu

NUM_CLASSES = 200
FEAT_DIM = 2048
OUT_PAD = 256                           # 200 padded up to a lane-dense multiple of 128
VMEM_LIMIT_BYTES = 56 * 1024 * 1024     # < 64 MiB/TC (v7x physical), > scoped defaults elsewhere
X_BUFFER_BUDGET = 40 * 1024 * 1024      # budget for the double-buffered feature tile


def head_kernel(x_ref, w_ref, b_ref, o_ref):
    """Fused AdaptiveAvgPool2d((1,1)) + Linear(2048, 200) head for one batch tile.

    x_ref: [TN, C, HW]   backbone NCHW features with spatial flattened
    w_ref: [C, OUT_PAD]  fc weight, transposed, pre-scaled by 1/HW, zero-padded (VMEM resident)
    b_ref: [1, OUT_PAD]  fc bias, zero-padded
    o_ref: [TN, OUT_PAD] logits (padded)
    """
    # AdaptiveAvgPool2d((1,1)): sum over the flattened spatial axis (lane reduce);
    # the 1/HW scale is folded into w_ref.  Upcast before the reduce, accumulate in f32.
    pooled = jnp.sum(x_ref[...].astype(jnp.float32), axis=-1)                 # [TN, C]
    o_ref[...] = (
        jnp.dot(pooled, w_ref[...], preferred_element_type=jnp.float32)       # [TN, OUT_PAD]
        + b_ref[...]
    ).astype(o_ref.dtype)


def _pick_batch_tile(n, hw, itemsize):
    """Largest batch tile whose double-buffered feature block fits the VMEM budget.

    Accounts for lane padding of the flattened spatial axis (last dim pads to a
    multiple of 128 in VMEM), per the perf review.
    """
    hw_padded = ((hw + 127) // 128) * 128
    per_sample = 2 * FEAT_DIM * hw_padded * itemsize          # x2 for double buffering
    cap = max(1, X_BUFFER_BUDGET // per_sample)
    # Prefer >= 2 batch tiles for larger batches so the "parallel" axis can feed both
    # v7x TensorCores.
    if n >= 16:
        cap = min(cap, n // 2)
    if cap >= n:
        return n                                              # whole batch in one block
    # Largest divisor of n that is <= cap; prefer a multiple of 8 (sublane-aligned stores).
    fallback = 1
    for t in range(min(cap, n), 0, -1):
        if n % t == 0:
            if t % 8 == 0:
                return t
            if fallback == 1:
                fallback = t
    return fallback


def resnet_head_forward(feats_nchw, fc_weight, fc_bias):
    """feats_nchw: [N, 2048, H, W] (output of the external ResNet backbone).
    fc_weight: [200, 2048] (PyTorch convention), fc_bias: [200].  Returns [N, 200]."""
    N, C, H, W = feats_nchw.shape
    assert C == FEAT_DIM, "fc expects 2048-dim features"
    HW = H * W

    # Free reshape only (no HBM-roundtrip transpose): [N, C, H, W] -> [N, C, HW].
    x = feats_nchw.reshape(N, C, HW)

    # Weight: transpose to [C, 200], fold in the 1/HW pooling scale, pad classes to 256.
    w_t = jnp.transpose(fc_weight).astype(jnp.float32) * jnp.float32(1.0 / HW)
    w_t = jnp.pad(w_t, ((0, 0), (0, OUT_PAD - NUM_CLASSES)))          # [C, OUT_PAD]
    b = jnp.pad(fc_bias.astype(jnp.float32),
                (0, OUT_PAD - NUM_CLASSES)).reshape(1, OUT_PAD)        # [1, OUT_PAD]

    itemsize = jnp.dtype(feats_nchw.dtype).itemsize
    tn = _pick_batch_tile(N, HW, itemsize)
    grid = (N // tn,)

    # Weight counted once (VMEM-resident, constant block index).
    cost = pl.CostEstimate(
        flops=2 * N * C * OUT_PAD + N * C * HW,
        transcendentals=0,
        bytes_accessed=(N * C * HW * itemsize
                        + C * OUT_PAD * 4
                        + OUT_PAD * 4
                        + N * OUT_PAD * 4),
    )

    out_padded = pl.pallas_call(
        head_kernel,
        out_shape=jax.ShapeDtypeStruct((N, OUT_PAD), jnp.float32),
        grid=grid,
        in_specs=[
            pl.BlockSpec((tn, C, HW), lambda n: (n, 0, 0)),
            pl.BlockSpec((C, OUT_PAD), lambda n: (0, 0)),   # constant index -> fetched once
            pl.BlockSpec((1, OUT_PAD), lambda n: (0, 0)),
        ],
        out_specs=pl.BlockSpec((tn, OUT_PAD), lambda n: (n, 0)),
        compiler_params=pltpu.CompilerParams(
            dimension_semantics=("parallel",),
            vmem_limit_bytes=VMEM_LIMIT_BYTES,
        ),
        cost_estimate=cost,
    )(x, w_t, b)

    return out_padded[:, :NUM_CLASSES]


def reference_forward(feats_nchw, fc_weight, fc_bias):
    """Pure-JAX reference of the same head (avgpool -> flatten -> linear)."""
    feat = jnp.mean(feats_nchw, axis=(2, 3))                 # [N, 2048]
    return feat @ fc_weight.T + fc_bias


if __name__ == "__main__":
    key = jax.random.PRNGKey(0)
    k_feat, k_w, k_b = jax.random.split(key, 3)

    # Small deterministic example: batch=2, backbone feature map [2, 2048, 4, 4].
    N, H, W = 2, 4, 4
    feats = jax.random.normal(k_feat, (N, FEAT_DIM, H, W), dtype=jnp.float32)

    # Deterministic fc parameters (kaiming-normal-ish weight; small random bias to
    # exercise the bias-add path — forward semantics are identical either way).
    std = (1.0 / FEAT_DIM) ** 0.5
    fc_weight = std * jax.random.normal(k_w, (NUM_CLASSES, FEAT_DIM), dtype=jnp.float32)
    fc_bias = 0.01 * jax.random.normal(k_b, (NUM_CLASSES,), dtype=jnp.float32)

    out = resnet_head_forward(feats, fc_weight, fc_bias)
    out = jax.block_until_ready(out)

    ref = reference_forward(feats, fc_weight, fc_bias)
    assert out.shape == (N, NUM_CLASSES)
    assert jnp.allclose(out, ref, atol=1e-4, rtol=1e-4), "mismatch vs reference"

    print("KERNEL_OK")
</pallas_src>

<mosaic_0001>
module attributes {stable_mosaic.version = 11 : i64} {
  func.func @head_kernel(%arg0: i32, %arg1: memref<2x2048x16xf32, #tpu.memory_space<vmem>>, %arg2: memref<2048x256xf32, #tpu.memory_space<vmem>>, %arg3: memref<1x256xf32, #tpu.memory_space<vmem>>, %arg4: memref<2x256xf32, #tpu.memory_space<vmem>>) attributes {dimension_semantics = [#tpu.dimension_semantics<parallel>], iteration_bounds = array<i64: 1>, scalar_prefetch = 0 : i64, scratch_operands = 0 : i64, tpu.core_type = #tpu.core_type<tc>, window_params = [{transform_indices = @transform_0, window_bounds = array<i64: 2, 2048, 16>}, {pipeline_mode = #tpu.pipeline_mode<synchronous>, transform_indices = @transform_1, window_bounds = array<i64: 2048, 256>}, {pipeline_mode = #tpu.pipeline_mode<synchronous>, transform_indices = @transform_2, window_bounds = array<i64: 1, 256>}, {transform_indices = @transform_3, window_bounds = array<i64: 2, 256>}]} {
    %c0 = arith.constant 0 : index
    %c0_0 = arith.constant 0 : index
    %c0_1 = arith.constant 0 : index
    %0 = vector.load %arg1[%c0, %c0_0, %c0_1] : memref<2x2048x16xf32, #tpu.memory_space<vmem>>, vector<2x2048x16xf32>
    %cst = arith.constant dense<0.000000e+00> : vector<2x2048xf32>
    %1 = vector.multi_reduction <add>, %0, %cst [2] : vector<2x2048x16xf32> to vector<2x2048xf32>
    %c0_2 = arith.constant 0 : index
    %c0_3 = arith.constant 0 : index
    %2 = vector.load %arg2[%c0_2, %c0_3] : memref<2048x256xf32, #tpu.memory_space<vmem>>, vector<2048x256xf32>
    %cst_4 = arith.constant dense<0.000000e+00> : vector<2x256xf32>
    %3 = tpu.matmul %1, %2, %cst_4 {dimension_numbers = #tpu.dot_dimension_numbers<[1], [0], [0], [1], [0, 0, 1, 1], [], []>} : vector<2x2048xf32>, vector<2048x256xf32>, vector<2x256xf32> -> vector<2x256xf32>
    %c0_5 = arith.constant 0 : index
    %c0_6 = arith.constant 0 : index
    %4 = vector.load %arg3[%c0_5, %c0_6] : memref<1x256xf32, #tpu.memory_space<vmem>>, vector<1x256xf32>
    %5 = vector.broadcast %4 : vector<1x256xf32> to vector<2x256xf32>
    %6 = arith.addf %3, %5 : vector<2x256xf32>
    %c0_7 = arith.constant 0 : index
    %c0_8 = arith.constant 0 : index
    %7 = vector.load %arg4[%c0_7, %c0_8] : memref<2x256xf32, #tpu.memory_space<vmem>>, vector<2x256xf32>
    tpu.vector_store %arg4[%c0_7, %c0_8], %6 {strides = array<i32>} : memref<2x256xf32, #tpu.memory_space<vmem>>, vector<2x256xf32>,
    return
  }
  func.func @transform_0(%arg0: i32) -> (i32, i32, i32) {
    %c0_i32 = arith.constant 0 : i32
    %c0_i32_0 = arith.constant 0 : i32
    %c0_i32_1 = arith.constant 0 : i32
    return %arg0, %c0_i32, %c0_i32_0 : i32, i32, i32
  }
  func.func @transform_1(%arg0: i32) -> (i32, i32) {
    %c0_i32 = arith.constant 0 : i32
    %c0_i32_0 = arith.constant 0 : i32
    %c0_i32_1 = arith.constant 0 : i32
    return %c0_i32, %c0_i32_0 : i32, i32
  }
  func.func @transform_2(%arg0: i32) -> (i32, i32) {
    %c0_i32 = arith.constant 0 : i32
    %c0_i32_0 = arith.constant 0 : i32
    %c0_i32_1 = arith.constant 0 : i32
    return %c0_i32, %c0_i32_0 : i32, i32
  }
  func.func @transform_3(%arg0: i32) -> (i32, i32) {
    %c0_i32 = arith.constant 0 : i32
    %c0_i32_0 = arith.constant 0 : i32
    return %arg0, %c0_i32 : i32, i32
  }
}

</mosaic_0001>

<bundles_post_ra>
// kernel: tpu_custom_call.1
= control target key start
LH: loop header
LB: loop body
LE: loop exit
PB: predicated region body
PF: predicated region fallthrough
CT: control target
= control target key end

     0   :  { %vm527_vm0 = vcmask 130048   ;;  %s12046_s0 = inlined_call_operand.vmem [shape: f32[2,2048,16], index: 0, kind: input, shape index: {}]   ;;  %s12047_s1 = inlined_call_operand.vmem [shape: f32[2048,256], index: 1, kind: input, shape index: {}]   ;;  %s12048_s2 = inlined_call_operand.vmem [shape: f32[1,256], index: 2, kind: input, shape index: {}]   ;;  %s12049_s3 = inlined_call_operand.hbm [shape: f32[2,256], index: 3, kind: output, shape index: {}]  }
   0x1   :  { %v17_v0 = vld [vmem:[%s12046_s0 + $0x10] sm:$0xff]  ;;  %v15_v1 = vld [vmem:[%s12046_s0] sm:$0xff]  ;;  %v18_v2 = vld [vmem:[%s12046_s0 + $0x18] sm:$0xff] }
   0x2   :  { %v534_v3 = vsel %vm527_vm0, %v17_v0, 0.0  ;;  %v528_v4 = vsel %vm527_vm0, %v15_v1, 0.0  ;;  %v16_v5 = vld [vmem:[%s12046_s0 + $0x8] sm:$0xff]  ;;  %v537_v6 = vsel %vm527_vm0, %v18_v2, 0.0  ;;  %v19_v9 = vld [vmem:[%s12046_s0 + $0x20] sm:$0xff]  ;;  %v22_v12 = vld [vmem:[%s12046_s0 + $0x38] sm:$0xff] }
   0x3   :  { %535 = vadd.xlane.f32.xlu1 %v534_v3  ;;  %529 = vadd.xlane.f32.xlu0 %v528_v4  ;;  %v531_v7 = vsel %vm527_vm0, %v16_v5, 0.0  ;;  %v20_v8 = vld [vmem:[%s12046_s0 + $0x28] sm:$0xff]  ;;  %v540_v11 = vsel %vm527_vm0, %v19_v9, 0.0  ;;  %v21_v13 = vld [vmem:[%s12046_s0 + $0x30] sm:$0xff]  ;;  %v549_v14 = vsel %vm527_vm0, %v22_v12, 0.0  ;;  %v23_v17 = vld [vmem:[%s12046_s0 + $0x40] sm:$0xff] }
   0x4   :  { %v543_v10 = vsel %vm527_vm0, %v20_v8, 0.0  ;;  %v546_v15 = vsel %vm527_vm0, %v21_v13, 0.0  ;;  %v24_v16 = vld [vmem:[%s12046_s0 + $0x48] sm:$0xff]  ;;  %v552_v19 = vsel %vm527_vm0, %v23_v17, 0.0  ;;  %v26_v20 = vld [vmem:[%s12046_s0 + $0x58] sm:$0xff]  ;;  %v25_v21 = vld [vmem:[%s12046_s0 + $0x50] sm:$0xff] }
   0x5   :  { %v555_v18 = vsel %vm527_vm0, %v24_v16, 0.0  ;;  %v561_v22 = vsel %vm527_vm0, %v26_v20, 0.0  ;;  %v558_v23 = vsel %vm527_vm0, %v25_v21, 0.0  ;;  %v28_v24 = vld [vmem:[%s12046_s0 + $0x68] sm:$0xff]  ;;  %v27_v25 = vld [vmem:[%s12046_s0 + $0x60] sm:$0xff]  ;;  %v30_v28 = vld [vmem:[%s12046_s0 + $0x78] sm:$0xff] }
   0x6   :  { %v567_v26 = vsel %vm527_vm0, %v28_v24, 0.0  ;;  %v564_v27 = vsel %vm527_vm0, %v27_v25, 0.0  ;;  %v29_v29 = vld [vmem:[%s12046_s0 + $0x70] sm:$0xff]  ;;  %v573_v30 = vsel %vm527_vm0, %v30_v28, 0.0 }
   0x7   :  { %538 = vadd.xlane.f32.xlu1 %v537_v6  ;;  %532 = vadd.xlane.f32.xlu0 %v531_v7  ;;  %v570_v31 = vsel %vm527_vm0, %v29_v29, 0.0 }
   0xb   :  { %544 = vadd.xlane.f32.xlu1 %v543_v10  ;;  %541 = vadd.xlane.f32.xlu0 %v540_v11 }
   0xf   :  { %550 = vadd.xlane.f32.xlu1 %v549_v14  ;;  %547 = vadd.xlane.f32.xlu0 %v546_v15 }
  0x13   :  { %556 = vadd.xlane.f32.xlu1 %v555_v18  ;;  %553 = vadd.xlane.f32.xlu0 %v552_v19 }
  0x17   :  { %562 = vadd.xlane.f32.xlu1 %v561_v22  ;;  %559 = vadd.xlane.f32.xlu0 %v558_v23 }
  0x1b   :  { %568 = vadd.xlane.f32.xlu1 %v567_v26  ;;  %565 = vadd.xlane.f32.xlu0 %v564_v27 }
  0x1c   :  { %8 = vsyncpa [#allocation3], 0  ;;  %v32_v32 = vld [vmem:[%s12046_s0 + $0x88] sm:$0xff]  ;;  %v31_v33 = vld [vmem:[%s12046_s0 + $0x80] sm:$0xff]  ;;  %vm3111_vm1 = vcmask 130112   ;;  %vm3118_vm2 = vcmask 195712  }
  0x1d   :  { %v579_v34 = vsel %vm527_vm0, %v32_v32, 0.0  ;;  %v576_v35 = vsel %vm527_vm0, %v31_v33, 0.0  ;;  %v34_v36 = vld [vmem:[%s12046_s0 + $0x98] sm:$0xff]  ;;  %v33_v37 = vld [vmem:[%s12046_s0 + $0x90] sm:$0xff]  ;;  %v36_v40 = vld [vmem:[%s12046_s0 + $0xa8] sm:$0xff]  ;;  %vm3125_vm3 = vcmask 261312  }
  0x1e   :  { %v585_v38 = vsel %vm527_vm0, %v34_v36, 0.0  ;;  %v582_v39 = vsel %vm527_vm0, %v33_v37, 0.0  ;;  %v35_v41 = vld [vmem:[%s12046_s0 + $0xa0] sm:$0xff]  ;;  %v591_v42 = vsel %vm527_vm0, %v36_v40, 0.0  ;;  %v38_v44 = vld [vmem:[%s12046_s0 + $0xb8] sm:$0xff]  ;;  %v37_v45 = vld [vmem:[%s12046_s0 + $0xb0] sm:$0xff] }
  0x1f   :  { %574 = vadd.xlane.f32.xlu1 %v573_v30  ;;  %571 = vadd.xlane.f32.xlu0 %v570_v31  ;;  %v588_v43 = vsel %vm527_vm0, %v35_v41, 0.0  ;;  %v597_v46 = vsel %vm527_vm0, %v38_v44, 0.0  ;;  %v594_v47 = vsel %vm527_vm0, %v37_v45, 0.0  ;;  %v40_v48 = vld [vmem:[%s12046_s0 + $0xc8] sm:$0xff]  ;;  %v39_v49 = vld [vmem:[%s12046_s0 + $0xc0] sm:$0xff]  ;;  %v42_v52 = vld [vmem:[%s12046_s0 + $0xd8] sm:$0xff] }
  0x20   :  { %v603_v50 = vsel %vm527_vm0, %v40_v48, 0.0  ;;  %v600_v51 = vsel %vm527_vm0, %v39_v49, 0.0  ;;  %v41_v53 = vld [vmem:[%s12046_s0 + $0xd0] sm:$0xff]  ;;  %v609_v54 = vsel %vm527_vm0, %v42_v52, 0.0  ;;  %v44_v56 = vld [vmem:[%s12046_s0 + $0xe8] sm:$0xff]  ;;  %v43_v57 = vld [vmem:[%s12046_s0 + $0xe0] sm:$0xff] }
  0x21   :  { %v606_v55 = vsel %vm527_vm0, %v41_v53, 0.0  ;;  %v615_v58 = vsel %vm527_vm0, %v44_v56, 0.0  ;;  %v612_v59 = vsel %vm527_vm0, %v43_v57, 0.0  ;;  %v46_v60 = vld [vmem:[%s12046_s0 + $0xf8] sm:$0xff]  ;;  %v45_v61 = vld [vmem:[%s12046_s0 + $0xf0] sm:$0xff]  ;;  %v48_v0 = vld [vmem:[%s12046_s0 + $0x108] sm:$0xff] }
  0x22   :  { %v621_v62 = vsel %vm527_vm0, %v46_v60, 0.0  ;;  %v618_v63 = vsel %vm527_vm0, %v45_v61, 0.0  ;;  %v47_v1 = vld [vmem:[%s12046_s0 + $0x100] sm:$0xff]  ;;  %v627_v2 = vsel %vm527_vm0, %v48_v0, 0.0  ;;  %v50_v4 = vld [vmem:[%s12046_s0 + $0x118] sm:$0xff]  ;;  %v49_v5 = vld [vmem:[%s12046_s0 + $0x110] sm:$0xff] }
  0x23   :  { %580 = vadd.xlane.f32.xlu1 %v579_v34  ;;  %577 = vadd.xlane.f32.xlu0 %v576_v35  ;;  %v624_v3 = vsel %vm527_vm0, %v47_v1, 0.0  ;;  %v633_v6 = vsel %vm527_vm0, %v50_v4, 0.0  ;;  %v630_v7 = vsel %vm527_vm0, %v49_v5, 0.0  ;;  %v52_v8 = vld [vmem:[%s12046_s0 + $0x128] sm:$0xff]  ;;  %v51_v9 = vld [vmem:[%s12046_s0 + $0x120] sm:$0xff]  ;;  %v54_v12 = vld [vmem:[%s12046_s0 + $0x138] sm:$0xff] }
  0x24   :  { %v639_v10 = vsel %vm527_vm0, %v52_v8, 0.0  ;;  %v636_v11 = vsel %vm527_vm0, %v51_v9, 0.0  ;;  %v53_v13 = vld [vmem:[%s12046_s0 + $0x130] sm:$0xff]  ;;  %v645_v14 = vsel %vm527_vm0, %v54_v12, 0.0  ;;  %v56_v16 = vld [vmem:[%s12046_s0 + $0x148] sm:$0xff]  ;;  %v55_v17 = vld [vmem:[%s12046_s0 + $0x140] sm:$0xff] }
  0x25   :  { %v642_v15 = vsel %vm527_vm0, %v53_v13, 0.0  ;;  %v651_v18 = vsel %vm527_vm0, %v56_v16, 0.0  ;;  %v648_v19 = vsel %vm527_vm0, %v55_v17, 0.0  ;;  %v58_v20 = vld [vmem:[%s12046_s0 + $0x158] sm:$0xff]  ;;  %v57_v21 = vld [vmem:[%s12046_s0 + $0x150] sm:$0xff]  ;;  %v60_v24 = vld [vmem:[%s12046_s0 + $0x168] sm:$0xff] }
  0x26   :  { %v657_v22 = vsel %vm527_vm0, %v58_v20, 0.0  ;;  %v654_v23 = vsel %vm527_vm0, %v57_v21, 0.0  ;;  %v59_v25 = vld [vmem:[%s12046_s0 + $0x160] sm:$0xff]  ;;  %v663_v26 = vsel %vm527_vm0, %v60_v24, 0.0  ;;  %v62_v28 = vld [vmem:[%s12046_s0 + $0x178] sm:$0xff]  ;;  %v61_v29 = vld [vmem:[%s12046_s0 + $0x170] sm:$0xff] }
  0x27   :  { %586 = vadd.xlane.f32.xlu1 %v585_v38  ;;  %583 = vadd.xlane.f32.xlu0 %v582_v39  ;;  %v660_v27 = vsel %vm527_vm0, %v59_v25, 0.0  ;;  %v669_v30 = vsel %vm527_vm0, %v62_v28, 0.0  ;;  %v666_v31 = vsel %vm527_vm0, %v61_v29, 0.0  ;;  %v64_v32 = vld [vmem:[%s12046_s0 + $0x188] sm:$0xff]  ;;  %v63_v33 = vld [vmem:[%s12046_s0 + $0x180] sm:$0xff]  ;;  %v66_v36 = vld [vmem:[%s12046_s0 + $0x198] sm:$0xff] }
  0x28   :  { %v675_v34 = vsel %vm527_vm0, %v64_v32, 0.0  ;;  %v672_v35 = vsel %vm527_vm0, %v63_v33, 0.0  ;;  %v65_v37 = vld [vmem:[%s12046_s0 + $0x190] sm:$0xff]  ;;  %v681_v38 = vsel %vm527_vm0, %v66_v36, 0.0  ;;  %v68_v40 = vld [vmem:[%s12046_s0 + $0x1a8] sm:$0xff]  ;;  %v67_v41 = vld [vmem:[%s12046_s0 + $0x1a0] sm:$0xff] }
  0x29   :  { %v678_v39 = vsel %vm527_vm0, %v65_v37, 0.0  ;;  %v70_v44 = vld [vmem:[%s12046_s0 + $0x1b8] sm:$0xff]  ;;  %v69_v45 = vld [vmem:[%s12046_s0 + $0x1b0] sm:$0xff]  ;;  %v72_v48 = vld [vmem:[%s12046_s0 + $0x1c8] sm:$0xff]  ;;  %vm12056_vm4 = vcmask 326912   ;;  %vm3139_vm5 = vcmask 392512  }
  0x2a   :  { %v71_v49 = vld [vmem:[%s12046_s0 + $0x1c0] sm:$0xff]  ;;  %v74_v52 = vld [vmem:[%s12046_s0 + $0x1d8] sm:$0xff]  ;;  %v73_v53 = vld [vmem:[%s12046_s0 + $0x1d0] sm:$0xff]  ;;  %vm3146_vm6 = vcmask 458112   ;;  %vm3153_vm7 = vcmask 523712   ;;  %vm3160_vm8 = vcmask 589312  }
  0x2b   :  { %592 = vadd.xlane.f32.xlu1 %v591_v42  ;;  %589 = vadd.xlane.f32.xlu0 %v588_v43  ;;  %v687_v42 = vsel %vm527_vm0, %v68_v40, 0.0  ;;  %v684_v43 = vsel %vm527_vm0, %v67_v41, 0.0  ;;  %v76_v56 = vld [vmem:[%s12046_s0 + $0x1e8] sm:$0xff]  ;;  %v75_v57 = vld [vmem:[%s12046_s0 + $0x1e0] sm:$0xff]  ;;  %v78_v60 = vld [vmem:[%s12046_s0 + $0x1f8] sm:$0xff]  ;;  %vm3167_vm9 = vcmask 654912  }
  0x2c   :  { %v77_v61 = vld [vmem:[%s12046_s0 + $0x1f0] sm:$0xff]  ;;  %v80_v0 = vld [vmem:[%s12046_s0 + $0x208] sm:$0xff]  ;;  %v79_v1 = vld [vmem:[%s12046_s0 + $0x200] sm:$0xff]  ;;  %vm3174_vm10 = vcmask 720512   ;;  %vm3181_vm11 = vcmask 786112   ;;  %vm3188_vm12 = vcmask 851712  }
  0x2d   :  { %v82_v4 = vld [vmem:[%s12046_s0 + $0x218] sm:$0xff]  ;;  %v81_v5 = vld [vmem:[%s12046_s0 + $0x210] sm:$0xff]  ;;  %v84_v8 = vld [vmem:[%s12046_s0 + $0x228] sm:$0xff]  ;;  %vm3195_vm13 = vcmask 917312   ;;  %vm12058_vm14 = vcmask 982912   ;;  %vm3209_vm15 = vcmask 1048512  }
  0x2e   :  { %v83_v9 = vld [vmem:[%s12046_s0 + $0x220] sm:$0xff]  ;;  %v86_v13 = vld [vmem:[%s12046_s0 + $0x238] sm:$0xff]  ;;  %s6841_s27 = smov [#allocation2]  }
  0x2f   :  { %598 = vadd.xlane.f32.xlu1 %v597_v46  ;;  %595 = vadd.xlane.f32.xlu0 %v594_v47  ;;  %v693_v46 = vsel %vm527_vm0, %v70_v44, 0.0  ;;  %v690_v47 = vsel %vm527_vm0, %v69_v45, 0.0  ;;  %v732_v12 = vsel %vm527_vm0, %v83_v9, 0.0  ;;  %v741_v16 = vsel %vm527_vm0, %v86_v13, 0.0  ;;  %v87_v20 = vld [vmem:[%s12046_s0 + $0x240] sm:$0xff]  ;;  %v90_v28 = vld [vmem:[%s12046_s0 + $0x258] sm:$0xff] }
  0x30   :  { %v753_v36 = vsel %vm527_vm0, %v90_v28, 0.0  ;;  %v95_v9 = vld [vmem:[%s12046_s0 + $0x280] sm:$0xff]  ;;  %s6279_s28 = sshll.u32 %s6841_s27, 4  ;;  %s6280_s28 = int_to_ptr.vmem [resolvable:$true] %s6279_s28 }
  0x31   :  { %s6817_s29 = scalar_lea.vmem %s6280_s28, 64  ;;  %p6822_p1 = scmp.lt.s32.totalorder %s6280_s28, %s6280_s28 }
  0x32   :  { %p6818_p0 = scmp.ne.s32.totalorder %s6280_s28, %s6817_s29  ;;  %p6823_p2 = scmp.lt.s32.totalorder %s6817_s29, %s6817_s29 }
  0x33   :  { %604 = vadd.xlane.f32.xlu1 %v603_v50  ;;  %601 = vadd.xlane.f32.xlu0 %v600_v51  ;;  %v699_v50 = vsel %vm527_vm0, %v72_v48, 0.0  ;;  %v696_v51 = vsel %vm527_vm0, %v71_v49, 0.0 }
  0x34   :  { %p6824_p3 = por %p6823_p2, %p6822_p1 }
  0x36   :  { %p6825_p4 = pnand %p6824_p3, %p6818_p0 }
  0x37   :  { %610 = vadd.xlane.f32.xlu1 %v609_v54  ;;  %607 = vadd.xlane.f32.xlu0 %v606_v55  ;;  %v705_v54 = vsel %vm527_vm0, %v74_v52, 0.0  ;;  %v702_v55 = vsel %vm527_vm0, %v73_v53, 0.0 }
  0x3b   :  { %616 = vadd.xlane.f32.xlu1 %v615_v58  ;;  %613 = vadd.xlane.f32.xlu0 %v612_v59  ;;  %v711_v58 = vsel %vm527_vm0, %v76_v56, 0.0  ;;  %v708_v59 = vsel %vm527_vm0, %v75_v57, 0.0  ;;  %v94_v57 = vld [vmem:[%s12046_s0 + $0x278] sm:$0xff] }
  0x3f   :  { %622 = vadd.xlane.f32.xlu1 %v621_v62  ;;  %619 = vadd.xlane.f32.xlu0 %v618_v63  ;;  %v717_v62 = vsel %vm527_vm0, %v78_v60, 0.0  ;;  %v714_v63 = vsel %vm527_vm0, %v77_v61, 0.0 }
  0x43   :  { %628 = vadd.xlane.f32.xlu1 %v627_v2  ;;  %625 = vadd.xlane.f32.xlu0 %v624_v3  ;;  %v723_v2 = vsel %vm527_vm0, %v80_v0, 0.0  ;;  %v720_v3 = vsel %vm527_vm0, %v79_v1, 0.0 }
  0x47   :  { %634 = vadd.xlane.f32.xlu1 %v633_v6  ;;  %631 = vadd.xlane.f32.xlu0 %v630_v7  ;;  %v729_v6 = vsel %vm527_vm0, %v82_v4, 0.0  ;;  %v726_v7 = vsel %vm527_vm0, %v81_v5, 0.0 }
  0x4b   :  { %640 = vadd.xlane.f32.xlu1 %v639_v10  ;;  %637 = vadd.xlane.f32.xlu0 %v636_v11  ;;  %v2578_v10 = vlaneseq  ;;  %v735_v11 = vsel %vm527_vm0, %v84_v8, 0.0  ;;  %v96_v8 = vld [vmem:[%s12046_s0 + $0x288] sm:$0xff] }
  0x4f   :  { %646 = vadd.xlane.f32.xlu1 %v645_v14  ;;  %643 = vadd.xlane.f32.xlu0 %v642_v15  ;;  %v85_v14 = vld [vmem:[%s12046_s0 + $0x230] sm:$0xff]  ;;  %v7148_v15 = vand.u32 127, %v2578_v10 }
  0x50   :  { %v738_v17 = vsel %vm527_vm0, %v85_v14, 0.0 }
  0x51   :  { %v3120_v21 = vadd.s32 4294967272, %v7148_v15  ;;  %v3134_v29 = vadd.s32 4294967256, %v7148_v15  ;;  %v3148_v44 = vadd.s32 4294967240, %v7148_v15  ;;  %v3141_v48 = vadd.s32 4294967248, %v7148_v15 }
  0x52   :  { %v3155_v60 = vadd.s32 4294967232, %v7148_v15  ;;  %v3169_v14 = vadd.s32 4294967216, %v7148_v15 }
  0x53   :  { %652 = vadd.xlane.f32.xlu1 %v651_v18  ;;  %649 = vadd.xlane.f32.xlu0 %v648_v19  ;;  %v7152_v18 = vshrl.u32 %v2578_v10, 7  ;;  %v88_v19 = vld [vmem:[%s12046_s0 + $0x248] sm:$0xff]  ;;  %v3176_v10 = vadd.s32 4294967208, %v7148_v15 }
  0x55   :  { %12059 = vst [vmem:[#allocation5_spill] sm:$0xff] %v7152_v18  ;;  %v7175_v32 = vsub.s32 %v3120_v21, %v7152_v18  ;;  %v7189_v40 = vsub.s32 %v3134_v29, %v7152_v18  ;;  %v7211_v56 = vsub.s32 %v3148_v44, %v7152_v18  ;;  %v7225_v0 = vsub.s32 %v3141_v48, %v7152_v18  ;;  %v100_v48 = vld [vmem:[%s12046_s0 + $0x2a8] sm:$0xff] }
  0x56   :  { %v7244_v13 = vsub.s32 %v3155_v60, %v7152_v18  ;;  %v7264_v29 = vsub.s32 %v3169_v14, %v7152_v18  ;;  %v3197_v44 = vadd.s32 4294967184, %v7148_v15 }
  0x57   :  { %658 = vadd.xlane.f32.xlu1 %v657_v22  ;;  %655 = vadd.xlane.f32.xlu0 %v654_v23  ;;  %v3106_v22 = vadd.s32 4294967288, %v7148_v15  ;;  %v3113_v23 = vadd.s32 4294967280, %v7148_v15  ;;  %12060 = vst [vmem:[#allocation6_spill] sm:$0xff] %v7175_v32 }
  0x59   :  { %v7178_v33 = vsub.s32 %v3106_v22, %v7152_v18 }
  0x5b   :  { %664 = vadd.xlane.f32.xlu1 %v663_v26  ;;  %661 = vadd.xlane.f32.xlu0 %v660_v27  ;;  %v747_v26 = vsel %vm527_vm0, %v88_v19, 0.0  ;;  %v744_v27 = vsel %vm527_vm0, %v87_v20, 0.0  ;;  %v768_v19 = vsel %vm527_vm0, %v95_v9, 0.0  ;;  %v104_v9 = vld [vmem:[%s12046_s0 + $0x2c8] sm:$0xff] }
  0x5f   :  { %670 = vadd.xlane.f32.xlu1 %v669_v30  ;;  %667 = vadd.xlane.f32.xlu0 %v666_v31  ;;  %v3127_v30 = vadd.s32 4294967264, %v7148_v15  ;;  %v7172_v31 = vsub.s32 %v7148_v15, %v7152_v18 }
  0x61   :  { %v7192_v41 = vsub.s32 %v3127_v30, %v7152_v18  ;;  %v3190_v30 = vadd.s32 4294967192, %v7148_v15 }
  0x63   :  { %676 = vadd.xlane.f32.xlu1 %v675_v34  ;;  %673 = vadd.xlane.f32.xlu0 %v672_v35  ;;  %v89_v34 = vld [vmem:[%s12046_s0 + $0x250] sm:$0xff]  ;;  %v7184_v35 = vsub.s32 %v3113_v23, %v7152_v18  ;;  %12061 = vst [vmem:[#allocation7_spill] sm:$0xff] %v7192_v41  ;;  %v7252_v23 = vsub.s32 %v3176_v10, %v7152_v18  ;;  %v103_v10 = vld [vmem:[%s12046_s0 + $0x2c0] sm:$0xff] }
  0x67   :  { %682 = vadd.xlane.f32.xlu1 %v681_v38  ;;  %679 = vadd.xlane.f32.xlu0 %v678_v39  ;;  %v750_v39 = vsel %vm527_vm0, %v89_v34, 0.0 }
  0x6b   :  { %688 = vadd.xlane.f32.xlu1 %v687_v42  ;;  %685 = vadd.xlane.f32.xlu0 %v684_v43  ;;  %v92_v42 = vld [vmem:[%s12046_s0 + $0x268] sm:$0xff]  ;;  %v91_v43 = vld [vmem:[%s12046_s0 + $0x260] sm:$0xff] }
  0x6c   :  { %v756_v52 = vsel %vm527_vm0, %v91_v43, 0.0 }
  0x6f   :  { %694 = vadd.xlane.f32.xlu1 %v693_v46  ;;  %691 = vadd.xlane.f32.xlu0 %v690_v47 }
  0x73   :  { %700 = vadd.xlane.f32.xlu1 %v699_v50  ;;  %697 = vadd.xlane.f32.xlu0 %v696_v51  ;;  %v759_v51 = vsel %vm527_vm0, %v92_v42, 0.0 }
  0x77   :  { %706 = vadd.xlane.f32.xlu1 %v705_v54  ;;  %703 = vadd.xlane.f32.xlu0 %v702_v55 }
  0x7b   :  { %712 = vadd.xlane.f32.xlu1 %v711_v58  ;;  %709 = vadd.xlane.f32.xlu0 %v708_v59  ;;  %v93_v58 = vld [vmem:[%s12046_s0 + $0x270] sm:$0xff]  ;;  %v3162_v59 = vadd.s32 4294967224, %v7148_v15 }
  0x7f   :  { %718 = vadd.xlane.f32.xlu1 %v717_v62  ;;  %715 = vadd.xlane.f32.xlu0 %v714_v63 }
  0x83   :  { %724 = vadd.xlane.f32.xlu1 %v723_v2  ;;  %721 = vadd.xlane.f32.xlu0 %v720_v3  ;;  %v765_v2 = vsel %vm527_vm0, %v94_v57, 0.0  ;;  %v762_v3 = vsel %vm527_vm0, %v93_v58, 0.0  ;;  %v7292_v58 = vsub.s32 %v3197_v44, %v7152_v18 }
  0x87   :  { %730 = vadd.xlane.f32.xlu1 %v729_v6  ;;  %727 = vadd.xlane.f32.xlu0 %v726_v7  ;;  %v7232_v7 = vsub.s32 %v3162_v59, %v7152_v18 }
  0x8b   :  { %736 = vadd.xlane.f32.xlu1 %v735_v11  ;;  %733 = vadd.xlane.f32.xlu0 %v732_v12 }
  0x8f   :  { %742 = vadd.xlane.f32.xlu1 %v741_v16  ;;  %739 = vadd.xlane.f32.xlu0 %v738_v17  ;;  %v771_v17 = vsel %vm527_vm0, %v96_v8, 0.0 }
  0x90   :  { %v536_v24 = vpop.xlane.xlu1 %535  ;;  %v530_v25 = vpop.xlane.xlu0 %529 }
  0x91   :  { %v3105_v45 = vrot.slane %v530_v25, %v7172_v31  ;;  %v3117_v49 = vrot.slane %v536_v24, %v7184_v35  ;;  %v98_v24 = vld [vmem:[%s12046_s0 + $0x298] sm:$0xff]  ;;  %v97_v25 = vld [vmem:[%s12046_s0 + $0x290] sm:$0xff] }
  0x93   :  { %748 = vadd.xlane.f32.xlu1 %v747_v26  ;;  %745 = vadd.xlane.f32.xlu0 %v744_v27  ;;  %v3183_v26 = vadd.s32 4294967200, %v7148_v15 }
  0x94   :  { %v539_v37 = vpop.xlane.xlu1 %538  ;;  %v533_v38 = vpop.xlane.xlu0 %532 }
  0x95   :  { %v3124_v46 = vrot.slane %v539_v37, %v7175_v32  ;;  %v3110_v47 = vrot.slane %v533_v38, %v7178_v33  ;;  %v774_v37 = vsel %vm527_vm0, %v97_v25, 0.0  ;;  %v7272_v43 = vsub.s32 %v3183_v26, %v7152_v18 }
  0x97   :  { %v3112_v50 = vsel %vm3111_vm1, %v3110_v47, %v3105_v45  ;;  %754 = vadd.xlane.f32.xlu1 %v753_v36  ;;  %751 = vadd.xlane.f32.xlu0 %v750_v39  ;;  %v777_v36 = vsel %vm527_vm0, %v98_v24, 0.0  ;;  %v7278_v47 = vsub.s32 %v3190_v30, %v7152_v18  ;;  %v105_v24 = vld [vmem:[%s12046_s0 + $0x2d0] sm:$0xff] }
  0x98   :  { %v3119_v53 = vsel %vm3118_vm2, %v3117_v49, %v3112_v50  ;;  %v545_v54 = vpop.xlane.xlu1 %544  ;;  %v542_v55 = vpop.xlane.xlu0 %541  ;;  %v99_v49 = vld [vmem:[%s12046_s0 + $0x2a0] sm:$0xff]  ;;  %v3204_v50 = vadd.s32 4294967176, %v7148_v15  ;;  %v798_v30 = vsel %vm527_vm0, %v105_v24, 0.0 }
  0x99   :  { %v3138_v61 = vrot.slane %v545_v54, %v7189_v40  ;;  %v3126_v62 = vsel %vm3125_vm3, %v3124_v46, %v3119_v53  ;;  %v3131_v63 = vrot.slane %v542_v55, %v7192_v41  ;;  %v783_v55 = vsel %vm527_vm0, %v100_v48, 0.0 }
  0x9a   :  { %v780_v57 = vsel %vm527_vm0, %v99_v49, 0.0  ;;  %v7297_v60 = vsub.s32 %v3204_v50, %v7152_v18 }
  0x9b   :  { %v3133_v1 = vsel %vm12056_vm4, %v3131_v63, %v3126_v62  ;;  %760 = vadd.xlane.f32.xlu1 %v759_v51  ;;  %757 = vadd.xlane.f32.xlu0 %v756_v52  ;;  %v101_v62 = vld [vmem:[%s12046_s0 + $0x2b0] sm:$0xff] }
  0x9c   :  { %v551_v4 = vpop.xlane.xlu1 %550  ;;  %v3140_v5 = vsel %vm3139_vm5, %v3138_v61, %v3133_v1  ;;  %v548_v6 = vpop.xlane.xlu0 %547  ;;  %v102_v61 = vld [vmem:[%s12046_s0 + $0x2b8] sm:$0xff] }
  0x9d   :  { %v3152_v11 = vrot.slane %v551_v4, %v7211_v56  ;;  %v3145_v12 = vrot.slane %v548_v6, %v7225_v0  ;;  %v786_v4 = vsel %vm527_vm0, %v101_v62, 0.0 }
  0x9f   :  { %v3147_v16 = vsel %vm3146_vm6, %v3145_v12, %v3140_v5  ;;  %766 = vadd.xlane.f32.xlu1 %v765_v2  ;;  %763 = vadd.xlane.f32.xlu0 %v762_v3  ;;  %v789_v3 = vsel %vm527_vm0, %v102_v61, 0.0 }
  0xa0   :  { %v557_v20 = vpop.xlane.xlu1 %556  ;;  %v3154_v21 = vsel %vm3153_vm7, %v3152_v11, %v3147_v16  ;;  %v554_v22 = vpop.xlane.xlu0 %553  ;;  %v795_v16 = vsel %vm527_vm0, %v104_v9, 0.0 }
  0xa1   :  { %v3166_v27 = vrot.slane %v557_v20, %v7232_v7  ;;  %v3159_v28 = vrot.slane %v554_v22, %v7244_v13  ;;  %v106_v22 = vld [vmem:[%s12046_s0 + $0x2d8] sm:$0xff] }
  0xa3   :  { %v3161_v34 = vsel %vm3160_vm8, %v3159_v28, %v3154_v21  ;;  %772 = vadd.xlane.f32.xlu1 %v771_v17  ;;  %769 = vadd.xlane.f32.xlu0 %v768_v19  ;;  %v792_v17 = vsel %vm527_vm0, %v103_v10, 0.0  ;;  %v801_v28 = vsel %vm527_vm0, %v106_v22, 0.0 }
  0xa4   :  { %v563_v38 = vpop.xlane.xlu1 %562  ;;  %v3168_v39 = vsel %vm3167_vm9, %v3166_v27, %v3161_v34  ;;  %v560_v42 = vpop.xlane.xlu0 %559 }
  0xa5   :  { %v3180_v45 = vrot.slane %v563_v38, %v7252_v23  ;;  %v3173_v46 = vrot.slane %v560_v42, %v7264_v29  ;;  %v107_v38 = vld [vmem:[%s12046_s0 + $0x2e0] sm:$0xff] }
  0xa6   :  { %v804_v48 = vsel %vm527_vm0, %v107_v38, 0.0 }
  0xa7   :  { %v3175_v51 = vsel %vm3174_vm10, %v3173_v46, %v3168_v39  ;;  %778 = vadd.xlane.f32.xlu1 %v777_v36  ;;  %775 = vadd.xlane.f32.xlu0 %v774_v37  ;;  %v108_v37 = vld [vmem:[%s12046_s0 + $0x2e8] sm:$0xff] }
  0xa8   :  { %v569_v52 = vpop.xlane.xlu1 %568  ;;  %v3182_v53 = vsel %vm3181_vm11, %v3180_v45, %v3175_v51  ;;  %v566_v54 = vpop.xlane.xlu0 %565  ;;  %v807_v46 = vsel %vm527_vm0, %v108_v37, 0.0  ;;  %v110_v51 = vld [vmem:[%s12046_s0 + $0x2f8] sm:$0xff] }
  0xa9   :  { %v3194_v59 = vrot.slane %v569_v52, %v7278_v47  ;;  %v3187_v15 = vrot.slane %v566_v54, %v7272_v43  ;;  %v109_v52 = vld [vmem:[%s12046_s0 + $0x2f0] sm:$0xff] }
  0xab   :  { %v3189_v63 = vsel %vm3188_vm12, %v3187_v15, %v3182_v53  ;;  %784 = vadd.xlane.f32.xlu1 %v783_v55  ;;  %781 = vadd.xlane.f32.xlu0 %v780_v57  ;;  %v810_v15 = vsel %vm527_vm0, %v109_v52, 0.0 }
  0xac   :  { %v575_v1 = vpop.xlane.xlu1 %574  ;;  %v572_v2 = vpop.xlane.xlu0 %571  ;;  %v3196_v5 = vsel %vm3195_vm13, %v3194_v59, %v3189_v63  ;;  %v813_v59 = vsel %vm527_vm0, %v110_v51, 0.0  ;;  %v112_v63 = vld [vmem:[%s12046_s0 + $0x308] sm:$0xff] }
  0xad   :  { %v3208_v6 = vrot.slane %v575_v1, %v7297_v60  ;;  %v3201_v8 = vrot.slane %v572_v2, %v7292_v58  ;;  %v111_v1 = vld [vmem:[%s12046_s0 + $0x300] sm:$0xff] }
  0xaf   :  { %790 = vadd.xlane.f32.xlu1 %v789_v3  ;;  %787 = vadd.xlane.f32.xlu0 %v786_v4  ;;  %v3203_v11 = vsel %vm12058_vm14, %v3201_v8, %v3196_v5  ;;  %v816_v8 = vsel %vm527_vm0, %v111_v1, 0.0 }
  0xb0   :  { %v581_v12 = vpop.xlane.xlu1 %580  ;;  %v578_v14 = vpop.xlane.xlu0 %577  ;;  %v7321_v19 = vsel %vm3209_vm15, %v3208_v6, %v3203_v11  ;;  %v819_v6 = vsel %vm527_vm0, %v112_v63, 0.0  ;;  %v114_v11 = vld [vmem:[%s12046_s0 + $0x318] sm:$0xff] }
  0xb1   :  { %v3218_v20 = vrot.slane %v581_v12, %v7178_v33  ;;  %v3214_v21 = vrot.slane %v578_v14, %v7172_v31  ;;  %v113_v12 = vld [vmem:[%s12046_s0 + $0x310] sm:$0xff] }
  0xb2   :  { %v822_v22 = vsel %vm527_vm0, %v113_v12, 0.0 }
  0xb3   :  { %v3219_v25 = vsel %vm3111_vm1, %v3218_v20, %v3214_v21  ;;  %796 = vadd.xlane.f32.xlu1 %v795_v16  ;;  %793 = vadd.xlane.f32.xlu0 %v792_v17  ;;  %v825_v21 = vsel %vm527_vm0, %v114_v11, 0.0 }
  0xb4   :  { %v587_v26 = vpop.xlane.xlu1 %586  ;;  %v584_v27 = vpop.xlane.xlu0 %583 }
  0xb5   :  { %v3228_v34 = vrot.slane %v587_v26, %v7175_v32  ;;  %v3223_v36 = vrot.slane %v584_v27, %v7184_v35  ;;  %v116_v26 = vld [vmem:[%s12046_s0 + $0x328] sm:$0xff]  ;;  %v115_v27 = vld [vmem:[%s12046_s0 + $0x320] sm:$0xff] }
  0xb6   :  { %v831_v37 = vsel %vm527_vm0, %v116_v26, 0.0  ;;  %v828_v38 = vsel %vm527_vm0, %v115_v27, 0.0 }
  0xb7   :  { %v3224_v39 = vsel %vm3118_vm2, %v3223_v36, %v3219_v25  ;;  %802 = vadd.xlane.f32.xlu1 %v801_v28  ;;  %799 = vadd.xlane.f32.xlu0 %v798_v30 }
  0xb8   :  { %v593_v42 = vpop.xlane.xlu1 %592  ;;  %v3229_v44 = vsel %vm3125_vm3, %v3228_v34, %v3224_v39  ;;  %v590_v45 = vpop.xlane.xlu0 %589 }
  0xb9   :  { %v3238_v49 = vrot.slane %v593_v42, %v7189_v40  ;;  %v3233_v50 = vrot.slane %v590_v45, %v7192_v41  ;;  %v117_v45 = vld [vmem:[%s12046_s0 + $0x330] sm:$0xff] }
  0xba   :  { %v834_v51 = vsel %vm527_vm0, %v117_v45, 0.0 }
  0xbb   :  { %v3234_v53 = vsel %vm12056_vm4, %v3233_v50, %v3229_v44  ;;  %808 = vadd.xlane.f32.xlu1 %v807_v46  ;;  %805 = vadd.xlane.f32.xlu0 %v804_v48  ;;  %v118_v44 = vld [vmem:[%s12046_s0 + $0x338] sm:$0xff] }
  0xbc   :  { %v599_v54 = vpop.xlane.xlu1 %598  ;;  %v3239_v55 = vsel %vm3139_vm5, %v3238_v49, %v3234_v53  ;;  %v596_v57 = vpop.xlane.xlu0 %595  ;;  %v837_v50 = vsel %vm527_vm0, %v118_v44, 0.0 }
  0xbd   :  { %v3248_v61 = vrot.slane %v599_v54, %v7211_v56  ;;  %v3243_v62 = vrot.slane %v596_v57, %v7225_v0  ;;  %v119_v57 = vld [vmem:[%s12046_s0 + $0x340] sm:$0xff] }
  0xbe   :  { %v840_v63 = vsel %vm527_vm0, %v119_v57, 0.0 }
  0xbf   :  { %v3244_v2 = vsel %vm3146_vm6, %v3243_v62, %v3239_v55  ;;  %814 = vadd.xlane.f32.xlu1 %v813_v59  ;;  %811 = vadd.xlane.f32.xlu0 %v810_v15  ;;  %v120_v55 = vld [vmem:[%s12046_s0 + $0x348] sm:$0xff] }
  0xc0   :  { %v605_v3 = vpop.xlane.xlu1 %604  ;;  %v3249_v4 = vsel %vm3153_vm7, %v3248_v61, %v3244_v2  ;;  %v602_v5 = vpop.xlane.xlu0 %601  ;;  %v843_v62 = vsel %vm527_vm0, %v120_v55, 0.0 }
  0xc1   :  { %v3258_v9 = vrot.slane %v605_v3, %v7232_v7  ;;  %v3253_v10 = vrot.slane %v602_v5, %v7244_v13  ;;  %v121_v5 = vld [vmem:[%s12046_s0 + $0x350] sm:$0xff] }
  0xc2   :  { %v846_v11 = vsel %vm527_vm0, %v121_v5, 0.0 }
  0xc3   :  { %v3254_v14 = vsel %vm3160_vm8, %v3253_v10, %v3249_v4  ;;  %820 = vadd.xlane.f32.xlu1 %v819_v6  ;;  %817 = vadd.xlane.f32.xlu0 %v816_v8  ;;  %v122_v4 = vld [vmem:[%s12046_s0 + $0x358] sm:$0xff] }
  0xc4   :  { %v611_v16 = vpop.xlane.xlu1 %610  ;;  %v3259_v17 = vsel %vm3167_vm9, %v3258_v9, %v3254_v14  ;;  %v608_v20 = vpop.xlane.xlu0 %607  ;;  %v849_v10 = vsel %vm527_vm0, %v122_v4, 0.0 }
  0xc5   :  { %v3268_v24 = vrot.slane %v611_v16, %v7252_v23  ;;  %v3263_v25 = vrot.slane %v608_v20, %v7264_v29  ;;  %v124_v16 = vld [vmem:[%s12046_s0 + $0x368] sm:$0xff] }
  0xc7   :  { %v3264_v28 = vsel %vm3174_vm10, %v3263_v25, %v3259_v17  ;;  %826 = vadd.xlane.f32.xlu1 %v825_v21  ;;  %823 = vadd.xlane.f32.xlu0 %v822_v22  ;;  %v123_v17 = vld [vmem:[%s12046_s0 + $0x360] sm:$0xff]  ;;  %v855_v25 = vsel %vm527_vm0, %v124_v16, 0.0 }
  0xc8   :  { %v617_v30 = vpop.xlane.xlu1 %616  ;;  %v3269_v34 = vsel %vm3181_vm11, %v3268_v24, %v3264_v28  ;;  %v614_v36 = vpop.xlane.xlu0 %613  ;;  %v852_v26 = vsel %vm527_vm0, %v123_v17, 0.0 }
  0xc9   :  { %v3278_v39 = vrot.slane %v617_v30, %v7278_v47  ;;  %v3273_v42 = vrot.slane %v614_v36, %v7272_v43  ;;  %v126_v30 = vld [vmem:[%s12046_s0 + $0x378] sm:$0xff] }
  0xcb   :  { %v3274_v46 = vsel %vm3188_vm12, %v3273_v42, %v3269_v34  ;;  %832 = vadd.xlane.f32.xlu1 %v831_v37  ;;  %829 = vadd.xlane.f32.xlu0 %v828_v38  ;;  %v125_v34 = vld [vmem:[%s12046_s0 + $0x370] sm:$0xff]  ;;  %v861_v42 = vsel %vm527_vm0, %v126_v30, 0.0 }
  0xcc   :  { %v623_v48 = vpop.xlane.xlu1 %622  ;;  %v620_v49 = vpop.xlane.xlu0 %619  ;;  %v3279_v52 = vsel %vm3195_vm13, %v3278_v39, %v3274_v46  ;;  %v858_v44 = vsel %vm527_vm0, %v125_v34, 0.0 }
  0xcd   :  { %v3288_v53 = vrot.slane %v623_v48, %v7297_v60  ;;  %v3283_v54 = vrot.slane %v620_v49, %v7292_v58  ;;  %v128_v48 = vld [vmem:[%s12046_s0 + $0x388] sm:$0xff]  ;;  %v127_v49 = vld [vmem:[%s12046_s0 + $0x380] sm:$0xff] }
  0xce   :  { %v864_v55 = vsel %vm527_vm0, %v127_v49, 0.0 }
  0xcf   :  { %838 = vadd.xlane.f32.xlu1 %v837_v50  ;;  %835 = vadd.xlane.f32.xlu0 %v834_v51  ;;  %v3284_v59 = vsel %vm12058_vm14, %v3283_v54, %v3279_v52  ;;  %v867_v54 = vsel %vm527_vm0, %v128_v48, 0.0 }
  0xd0   :  { %v629_v15 = vpop.xlane.xlu1 %628  ;;  %v626_v61 = vpop.xlane.xlu0 %625  ;;  %v7418_v1 = vsel %vm3209_vm15, %v3288_v53, %v3284_v59 }
  0xd1   :  { %v3297_v2 = vrot.slane %v629_v15, %v7178_v33  ;;  %v3293_v3 = vrot.slane %v626_v61, %v7172_v31  ;;  %v130_v15 = vld [vmem:[%s12046_s0 + $0x398] sm:$0xff]  ;;  %v129_v61 = vld [vmem:[%s12046_s0 + $0x390] sm:$0xff] }
  0xd2   :  { %v873_v4 = vsel %vm527_vm0, %v130_v15, 0.0  ;;  %v870_v5 = vsel %vm527_vm0, %v129_v61, 0.0 }
  0xd3   :  { %v3298_v6 = vsel %vm3111_vm1, %v3297_v2, %v3293_v3  ;;  %844 = vadd.xlane.f32.xlu1 %v843_v62  ;;  %841 = vadd.xlane.f32.xlu0 %v840_v63 }
  0xd4   :  { %v635_v8 = vpop.xlane.xlu1 %634  ;;  %v632_v9 = vpop.xlane.xlu0 %631 }
  0xd5   :  { %v3307_v12 = vrot.slane %v635_v8, %v7175_v32  ;;  %v3302_v14 = vrot.slane %v632_v9, %v7184_v35  ;;  %v132_v9 = vld [vmem:[%s12046_s0 + $0x3a8] sm:$0xff] }
  0xd6   :  { %v879_v17 = vsel %vm527_vm0, %v132_v9, 0.0 }
  0xd7   :  { %v3303_v20 = vsel %vm3118_vm2, %v3302_v14, %v3298_v6  ;;  %850 = vadd.xlane.f32.xlu1 %v849_v10  ;;  %847 = vadd.xlane.f32.xlu0 %v846_v11  ;;  %v131_v10 = vld [vmem:[%s12046_s0 + $0x3a0] sm:$0xff] }
  0xd8   :  { %v641_v21 = vpop.xlane.xlu1 %640  ;;  %v3308_v22 = vsel %vm3125_vm3, %v3307_v12, %v3303_v20  ;;  %v638_v24 = vpop.xlane.xlu0 %637  ;;  %v876_v20 = vsel %vm527_vm0, %v131_v10, 0.0 }
  0xd9   :  { %v3317_v27 = vrot.slane %v641_v21, %v7189_v40  ;;  %v3312_v28 = vrot.slane %v638_v24, %v7192_v41  ;;  %v134_v24 = vld [vmem:[%s12046_s0 + $0x3b8] sm:$0xff] }
  0xda   :  { %v885_v34 = vsel %vm527_vm0, %v134_v24, 0.0 }
  0xdb   :  { %v3313_v36 = vsel %vm12056_vm4, %v3312_v28, %v3308_v22  ;;  %856 = vadd.xlane.f32.xlu1 %v855_v25  ;;  %853 = vadd.xlane.f32.xlu0 %v852_v26  ;;  %v133_v25 = vld [vmem:[%s12046_s0 + $0x3b0] sm:$0xff] }
  0xdc   :  { %v647_v37 = vpop.xlane.xlu1 %646  ;;  %v3318_v38 = vsel %vm3139_vm5, %v3317_v27, %v3313_v36  ;;  %v644_v39 = vpop.xlane.xlu0 %643  ;;  %v882_v36 = vsel %vm527_vm0, %v133_v25, 0.0 }
  0xdd   :  { %v3327_v45 = vrot.slane %v647_v37, %v7211_v56  ;;  %v3322_v46 = vrot.slane %v644_v39, %v7225_v0  ;;  %v136_v39 = vld [vmem:[%s12046_s0 + $0x3c8] sm:$0xff] }
  0xde   :  { %v891_v48 = vsel %vm527_vm0, %v136_v39, 0.0 }
  0xdf   :  { %v3323_v50 = vsel %vm3146_vm6, %v3322_v46, %v3318_v38  ;;  %862 = vadd.xlane.f32.xlu1 %v861_v42  ;;  %859 = vadd.xlane.f32.xlu0 %v858_v44  ;;  %v135_v42 = vld [vmem:[%s12046_s0 + $0x3c0] sm:$0xff] }
  0xe0   :  { %v653_v51 = vpop.xlane.xlu1 %652  ;;  %v3328_v52 = vsel %vm3153_vm7, %v3327_v45, %v3323_v50  ;;  %v650_v53 = vpop.xlane.xlu0 %649  ;;  %v888_v49 = vsel %vm527_vm0, %v135_v42, 0.0 }
  0xe1   :  { %v3337_v57 = vrot.slane %v653_v51, %v7232_v7  ;;  %v3332_v59 = vrot.slane %v650_v53, %v7244_v13  ;;  %v138_v53 = vld [vmem:[%s12046_s0 + $0x3d8] sm:$0xff] }
  0xe2   :  { %v897_v15 = vsel %vm527_vm0, %v138_v53, 0.0 }
  0xe3   :  { %v3333_v62 = vsel %vm3160_vm8, %v3332_v59, %v3328_v52  ;;  %868 = vadd.xlane.f32.xlu1 %v867_v54  ;;  %865 = vadd.xlane.f32.xlu0 %v864_v55  ;;  %v137_v54 = vld [vmem:[%s12046_s0 + $0x3d0] sm:$0xff] }
  0xe4   :  { %v659_v63 = vpop.xlane.xlu1 %658  ;;  %v3338_v2 = vsel %vm3167_vm9, %v3337_v57, %v3333_v62  ;;  %v656_v3 = vpop.xlane.xlu0 %655  ;;  %v894_v61 = vsel %vm527_vm0, %v137_v54, 0.0 }
  0xe5   :  { %v3347_v6 = vrot.slane %v659_v63, %v7252_v23  ;;  %v3342_v8 = vrot.slane %v656_v3, %v7264_v29  ;;  %v139_v3 = vld [vmem:[%s12046_s0 + $0x3e0] sm:$0xff] }
  0xe6   :  { %v900_v10 = vsel %vm527_vm0, %v139_v3, 0.0 }
  0xe7   :  { %v3343_v11 = vsel %vm3174_vm10, %v3342_v8, %v3338_v2  ;;  %874 = vadd.xlane.f32.xlu1 %v873_v4  ;;  %871 = vadd.xlane.f32.xlu0 %v870_v5  ;;  %v140_v2 = vld [vmem:[%s12046_s0 + $0x3e8] sm:$0xff] }
  0xe8   :  { %v665_v12 = vpop.xlane.xlu1 %664  ;;  %v3348_v14 = vsel %vm3181_vm11, %v3347_v6, %v3343_v11  ;;  %v662_v16 = vpop.xlane.xlu0 %661  ;;  %v903_v9 = vsel %vm527_vm0, %v140_v2, 0.0 }
  0xe9   :  { %v3357_v21 = vrot.slane %v665_v12, %v7278_v47  ;;  %v3352_v22 = vrot.slane %v662_v16, %v7272_v43  ;;  %v141_v16 = vld [vmem:[%s12046_s0 + $0x3f0] sm:$0xff] }
  0xea   :  { %v906_v25 = vsel %vm527_vm0, %v141_v16, 0.0 }
  0xeb   :  { %v3353_v26 = vsel %vm3188_vm12, %v3352_v22, %v3348_v14  ;;  %880 = vadd.xlane.f32.xlu1 %v879_v17  ;;  %877 = vadd.xlane.f32.xlu0 %v876_v20  ;;  %v142_v14 = vld [vmem:[%s12046_s0 + $0x3f8] sm:$0xff] }
  0xec   :  { %v671_v27 = vpop.xlane.xlu1 %670  ;;  %v3358_v28 = vsel %vm3195_vm13, %v3357_v21, %v3353_v26  ;;  %v668_v30 = vpop.xlane.xlu0 %667  ;;  %v909_v24 = vsel %vm527_vm0, %v142_v14, 0.0 }
  0xed   :  { %v3367_v37 = vrot.slane %v671_v27, %v7297_v60  ;;  %v3362_v38 = vrot.slane %v668_v30, %v7292_v58  ;;  %v143_v30 = vld [vmem:[%s12046_s0 + $0x400] sm:$0xff] }
  0xee   :  { %v912_v42 = vsel %vm527_vm0, %v143_v30, 0.0 }
  0xef   :  { %v3363_v44 = vsel %vm12058_vm14, %v3362_v38, %v3358_v28  ;;  %886 = vadd.xlane.f32.xlu1 %v885_v34  ;;  %883 = vadd.xlane.f32.xlu0 %v882_v36  ;;  %v144_v28 = vld [vmem:[%s12046_s0 + $0x408] sm:$0xff] }
  0xf0   :  { %v677_v45 = vpop.xlane.xlu1 %676  ;;  %v674_v46 = vpop.xlane.xlu0 %673  ;;  %v7515_v50 = vsel %vm3209_vm15, %v3367_v37, %v3363_v44  ;;  %v915_v39 = vsel %vm527_vm0, %v144_v28, 0.0 }
  0xf1   :  { %12062 = vst [vmem:[#allocation8_spill] sm:$0xff] %v7515_v50  ;;  %v3376_v51 = vrot.slane %v677_v45, %v7178_v33  ;;  %v3372_v52 = vrot.slane %v674_v46, %v7172_v31  ;;  %v146_v46 = vld [vmem:[%s12046_s0 + $0x418] sm:$0xff]  ;;  %v445_v50 = vld [vmem:[%s12046_s0 + $0xd70] sm:$0xff] }
  0xf2   :  { %v921_v54 = vsel %vm527_vm0, %v146_v46, 0.0 }
  0xf3   :  { %v3377_v55 = vsel %vm3111_vm1, %v3376_v51, %v3372_v52  ;;  %892 = vadd.xlane.f32.xlu1 %v891_v48  ;;  %889 = vadd.xlane.f32.xlu0 %v888_v49  ;;  %v145_v48 = vld [vmem:[%s12046_s0 + $0x410] sm:$0xff] }
  0xf4   :  { %v683_v57 = vpop.xlane.xlu1 %682  ;;  %v680_v59 = vpop.xlane.xlu0 %679 }
  0xf5   :  { %v3386_v62 = vrot.slane %v683_v57, %v7175_v32  ;;  %v3381_v63 = vrot.slane %v680_v59, %v7184_v35 }
  0xf7   :  { %v3382_v4 = vsel %vm3118_vm2, %v3381_v63, %v3377_v55  ;;  %898 = vadd.xlane.f32.xlu1 %v897_v15  ;;  %895 = vadd.xlane.f32.xlu0 %v894_v61  ;;  %v918_v55 = vsel %vm527_vm0, %v145_v48, 0.0  ;;  %v148_v15 = vld [vmem:[%s12046_s0 + $0x428] sm:$0xff]  ;;  %v147_v61 = vld [vmem:[%s12046_s0 + $0x420] sm:$0xff] }
  0xf8   :  { %v689_v5 = vpop.xlane.xlu1 %688  ;;  %v3387_v6 = vsel %vm3125_vm3, %v3386_v62, %v3382_v4  ;;  %v686_v8 = vpop.xlane.xlu0 %685  ;;  %v927_v4 = vsel %vm527_vm0, %v148_v15, 0.0 }
  0xf9   :  { %v3396_v11 = vrot.slane %v689_v5, %v7189_v40  ;;  %v3391_v12 = vrot.slane %v686_v8, %v7192_v41  ;;  %v924_v5 = vsel %vm527_vm0, %v147_v61, 0.0 }
  0xfb   :  { %v3392_v17 = vsel %vm12056_vm4, %v3391_v12, %v3387_v6  ;;  %904 = vadd.xlane.f32.xlu1 %v903_v9  ;;  %901 = vadd.xlane.f32.xlu0 %v900_v10  ;;  %v150_v9 = vld [vmem:[%s12046_s0 + $0x438] sm:$0xff]  ;;  %v149_v10 = vld [vmem:[%s12046_s0 + $0x430] sm:$0xff] }
  0xfc   :  { %v695_v20 = vpop.xlane.xlu1 %694  ;;  %v3397_v21 = vsel %vm3139_vm5, %v3396_v11, %v3392_v17  ;;  %v692_v22 = vpop.xlane.xlu0 %691  ;;  %v933_v16 = vsel %vm527_vm0, %v150_v9, 0.0  ;;  %v930_v17 = vsel %vm527_vm0, %v149_v10, 0.0 }
  0xfd   :  { %v3406_v26 = vrot.slane %v695_v20, %v7211_v56  ;;  %v3401_v27 = vrot.slane %v692_v22, %v7225_v0 }
  0xff   :  { %v3402_v34 = vsel %vm3146_vm6, %v3401_v27, %v3397_v21  ;;  %910 = vadd.xlane.f32.xlu1 %v909_v24  ;;  %907 = vadd.xlane.f32.xlu0 %v906_v25  ;;  %v152_v24 = vld [vmem:[%s12046_s0 + $0x448] sm:$0xff]  ;;  %v151_v25 = vld [vmem:[%s12046_s0 + $0x440] sm:$0xff] }
 0x100   :  { %v701_v36 = vpop.xlane.xlu1 %700  ;;  %v3407_v37 = vsel %vm3153_vm7, %v3406_v26, %v3402_v34  ;;  %v698_v38 = vpop.xlane.xlu0 %697  ;;  %v939_v30 = vsel %vm527_vm0, %v152_v24, 0.0  ;;  %v936_v34 = vsel %vm527_vm0, %v151_v25, 0.0 }
 0x101   :  { %v3416_v44 = vrot.slane %v701_v36, %v7232_v7  ;;  %v3411_v45 = vrot.slane %v698_v38, %v7244_v13 }
 0x103   :  { %v3412_v49 = vsel %vm3160_vm8, %v3411_v45, %v3407_v37  ;;  %916 = vadd.xlane.f32.xlu1 %v915_v39  ;;  %913 = vadd.xlane.f32.xlu0 %v912_v42  ;;  %v154_v39 = vld [vmem:[%s12046_s0 + $0x458] sm:$0xff]  ;;  %v153_v42 = vld [vmem:[%s12046_s0 + $0x450] sm:$0xff] }
 0x104   :  { %v707_v51 = vpop.xlane.xlu1 %706  ;;  %v3417_v52 = vsel %vm3167_vm9, %v3416_v44, %v3412_v49  ;;  %v704_v53 = vpop.xlane.xlu0 %703  ;;  %v945_v48 = vsel %vm527_vm0, %v154_v39, 0.0  ;;  %v942_v49 = vsel %vm527_vm0, %v153_v42, 0.0 }
 0x105   :  { %v3426_v57 = vrot.slane %v707_v51, %v7252_v23  ;;  %v3421_v59 = vrot.slane %v704_v53, %v7264_v29  ;;  %v156_v53 = vld [vmem:[%s12046_s0 + $0x468] sm:$0xff] }
 0x106   :  { %v951_v61 = vsel %vm527_vm0, %v156_v53, 0.0 }
 0x107   :  { %v3422_v62 = vsel %vm3174_vm10, %v3421_v59, %v3417_v52  ;;  %922 = vadd.xlane.f32.xlu1 %v921_v54  ;;  %919 = vadd.xlane.f32.xlu0 %v918_v55  ;;  %v155_v54 = vld [vmem:[%s12046_s0 + $0x460] sm:$0xff] }
 0x108   :  { %v713_v63 = vpop.xlane.xlu1 %712  ;;  %v3427_v2 = vsel %vm3181_vm11, %v3426_v57, %v3422_v62  ;;  %v710_v3 = vpop.xlane.xlu0 %709  ;;  %v948_v62 = vsel %vm527_vm0, %v155_v54, 0.0 }
 0x109   :  { %v3436_v6 = vrot.slane %v713_v63, %v7278_v47  ;;  %v3431_v8 = vrot.slane %v710_v3, %v7272_v43  ;;  %v158_v3 = vld [vmem:[%s12046_s0 + $0x478] sm:$0xff] }
 0x10a   :  { %v957_v10 = vsel %vm527_vm0, %v158_v3, 0.0 }
 0x10b   :  { %v3432_v11 = vsel %vm3188_vm12, %v3431_v8, %v3427_v2  ;;  %928 = vadd.xlane.f32.xlu1 %v927_v4  ;;  %925 = vadd.xlane.f32.xlu0 %v924_v5  ;;  %v157_v4 = vld [vmem:[%s12046_s0 + $0x470] sm:$0xff] }
 0x10c   :  { %v719_v12 = vpop.xlane.xlu1 %718  ;;  %v716_v14 = vpop.xlane.xlu0 %715  ;;  %v3437_v20 = vsel %vm3195_vm13, %v3436_v6, %v3432_v11  ;;  %v954_v11 = vsel %vm527_vm0, %v157_v4, 0.0 }
 0x10d   :  { %v3446_v21 = vrot.slane %v719_v12, %v7297_v60  ;;  %v3441_v22 = vrot.slane %v716_v14, %v7292_v58 }
 0x10f   :  { %934 = vadd.xlane.f32.xlu1 %v933_v16  ;;  %931 = vadd.xlane.f32.xlu0 %v930_v17  ;;  %v3442_v26 = vsel %vm12058_vm14, %v3441_v22, %v3437_v20  ;;  %v160_v16 = vld [vmem:[%s12046_s0 + $0x488] sm:$0xff]  ;;  %v159_v17 = vld [vmem:[%s12046_s0 + $0x480] sm:$0xff] }
 0x110   :  { %v725_v27 = vpop.xlane.xlu1 %724  ;;  %v722_v28 = vpop.xlane.xlu0 %721  ;;  %v7612_v36 = vsel %vm3209_vm15, %v3446_v21, %v3442_v26  ;;  %v963_v25 = vsel %vm527_vm0, %v160_v16, 0.0  ;;  %v960_v26 = vsel %vm527_vm0, %v159_v17, 0.0 }
 0x111   :  { %12063 = vst [vmem:[#allocation9_spill] sm:$0xff] %v7612_v36  ;;  %v3455_v37 = vrot.slane %v725_v27, %v7178_v33  ;;  %v3451_v38 = vrot.slane %v722_v28, %v7172_v31 }
 0x113   :  { %v3456_v44 = vsel %vm3111_vm1, %v3455_v37, %v3451_v38  ;;  %940 = vadd.xlane.f32.xlu1 %v939_v30  ;;  %937 = vadd.xlane.f32.xlu0 %v936_v34  ;;  %v162_v30 = vld [vmem:[%s12046_s0 + $0x498] sm:$0xff]  ;;  %v161_v34 = vld [vmem:[%s12046_s0 + $0x490] sm:$0xff] }
 0x114   :  { %v731_v45 = vpop.xlane.xlu1 %730  ;;  %v728_v46 = vpop.xlane.xlu0 %727 }
 0x115   :  { %v3465_v51 = vrot.slane %v731_v45, %v7175_v32  ;;  %v3460_v52 = vrot.slane %v728_v46, %v7184_v35  ;;  %v966_v45 = vsel %vm527_vm0, %v161_v34, 0.0 }
 0x117   :  { %v3461_v55 = vsel %vm3118_vm2, %v3460_v52, %v3456_v44  ;;  %946 = vadd.xlane.f32.xlu1 %v945_v48  ;;  %943 = vadd.xlane.f32.xlu0 %v942_v49  ;;  %v969_v44 = vsel %vm527_vm0, %v162_v30, 0.0  ;;  %v164_v49 = vld [vmem:[%s12046_s0 + $0x4a8] sm:$0xff] }
 0x118   :  { %v737_v57 = vpop.xlane.xlu1 %736  ;;  %v3466_v59 = vsel %vm3125_vm3, %v3465_v51, %v3461_v55  ;;  %v734_v15 = vpop.xlane.xlu0 %733  ;;  %v163_v51 = vld [vmem:[%s12046_s0 + $0x4a0] sm:$0xff] }
 0x119   :  { %v3475_v63 = vrot.slane %v737_v57, %v7189_v40  ;;  %v3470_v2 = vrot.slane %v734_v15, %v7192_v41  ;;  %v975_v57 = vsel %vm527_vm0, %v164_v49, 0.0 }
 0x11b   :  { %v3471_v5 = vsel %vm12056_vm4, %v3470_v2, %v3466_v59  ;;  %952 = vadd.xlane.f32.xlu1 %v951_v61  ;;  %949 = vadd.xlane.f32.xlu0 %v948_v62  ;;  %v972_v59 = vsel %vm527_vm0, %v163_v51, 0.0  ;;  %v166_v62 = vld [vmem:[%s12046_s0 + $0x4b8] sm:$0xff] }
 0x11c   :  { %v743_v6 = vpop.xlane.xlu1 %742  ;;  %v3476_v8 = vsel %vm3139_vm5, %v3475_v63, %v3471_v5  ;;  %v740_v9 = vpop.xlane.xlu0 %739  ;;  %v165_v63 = vld [vmem:[%s12046_s0 + $0x4b0] sm:$0xff] }
 0x11d   :  { %v3485_v12 = vrot.slane %v743_v6, %v7211_v56  ;;  %v3480_v14 = vrot.slane %v740_v9, %v7225_v0  ;;  %v981_v6 = vsel %vm527_vm0, %v166_v62, 0.0 }
 0x11f   :  { %v3481_v20 = vsel %vm3146_vm6, %v3480_v14, %v3476_v8  ;;  %958 = vadd.xlane.f32.xlu1 %v957_v10  ;;  %955 = vadd.xlane.f32.xlu0 %v954_v11  ;;  %v978_v8 = vsel %vm527_vm0, %v165_v63, 0.0  ;;  %v168_v11 = vld [vmem:[%s12046_s0 + $0x4c8] sm:$0xff] }
 0x120   :  { %v749_v21 = vpop.xlane.xlu1 %748  ;;  %v3486_v22 = vsel %vm3153_vm7, %v3485_v12, %v3481_v20  ;;  %v746_v24 = vpop.xlane.xlu0 %745  ;;  %v167_v12 = vld [vmem:[%s12046_s0 + $0x4c0] sm:$0xff]  ;;  %v987_v20 = vsel %vm527_vm0, %v168_v11, 0.0 }
 0x121   :  { %v3495_v27 = vrot.slane %v749_v21, %v7232_v7  ;;  %v3490_v28 = vrot.slane %v746_v24, %v7244_v13  ;;  %v984_v21 = vsel %vm527_vm0, %v167_v12, 0.0 }
 0x123   :  { %v3491_v37 = vsel %vm3160_vm8, %v3490_v28, %v3486_v22  ;;  %964 = vadd.xlane.f32.xlu1 %v963_v25  ;;  %961 = vadd.xlane.f32.xlu0 %v960_v26  ;;  %v170_v26 = vld [vmem:[%s12046_s0 + $0x4d8] sm:$0xff] }
 0x124   :  { %v755_v38 = vpop.xlane.xlu1 %754  ;;  %v3496_v39 = vsel %vm3167_vm9, %v3495_v27, %v3491_v37  ;;  %v752_v42 = vpop.xlane.xlu0 %751  ;;  %v169_v27 = vld [vmem:[%s12046_s0 + $0x4d0] sm:$0xff]  ;;  %v993_v37 = vsel %vm527_vm0, %v170_v26, 0.0 }
 0x125   :  { %v3505_v46 = vrot.slane %v755_v38, %v7252_v23  ;;  %v3500_v48 = vrot.slane %v752_v42, %v7264_v29  ;;  %v990_v38 = vsel %vm527_vm0, %v169_v27, 0.0 }
 0x127   :  { %v3501_v52 = vsel %vm3174_vm10, %v3500_v48, %v3496_v39  ;;  %970 = vadd.xlane.f32.xlu1 %v969_v44  ;;  %967 = vadd.xlane.f32.xlu0 %v966_v45  ;;  %v172_v44 = vld [vmem:[%s12046_s0 + $0x4e8] sm:$0xff]  ;;  %v171_v45 = vld [vmem:[%s12046_s0 + $0x4e0] sm:$0xff] }
 0x128   :  { %v761_v53 = vpop.xlane.xlu1 %760  ;;  %v3506_v54 = vsel %vm3181_vm11, %v3505_v46, %v3501_v52  ;;  %v758_v55 = vpop.xlane.xlu0 %757  ;;  %v999_v52 = vsel %vm527_vm0, %v172_v44, 0.0 }
 0x129   :  { %v3515_v15 = vrot.slane %v761_v53, %v7278_v47  ;;  %v3510_v61 = vrot.slane %v758_v55, %v7272_v43  ;;  %v996_v53 = vsel %vm527_vm0, %v171_v45, 0.0 }
 0x12b   :  { %v3511_v2 = vsel %vm3188_vm12, %v3510_v61, %v3506_v54  ;;  %976 = vadd.xlane.f32.xlu1 %v975_v57  ;;  %973 = vadd.xlane.f32.xlu0 %v972_v59  ;;  %v174_v57 = vld [vmem:[%s12046_s0 + $0x4f8] sm:$0xff]  ;;  %v173_v59 = vld [vmem:[%s12046_s0 + $0x4f0] sm:$0xff] }
 0x12c   :  { %v767_v3 = vpop.xlane.xlu1 %766  ;;  %v3516_v4 = vsel %vm3195_vm13, %v3515_v15, %v3511_v2  ;;  %v764_v5 = vpop.xlane.xlu0 %763  ;;  %v1005_v2 = vsel %vm527_vm0, %v174_v57, 0.0 }
 0x12d   :  { %v3525_v9 = vrot.slane %v767_v3, %v7297_v60  ;;  %v3520_v10 = vrot.slane %v764_v5, %v7292_v58  ;;  %v1002_v3 = vsel %vm527_vm0, %v173_v59, 0.0 }
 0x12f   :  { %v3521_v14 = vsel %vm12058_vm14, %v3520_v10, %v3516_v4  ;;  %982 = vadd.xlane.f32.xlu1 %v981_v6  ;;  %979 = vadd.xlane.f32.xlu0 %v978_v8  ;;  %v176_v6 = vld [vmem:[%s12046_s0 + $0x508] sm:$0xff]  ;;  %v175_v8 = vld [vmem:[%s12046_s0 + $0x500] sm:$0xff] }
 0x130   :  { %v773_v16 = vpop.xlane.xlu1 %772  ;;  %v770_v17 = vpop.xlane.xlu0 %769  ;;  %v7709_v22 = vsel %vm3209_vm15, %v3525_v9, %v3521_v14  ;;  %v1011_v14 = vsel %vm527_vm0, %v176_v6, 0.0 }
 0x131   :  { %12064 = vst [vmem:[#allocation10_spill] sm:$0xff] %v7709_v22  ;;  %v3534_v24 = vrot.slane %v773_v16, %v7178_v33  ;;  %v3530_v25 = vrot.slane %v770_v17, %v7172_v31  ;;  %v1008_v16 = vsel %vm527_vm0, %v175_v8, 0.0  ;;  %v318_v22 = vld [vmem:[%s12046_s0 + $0x978] sm:$0xff] }
 0x133   :  { %v3535_v28 = vsel %vm3111_vm1, %v3534_v24, %v3530_v25  ;;  %988 = vadd.xlane.f32.xlu1 %v987_v20  ;;  %985 = vadd.xlane.f32.xlu0 %v984_v21  ;;  %v178_v21 = vld [vmem:[%s12046_s0 + $0x518] sm:$0xff]  ;;  %v177_v24 = vld [vmem:[%s12046_s0 + $0x510] sm:$0xff] }
 0x134   :  { %v779_v30 = vpop.xlane.xlu1 %778  ;;  %v776_v34 = vpop.xlane.xlu0 %775 }
 0x135   :  { %v3544_v39 = vrot.slane %v779_v30, %v7175_v32  ;;  %v3539_v42 = vrot.slane %v776_v34, %v7184_v35  ;;  %v1017_v30 = vsel %vm527_vm0, %v178_v21, 0.0  ;;  %v1014_v34 = vsel %vm527_vm0, %v177_v24, 0.0 }
 0x137   :  { %v3540_v46 = vsel %vm3118_vm2, %v3539_v42, %v3535_v28  ;;  %994 = vadd.xlane.f32.xlu1 %v993_v37  ;;  %991 = vadd.xlane.f32.xlu0 %v990_v38  ;;  %v179_v42 = vld [vmem:[%s12046_s0 + $0x520] sm:$0xff] }
 0x138   :  { %v785_v48 = vpop.xlane.xlu1 %784  ;;  %v3545_v49 = vsel %vm3125_vm3, %v3544_v39, %v3540_v46  ;;  %v782_v51 = vpop.xlane.xlu0 %781  ;;  %v180_v39 = vld [vmem:[%s12046_s0 + $0x528] sm:$0xff] }
 0x139   :  { %v3554_v54 = vrot.slane %v785_v48, %v7189_v40  ;;  %v3549_v55 = vrot.slane %v782_v51, %v7192_v41  ;;  %v1020_v51 = vsel %vm527_vm0, %v179_v42, 0.0 }
 0x13b   :  { %v3550_v15 = vsel %vm12056_vm4, %v3549_v55, %v3545_v49  ;;  %1000 = vadd.xlane.f32.xlu1 %v999_v52  ;;  %997 = vadd.xlane.f32.xlu0 %v996_v53  ;;  %v1023_v49 = vsel %vm527_vm0, %v180_v39, 0.0  ;;  %v181_v55 = vld [vmem:[%s12046_s0 + $0x530] sm:$0xff] }
 0x13c   :  { %v791_v61 = vpop.xlane.xlu1 %790  ;;  %v3555_v62 = vsel %vm3139_vm5, %v3554_v54, %v3550_v15  ;;  %v788_v63 = vpop.xlane.xlu0 %787  ;;  %v182_v54 = vld [vmem:[%s12046_s0 + $0x538] sm:$0xff] }
 0x13d   :  { %v3564_v4 = vrot.slane %v791_v61, %v7211_v56  ;;  %v3559_v5 = vrot.slane %v788_v63, %v7225_v0  ;;  %v1029_v61 = vsel %vm527_vm0, %v182_v54, 0.0 }
 0x13f   :  { %v3560_v9 = vsel %vm3146_vm6, %v3559_v5, %v3555_v62  ;;  %1006 = vadd.xlane.f32.xlu1 %v1005_v2  ;;  %1003 = vadd.xlane.f32.xlu0 %v1002_v3  ;;  %v1026_v62 = vsel %vm527_vm0, %v181_v55, 0.0  ;;  %v183_v5 = vld [vmem:[%s12046_s0 + $0x540] sm:$0xff] }
 0x140   :  { %v797_v10 = vpop.xlane.xlu1 %796  ;;  %v3565_v11 = vsel %vm3153_vm7, %v3564_v4, %v3560_v9  ;;  %v794_v12 = vpop.xlane.xlu0 %793  ;;  %v184_v4 = vld [vmem:[%s12046_s0 + $0x548] sm:$0xff] }
 0x141   :  { %v3574_v17 = vrot.slane %v797_v10, %v7232_v7  ;;  %v3569_v20 = vrot.slane %v794_v12, %v7244_v13  ;;  %v1035_v10 = vsel %vm527_vm0, %v184_v4, 0.0 }
 0x143   :  { %v3570_v25 = vsel %vm3160_vm8, %v3569_v20, %v3565_v11  ;;  %1012 = vadd.xlane.f32.xlu1 %v1011_v14  ;;  %1009 = vadd.xlane.f32.xlu0 %v1008_v16  ;;  %v1032_v11 = vsel %vm527_vm0, %v183_v5, 0.0  ;;  %v185_v20 = vld [vmem:[%s12046_s0 + $0x550] sm:$0xff] }
 0x144   :  { %v803_v26 = vpop.xlane.xlu1 %802  ;;  %v3575_v27 = vsel %vm3167_vm9, %v3574_v17, %v3570_v25  ;;  %v800_v28 = vpop.xlane.xlu0 %799  ;;  %v186_v17 = vld [vmem:[%s12046_s0 + $0x558] sm:$0xff] }
 0x145   :  { %v3584_v37 = vrot.slane %v803_v26, %v7252_v23  ;;  %v3579_v38 = vrot.slane %v800_v28, %v7264_v29  ;;  %v1041_v26 = vsel %vm527_vm0, %v186_v17, 0.0 }
 0x147   :  { %v3580_v44 = vsel %vm3174_vm10, %v3579_v38, %v3575_v27  ;;  %1018 = vadd.xlane.f32.xlu1 %v1017_v30  ;;  %1015 = vadd.xlane.f32.xlu0 %v1014_v34  ;;  %v1038_v27 = vsel %vm527_vm0, %v185_v20, 0.0  ;;  %v188_v34 = vld [vmem:[%s12046_s0 + $0x568] sm:$0xff] }
 0x148   :  { %v809_v45 = vpop.xlane.xlu1 %808  ;;  %v3585_v46 = vsel %vm3181_vm11, %v3584_v37, %v3580_v44  ;;  %v806_v48 = vpop.xlane.xlu0 %805  ;;  %v187_v37 = vld [vmem:[%s12046_s0 + $0x560] sm:$0xff] }
 0x149   :  { %v3594_v52 = vrot.slane %v809_v45, %v7278_v47  ;;  %v3589_v53 = vrot.slane %v806_v48, %v7272_v43  ;;  %v1047_v45 = vsel %vm527_vm0, %v188_v34, 0.0  ;;  %v195_v34 = vld [vmem:[%s12046_s0 + $0x5a0] sm:$0xff] }
 0x14b   :  { %v3590_v57 = vsel %vm3188_vm12, %v3589_v53, %v3585_v46  ;;  %1024 = vadd.xlane.f32.xlu1 %v1023_v49  ;;  %1021 = vadd.xlane.f32.xlu0 %v1020_v51  ;;  %v1044_v46 = vsel %vm527_vm0, %v187_v37, 0.0  ;;  %v190_v51 = vld [vmem:[%s12046_s0 + $0x578] sm:$0xff] }
 0x14c   :  { %v815_v59 = vpop.xlane.xlu1 %814  ;;  %v812_v15 = vpop.xlane.xlu0 %811  ;;  %v3595_v63 = vsel %vm3195_vm13, %v3594_v52, %v3590_v57  ;;  %v189_v52 = vld [vmem:[%s12046_s0 + $0x570] sm:$0xff] }
 0x14d   :  { %v3604_v2 = vrot.slane %v815_v59, %v7297_v60  ;;  %v3599_v3 = vrot.slane %v812_v15, %v7292_v58  ;;  %v1053_v59 = vsel %vm527_vm0, %v190_v51, 0.0  ;;  %v1050_v15 = vsel %vm527_vm0, %v189_v52, 0.0  ;;  %v197_v51 = vld [vmem:[%s12046_s0 + $0x5b0] sm:$0xff] }
 0x14f   :  { %1030 = vadd.xlane.f32.xlu1 %v1029_v61  ;;  %1027 = vadd.xlane.f32.xlu0 %v1026_v62  ;;  %v3600_v6 = vsel %vm12058_vm14, %v3599_v3, %v3595_v63  ;;  %v192_v63 = vld [vmem:[%s12046_s0 + $0x588] sm:$0xff] }
 0x150   :  { %v821_v8 = vpop.xlane.xlu1 %820  ;;  %v818_v9 = vpop.xlane.xlu0 %817  ;;  %v7806_v12 = vsel %vm3209_vm15, %v3604_v2, %v3600_v6  ;;  %v191_v2 = vld [vmem:[%s12046_s0 + $0x580] sm:$0xff] }
 0x151   :  { %12065 = vst [vmem:[#allocation11_spill] sm:$0xff] %v7806_v12  ;;  %v3613_v14 = vrot.slane %v821_v8, %v7178_v33  ;;  %v3609_v16 = vrot.slane %v818_v9, %v7172_v31  ;;  %v1059_v8 = vsel %vm527_vm0, %v192_v63, 0.0  ;;  %v1056_v9 = vsel %vm527_vm0, %v191_v2, 0.0  ;;  %v199_v63 = vld [vmem:[%s12046_s0 + $0x5c0] sm:$0xff] }
 0x153   :  { %v3614_v21 = vsel %vm3111_vm1, %v3613_v14, %v3609_v16  ;;  %1036 = vadd.xlane.f32.xlu1 %v1035_v10  ;;  %1033 = vadd.xlane.f32.xlu0 %v1032_v11  ;;  %v194_v14 = vld [vmem:[%s12046_s0 + $0x598] sm:$0xff]  ;;  %v193_v16 = vld [vmem:[%s12046_s0 + $0x590] sm:$0xff] }
 0x154   :  { %v827_v24 = vpop.xlane.xlu1 %826  ;;  %v824_v25 = vpop.xlane.xlu0 %823 }
 0x155   :  { %v3623_v28 = vrot.slane %v827_v24, %v7175_v32  ;;  %v3618_v30 = vrot.slane %v824_v25, %v7184_v35  ;;  %v1065_v25 = vsel %vm527_vm0, %v194_v14, 0.0  ;;  %v201_v14 = vld [vmem:[%s12046_s0 + $0x5d0] sm:$0xff] }
 0x157   :  { %v3619_v38 = vsel %vm3118_vm2, %v3618_v30, %v3614_v21  ;;  %1042 = vadd.xlane.f32.xlu1 %v1041_v26  ;;  %1039 = vadd.xlane.f32.xlu0 %v1038_v27  ;;  %v1062_v26 = vsel %vm527_vm0, %v193_v16, 0.0  ;;  %v196_v30 = vld [vmem:[%s12046_s0 + $0x5a8] sm:$0xff] }
 0x158   :  { %v833_v39 = vpop.xlane.xlu1 %832  ;;  %v3624_v42 = vsel %vm3125_vm3, %v3623_v28, %v3619_v38  ;;  %v830_v44 = vpop.xlane.xlu0 %829 }
 0x159   :  { %v3633_v48 = vrot.slane %v833_v39, %v7189_v40  ;;  %v3628_v49 = vrot.slane %v830_v44, %v7192_v41  ;;  %v1071_v44 = vsel %vm527_vm0, %v196_v30, 0.0 }
 0x15b   :  { %v3629_v53 = vsel %vm12056_vm4, %v3628_v49, %v3624_v42  ;;  %1048 = vadd.xlane.f32.xlu1 %v1047_v45  ;;  %1045 = vadd.xlane.f32.xlu0 %v1044_v46  ;;  %v1068_v45 = vsel %vm527_vm0, %v195_v34, 0.0  ;;  %v198_v49 = vld [vmem:[%s12046_s0 + $0x5b8] sm:$0xff] }
 0x15c   :  { %v839_v54 = vpop.xlane.xlu1 %838  ;;  %v3634_v55 = vsel %vm3139_vm5, %v3633_v48, %v3629_v53  ;;  %v836_v57 = vpop.xlane.xlu0 %835 }
 0x15d   :  { %v3643_v61 = vrot.slane %v839_v54, %v7211_v56  ;;  %v3638_v62 = vrot.slane %v836_v57, %v7225_v0  ;;  %v1077_v57 = vsel %vm527_vm0, %v198_v49, 0.0 }
 0x15f   :  { %v3639_v3 = vsel %vm3146_vm6, %v3638_v62, %v3634_v55  ;;  %1054 = vadd.xlane.f32.xlu1 %v1053_v59  ;;  %1051 = vadd.xlane.f32.xlu0 %v1050_v15  ;;  %v1074_v59 = vsel %vm527_vm0, %v197_v51, 0.0  ;;  %v200_v62 = vld [vmem:[%s12046_s0 + $0x5c8] sm:$0xff] }
 0x160   :  { %v845_v4 = vpop.xlane.xlu1 %844  ;;  %v3644_v5 = vsel %vm3153_vm7, %v3643_v61, %v3639_v3  ;;  %v842_v6 = vpop.xlane.xlu0 %841 }
 0x161   :  { %v3653_v10 = vrot.slane %v845_v4, %v7232_v7  ;;  %v3648_v11 = vrot.slane %v842_v6, %v7244_v13  ;;  %v1080_v6 = vsel %vm527_vm0, %v199_v63, 0.0 }
 0x163   :  { %v3649_v17 = vsel %vm3160_vm8, %v3648_v11, %v3644_v5  ;;  %1060 = vadd.xlane.f32.xlu1 %v1059_v8  ;;  %1057 = vadd.xlane.f32.xlu0 %v1056_v9  ;;  %v1083_v5 = vsel %vm527_vm0, %v200_v62, 0.0  ;;  %v202_v11 = vld [vmem:[%s12046_s0 + $0x5d8] sm:$0xff] }
 0x164   :  { %v851_v20 = vpop.xlane.xlu1 %850  ;;  %v3654_v21 = vsel %vm3167_vm9, %v3653_v10, %v3649_v17  ;;  %v848_v24 = vpop.xlane.xlu0 %847 }
 0x165   :  { %v3663_v27 = vrot.slane %v851_v20, %v7252_v23  ;;  %v3658_v28 = vrot.slane %v848_v24, %v7264_v29  ;;  %v1086_v24 = vsel %vm527_vm0, %v201_v14, 0.0 }
 0x167   :  { %v3659_v37 = vsel %vm3174_vm10, %v3658_v28, %v3654_v21  ;;  %1066 = vadd.xlane.f32.xlu1 %v1065_v25  ;;  %1063 = vadd.xlane.f32.xlu0 %v1062_v26  ;;  %v1089_v21 = vsel %vm527_vm0, %v202_v11, 0.0  ;;  %v203_v28 = vld [vmem:[%s12046_s0 + $0x5e0] sm:$0xff]  ;;  %v209_v11 = vld [vmem:[%s12046_s0 + $0x610] sm:$0xff] }
 0x168   :  { %v857_v38 = vpop.xlane.xlu1 %856  ;;  %v3664_v39 = vsel %vm3181_vm11, %v3663_v27, %v3659_v37  ;;  %v854_v42 = vpop.xlane.xlu0 %853  ;;  %v204_v27 = vld [vmem:[%s12046_s0 + $0x5e8] sm:$0xff] }
 0x169   :  { %v3673_v46 = vrot.slane %v857_v38, %v7278_v47  ;;  %v3668_v48 = vrot.slane %v854_v42, %v7272_v43  ;;  %v1092_v42 = vsel %vm527_vm0, %v203_v28, 0.0  ;;  %v211_v28 = vld [vmem:[%s12046_s0 + $0x620] sm:$0xff] }
 0x16b   :  { %v3669_v52 = vsel %vm3188_vm12, %v3668_v48, %v3664_v39  ;;  %1072 = vadd.xlane.f32.xlu1 %v1071_v44  ;;  %1069 = vadd.xlane.f32.xlu0 %v1068_v45  ;;  %v1095_v39 = vsel %vm527_vm0, %v204_v27, 0.0  ;;  %v205_v48 = vld [vmem:[%s12046_s0 + $0x5f0] sm:$0xff]  ;;  %v212_v27 = vld [vmem:[%s12046_s0 + $0x628] sm:$0xff] }
 0x16c   :  { %v863_v53 = vpop.xlane.xlu1 %862  ;;  %v3674_v54 = vsel %vm3195_vm13, %v3673_v46, %v3669_v52  ;;  %v860_v55 = vpop.xlane.xlu0 %859  ;;  %v206_v46 = vld [vmem:[%s12046_s0 + $0x5f8] sm:$0xff] }
 0x16d   :  { %v3683_v15 = vrot.slane %v863_v53, %v7297_v60  ;;  %v3678_v61 = vrot.slane %v860_v55, %v7292_v58  ;;  %v1098_v55 = vsel %vm527_vm0, %v205_v48, 0.0  ;;  %v213_v48 = vld [vmem:[%s12046_s0 + $0x630] sm:$0xff] }
 0x16f   :  { %v3679_v2 = vsel %vm12058_vm14, %v3678_v61, %v3674_v54  ;;  %1078 = vadd.xlane.f32.xlu1 %v1077_v57  ;;  %1075 = vadd.xlane.f32.xlu0 %v1074_v59  ;;  %v1101_v54 = vsel %vm527_vm0, %v206_v46, 0.0  ;;  %v207_v61 = vld [vmem:[%s12046_s0 + $0x600] sm:$0xff]  ;;  %v214_v46 = vld [vmem:[%s12046_s0 + $0x638] sm:$0xff] }
 0x170   :  { %v869_v3 = vpop.xlane.xlu1 %868  ;;  %v866_v4 = vpop.xlane.xlu0 %865  ;;  %v7903_v8 = vsel %vm3209_vm15, %v3683_v15, %v3679_v2  ;;  %v208_v15 = vld [vmem:[%s12046_s0 + $0x608] sm:$0xff] }
 0x171   :  { %12066 = vst [vmem:[#allocation12_spill] sm:$0xff] %v7903_v8  ;;  %v3692_v9 = vrot.slane %v869_v3, %v7178_v33  ;;  %v3688_v10 = vrot.slane %v866_v4, %v7172_v31  ;;  %v1107_v4 = vsel %vm527_vm0, %v208_v15, 0.0  ;;  %v216_v15 = vld [vmem:[%s12046_s0 + $0x648] sm:$0xff]  ;;  %v317_v8 = vld [vmem:[%s12046_s0 + $0x970] sm:$0xff] }
 0x173   :  { %v3693_v16 = vsel %vm3111_vm1, %v3692_v9, %v3688_v10  ;;  %1084 = vadd.xlane.f32.xlu1 %v1083_v5  ;;  %1081 = vadd.xlane.f32.xlu0 %v1080_v6  ;;  %v1104_v5 = vsel %vm527_vm0, %v207_v61, 0.0  ;;  %v210_v10 = vld [vmem:[%s12046_s0 + $0x618] sm:$0xff]  ;;  %v215_v61 = vld [vmem:[%s12046_s0 + $0x640] sm:$0xff] }
 0x174   :  { %v875_v17 = vpop.xlane.xlu1 %874  ;;  %v872_v20 = vpop.xlane.xlu0 %871 }
 0x175   :  { %v3702_v25 = vrot.slane %v875_v17, %v7175_v32  ;;  %v3697_v26 = vrot.slane %v872_v20, %v7184_v35 }
 0x177   :  { %v3698_v30 = vsel %vm3118_vm2, %v3697_v26, %v3693_v16  ;;  %1090 = vadd.xlane.f32.xlu1 %v1089_v21  ;;  %1087 = vadd.xlane.f32.xlu0 %v1086_v24  ;;  %v1113_v21 = vsel %vm527_vm0, %v210_v10, 0.0  ;;  %v1110_v24 = vsel %vm527_vm0, %v209_v11, 0.0  ;;  %v218_v10 = vld [vmem:[%s12046_s0 + $0x658] sm:$0xff]  ;;  %v217_v11 = vld [vmem:[%s12046_s0 + $0x650] sm:$0xff] }
 0x178   :  { %v881_v34 = vpop.xlane.xlu1 %880  ;;  %v3703_v37 = vsel %vm3125_vm3, %v3702_v25, %v3698_v30  ;;  %v878_v38 = vpop.xlane.xlu0 %877 }
 0x179   :  { %v3712_v44 = vrot.slane %v881_v34, %v7189_v40  ;;  %v3707_v45 = vrot.slane %v878_v38, %v7192_v41 }
 0x17b   :  { %v3708_v49 = vsel %vm12056_vm4, %v3707_v45, %v3703_v37  ;;  %1096 = vadd.xlane.f32.xlu1 %v1095_v39  ;;  %1093 = vadd.xlane.f32.xlu0 %v1092_v42  ;;  %v1119_v39 = vsel %vm527_vm0, %v212_v27, 0.0  ;;  %v1116_v42 = vsel %vm527_vm0, %v211_v28, 0.0  ;;  %v219_v27 = vld [vmem:[%s12046_s0 + $0x660] sm:$0xff] }
 0x17c   :  { %v887_v51 = vpop.xlane.xlu1 %886  ;;  %v3713_v52 = vsel %vm3139_vm5, %v3712_v44, %v3708_v49  ;;  %v884_v53 = vpop.xlane.xlu0 %883 }
 0x17d   :  { %v3722_v57 = vrot.slane %v887_v51, %v7211_v56  ;;  %v3717_v59 = vrot.slane %v884_v53, %v7225_v0  ;;  %v1125_v53 = vsel %vm527_vm0, %v214_v46, 0.0  ;;  %v221_v46 = vld [vmem:[%s12046_s0 + $0x670] sm:$0xff] }
 0x17f   :  { %v3718_v62 = vsel %vm3146_vm6, %v3717_v59, %v3713_v52  ;;  %1102 = vadd.xlane.f32.xlu1 %v1101_v54  ;;  %1099 = vadd.xlane.f32.xlu0 %v1098_v55  ;;  %v1122_v54 = vsel %vm527_vm0, %v213_v48, 0.0 }
 0x180   :  { %v893_v63 = vpop.xlane.xlu1 %892  ;;  %v3723_v2 = vsel %vm3153_vm7, %v3722_v57, %v3718_v62  ;;  %v890_v3 = vpop.xlane.xlu0 %889 }
 0x181   :  { %v3732_v6 = vrot.slane %v893_v63, %v7232_v7  ;;  %v3727_v9 = vrot.slane %v890_v3, %v7244_v13  ;;  %v1131_v3 = vsel %vm527_vm0, %v216_v15, 0.0  ;;  %v223_v15 = vld [vmem:[%s12046_s0 + $0x680] sm:$0xff] }
 0x183   :  { %v3728_v14 = vsel %vm3160_vm8, %v3727_v9, %v3723_v2  ;;  %1108 = vadd.xlane.f32.xlu1 %v1107_v4  ;;  %1105 = vadd.xlane.f32.xlu0 %v1104_v5  ;;  %v1128_v4 = vsel %vm527_vm0, %v215_v61, 0.0 }
 0x184   :  { %v899_v16 = vpop.xlane.xlu1 %898  ;;  %v3733_v17 = vsel %vm3167_vm9, %v3732_v6, %v3728_v14  ;;  %v896_v20 = vpop.xlane.xlu0 %895 }
 0x185   :  { %v3742_v25 = vrot.slane %v899_v16, %v7252_v23  ;;  %v3737_v26 = vrot.slane %v896_v20, %v7264_v29  ;;  %v1137_v20 = vsel %vm527_vm0, %v218_v10, 0.0  ;;  %v226_v10 = vld [vmem:[%s12046_s0 + $0x698] sm:$0xff] }
 0x187   :  { %v3738_v30 = vsel %vm3174_vm10, %v3737_v26, %v3733_v17  ;;  %1114 = vadd.xlane.f32.xlu1 %v1113_v21  ;;  %1111 = vadd.xlane.f32.xlu0 %v1110_v24  ;;  %v1134_v21 = vsel %vm527_vm0, %v217_v11, 0.0  ;;  %v220_v26 = vld [vmem:[%s12046_s0 + $0x668] sm:$0xff]  ;;  %v225_v11 = vld [vmem:[%s12046_s0 + $0x690] sm:$0xff] }
 0x188   :  { %v905_v34 = vpop.xlane.xlu1 %904  ;;  %v3743_v37 = vsel %vm3181_vm11, %v3742_v25, %v3738_v30  ;;  %v902_v38 = vpop.xlane.xlu0 %901 }
 0x189   :  { %v3752_v44 = vrot.slane %v905_v34, %v7278_v47  ;;  %v3747_v45 = vrot.slane %v902_v38, %v7272_v43  ;;  %v1143_v38 = vsel %vm527_vm0, %v220_v26, 0.0 }
 0x18b   :  { %v3748_v49 = vsel %vm3188_vm12, %v3747_v45, %v3743_v37  ;;  %1120 = vadd.xlane.f32.xlu1 %v1119_v39  ;;  %1117 = vadd.xlane.f32.xlu0 %v1116_v42  ;;  %v1140_v39 = vsel %vm527_vm0, %v219_v27, 0.0  ;;  %v222_v45 = vld [vmem:[%s12046_s0 + $0x678] sm:$0xff]  ;;  %v228_v27 = vld [vmem:[%s12046_s0 + $0x6a8] sm:$0xff] }
 0x18c   :  { %v911_v51 = vpop.xlane.xlu1 %910  ;;  %v908_v52 = vpop.xlane.xlu0 %907  ;;  %v3753_v55 = vsel %vm3195_vm13, %v3752_v44, %v3748_v49 }
 0x18d   :  { %v3762_v57 = vrot.slane %v911_v51, %v7297_v60  ;;  %v3757_v59 = vrot.slane %v908_v52, %v7292_v58 }
 0x18f   :  { %1126 = vadd.xlane.f32.xlu1 %v1125_v53  ;;  %1123 = vadd.xlane.f32.xlu0 %v1122_v54  ;;  %v3758_v62 = vsel %vm12058_vm14, %v3757_v59, %v3753_v55  ;;  %v1149_v53 = vsel %vm527_vm0, %v222_v45, 0.0  ;;  %v1146_v54 = vsel %vm527_vm0, %v221_v46, 0.0  ;;  %v224_v59 = vld [vmem:[%s12046_s0 + $0x688] sm:$0xff]  ;;  %v230_v46 = vld [vmem:[%s12046_s0 + $0x6b8] sm:$0xff] }
 0x190   :  { %v917_v63 = vpop.xlane.xlu1 %916  ;;  %v914_v2 = vpop.xlane.xlu0 %913  ;;  %v8000_v5 = vsel %vm3209_vm15, %v3762_v57, %v3758_v62 }
 0x191   :  { %12067 = vst [vmem:[#allocation13_spill] sm:$0xff] %v8000_v5  ;;  %v3771_v6 = vrot.slane %v917_v63, %v7178_v33  ;;  %v3767_v9 = vrot.slane %v914_v2, %v7172_v31 }
 0x193   :  { %v3772_v14 = vsel %vm3111_vm1, %v3771_v6, %v3767_v9  ;;  %1132 = vadd.xlane.f32.xlu1 %v1131_v3  ;;  %1129 = vadd.xlane.f32.xlu0 %v1128_v4  ;;  %v1155_v3 = vsel %vm527_vm0, %v224_v59, 0.0  ;;  %v1152_v4 = vsel %vm527_vm0, %v223_v15, 0.0  ;;  %v232_v15 = vld [vmem:[%s12046_s0 + $0x6c8] sm:$0xff] }
 0x194   :  { %v923_v16 = vpop.xlane.xlu1 %922  ;;  %v920_v17 = vpop.xlane.xlu0 %919 }
 0x195   :  { %v3781_v24 = vrot.slane %v923_v16, %v7175_v32  ;;  %v3776_v25 = vrot.slane %v920_v17, %v7184_v35 }
 0x197   :  { %v3777_v28 = vsel %vm3118_vm2, %v3776_v25, %v3772_v14  ;;  %1138 = vadd.xlane.f32.xlu1 %v1137_v20  ;;  %1135 = vadd.xlane.f32.xlu0 %v1134_v21  ;;  %v1161_v21 = vsel %vm527_vm0, %v226_v10, 0.0 }
 0x198   :  { %v929_v30 = vpop.xlane.xlu1 %928  ;;  %v3782_v34 = vsel %vm3125_vm3, %v3781_v24, %v3777_v28  ;;  %v926_v37 = vpop.xlane.xlu0 %925  ;;  %v1158_v24 = vsel %vm527_vm0, %v225_v11, 0.0  ;;  %v227_v28 = vld [vmem:[%s12046_s0 + $0x6a0] sm:$0xff]  ;;  %v234_v11 = vld [vmem:[%s12046_s0 + $0x6d8] sm:$0xff] }
 0x199   :  { %v3791_v42 = vrot.slane %v929_v30, %v7189_v40  ;;  %v3786_v44 = vrot.slane %v926_v37, %v7192_v41 }
 0x19b   :  { %v3787_v48 = vsel %vm12056_vm4, %v3786_v44, %v3782_v34  ;;  %1144 = vadd.xlane.f32.xlu1 %v1143_v38  ;;  %1141 = vadd.xlane.f32.xlu0 %v1140_v39  ;;  %v1167_v39 = vsel %vm527_vm0, %v228_v27, 0.0  ;;  %v236_v27 = vld [vmem:[%s12046_s0 + $0x6e8] sm:$0xff] }
 0x19c   :  { %v935_v49 = vpop.xlane.xlu1 %934  ;;  %v3792_v51 = vsel %vm3139_vm5, %v3791_v42, %v3787_v48  ;;  %v932_v52 = vpop.xlane.xlu0 %931  ;;  %v1164_v42 = vsel %vm527_vm0, %v227_v28, 0.0  ;;  %v229_v48 = vld [vmem:[%s12046_s0 + $0x6b0] sm:$0xff]  ;;  %v235_v28 = vld [vmem:[%s12046_s0 + $0x6e0] sm:$0xff] }
 0x19d   :  { %v3801_v55 = vrot.slane %v935_v49, %v7211_v56  ;;  %v3796_v57 = vrot.slane %v932_v52, %v7225_v0 }
 0x19f   :  { %v3797_v61 = vsel %vm3146_vm6, %v3796_v57, %v3792_v51  ;;  %1150 = vadd.xlane.f32.xlu1 %v1149_v53  ;;  %1147 = vadd.xlane.f32.xlu0 %v1146_v54  ;;  %v1173_v53 = vsel %vm527_vm0, %v230_v46, 0.0  ;;  %v1170_v54 = vsel %vm527_vm0, %v229_v48, 0.0  ;;  %v238_v46 = vld [vmem:[%s12046_s0 + $0x6f8] sm:$0xff]  ;;  %v237_v48 = vld [vmem:[%s12046_s0 + $0x6f0] sm:$0xff] }
 0x1a0   :  { %v941_v62 = vpop.xlane.xlu1 %940  ;;  %v3802_v63 = vsel %vm3153_vm7, %v3801_v55, %v3797_v61  ;;  %v938_v2 = vpop.xlane.xlu0 %937  ;;  %v231_v61 = vld [vmem:[%s12046_s0 + $0x6c0] sm:$0xff] }
 0x1a1   :  { %v3811_v6 = vrot.slane %v941_v62, %v7232_v7  ;;  %v3806_v9 = vrot.slane %v938_v2, %v7244_v13 }
 0x1a3   :  { %v3807_v14 = vsel %vm3160_vm8, %v3806_v9, %v3802_v63  ;;  %1156 = vadd.xlane.f32.xlu1 %v1155_v3  ;;  %1153 = vadd.xlane.f32.xlu0 %v1152_v4  ;;  %v1179_v3 = vsel %vm527_vm0, %v232_v15, 0.0  ;;  %v1176_v4 = vsel %vm527_vm0, %v231_v61, 0.0  ;;  %v240_v15 = vld [vmem:[%s12046_s0 + $0x708] sm:$0xff]  ;;  %v239_v61 = vld [vmem:[%s12046_s0 + $0x700] sm:$0xff] }
 0x1a4   :  { %v947_v16 = vpop.xlane.xlu1 %946  ;;  %v3812_v17 = vsel %vm3167_vm9, %v3811_v6, %v3807_v14  ;;  %v944_v20 = vpop.xlane.xlu0 %943  ;;  %v233_v14 = vld [vmem:[%s12046_s0 + $0x6d0] sm:$0xff] }
 0x1a5   :  { %v3821_v25 = vrot.slane %v947_v16, %v7252_v23  ;;  %v3816_v26 = vrot.slane %v944_v20, %v7264_v29 }
 0x1a7   :  { %v3817_v30 = vsel %vm3174_vm10, %v3816_v26, %v3812_v17  ;;  %1162 = vadd.xlane.f32.xlu1 %v1161_v21  ;;  %1159 = vadd.xlane.f32.xlu0 %v1158_v24  ;;  %v1185_v21 = vsel %vm527_vm0, %v234_v11, 0.0  ;;  %v1182_v24 = vsel %vm527_vm0, %v233_v14, 0.0  ;;  %v242_v14 = vld [vmem:[%s12046_s0 + $0x718] sm:$0xff] }
 0x1a8   :  { %v953_v34 = vpop.xlane.xlu1 %952  ;;  %v3822_v37 = vsel %vm3181_vm11, %v3821_v25, %v3817_v30  ;;  %v950_v38 = vpop.xlane.xlu0 %949 }
 0x1a9   :  { %v3831_v44 = vrot.slane %v953_v34, %v7278_v47  ;;  %v3826_v45 = vrot.slane %v950_v38, %v7272_v43 }
 0x1ab   :  { %v3827_v49 = vsel %vm3188_vm12, %v3826_v45, %v3822_v37  ;;  %1168 = vadd.xlane.f32.xlu1 %v1167_v39  ;;  %1165 = vadd.xlane.f32.xlu0 %v1164_v42  ;;  %v1191_v39 = vsel %vm527_vm0, %v236_v27, 0.0  ;;  %v1188_v42 = vsel %vm527_vm0, %v235_v28, 0.0 }
 0x1ac   :  { %v959_v51 = vpop.xlane.xlu1 %958  ;;  %v956_v52 = vpop.xlane.xlu0 %955  ;;  %v3832_v55 = vsel %vm3195_vm13, %v3831_v44, %v3827_v49 }
 0x1ad   :  { %v3841_v57 = vrot.slane %v959_v51, %v7297_v60  ;;  %v3836_v59 = vrot.slane %v956_v52, %v7292_v58 }
 0x1af   :  { %1174 = vadd.xlane.f32.xlu1 %v1173_v53  ;;  %1171 = vadd.xlane.f32.xlu0 %v1170_v54  ;;  %v3837_v62 = vsel %vm12058_vm14, %v3836_v59, %v3832_v55  ;;  %v1197_v54 = vsel %vm527_vm0, %v238_v46, 0.0  ;;  %v1194_v55 = vsel %vm527_vm0, %v237_v48, 0.0 }
 0x1b0   :  { %v965_v63 = vpop.xlane.xlu1 %964  ;;  %v962_v2 = vpop.xlane.xlu0 %961  ;;  %v8097_v6 = vsel %vm3209_vm15, %v3841_v57, %v3837_v62 }
 0x1b1   :  { %v3850_v9 = vrot.slane %v965_v63, %v7178_v33  ;;  %v3846_v10 = vrot.slane %v962_v2, %v7172_v31 }
 0x1b3   :  { %v3851_v16 = vsel %vm3111_vm1, %v3850_v9, %v3846_v10  ;;  %1180 = vadd.xlane.f32.xlu1 %v1179_v3  ;;  %1177 = vadd.xlane.f32.xlu0 %v1176_v4  ;;  %v1203_v4 = vsel %vm527_vm0, %v240_v15, 0.0  ;;  %v1200_v9 = vsel %vm527_vm0, %v239_v61, 0.0 }
 0x1b4   :  { %v971_v17 = vpop.xlane.xlu1 %970  ;;  %v968_v20 = vpop.xlane.xlu0 %967 }
 0x1b5   :  { %v3860_v25 = vrot.slane %v971_v17, %v7175_v32  ;;  %v3855_v26 = vrot.slane %v968_v20, %v7184_v35 }
 0x1b7   :  { %v3856_v30 = vsel %vm3118_vm2, %v3855_v26, %v3851_v16  ;;  %1186 = vadd.xlane.f32.xlu1 %v1185_v21  ;;  %1183 = vadd.xlane.f32.xlu0 %v1182_v24  ;;  %v241_v16 = vld [vmem:[%s12046_s0 + $0x710] sm:$0xff] }
 0x1b8   :  { %v977_v34 = vpop.xlane.xlu1 %976  ;;  %v3861_v37 = vsel %vm3125_vm3, %v3860_v25, %v3856_v30  ;;  %v974_v38 = vpop.xlane.xlu0 %973  ;;  %v1209_v25 = vsel %vm527_vm0, %v242_v14, 0.0  ;;  %v1206_v26 = vsel %vm527_vm0, %v241_v16, 0.0  ;;  %v244_v30 = vld [vmem:[%s12046_s0 + $0x728] sm:$0xff] }
 0x1b9   :  { %v3870_v44 = vrot.slane %v977_v34, %v7189_v40  ;;  %v3865_v45 = vrot.slane %v974_v38, %v7192_v41  ;;  %v243_v34 = vld [vmem:[%s12046_s0 + $0x720] sm:$0xff] }
 0x1bb   :  { %v3866_v49 = vsel %vm12056_vm4, %v3865_v45, %v3861_v37  ;;  %1192 = vadd.xlane.f32.xlu1 %v1191_v39  ;;  %1189 = vadd.xlane.f32.xlu0 %v1188_v42  ;;  %v1212_v45 = vsel %vm527_vm0, %v243_v34, 0.0  ;;  %v252_v34 = vld [vmem:[%s12046_s0 + $0x768] sm:$0xff] }
 0x1bc   :  { %v983_v51 = vpop.xlane.xlu1 %982  ;;  %v3871_v52 = vsel %vm3139_vm5, %v3870_v44, %v3866_v49  ;;  %v980_v53 = vpop.xlane.xlu0 %979  ;;  %v1215_v44 = vsel %vm527_vm0, %v244_v30, 0.0  ;;  %v246_v49 = vld [vmem:[%s12046_s0 + $0x738] sm:$0xff] }
 0x1bd   :  { %v3880_v57 = vrot.slane %v983_v51, %v7211_v56  ;;  %v3875_v59 = vrot.slane %v980_v53, %v7225_v0  ;;  %v245_v51 = vld [vmem:[%s12046_s0 + $0x730] sm:$0xff] }
 0x1bf   :  { %v3876_v62 = vsel %vm3146_vm6, %v3875_v59, %v3871_v52  ;;  %1198 = vadd.xlane.f32.xlu1 %v1197_v54  ;;  %1195 = vadd.xlane.f32.xlu0 %v1194_v55  ;;  %v1221_v55 = vsel %vm527_vm0, %v246_v49, 0.0 }
 0x1c0   :  { %v989_v63 = vpop.xlane.xlu1 %988  ;;  %v3881_v2 = vsel %vm3153_vm7, %v3880_v57, %v3876_v62  ;;  %v986_v3 = vpop.xlane.xlu0 %985  ;;  %v1218_v57 = vsel %vm527_vm0, %v245_v51, 0.0  ;;  %v248_v62 = vld [vmem:[%s12046_s0 + $0x748] sm:$0xff]  ;;  %v254_v51 = vld [vmem:[%s12046_s0 + $0x778] sm:$0xff] }
 0x1c1   :  { %v3890_v10 = vrot.slane %v989_v63, %v7232_v7  ;;  %v3885_v11 = vrot.slane %v986_v3, %v7244_v13  ;;  %v247_v63 = vld [vmem:[%s12046_s0 + $0x740] sm:$0xff] }
 0x1c3   :  { %v3886_v17 = vsel %vm3160_vm8, %v3885_v11, %v3881_v2  ;;  %1204 = vadd.xlane.f32.xlu1 %v1203_v4  ;;  %1201 = vadd.xlane.f32.xlu0 %v1200_v9  ;;  %v1227_v9 = vsel %vm527_vm0, %v248_v62, 0.0 }
 0x1c4   :  { %v995_v20 = vpop.xlane.xlu1 %994  ;;  %v3891_v21 = vsel %vm3167_vm9, %v3890_v10, %v3886_v17  ;;  %v992_v24 = vpop.xlane.xlu0 %991  ;;  %v1224_v10 = vsel %vm527_vm0, %v247_v63, 0.0  ;;  %v250_v17 = vld [vmem:[%s12046_s0 + $0x758] sm:$0xff]  ;;  %v256_v63 = vld [vmem:[%s12046_s0 + $0x788] sm:$0xff] }
 0x1c5   :  { %v3900_v27 = vrot.slane %v995_v20, %v7252_v23  ;;  %v3895_v28 = vrot.slane %v992_v24, %v7264_v29  ;;  %v249_v20 = vld [vmem:[%s12046_s0 + $0x750] sm:$0xff] }
 0x1c7   :  { %v3896_v37 = vsel %vm3174_vm10, %v3895_v28, %v3891_v21  ;;  %1210 = vadd.xlane.f32.xlu1 %v1209_v25  ;;  %1207 = vadd.xlane.f32.xlu0 %v1206_v26  ;;  %v1233_v26 = vsel %vm527_vm0, %v250_v17, 0.0 }
 0x1c8   :  { %v1001_v38 = vpop.xlane.xlu1 %1000  ;;  %v3901_v39 = vsel %vm3181_vm11, %v3900_v27, %v3896_v37  ;;  %v998_v42 = vpop.xlane.xlu0 %997  ;;  %v1230_v27 = vsel %vm527_vm0, %v249_v20, 0.0  ;;  %v251_v37 = vld [vmem:[%s12046_s0 + $0x760] sm:$0xff] }
 0x1c9   :  { %v3910_v46 = vrot.slane %v1001_v38, %v7278_v47  ;;  %v3905_v48 = vrot.slane %v998_v42, %v7272_v43 }
 0x1cb   :  { %v3906_v52 = vsel %vm3188_vm12, %v3905_v48, %v3901_v39  ;;  %1216 = vadd.xlane.f32.xlu1 %v1215_v44  ;;  %1213 = vadd.xlane.f32.xlu0 %v1212_v45  ;;  %v1239_v45 = vsel %vm527_vm0, %v252_v34, 0.0 }
 0x1cc   :  { %v1007_v53 = vpop.xlane.xlu1 %1006  ;;  %v1004_v54 = vpop.xlane.xlu0 %1003  ;;  %v3911_v59 = vsel %vm3195_vm13, %v3910_v46, %v3906_v52  ;;  %v1236_v46 = vsel %vm527_vm0, %v251_v37, 0.0  ;;  %v253_v52 = vld [vmem:[%s12046_s0 + $0x770] sm:$0xff] }
 0x1cd   :  { %v3920_v15 = vrot.slane %v1007_v53, %v7297_v60  ;;  %v3915_v61 = vrot.slane %v1004_v54, %v7292_v58 }
 0x1cf   :  { %1222 = vadd.xlane.f32.xlu1 %v1221_v55  ;;  %1219 = vadd.xlane.f32.xlu0 %v1218_v57  ;;  %v3916_v2 = vsel %vm12058_vm14, %v3915_v61, %v3911_v59  ;;  %v1245_v59 = vsel %vm527_vm0, %v254_v51, 0.0 }
 0x1d0   :  { %v1013_v3 = vpop.xlane.xlu1 %1012  ;;  %v1010_v4 = vpop.xlane.xlu0 %1009  ;;  %v8194_v11 = vsel %vm3209_vm15, %v3920_v15, %v3916_v2  ;;  %v1242_v15 = vsel %vm527_vm0, %v253_v52, 0.0  ;;  %v255_v2 = vld [vmem:[%s12046_s0 + $0x780] sm:$0xff] }
 0x1d1   :  { %v3929_v14 = vrot.slane %v1013_v3, %v7178_v33  ;;  %v3925_v16 = vrot.slane %v1010_v4, %v7172_v31 }
 0x1d3   :  { %v3930_v21 = vsel %vm3111_vm1, %v3929_v14, %v3925_v16  ;;  %1228 = vadd.xlane.f32.xlu1 %v1227_v9  ;;  %1225 = vadd.xlane.f32.xlu0 %v1224_v10  ;;  %v1251_v14 = vsel %vm527_vm0, %v256_v63, 0.0  ;;  %v1248_v16 = vsel %vm527_vm0, %v255_v2, 0.0 }
 0x1d4   :  { %v1019_v24 = vpop.xlane.xlu1 %1018  ;;  %v1016_v25 = vpop.xlane.xlu0 %1015 }
 0x1d5   :  { %v3939_v28 = vrot.slane %v1019_v24, %v7175_v32  ;;  %v3934_v30 = vrot.slane %v1016_v25, %v7184_v35  ;;  %v257_v24 = vld [vmem:[%s12046_s0 + $0x790] sm:$0xff] }
 0x1d6   :  { %v1254_v34 = vsel %vm527_vm0, %v257_v24, 0.0 }
 0x1d7   :  { %v3935_v38 = vsel %vm3118_vm2, %v3934_v30, %v3930_v21  ;;  %1234 = vadd.xlane.f32.xlu1 %v1233_v26  ;;  %1231 = vadd.xlane.f32.xlu0 %v1230_v27  ;;  %v258_v21 = vld [vmem:[%s12046_s0 + $0x798] sm:$0xff] }
 0x1d8   :  { %v1025_v39 = vpop.xlane.xlu1 %1024  ;;  %v3940_v42 = vsel %vm3125_vm3, %v3939_v28, %v3935_v38  ;;  %v1022_v44 = vpop.xlane.xlu0 %1021  ;;  %v1257_v30 = vsel %vm527_vm0, %v258_v21, 0.0 }
 0x1d9   :  { %v3949_v48 = vrot.slane %v1025_v39, %v7189_v40  ;;  %v3944_v49 = vrot.slane %v1022_v44, %v7192_v41  ;;  %v260_v39 = vld [vmem:[%s12046_s0 + $0x7a8] sm:$0xff] }
 0x1db   :  { %v3945_v53 = vsel %vm12056_vm4, %v3944_v49, %v3940_v42  ;;  %1240 = vadd.xlane.f32.xlu1 %v1239_v45  ;;  %1237 = vadd.xlane.f32.xlu0 %v1236_v46  ;;  %v259_v42 = vld [vmem:[%s12046_s0 + $0x7a0] sm:$0xff]  ;;  %v1263_v49 = vsel %vm527_vm0, %v260_v39, 0.0 }
 0x1dc   :  { %v1031_v54 = vpop.xlane.xlu1 %1030  ;;  %v3950_v55 = vsel %vm3139_vm5, %v3949_v48, %v3945_v53  ;;  %v1028_v57 = vpop.xlane.xlu0 %1027  ;;  %v1260_v51 = vsel %vm527_vm0, %v259_v42, 0.0 }
 0x1dd   :  { %v3959_v61 = vrot.slane %v1031_v54, %v7211_v56  ;;  %v3954_v62 = vrot.slane %v1028_v57, %v7225_v0  ;;  %v262_v54 = vld [vmem:[%s12046_s0 + $0x7b8] sm:$0xff] }
 0x1df   :  { %v3955_v3 = vsel %vm3146_vm6, %v3954_v62, %v3950_v55  ;;  %1246 = vadd.xlane.f32.xlu1 %v1245_v59  ;;  %1243 = vadd.xlane.f32.xlu0 %v1242_v15  ;;  %v261_v55 = vld [vmem:[%s12046_s0 + $0x7b0] sm:$0xff]  ;;  %v1269_v62 = vsel %vm527_vm0, %v262_v54, 0.0 }
 0x1e0   :  { %v1037_v4 = vpop.xlane.xlu1 %1036  ;;  %v3960_v9 = vsel %vm3153_vm7, %v3959_v61, %v3955_v3  ;;  %v1034_v10 = vpop.xlane.xlu0 %1033  ;;  %v1266_v63 = vsel %vm527_vm0, %v261_v55, 0.0 }
 0x1e1   :  { %v3969_v17 = vrot.slane %v1037_v4, %v7232_v7  ;;  %v3964_v20 = vrot.slane %v1034_v10, %v7244_v13  ;;  %v264_v4 = vld [vmem:[%s12046_s0 + $0x7c8] sm:$0xff] }
 0x1e3   :  { %v3965_v25 = vsel %vm3160_vm8, %v3964_v20, %v3960_v9  ;;  %1252 = vadd.xlane.f32.xlu1 %v1251_v14  ;;  %1249 = vadd.xlane.f32.xlu0 %v1248_v16  ;;  %v263_v9 = vld [vmem:[%s12046_s0 + $0x7c0] sm:$0xff] }
 0x1e4   :  { %v1043_v26 = vpop.xlane.xlu1 %1042  ;;  %v3970_v27 = vsel %vm3167_vm9, %v3969_v17, %v3965_v25  ;;  %v1040_v28 = vpop.xlane.xlu0 %1039  ;;  %v1275_v17 = vsel %vm527_vm0, %v264_v4, 0.0  ;;  %v1272_v20 = vsel %vm527_vm0, %v263_v9, 0.0 }
 0x1e5   :  { %v3979_v37 = vrot.slane %v1043_v26, %v7252_v23  ;;  %v3974_v38 = vrot.slane %v1040_v28, %v7264_v29  ;;  %v266_v26 = vld [vmem:[%s12046_s0 + $0x7d8] sm:$0xff] }
 0x1e7   :  { %v3975_v44 = vsel %vm3174_vm10, %v3974_v38, %v3970_v27  ;;  %1258 = vadd.xlane.f32.xlu1 %v1257_v30  ;;  %1255 = vadd.xlane.f32.xlu0 %v1254_v34  ;;  %v265_v27 = vld [vmem:[%s12046_s0 + $0x7d0] sm:$0xff] }
 0x1e8   :  { %v1049_v45 = vpop.xlane.xlu1 %1048  ;;  %v3980_v46 = vsel %vm3181_vm11, %v3979_v37, %v3975_v44  ;;  %v1046_v48 = vpop.xlane.xlu0 %1045  ;;  %v1281_v37 = vsel %vm527_vm0, %v266_v26, 0.0  ;;  %v1278_v38 = vsel %vm527_vm0, %v265_v27, 0.0  ;;  %v268_v44 = vld [vmem:[%s12046_s0 + $0x7e8] sm:$0xff] }
 0x1e9   :  { %v3989_v52 = vrot.slane %v1049_v45, %v7278_v47  ;;  %v3984_v53 = vrot.slane %v1046_v48, %v7272_v43  ;;  %v267_v45 = vld [vmem:[%s12046_s0 + $0x7e0] sm:$0xff] }
 0x1eb   :  { %v3985_v57 = vsel %vm3188_vm12, %v3984_v53, %v3980_v46  ;;  %1264 = vadd.xlane.f32.xlu1 %v1263_v49  ;;  %1261 = vadd.xlane.f32.xlu0 %v1260_v51  ;;  %v1284_v53 = vsel %vm527_vm0, %v267_v45, 0.0 }
 0x1ec   :  { %v1055_v59 = vpop.xlane.xlu1 %1054  ;;  %v3990_v15 = vsel %vm3195_vm13, %v3989_v52, %v3985_v57  ;;  %v1052_v61 = vpop.xlane.xlu0 %1051  ;;  %v1287_v52 = vsel %vm527_vm0, %v268_v44, 0.0  ;;  %v270_v57 = vld [vmem:[%s12046_s0 + $0x7f8] sm:$0xff] }
 0x1ed   :  { %v3999_v2 = vrot.slane %v1055_v59, %v7297_v60  ;;  %v3994_v3 = vrot.slane %v1052_v61, %v7292_v58  ;;  %v269_v59 = vld [vmem:[%s12046_s0 + $0x7f0] sm:$0xff] }
 0x1ef   :  { %v3995_v10 = vsel %vm12058_vm14, %v3994_v3, %v3990_v15  ;;  %1270 = vadd.xlane.f32.xlu1 %v1269_v62  ;;  %1267 = vadd.xlane.f32.xlu0 %v1266_v63  ;;  %v1290_v3 = vsel %vm527_vm0, %v269_v59, 0.0 }
 0x1f0   :  { %v1061_v14 = vpop.xlane.xlu1 %1060  ;;  %v1058_v16 = vpop.xlane.xlu0 %1057  ;;  %v8291_v21 = vsel %vm3209_vm15, %v3999_v2, %v3995_v10  ;;  %v1293_v2 = vsel %vm527_vm0, %v270_v57, 0.0  ;;  %v272_v10 = vld [vmem:[%s12046_s0 + $0x808] sm:$0xff] }
 0x1f1   :  { %12068 = vst [vmem:[#allocation14_spill] sm:$0xff] %v8291_v21  ;;  %v4008_v24 = vrot.slane %v1061_v14, %v7178_v33  ;;  %v4004_v25 = vrot.slane %v1058_v16, %v7172_v31  ;;  %v271_v14 = vld [vmem:[%s12046_s0 + $0x800] sm:$0xff] }
 0x1f2   :  { %v1296_v26 = vsel %vm527_vm0, %v271_v14, 0.0 }
 0x1f3   :  { %v4009_v28 = vsel %vm3111_vm1, %v4008_v24, %v4004_v25  ;;  %1276 = vadd.xlane.f32.xlu1 %v1275_v17  ;;  %1273 = vadd.xlane.f32.xlu0 %v1272_v20  ;;  %v1299_v25 = vsel %vm527_vm0, %v272_v10, 0.0 }
 0x1f4   :  { %v1067_v30 = vpop.xlane.xlu1 %1066  ;;  %v1064_v34 = vpop.xlane.xlu0 %1063 }
 0x1f5   :  { %v4018_v39 = vrot.slane %v1067_v30, %v7175_v32  ;;  %v4013_v42 = vrot.slane %v1064_v34, %v7184_v35  ;;  %v274_v30 = vld [vmem:[%s12046_s0 + $0x818] sm:$0xff]  ;;  %v273_v34 = vld [vmem:[%s12046_s0 + $0x810] sm:$0xff] }
 0x1f6   :  { %v1305_v44 = vsel %vm527_vm0, %v274_v30, 0.0  ;;  %v1302_v45 = vsel %vm527_vm0, %v273_v34, 0.0 }
 0x1f7   :  { %v4014_v46 = vsel %vm3118_vm2, %v4013_v42, %v4009_v28  ;;  %1282 = vadd.xlane.f32.xlu1 %v1281_v37  ;;  %1279 = vadd.xlane.f32.xlu0 %v1278_v38 }
 0x1f8   :  { %v1073_v48 = vpop.xlane.xlu1 %1072  ;;  %v4019_v49 = vsel %vm3125_vm3, %v4018_v39, %v4014_v46  ;;  %v1070_v51 = vpop.xlane.xlu0 %1069 }
 0x1f9   :  { %v4028_v54 = vrot.slane %v1073_v48, %v7189_v40  ;;  %v4023_v55 = vrot.slane %v1070_v51, %v7192_v41  ;;  %v275_v51 = vld [vmem:[%s12046_s0 + $0x820] sm:$0xff] }
 0x1fa   :  { %v1308_v59 = vsel %vm527_vm0, %v275_v51, 0.0 }
 0x1fb   :  { %v4024_v15 = vsel %vm12056_vm4, %v4023_v55, %v4019_v49  ;;  %1288 = vadd.xlane.f32.xlu1 %v1287_v52  ;;  %1285 = vadd.xlane.f32.xlu0 %v1284_v53  ;;  %v287_v49 = vld [vmem:[%s12046_s0 + $0x880] sm:$0xff] }
 0x1fc   :  { %v1079_v61 = vpop.xlane.xlu1 %1078  ;;  %v4029_v62 = vsel %vm3139_vm5, %v4028_v54, %v4024_v15  ;;  %v1076_v63 = vpop.xlane.xlu0 %1075  ;;  %v1344_v57 = vsel %vm527_vm0, %v287_v49, 0.0 }
 0x1fd   :  { %v4038_v4 = vrot.slane %v1079_v61, %v7211_v56  ;;  %v4033_v9 = vrot.slane %v1076_v63, %v7225_v0  ;;  %v288_v63 = vld [vmem:[%s12046_s0 + $0x888] sm:$0xff] }
 0x1fe   :  { %v1347_v10 = vsel %vm527_vm0, %v288_v63, 0.0 }
 0x1ff   :  { %v4034_v16 = vsel %vm3146_vm6, %v4033_v9, %v4029_v62  ;;  %1294 = vadd.xlane.f32.xlu1 %v1293_v2  ;;  %1291 = vadd.xlane.f32.xlu0 %v1290_v3  ;;  %v289_v62 = vld [vmem:[%s12046_s0 + $0x890] sm:$0xff] }
 0x200   :  { %v1085_v17 = vpop.xlane.xlu1 %1084  ;;  %v4039_v20 = vsel %vm3153_vm7, %v4038_v4, %v4034_v16  ;;  %v1082_v24 = vpop.xlane.xlu0 %1081  ;;  %v1350_v9 = vsel %vm527_vm0, %v289_v62, 0.0 }
 0x201   :  { %v4048_v27 = vrot.slane %v1085_v17, %v7232_v7  ;;  %v4043_v28 = vrot.slane %v1082_v24, %v7244_v13  ;;  %v290_v24 = vld [vmem:[%s12046_s0 + $0x898] sm:$0xff] }
 0x202   :  { %v1353_v30 = vsel %vm527_vm0, %v290_v24, 0.0 }
 0x203   :  { %v4044_v37 = vsel %vm3160_vm8, %v4043_v28, %v4039_v20  ;;  %1300 = vadd.xlane.f32.xlu1 %v1299_v25  ;;  %1297 = vadd.xlane.f32.xlu0 %v1296_v26  ;;  %v415_v20 = vld [vmem:[%s12046_s0 + $0xc80] sm:$0xff] }
 0x204   :  { %v1091_v38 = vpop.xlane.xlu1 %1090  ;;  %v4049_v39 = vsel %vm3167_vm9, %v4048_v27, %v4044_v37  ;;  %v1088_v42 = vpop.xlane.xlu0 %1087  ;;  %v1728_v28 = vsel %vm527_vm0, %v415_v20, 0.0 }
 0x205   :  { %v4058_v46 = vrot.slane %v1091_v38, %v7252_v23  ;;  %v4053_v48 = vrot.slane %v1088_v42, %v7264_v29  ;;  %v416_v42 = vld [vmem:[%s12046_s0 + $0xc88] sm:$0xff] }
 0x206   :  { %v1731_v49 = vsel %vm527_vm0, %v416_v42, 0.0 }
 0x207   :  { %v4054_v52 = vsel %vm3174_vm10, %v4053_v48, %v4049_v39  ;;  %1306 = vadd.xlane.f32.xlu1 %v1305_v44  ;;  %1303 = vadd.xlane.f32.xlu0 %v1302_v45  ;;  %v291_v39 = vld [vmem:[%s12046_s0 + $0x8a0] sm:$0xff] }
 0x208   :  { %v1097_v53 = vpop.xlane.xlu1 %1096  ;;  %v4059_v54 = vsel %vm3181_vm11, %v4058_v46, %v4054_v52  ;;  %v1094_v55 = vpop.xlane.xlu0 %1093  ;;  %v1356_v48 = vsel %vm527_vm0, %v291_v39, 0.0 }
 0x209   :  { %v4068_v15 = vrot.slane %v1097_v53, %v7278_v47  ;;  %v4063_v61 = vrot.slane %v1094_v55, %v7272_v43  ;;  %v400_v53 = vld [vmem:[%s12046_s0 + $0xc08] sm:$0xff] }
 0x20b   :  { %v4064_v2 = vsel %vm3188_vm12, %v4063_v61, %v4059_v54  ;;  %1345 = vadd.xlane.f32.xlu1 %v1344_v57  ;;  %1309 = vadd.xlane.f32.xlu0 %v1308_v59  ;;  %v399_v54 = vld [vmem:[%s12046_s0 + $0xc00] sm:$0xff]  ;;  %v1683_v61 = vsel %vm527_vm0, %v400_v53, 0.0 }
 0x20c   :  { %v1103_v3 = vpop.xlane.xlu1 %1102  ;;  %v1100_v4 = vpop.xlane.xlu0 %1099  ;;  %v4069_v14 = vsel %vm3195_vm13, %v4068_v15, %v4064_v2  ;;  %v1680_v62 = vsel %vm527_vm0, %v399_v54, 0.0 }
 0x20d   :  { %v4078_v16 = vrot.slane %v1103_v3, %v7297_v60  ;;  %v4073_v17 = vrot.slane %v1100_v4, %v7292_v58  ;;  %v292_v3 = vld [vmem:[%s12046_s0 + $0x8a8] sm:$0xff]  ;;  %v417_v4 = vld [vmem:[%s12046_s0 + $0xc90] sm:$0xff] }
 0x20e   :  { %v1734_v20 = vsel %vm527_vm0, %v417_v4, 0.0 }
 0x20f   :  { %1351 = vadd.xlane.f32.xlu1 %v1350_v9  ;;  %1348 = vadd.xlane.f32.xlu0 %v1347_v10  ;;  %v4074_v25 = vsel %vm12058_vm14, %v4073_v17, %v4069_v14  ;;  %v1359_v17 = vsel %vm527_vm0, %v292_v3, 0.0 }
 0x210   :  { %v1109_v26 = vpop.xlane.xlu1 %1108  ;;  %v1106_v27 = vpop.xlane.xlu0 %1105  ;;  %v8388_v34 = vsel %vm3209_vm15, %v4078_v16, %v4074_v25 }
 0x211   :  { %12069 = vst [vmem:[#allocation15_spill] sm:$0xff] %v8388_v34  ;;  %v4087_v37 = vrot.slane %v1109_v26, %v7178_v33  ;;  %v4083_v38 = vrot.slane %v1106_v27, %v7172_v31  ;;  %v418_v26 = vld [vmem:[%s12046_s0 + $0xc98] sm:$0xff]  ;;  %v401_v27 = vld [vmem:[%s12046_s0 + $0xc10] sm:$0xff]  ;;  %v1437_v34 = vsel %vm527_vm0, %v318_v22, 0.0 }
 0x212   :  { %v1737_v39 = vsel %vm527_vm0, %v418_v26, 0.0  ;;  %v1686_v42 = vsel %vm527_vm0, %v401_v27, 0.0  ;;  %v446_v22 = vld [vmem:[%s12046_s0 + $0xd78] sm:$0xff] }
 0x213   :  { %v4088_v44 = vsel %vm3111_vm1, %v4087_v37, %v4083_v38  ;;  %1729 = vadd.xlane.f32.xlu1 %v1728_v28  ;;  %1354 = vadd.xlane.f32.xlu0 %v1353_v30 }
 0x214   :  { %v1115_v45 = vpop.xlane.xlu1 %1114  ;;  %v1112_v46 = vpop.xlane.xlu0 %1111 }
 0x215   :  { %v4097_v51 = vrot.slane %v1115_v45, %v7175_v32  ;;  %v4092_v52 = vrot.slane %v1112_v46, %v7184_v35  ;;  %v293_v46 = vld [vmem:[%s12046_s0 + $0x8b0] sm:$0xff] }
 0x216   :  { %v1362_v54 = vsel %vm527_vm0, %v293_v46, 0.0 }
 0x217   :  { %v4093_v55 = vsel %vm3118_vm2, %v4092_v52, %v4088_v44  ;;  %1357 = vadd.xlane.f32.xlu1 %v1356_v48  ;;  %1732 = vadd.xlane.f32.xlu0 %v1731_v49  ;;  %v276_v48 = vld [vmem:[%s12046_s0 + $0x828] sm:$0xff] }
 0x218   :  { %v1121_v57 = vpop.xlane.xlu1 %1120  ;;  %v4098_v59 = vsel %vm3125_vm3, %v4097_v51, %v4093_v55  ;;  %v1118_v15 = vpop.xlane.xlu0 %1117  ;;  %v1311_v55 = vsel %vm527_vm0, %v276_v48, 0.0 }
 0x219   :  { %v4107_v63 = vrot.slane %v1121_v57, %v7189_v40  ;;  %v4102_v2 = vrot.slane %v1118_v15, %v7192_v41  ;;  %v419_v15 = vld [vmem:[%s12046_s0 + $0xca0] sm:$0xff] }
 0x21a   :  { %v1740_v4 = vsel %vm527_vm0, %v419_v15, 0.0 }
 0x21b   :  { %v4103_v9 = vsel %vm12056_vm4, %v4102_v2, %v4098_v59  ;;  %1684 = vadd.xlane.f32.xlu1 %v1683_v61  ;;  %1681 = vadd.xlane.f32.xlu0 %v1680_v62  ;;  %v402_v61 = vld [vmem:[%s12046_s0 + $0xc18] sm:$0xff] }
 0x21c   :  { %v1127_v10 = vpop.xlane.xlu1 %1126  ;;  %v4108_v14 = vsel %vm3139_vm5, %v4107_v63, %v4103_v9  ;;  %v1124_v16 = vpop.xlane.xlu0 %1123  ;;  %v1689_v9 = vsel %vm527_vm0, %v402_v61, 0.0 }
 0x21d   :  { %v4117_v24 = vrot.slane %v1127_v10, %v7211_v56  ;;  %v4112_v25 = vrot.slane %v1124_v16, %v7225_v0  ;;  %v294_v16 = vld [vmem:[%s12046_s0 + $0x8b8] sm:$0xff] }
 0x21e   :  { %v1365_v27 = vsel %vm527_vm0, %v294_v16, 0.0 }
 0x21f   :  { %v4113_v28 = vsel %vm3146_vm6, %v4112_v25, %v4108_v14  ;;  %1360 = vadd.xlane.f32.xlu1 %v1359_v17  ;;  %1735 = vadd.xlane.f32.xlu0 %v1734_v20  ;;  %v277_v17 = vld [vmem:[%s12046_s0 + $0x830] sm:$0xff] }
 0x220   :  { %v1133_v30 = vpop.xlane.xlu1 %1132  ;;  %v4118_v37 = vsel %vm3153_vm7, %v4117_v24, %v4113_v28  ;;  %v1130_v38 = vpop.xlane.xlu0 %1129  ;;  %v1314_v28 = vsel %vm527_vm0, %v277_v17, 0.0 }
 0x221   :  { %v4127_v44 = vrot.slane %v1133_v30, %v7232_v7  ;;  %v4122_v45 = vrot.slane %v1130_v38, %v7244_v13  ;;  %v420_v38 = vld [vmem:[%s12046_s0 + $0xca8] sm:$0xff] }
 0x222   :  { %v1743_v46 = vsel %vm527_vm0, %v420_v38, 0.0 }
 0x223   :  { %v4123_v49 = vsel %vm3160_vm8, %v4122_v45, %v4118_v37  ;;  %1738 = vadd.xlane.f32.xlu1 %v1737_v39  ;;  %1687 = vadd.xlane.f32.xlu0 %v1686_v42  ;;  %v403_v39 = vld [vmem:[%s12046_s0 + $0xc20] sm:$0xff] }
 0x224   :  { %v1139_v51 = vpop.xlane.xlu1 %1138  ;;  %v4128_v52 = vsel %vm3167_vm9, %v4127_v44, %v4123_v49  ;;  %v1136_v53 = vpop.xlane.xlu0 %1135  ;;  %v1692_v48 = vsel %vm527_vm0, %v403_v39, 0.0 }
 0x225   :  { %v4137_v57 = vrot.slane %v1139_v51, %v7252_v23  ;;  %v4132_v59 = vrot.slane %v1136_v53, %v7264_v29  ;;  %v295_v53 = vld [vmem:[%s12046_s0 + $0x8c0] sm:$0xff] }
 0x226   :  { %v1368_v15 = vsel %vm527_vm0, %v295_v53, 0.0 }
 0x227   :  { %v4133_v62 = vsel %vm3174_vm10, %v4132_v59, %v4128_v52  ;;  %1363 = vadd.xlane.f32.xlu1 %v1362_v54  ;;  %1312 = vadd.xlane.f32.xlu0 %v1311_v55  ;;  %v278_v54 = vld [vmem:[%s12046_s0 + $0x838] sm:$0xff] }
 0x228   :  { %v1145_v63 = vpop.xlane.xlu1 %1144  ;;  %v4138_v2 = vsel %vm3181_vm11, %v4137_v57, %v4133_v62  ;;  %v1142_v3 = vpop.xlane.xlu0 %1141  ;;  %v1317_v61 = vsel %vm527_vm0, %v278_v54, 0.0 }
 0x229   :  { %v4147_v10 = vrot.slane %v1145_v63, %v7278_v47  ;;  %v4142_v14 = vrot.slane %v1142_v3, %v7272_v43  ;;  %v404_v3 = vld [vmem:[%s12046_s0 + $0xc28] sm:$0xff] }
 0x22a   :  { %v1695_v17 = vsel %vm527_vm0, %v404_v3, 0.0 }
 0x22b   :  { %v4143_v20 = vsel %vm3188_vm12, %v4142_v14, %v4138_v2  ;;  %1741 = vadd.xlane.f32.xlu1 %v1740_v4  ;;  %1690 = vadd.xlane.f32.xlu0 %v1689_v9  ;;  %v421_v2 = vld [vmem:[%s12046_s0 + $0xcb0] sm:$0xff] }
 0x22c   :  { %v1151_v24 = vpop.xlane.xlu1 %1150  ;;  %v4148_v25 = vsel %vm3195_vm13, %v4147_v10, %v4143_v20  ;;  %v1148_v26 = vpop.xlane.xlu0 %1147  ;;  %v1746_v16 = vsel %vm527_vm0, %v421_v2, 0.0 }
 0x22d   :  { %v4157_v30 = vrot.slane %v1151_v24, %v7297_v60  ;;  %v4152_v37 = vrot.slane %v1148_v26, %v7292_v58  ;;  %v279_v26 = vld [vmem:[%s12046_s0 + $0x840] sm:$0xff] }
 0x22e   :  { %v1320_v39 = vsel %vm527_vm0, %v279_v26, 0.0 }
 0x22f   :  { %v4153_v42 = vsel %vm12058_vm14, %v4152_v37, %v4148_v25  ;;  %1366 = vadd.xlane.f32.xlu1 %v1365_v27  ;;  %1315 = vadd.xlane.f32.xlu0 %v1314_v28  ;;  %v296_v25 = vld [vmem:[%s12046_s0 + $0x8c8] sm:$0xff] }
 0x230   :  { %v1157_v44 = vpop.xlane.xlu1 %1156  ;;  %v1154_v45 = vpop.xlane.xlu0 %1153  ;;  %v8485_v49 = vsel %vm3209_vm15, %v4157_v30, %v4153_v42  ;;  %v1371_v38 = vsel %vm527_vm0, %v296_v25, 0.0 }
 0x231   :  { %12070 = vst [vmem:[#allocation16_spill] sm:$0xff] %v8485_v49  ;;  %v4166_v51 = vrot.slane %v1157_v44, %v7178_v33  ;;  %v4162_v52 = vrot.slane %v1154_v45, %v7172_v31  ;;  %v422_v45 = vld [vmem:[%s12046_s0 + $0xcb8] sm:$0xff]  ;;  %v443_v49 = vld [vmem:[%s12046_s0 + $0xd60] sm:$0xff] }
 0x232   :  { %v1749_v54 = vsel %vm527_vm0, %v422_v45, 0.0 }
 0x233   :  { %v4167_v55 = vsel %vm3111_vm1, %v4166_v51, %v4162_v52  ;;  %1744 = vadd.xlane.f32.xlu1 %v1743_v46  ;;  %1693 = vadd.xlane.f32.xlu0 %v1692_v48  ;;  %v405_v46 = vld [vmem:[%s12046_s0 + $0xc30] sm:$0xff] }
 0x234   :  { %v1163_v57 = vpop.xlane.xlu1 %1162  ;;  %v1160_v59 = vpop.xlane.xlu0 %1159 }
 0x235   :  { %v4176_v62 = vrot.slane %v1163_v57, %v7175_v32  ;;  %v4171_v63 = vrot.slane %v1160_v59, %v7184_v35 }
 0x237   :  { %v4172_v4 = vsel %vm3118_vm2, %v4171_v63, %v4167_v55  ;;  %1369 = vadd.xlane.f32.xlu1 %v1368_v15  ;;  %1318 = vadd.xlane.f32.xlu0 %v1317_v61  ;;  %v1698_v55 = vsel %vm527_vm0, %v405_v46, 0.0  ;;  %v297_v15 = vld [vmem:[%s12046_s0 + $0x8d0] sm:$0xff]  ;;  %v280_v61 = vld [vmem:[%s12046_s0 + $0x848] sm:$0xff] }
 0x238   :  { %v1169_v9 = vpop.xlane.xlu1 %1168  ;;  %v4177_v10 = vsel %vm3125_vm3, %v4176_v62, %v4172_v4  ;;  %v1166_v14 = vpop.xlane.xlu0 %1165  ;;  %v1374_v4 = vsel %vm527_vm0, %v297_v15, 0.0 }
 0x239   :  { %v4186_v20 = vrot.slane %v1169_v9, %v7189_v40  ;;  %v4181_v24 = vrot.slane %v1166_v14, %v7192_v41  ;;  %v1323_v9 = vsel %vm527_vm0, %v280_v61, 0.0 }
 0x23b   :  { %v4182_v27 = vsel %vm12056_vm4, %v4181_v24, %v4177_v10  ;;  %1747 = vadd.xlane.f32.xlu1 %v1746_v16  ;;  %1696 = vadd.xlane.f32.xlu0 %v1695_v17  ;;  %v423_v16 = vld [vmem:[%s12046_s0 + $0xcc0] sm:$0xff]  ;;  %v406_v17 = vld [vmem:[%s12046_s0 + $0xc38] sm:$0xff] }
 0x23c   :  { %v1175_v28 = vpop.xlane.xlu1 %1174  ;;  %v4187_v30 = vsel %vm3139_vm5, %v4186_v20, %v4182_v27  ;;  %v1172_v37 = vpop.xlane.xlu0 %1171  ;;  %v2065_v20 = vld [vmem:[%s12047_s1 + $0x8] sm:$0xff]  ;;  %v2067_v24 = vld [vmem:[%s12047_s1 + $0x18] sm:$0xff]  ;;  %v2064_v27 = vld [vmem:[%s12047_s1] sm:$0xff] }
 0x23d   :  { %v4196_v42 = vrot.slane %v1175_v28, %v7211_v56  ;;  %v4191_v44 = vrot.slane %v1172_v37, %v7225_v0  ;;  %v6288_v26 = vpack.c.bf16 %v2067_v24, %v2065_v20  ;;  %v2066_v28 = vld [vmem:[%s12047_s1 + $0x10] sm:$0xff]  ;;  %v2072_v24 = vld [vmem:[%s12047_s1 + $0x40] sm:$0xff] }
 0x23f   :  { %v4192_v48 = vsel %vm3146_vm6, %v4191_v44, %v4187_v30  ;;  %1372 = vadd.xlane.f32.xlu1 %v1371_v38  ;;  %1321 = vadd.xlane.f32.xlu0 %v1320_v39  ;;  %v1752_v39 = vsel %vm527_vm0, %v423_v16, 0.0  ;;  %v6290_v44 = vpack.c.bf16 %v2066_v28, %v2064_v27  ;;  %v2073_v16 = vld [vmem:[%s12047_s1 + $0x48] sm:$0xff] }
 0x240   :  { %v1181_v51 = vpop.xlane.xlu1 %1180  ;;  %v4197_v52 = vsel %vm3153_vm7, %v4196_v42, %v4192_v48  ;;  %v1178_v53 = vpop.xlane.xlu0 %1177  ;;  %v1701_v42 = vsel %vm527_vm0, %v406_v17, 0.0  ;;  %v298_v48 = vld [vmem:[%s12046_s0 + $0x8d8] sm:$0xff]  ;;  %6289 = vmatprep.subr.bf16.mxu1 %v6288_v26  ;;  %v2321_v26 = vld [vmem:[%s12047_s1 + $0x808] sm:$0xff] }
 0x241   :  { %v4206_v57 = vrot.slane %v1181_v51, %v7232_v7  ;;  %v4201_v59 = vrot.slane %v1178_v53, %v7244_v13  ;;  %v281_v51 = vld [vmem:[%s12046_s0 + $0x850] sm:$0xff]  ;;  %6291 = vmatpush1.bf16.msra.mxu1 %v6290_v44  ;;  %v2071_v53 = vld [vmem:[%s12047_s1 + $0x38] sm:$0xff]  ;;  %v2320_v44 = vld [vmem:[%s12047_s1 + $0x800] sm:$0xff] }
 0x242   :  { %v2075_v17 = vld [vmem:[%s12047_s1 + $0x58] sm:$0xff] }
 0x243   :  { %v4202_v62 = vsel %vm3160_vm8, %v4201_v59, %v4197_v52  ;;  %1750 = vadd.xlane.f32.xlu1 %v1749_v54  ;;  %1699 = vadd.xlane.f32.xlu0 %v1698_v55  ;;  %v2069_v52 = vld [vmem:[%s12047_s1 + $0x28] sm:$0xff]  ;;  %v2070_v59 = vld [vmem:[%s12047_s1 + $0x30] sm:$0xff]  ;;  %v6296_v20 = vpack.c.bf16 %v2075_v17, %v2073_v16  ;;  %v2327_v16 = vld [vmem:[%s12047_s1 + $0x838] sm:$0xff] }
 0x244   :  { %v1187_v63 = vpop.xlane.xlu1 %1186  ;;  %v4207_v2 = vsel %vm3167_vm9, %v4206_v57, %v4202_v62  ;;  %v1184_v3 = vpop.xlane.xlu0 %1183  ;;  %v6292_v55 = vpack.c.bf16 %v2071_v53, %v2069_v52  ;;  %v2068_v57 = vld [vmem:[%s12047_s1 + $0x20] sm:$0xff]  ;;  %v1377_v62 = vsel %vm527_vm0, %v298_v48, 0.0  ;;  %v282_v53 = vld [vmem:[%s12046_s0 + $0x858] sm:$0xff] }
 0x245   :  { %v4216_v10 = vrot.slane %v1187_v63, %v7252_v23  ;;  %v4211_v14 = vrot.slane %v1184_v3, %v7264_v29  ;;  %v1326_v63 = vsel %vm527_vm0, %v281_v51, 0.0  ;;  %v299_v52 = vld [vmem:[%s12046_s0 + $0x8e0] sm:$0xff] }
 0x246   :  { %6293 = vmatprep.subr.bf16.mxu1 %v6292_v55  ;;  %v2324_v17 = vld [vmem:[%s12047_s1 + $0x820] sm:$0xff] }
 0x247   :  { %v4212_v25 = vsel %vm3174_vm10, %v4211_v14, %v4207_v2  ;;  %1375 = vadd.xlane.f32.xlu1 %v1374_v4  ;;  %1324 = vadd.xlane.f32.xlu0 %v1323_v9  ;;  %v6294_v2 = vpack.c.bf16 %v2070_v59, %v2068_v57  ;;  %v407_v14 = vld [vmem:[%s12046_s0 + $0xc40] sm:$0xff]  ;;  %v2077_v57 = vld [vmem:[%s12047_s1 + $0x68] sm:$0xff]  ;;  %v2079_v59 = vld [vmem:[%s12047_s1 + $0x78] sm:$0xff] }
 0x248   :  { %v1193_v30 = vpop.xlane.xlu1 %1192  ;;  %v4217_v37 = vsel %vm3181_vm11, %v4216_v10, %v4212_v25  ;;  %v1190_v38 = vpop.xlane.xlu0 %1189  ;;  %v424_v10 = vld [vmem:[%s12046_s0 + $0xcc8] sm:$0xff]  ;;  %v2074_v25 = vld [vmem:[%s12047_s1 + $0x50] sm:$0xff] }
 0x249   :  { %v4226_v45 = vrot.slane %v1193_v30, %v7278_v47  ;;  %v4221_v46 = vrot.slane %v1190_v38, %v7272_v43  ;;  %6295 = vmatpush1.bf16.msra.mxu1 %v6294_v2  ;;  %v1704_v38 = vsel %vm527_vm0, %v407_v14, 0.0  ;;  %v2325_v2 = vld [vmem:[%s12047_s1 + $0x828] sm:$0xff] }
 0x24a   :  { %6297 = vmatprep.subr.bf16.mxu1 %v6296_v20  ;;  %v2326_v20 = vld [vmem:[%s12047_s1 + $0x830] sm:$0xff] }
 0x24b   :  { %v4222_v54 = vsel %vm3188_vm12, %v4221_v46, %v4217_v37  ;;  %1753 = vadd.xlane.f32.xlu1 %v1752_v39  ;;  %1702 = vadd.xlane.f32.xlu0 %v1701_v42  ;;  %v1755_v37 = vsel %vm527_vm0, %v424_v10, 0.0  ;;  %v6298_v39 = vpack.c.bf16 %v2074_v25, %v2072_v24  ;;  %v2323_v42 = vld [vmem:[%s12047_s1 + $0x818] sm:$0xff]  ;;  %v1329_v10 = vsel %vm527_vm0, %v282_v53, 0.0 }
 0x24c   :  { %v1199_v15 = vpop.xlane.xlu1 %1198  ;;  %v1196_v61 = vpop.xlane.xlu0 %1195  ;;  %v4227_v3 = vsel %vm3195_vm13, %v4226_v45, %v4222_v54  ;;  %v2322_v45 = vld [vmem:[%s12047_s1 + $0x810] sm:$0xff]  ;;  %v6544_v54 = vpack.c.bf16 %v2323_v42, %v2321_v26 }
 0x24d   :  { %v4236_v4 = vrot.slane %v1199_v15, %v7297_v60  ;;  %v4231_v9 = vrot.slane %v1196_v61, %v7292_v58  ;;  %v6546_v55 = vpack.c.bf16 %v2322_v45, %v2320_v44  ;;  %6299 = vmatpush1.bf16.msra.mxu1 %v6298_v39  ;;  %v6300_v61 = vpack.c.bf16 %v2079_v59, %v2077_v57  ;;  %v425_v26 = vld [vmem:[%s12046_s0 + $0xcd0] sm:$0xff]  ;;  %v2080_v44 = vld [vmem:[%s12047_s1 + $0x80] sm:$0xff]  ;;  %v2331_v59 = vld [vmem:[%s12047_s1 + $0x858] sm:$0xff] }
 0x24e   :  { %6545 = vmatprep.subr.bf16.mxu0 %v6544_v54  ;;  %v2082_v45 = vld [vmem:[%s12047_s1 + $0x90] sm:$0xff]  ;;  %v1758_v54 = vsel %vm527_vm0, %v425_v26, 0.0 }
 0x24f   :  { %1378 = vadd.xlane.f32.xlu1 %v1377_v62  ;;  %1327 = vadd.xlane.f32.xlu0 %v1326_v63  ;;  %v4232_v27 = vsel %vm12058_vm14, %v4231_v9, %v4227_v3  ;;  %v2076_v62 = vld [vmem:[%s12047_s1 + $0x60] sm:$0xff]  ;;  %v2078_v63 = vld [vmem:[%s12047_s1 + $0x70] sm:$0xff]  ;;  %v1380_v9 = vsel %vm527_vm0, %v299_v52, 0.0  ;;  %v6306_v57 = vpack.c.bf16 %v2082_v45, %v2080_v44 }
 0x250   :  { %v1205_v28 = vpop.xlane.xlu1 %1204  ;;  %v1202_v30 = vpop.xlane.xlu0 %1201  ;;  %v8630_v46 = vsel %vm3209_vm15, %v4236_v4, %v4232_v27  ;;  %v6302_v14 = vpack.c.bf16 %v2078_v63, %v2076_v62  ;;  %v408_v27 = vld [vmem:[%s12046_s0 + $0xc48] sm:$0xff]  ;;  %6547 = vmatpush1.bf16.msra.mxu0 %v6546_v55  ;;  %6301 = vmatprep.subr.bf16.mxu1 %v6300_v61  ;;  %v2330_v61 = vld [vmem:[%s12047_s1 + $0x850] sm:$0xff] }
 0x251   :  { %12071 = vst [vmem:[#allocation17_spill] sm:$0xff] %v8630_v46  ;;  %v4245_v48 = vrot.slane %v1205_v28, %v7178_v33  ;;  %v4241_v51 = vrot.slane %v1202_v30, %v7172_v31  ;;  %v6548_v28 = vpack.c.bf16 %v2327_v16, %v2325_v2  ;;  %v6550_v30 = vpack.c.bf16 %v2326_v20, %v2324_v17  ;;  %v300_v2 = vld [vmem:[%s12046_s0 + $0x8e8] sm:$0xff]  ;;  %v2084_v20 = vld [vmem:[%s12047_s1 + $0xa0] sm:$0xff]  ;;  %v2334_v44 = vld [vmem:[%s12047_s1 + $0x870] sm:$0xff] }
 0x252   :  { %6303 = vmatpush1.bf16.msra.mxu1 %v6302_v14  ;;  %v1707_v55 = vsel %vm527_vm0, %v408_v27, 0.0  ;;  %v2087_v14 = vld [vmem:[%s12047_s1 + $0xb8] sm:$0xff] }
 0x253   :  { %v4246_v15 = vsel %vm3111_vm1, %v4245_v48, %v4241_v51  ;;  %1756 = vadd.xlane.f32.xlu1 %v1755_v37  ;;  %1705 = vadd.xlane.f32.xlu0 %v1704_v38  ;;  %v2081_v37 = vld [vmem:[%s12047_s1 + $0x88] sm:$0xff]  ;;  %v2083_v38 = vld [vmem:[%s12047_s1 + $0x98] sm:$0xff] }
 0x254   :  { %v1211_v3 = vpop.xlane.xlu1 %1210  ;;  %v1208_v4 = vpop.xlane.xlu0 %1207  ;;  %v6304_v42 = vpack.c.bf16 %v2083_v38, %v2081_v37  ;;  %v2329_v48 = vld [vmem:[%s12047_s1 + $0x848] sm:$0xff]  ;;  %6549 = vmatprep.subr.bf16.mxu0 %v6548_v28 }
 0x255   :  { %v4255_v24 = vrot.slane %v1211_v3, %v7175_v32  ;;  %v4250_v25 = vrot.slane %v1208_v4, %v7184_v35  ;;  %v283_v3 = vld [vmem:[%s12046_s0 + $0x860] sm:$0xff]  ;;  %6551 = vmatpush1.bf16.msra.mxu0 %v6550_v30  ;;  %v6552_v4 = vpack.c.bf16 %v2331_v59, %v2329_v48  ;;  %v1383_v30 = vsel %vm527_vm0, %v300_v2, 0.0 }
 0x256   :  { %6305 = vmatprep.subr.bf16.mxu1 %v6304_v42  ;;  %v1332_v37 = vsel %vm527_vm0, %v283_v3, 0.0  ;;  %v2332_v42 = vld [vmem:[%s12047_s1 + $0x860] sm:$0xff] }
 0x257   :  { %v4251_v39 = vsel %vm3118_vm2, %v4250_v25, %v4246_v15  ;;  %1381 = vadd.xlane.f32.xlu1 %v1380_v9  ;;  %1330 = vadd.xlane.f32.xlu0 %v1329_v10  ;;  %v2328_v15 = vld [vmem:[%s12047_s1 + $0x840] sm:$0xff]  ;;  %v2085_v10 = vld [vmem:[%s12047_s1 + $0xa8] sm:$0xff] }
 0x258   :  { %v1217_v51 = vpop.xlane.xlu1 %1216  ;;  %v4256_v52 = vsel %vm3125_vm3, %v4255_v24, %v4251_v39  ;;  %v1214_v53 = vpop.xlane.xlu0 %1213  ;;  %6307 = vmatpush1.bf16.msra.mxu1 %v6306_v57  ;;  %v6554_v9 = vpack.c.bf16 %v2330_v61, %v2328_v15  ;;  %v6308_v17 = vpack.c.bf16 %v2087_v14, %v2085_v10  ;;  %v2086_v24 = vld [vmem:[%s12047_s1 + $0xb0] sm:$0xff]  ;;  %v2333_v25 = vld [vmem:[%s12047_s1 + $0x868] sm:$0xff]  ;;  %6553 = vmatprep.subr.bf16.mxu0 %v6552_v4  ;;  %v2335_v39 = vld [vmem:[%s12047_s1 + $0x878] sm:$0xff] }
 0x259   :  { %v4265_v62 = vrot.slane %v1217_v51, %v7189_v40  ;;  %v4260_v63 = vrot.slane %v1214_v53, %v7192_v41  ;;  %v6310_v38 = vpack.c.bf16 %v2086_v24, %v2084_v20  ;;  %v426_v51 = vld [vmem:[%s12046_s0 + $0xcd8] sm:$0xff]  ;;  %v6556_v53 = vpack.c.bf16 %v2335_v39, %v2333_v25  ;;  %v2088_v61 = vld [vmem:[%s12047_s1 + $0xc0] sm:$0xff]  ;;  %v2338_v20 = vld [vmem:[%s12047_s1 + $0x890] sm:$0xff] }
 0x25a   :  { %6555 = vmatpush1.bf16.msra.mxu0 %v6554_v9  ;;  %6309 = vmatprep.subr.bf16.mxu1 %v6308_v17  ;;  %v2091_v57 = vld [vmem:[%s12047_s1 + $0xd8] sm:$0xff]  ;;  %v1761_v9 = vsel %vm527_vm0, %v426_v51, 0.0  ;;  %v2336_v17 = vld [vmem:[%s12047_s1 + $0x880] sm:$0xff] }
 0x25b   :  { %v4261_v16 = vsel %vm12056_vm4, %v4260_v63, %v4256_v52  ;;  %1759 = vadd.xlane.f32.xlu1 %v1758_v54  ;;  %1708 = vadd.xlane.f32.xlu0 %v1707_v55  ;;  %v409_v52 = vld [vmem:[%s12046_s0 + $0xc50] sm:$0xff]  ;;  %v6558_v54 = vpack.c.bf16 %v2334_v44, %v2332_v42  ;;  %v2089_v55 = vld [vmem:[%s12047_s1 + $0xc8] sm:$0xff]  ;;  %v2092_v44 = vld [vmem:[%s12047_s1 + $0xe0] sm:$0xff] }
 0x25c   :  { %v1223_v26 = vpop.xlane.xlu1 %1222  ;;  %v4266_v27 = vsel %vm3139_vm5, %v4265_v62, %v4261_v16  ;;  %v1220_v28 = vpop.xlane.xlu0 %1219  ;;  %6311 = vmatpush1.bf16.msra.mxu1 %v6310_v38  ;;  %v6312_v15 = vpack.c.bf16 %v2091_v57, %v2089_v55  ;;  %v2090_v62 = vld [vmem:[%s12047_s1 + $0xd0] sm:$0xff]  ;;  %v2337_v63 = vld [vmem:[%s12047_s1 + $0x888] sm:$0xff]  ;;  %v1710_v10 = vsel %vm527_vm0, %v409_v52, 0.0  ;;  %6557 = vmatprep.subr.bf16.mxu0 %v6556_v53  ;;  %v2339_v16 = vld [vmem:[%s12047_s1 + $0x898] sm:$0xff] }
 0x25d   :  { %v4275_v45 = vrot.slane %v1223_v26, %v7211_v56  ;;  %v4270_v48 = vrot.slane %v1220_v28, %v7225_v0  ;;  %v6314_v14 = vpack.c.bf16 %v2090_v62, %v2088_v61  ;;  %v301_v26 = vld [vmem:[%s12046_s0 + $0x8f0] sm:$0xff]  ;;  %v6560_v28 = vpack.c.bf16 %v2339_v16, %v2337_v63  ;;  %v2095_v38 = vld [vmem:[%s12047_s1 + $0xf8] sm:$0xff] }
 0x25e   :  { %6559 = vmatpush1.bf16.msra.mxu0 %v6558_v54  ;;  %6313 = vmatprep.subr.bf16.mxu1 %v6312_v15  ;;  %v1386_v54 = vsel %vm527_vm0, %v301_v26, 0.0  ;;  %v2340_v15 = vld [vmem:[%s12047_s1 + $0x8a0] sm:$0xff]  ;;  %v2342_v61 = vld [vmem:[%s12047_s1 + $0x8b0] sm:$0xff] }
 0x25f   :  { %v4271_v59 = vsel %vm3146_vm6, %v4270_v48, %v4266_v27  ;;  %1384 = vadd.xlane.f32.xlu1 %v1383_v30  ;;  %1333 = vadd.xlane.f32.xlu0 %v1332_v37  ;;  %v284_v27 = vld [vmem:[%s12046_s0 + $0x868] sm:$0xff]  ;;  %v6562_v30 = vpack.c.bf16 %v2338_v20, %v2336_v17  ;;  %v2096_v20 = vld [vmem:[%s12047_s1 + $0x100] sm:$0xff] }
 0x260   :  { %v1229_v2 = vpop.xlane.xlu1 %1228  ;;  %v4276_v3 = vsel %vm3153_vm7, %v4275_v45, %v4271_v59  ;;  %v1226_v4 = vpop.xlane.xlu0 %1225  ;;  %6315 = vmatpush1.bf16.msra.mxu1 %v6314_v14  ;;  %v2093_v37 = vld [vmem:[%s12047_s1 + $0xe8] sm:$0xff]  ;;  %v2094_v45 = vld [vmem:[%s12047_s1 + $0xf0] sm:$0xff]  ;;  %v1335_v55 = vsel %vm527_vm0, %v284_v27, 0.0  ;;  %6561 = vmatprep.subr.bf16.mxu0 %v6560_v28  ;;  %v2343_v59 = vld [vmem:[%s12047_s1 + $0x8b8] sm:$0xff] }
 0x261   :  { %v4285_v24 = vrot.slane %v1229_v2, %v7232_v7  ;;  %v4280_v25 = vrot.slane %v1226_v4, %v7244_v13  ;;  %v6316_v42 = vpack.c.bf16 %v2095_v38, %v2093_v37  ;;  %v2341_v48 = vld [vmem:[%s12047_s1 + $0x8a8] sm:$0xff]  ;;  %v6318_v57 = vpack.c.bf16 %v2094_v45, %v2092_v44  ;;  %v427_v2 = vld [vmem:[%s12046_s0 + $0xce0] sm:$0xff]  ;;  %v2099_v14 = vld [vmem:[%s12047_s1 + $0x118] sm:$0xff] }
 0x262   :  { %6563 = vmatpush1.bf16.msra.mxu0 %v6562_v30  ;;  %v6564_v4 = vpack.c.bf16 %v2343_v59, %v2341_v48  ;;  %v1764_v30 = vsel %vm527_vm0, %v427_v2, 0.0  ;;  %v2346_v44 = vld [vmem:[%s12047_s1 + $0x8d0] sm:$0xff] }
 0x263   :  { %v4281_v39 = vsel %vm3160_vm8, %v4280_v25, %v4276_v3  ;;  %1762 = vadd.xlane.f32.xlu1 %v1761_v9  ;;  %1711 = vadd.xlane.f32.xlu0 %v1710_v10  ;;  %v410_v3 = vld [vmem:[%s12046_s0 + $0xc58] sm:$0xff]  ;;  %v6566_v9 = vpack.c.bf16 %v2342_v61, %v2340_v15  ;;  %v2097_v10 = vld [vmem:[%s12047_s1 + $0x108] sm:$0xff]  ;;  %v2100_v61 = vld [vmem:[%s12047_s1 + $0x120] sm:$0xff] }
 0x264   :  { %v1235_v51 = vpop.xlane.xlu1 %1234  ;;  %v4286_v52 = vsel %vm3167_vm9, %v4285_v24, %v4281_v39  ;;  %v1232_v53 = vpop.xlane.xlu0 %1231  ;;  %6317 = vmatprep.subr.bf16.mxu1 %v6316_v42  ;;  %v6320_v17 = vpack.c.bf16 %v2099_v14, %v2097_v10  ;;  %v2098_v24 = vld [vmem:[%s12047_s1 + $0x110] sm:$0xff]  ;;  %v2345_v25 = vld [vmem:[%s12047_s1 + $0x8c8] sm:$0xff]  ;;  %v1713_v37 = vsel %vm527_vm0, %v410_v3, 0.0  ;;  %6565 = vmatprep.subr.bf16.mxu0 %v6564_v4  ;;  %v2347_v39 = vld [vmem:[%s12047_s1 + $0x8d8] sm:$0xff] }
 0x265   :  { %v4295_v62 = vrot.slane %v1235_v51, %v7252_v23  ;;  %v4290_v63 = vrot.slane %v1232_v53, %v7264_v29  ;;  %6319 = vmatpush1.bf16.msra.mxu1 %v6318_v57  ;;  %v6322_v38 = vpack.c.bf16 %v2098_v24, %v2096_v20  ;;  %v2344_v42 = vld [vmem:[%s12047_s1 + $0x8c0] sm:$0xff]  ;;  %v302_v51 = vld [vmem:[%s12046_s0 + $0x8f8] sm:$0xff]  ;;  %v6568_v53 = vpack.c.bf16 %v2347_v39, %v2345_v25  ;;  %v2350_v20 = vld [vmem:[%s12047_s1 + $0x8f0] sm:$0xff] }
 0x266   :  { %6567 = vmatpush1.bf16.msra.mxu0 %v6566_v9  ;;  %6321 = vmatprep.subr.bf16.mxu1 %v6320_v17  ;;  %v2103_v57 = vld [vmem:[%s12047_s1 + $0x138] sm:$0xff]  ;;  %v1389_v9 = vsel %vm527_vm0, %v302_v51, 0.0  ;;  %v2348_v17 = vld [vmem:[%s12047_s1 + $0x8e0] sm:$0xff] }
 0x267   :  { %v4291_v16 = vsel %vm3174_vm10, %v4290_v63, %v4286_v52  ;;  %1387 = vadd.xlane.f32.xlu1 %v1386_v54  ;;  %1336 = vadd.xlane.f32.xlu0 %v1335_v55  ;;  %v285_v52 = vld [vmem:[%s12046_s0 + $0x870] sm:$0xff]  ;;  %v6570_v54 = vpack.c.bf16 %v2346_v44, %v2344_v42  ;;  %v2101_v55 = vld [vmem:[%s12047_s1 + $0x128] sm:$0xff]  ;;  %v2104_v44 = vld [vmem:[%s12047_s1 + $0x140] sm:$0xff] }
 0x268   :  { %v1241_v26 = vpop.xlane.xlu1 %1240  ;;  %v4296_v27 = vsel %vm3181_vm11, %v4295_v62, %v4291_v16  ;;  %v1238_v28 = vpop.xlane.xlu0 %1237  ;;  %v6324_v15 = vpack.c.bf16 %v2103_v57, %v2101_v55  ;;  %v2102_v62 = vld [vmem:[%s12047_s1 + $0x130] sm:$0xff]  ;;  %v2349_v63 = vld [vmem:[%s12047_s1 + $0x8e8] sm:$0xff]  ;;  %v1338_v10 = vsel %vm527_vm0, %v285_v52, 0.0  ;;  %6569 = vmatprep.subr.bf16.mxu0 %v6568_v53  ;;  %v2351_v16 = vld [vmem:[%s12047_s1 + $0x8f8] sm:$0xff] }
 0x269   :  { %v4305_v45 = vrot.slane %v1241_v26, %v7278_v47  ;;  %v4300_v48 = vrot.slane %v1238_v28, %v7272_v43  ;;  %6323 = vmatpush1.bf16.msra.mxu1 %v6322_v38  ;;  %v6326_v14 = vpack.c.bf16 %v2102_v62, %v2100_v61  ;;  %v428_v26 = vld [vmem:[%s12046_s0 + $0xce8] sm:$0xff]  ;;  %v6572_v28 = vpack.c.bf16 %v2351_v16, %v2349_v63  ;;  %v2107_v38 = vld [vmem:[%s12047_s1 + $0x158] sm:$0xff] }
 0x26a   :  { %6571 = vmatpush1.bf16.msra.mxu0 %v6570_v54  ;;  %6325 = vmatprep.subr.bf16.mxu1 %v6324_v15  ;;  %v1767_v53 = vsel %vm527_vm0, %v428_v26, 0.0  ;;  %v2355_v57 = vld [vmem:[%s12047_s1 + $0x918] sm:$0xff]  ;;  %v2354_v15 = vld [vmem:[%s12047_s1 + $0x910] sm:$0xff] }
 0x26b   :  { %v4301_v59 = vsel %vm3188_vm12, %v4300_v48, %v4296_v27  ;;  %1765 = vadd.xlane.f32.xlu1 %v1764_v30  ;;  %1714 = vadd.xlane.f32.xlu0 %v1713_v37  ;;  %v411_v27 = vld [vmem:[%s12046_s0 + $0xc60] sm:$0xff]  ;;  %v6574_v30 = vpack.c.bf16 %v2350_v20, %v2348_v17  ;;  %v2105_v37 = vld [vmem:[%s12047_s1 + $0x148] sm:$0xff] }
 0x26c   :  { %v1247_v2 = vpop.xlane.xlu1 %1246  ;;  %v4306_v3 = vsel %vm3195_vm13, %v4305_v45, %v4301_v59  ;;  %v1244_v4 = vpop.xlane.xlu0 %1243  ;;  %v6328_v42 = vpack.c.bf16 %v2107_v38, %v2105_v37  ;;  %v2106_v45 = vld [vmem:[%s12047_s1 + $0x150] sm:$0xff]  ;;  %v2353_v48 = vld [vmem:[%s12047_s1 + $0x908] sm:$0xff]  ;;  %v1716_v54 = vsel %vm527_vm0, %v411_v27, 0.0  ;;  %6573 = vmatprep.subr.bf16.mxu0 %v6572_v28  ;;  %v2352_v59 = vld [vmem:[%s12047_s1 + $0x900] sm:$0xff] }
 0x26d   :  { %v4315_v24 = vrot.slane %v1247_v2, %v7297_v60  ;;  %v4310_v25 = vrot.slane %v1244_v4, %v7292_v58  ;;  %6327 = vmatpush1.bf16.msra.mxu1 %v6326_v14  ;;  %v6330_v55 = vpack.c.bf16 %v2106_v45, %v2104_v44  ;;  %v412_v2 = vld [vmem:[%s12046_s0 + $0xc68] sm:$0xff]  ;;  %v6576_v4 = vpack.c.bf16 %v2355_v57, %v2353_v48  ;;  %v2111_v14 = vld [vmem:[%s12047_s1 + $0x178] sm:$0xff]  ;;  %v2108_v20 = vld [vmem:[%s12047_s1 + $0x160] sm:$0xff] }
 0x26e   :  { %6575 = vmatpush1.bf16.msra.mxu0 %v6574_v30  ;;  %6329 = vmatprep.subr.bf16.mxu1 %v6328_v42  ;;  %v1719_v28 = vsel %vm527_vm0, %v412_v2, 0.0  ;;  %v2359_v38 = vld [vmem:[%s12047_s1 + $0x938] sm:$0xff]  ;;  %v2358_v42 = vld [vmem:[%s12047_s1 + $0x930] sm:$0xff] }
 0x26f   :  { %v4311_v39 = vsel %vm12058_vm14, %v4310_v25, %v4306_v3  ;;  %1390 = vadd.xlane.f32.xlu1 %v1389_v9  ;;  %1339 = vadd.xlane.f32.xlu0 %v1338_v10  ;;  %v286_v3 = vld [vmem:[%s12046_s0 + $0x878] sm:$0xff]  ;;  %v6578_v9 = vpack.c.bf16 %v2354_v15, %v2352_v59  ;;  %v2109_v10 = vld [vmem:[%s12047_s1 + $0x168] sm:$0xff]  ;;  %v413_v48 = vld [vmem:[%s12046_s0 + $0xc70] sm:$0xff] }
 0x270   :  { %v1253_v51 = vpop.xlane.xlu1 %1252  ;;  %v1250_v52 = vpop.xlane.xlu0 %1249  ;;  %v8919_v61 = vsel %vm3209_vm15, %v4315_v24, %v4311_v39  ;;  %v6332_v17 = vpack.c.bf16 %v2111_v14, %v2109_v10  ;;  %v2110_v24 = vld [vmem:[%s12047_s1 + $0x170] sm:$0xff]  ;;  %v2357_v25 = vld [vmem:[%s12047_s1 + $0x928] sm:$0xff]  ;;  %v1341_v30 = vsel %vm527_vm0, %v286_v3, 0.0  ;;  %6577 = vmatprep.subr.bf16.mxu0 %v6576_v4  ;;  %v2356_v39 = vld [vmem:[%s12047_s1 + $0x920] sm:$0xff] }
 0x271   :  { %12072 = vst [vmem:[#allocation18_spill] sm:$0xff] %v8919_v61  ;;  %v4324_v62 = vrot.slane %v1253_v51, %v7178_v33  ;;  %v4320_v63 = vrot.slane %v1250_v52, %v7172_v31  ;;  %6331 = vmatpush1.bf16.msra.mxu1 %v6330_v55  ;;  %v6334_v37 = vpack.c.bf16 %v2110_v24, %v2108_v20  ;;  %v429_v51 = vld [vmem:[%s12046_s0 + $0xcf0] sm:$0xff]  ;;  %v2115_v55 = vld [vmem:[%s12047_s1 + $0x198] sm:$0xff]  ;;  %v2112_v15 = vld [vmem:[%s12047_s1 + $0x180] sm:$0xff] }
 0x272   :  { %6579 = vmatpush1.bf16.msra.mxu0 %v6578_v9  ;;  %6333 = vmatprep.subr.bf16.mxu1 %v6332_v17  ;;  %v6580_v52 = vpack.c.bf16 %v2359_v38, %v2357_v25  ;;  %v1722_v9 = vsel %vm527_vm0, %v413_v48, 0.0  ;;  %v1770_v10 = vsel %vm527_vm0, %v429_v51, 0.0  ;;  %v2360_v17 = vld [vmem:[%s12047_s1 + $0x940] sm:$0xff]  ;;  %v2362_v20 = vld [vmem:[%s12047_s1 + $0x950] sm:$0xff]  ;;  %v2119_v38 = vld [vmem:[%s12047_s1 + $0x1b8] sm:$0xff] }
 0x273   :  { %v4325_v16 = vsel %vm3111_vm1, %v4324_v62, %v4320_v63  ;;  %1768 = vadd.xlane.f32.xlu1 %v1767_v53  ;;  %1717 = vadd.xlane.f32.xlu0 %v1716_v54  ;;  %v6582_v53 = vpack.c.bf16 %v2358_v42, %v2356_v39  ;;  %v2113_v54 = vld [vmem:[%s12047_s1 + $0x188] sm:$0xff]  ;;  %v2114_v62 = vld [vmem:[%s12047_s1 + $0x190] sm:$0xff]  ;;  %v442_v61 = vld [vmem:[%s12046_s0 + $0xd58] sm:$0xff] }
 0x274   :  { %v1259_v26 = vpop.xlane.xlu1 %1258  ;;  %v1256_v27 = vpop.xlane.xlu0 %1255  ;;  %v6336_v59 = vpack.c.bf16 %v2115_v55, %v2113_v54  ;;  %v2361_v63 = vld [vmem:[%s12047_s1 + $0x948] sm:$0xff]  ;;  %6581 = vmatprep.subr.bf16.mxu0 %v6580_v52  ;;  %v6338_v14 = vpack.c.bf16 %v2114_v62, %v2112_v15  ;;  %v2364_v15 = vld [vmem:[%s12047_s1 + $0x960] sm:$0xff]  ;;  %v2366_v62 = vld [vmem:[%s12047_s1 + $0x970] sm:$0xff] }
 0x275   :  { %v4334_v44 = vrot.slane %v1259_v26, %v7175_v32  ;;  %v4329_v45 = vrot.slane %v1256_v27, %v7184_v35  ;;  %6335 = vmatpush1.bf16.msra.mxu1 %v6334_v37  ;;  %v414_v26 = vld [vmem:[%s12046_s0 + $0xc78] sm:$0xff]  ;;  %v2117_v37 = vld [vmem:[%s12047_s1 + $0x1a8] sm:$0xff] }
 0x276   :  { %v430_v27 = vld [vmem:[%s12046_s0 + $0xcf8] sm:$0xff]  ;;  %6583 = vmatpush1.bf16.msra.mxu0 %v6582_v53  ;;  %6337 = vmatprep.subr.bf16.mxu1 %v6336_v59  ;;  %v6340_v42 = vpack.c.bf16 %v2119_v38, %v2117_v37  ;;  %v2365_v48 = vld [vmem:[%s12047_s1 + $0x968] sm:$0xff]  ;;  %v1725_v54 = vsel %vm527_vm0, %v414_v26, 0.0 }
 0x277   :  { %v4330_v57 = vsel %vm3118_vm2, %v4329_v45, %v4325_v16  ;;  %1720 = vadd.xlane.f32.xlu1 %v1719_v28  ;;  %1342 = vadd.xlane.f32.xlu0 %v1341_v30  ;;  %v2363_v16 = vld [vmem:[%s12047_s1 + $0x958] sm:$0xff]  ;;  %v6586_v30 = vpack.c.bf16 %v2362_v20, %v2360_v17  ;;  %v2118_v45 = vld [vmem:[%s12047_s1 + $0x1b0] sm:$0xff]  ;;  %v1773_v55 = vsel %vm527_vm0, %v430_v27, 0.0  ;;  %v2369_v26 = vld [vmem:[%s12047_s1 + $0x988] sm:$0xff] }
 0x278   :  { %v1265_v2 = vpop.xlane.xlu1 %1264  ;;  %v4335_v3 = vsel %vm3125_vm3, %v4334_v44, %v4330_v57  ;;  %v1262_v4 = vpop.xlane.xlu0 %1261  ;;  %v6584_v28 = vpack.c.bf16 %v2363_v16, %v2361_v63  ;;  %v2116_v44 = vld [vmem:[%s12047_s1 + $0x1a0] sm:$0xff]  ;;  %v2367_v59 = vld [vmem:[%s12047_s1 + $0x978] sm:$0xff] }
 0x279   :  { %v4344_v24 = vrot.slane %v1265_v2, %v7189_v40  ;;  %v4339_v25 = vrot.slane %v1262_v4, %v7192_v41  ;;  %6339 = vmatpush1.bf16.msra.mxu1 %v6338_v14  ;;  %v6342_v57 = vpack.c.bf16 %v2118_v45, %v2116_v44  ;;  %v319_v4 = vld [vmem:[%s12046_s0 + $0x980] sm:$0xff]  ;;  %v2121_v14 = vld [vmem:[%s12047_s1 + $0x1c8] sm:$0xff]  ;;  %v2123_v16 = vld [vmem:[%s12047_s1 + $0x1d8] sm:$0xff] }
 0x27a   :  { %6585 = vmatprep.subr.bf16.mxu0 %v6584_v28  ;;  %6341 = vmatprep.subr.bf16.mxu1 %v6340_v42  ;;  %v6344_v20 = vpack.c.bf16 %v2123_v16, %v2121_v14  ;;  %v1440_v38 = vsel %vm527_vm0, %v319_v4, 0.0  ;;  %v2371_v42 = vld [vmem:[%s12047_s1 + $0x998] sm:$0xff]  ;;  %v2368_v44 = vld [vmem:[%s12047_s1 + $0x980] sm:$0xff]  ;;  %v2370_v45 = vld [vmem:[%s12047_s1 + $0x990] sm:$0xff] }
 0x27b   :  { %v4340_v39 = vsel %vm12056_vm4, %v4339_v25, %v4335_v3  ;;  %1723 = vadd.xlane.f32.xlu1 %v1722_v9  ;;  %1771 = vadd.xlane.f32.xlu0 %v1770_v10  ;;  %v320_v3 = vld [vmem:[%s12046_s0 + $0x988] sm:$0xff]  ;;  %v6588_v9 = vpack.c.bf16 %v2367_v59, %v2365_v48  ;;  %v6590_v10 = vpack.c.bf16 %v2366_v62, %v2364_v15  ;;  %v2122_v25 = vld [vmem:[%s12047_s1 + $0x1d0] sm:$0xff]  ;;  %v2127_v59 = vld [vmem:[%s12047_s1 + $0x1f8] sm:$0xff] }
 0x27c   :  { %v1271_v51 = vpop.xlane.xlu1 %1270  ;;  %v4345_v52 = vsel %vm3139_vm5, %v4344_v24, %v4340_v39  ;;  %v1268_v53 = vpop.xlane.xlu0 %1267  ;;  %6587 = vmatpush1.bf16.msra.mxu0 %v6586_v30  ;;  %v2120_v24 = vld [vmem:[%s12047_s1 + $0x1c0] sm:$0xff]  ;;  %v1443_v37 = vsel %vm527_vm0, %v320_v3, 0.0  ;;  %v2373_v3 = vld [vmem:[%s12047_s1 + $0x9a8] sm:$0xff] }
 0x27d   :  { %v4354_v63 = vrot.slane %v1271_v51, %v7211_v56  ;;  %v4349_v2 = vrot.slane %v1268_v53, %v7225_v0  ;;  %6343 = vmatpush1.bf16.msra.mxu1 %v6342_v57  ;;  %6589 = vmatprep.subr.bf16.mxu0 %v6588_v9  ;;  %v6346_v39 = vpack.c.bf16 %v2122_v25, %v2120_v24  ;;  %v303_v53 = vld [vmem:[%s12046_s0 + $0x900] sm:$0xff]  ;;  %v2125_v57 = vld [vmem:[%s12047_s1 + $0x1e8] sm:$0xff]  ;;  %v2374_v25 = vld [vmem:[%s12047_s1 + $0x9b0] sm:$0xff] }
 0x27e   :  { %6345 = vmatprep.subr.bf16.mxu1 %v6344_v20  ;;  %v6348_v62 = vpack.c.bf16 %v2127_v59, %v2125_v57  ;;  %v1392_v16 = vsel %vm527_vm0, %v303_v53, 0.0  ;;  %v2375_v20 = vld [vmem:[%s12047_s1 + $0x9b8] sm:$0xff]  ;;  %v2372_v24 = vld [vmem:[%s12047_s1 + $0x9a0] sm:$0xff]  ;;  %v2378_v57 = vld [vmem:[%s12047_s1 + $0x9d0] sm:$0xff] }
 0x27f   :  { %v4350_v17 = vsel %vm3146_vm6, %v4349_v2, %v4345_v52  ;;  %1726 = vadd.xlane.f32.xlu1 %v1725_v54  ;;  %1774 = vadd.xlane.f32.xlu0 %v1773_v55  ;;  %v304_v52 = vld [vmem:[%s12046_s0 + $0x908] sm:$0xff]  ;;  %v6592_v54 = vpack.c.bf16 %v2371_v42, %v2369_v26  ;;  %v6594_v55 = vpack.c.bf16 %v2370_v45, %v2368_v44  ;;  %v2126_v2 = vld [vmem:[%s12047_s1 + $0x1f0] sm:$0xff]  ;;  %v2379_v44 = vld [vmem:[%s12047_s1 + $0x9d8] sm:$0xff] }
 0x280   :  { %v1277_v27 = vpop.xlane.xlu1 %1276  ;;  %v4355_v28 = vsel %vm3153_vm7, %v4354_v63, %v4350_v17  ;;  %v1274_v30 = vpop.xlane.xlu0 %1273  ;;  %6591 = vmatpush1.bf16.msra.mxu0 %v6590_v10  ;;  %v2124_v63 = vld [vmem:[%s12047_s1 + $0x1e0] sm:$0xff]  ;;  %v1395_v14 = vsel %vm527_vm0, %v304_v52, 0.0  ;;  %v2377_v42 = vld [vmem:[%s12047_s1 + $0x9c8] sm:$0xff] }
 0x281   :  { %v4364_v48 = vrot.slane %v1277_v27, %v7232_v7  ;;  %v4359_v51 = vrot.slane %v1274_v30, %v7244_v13  ;;  %6347 = vmatpush1.bf16.msra.mxu1 %v6346_v39  ;;  %6593 = vmatprep.subr.bf16.mxu0 %v6592_v54  ;;  %v6350_v17 = vpack.c.bf16 %v2126_v2, %v2124_v63  ;;  %v321_v30 = vld [vmem:[%s12046_s0 + $0x990] sm:$0xff]  ;;  %v322_v63 = vld [vmem:[%s12046_s0 + $0x998] sm:$0xff] }
 0x282   :  { %6349 = vmatprep.subr.bf16.mxu1 %v6348_v62  ;;  %v1446_v53 = vsel %vm527_vm0, %v321_v30, 0.0  ;;  %v6600_v54 = vpack.c.bf16 %v2379_v44, %v2377_v42  ;;  %v447_v62 = vld [vmem:[%s12046_s0 + $0xd80] sm:$0xff]  ;;  %v306_v30 = vld [vmem:[%s12046_s0 + $0x918] sm:$0xff] }
 0x283   :  { %v4360_v15 = vsel %vm3160_vm8, %v4359_v51, %v4355_v28  ;;  %1444 = vadd.xlane.f32.xlu1 %v1443_v37  ;;  %1441 = vadd.xlane.f32.xlu0 %v1440_v38  ;;  %v305_v28 = vld [vmem:[%s12046_s0 + $0x910] sm:$0xff]  ;;  %v6596_v37 = vpack.c.bf16 %v2375_v20, %v2373_v3  ;;  %v6598_v38 = vpack.c.bf16 %v2374_v25, %v2372_v24  ;;  %v2380_v24 = vld [vmem:[%s12047_s1 + $0x9e0] sm:$0xff] }
 0x284   :  { %v1283_v4 = vpop.xlane.xlu1 %1282  ;;  %v4365_v9 = vsel %vm3167_vm9, %v4364_v48, %v4360_v15  ;;  %v1280_v10 = vpop.xlane.xlu0 %1279  ;;  %6595 = vmatpush1.bf16.msra.mxu0 %v6594_v55  ;;  %v1398_v52 = vsel %vm527_vm0, %v305_v28, 0.0  ;;  %v2376_v55 = vld [vmem:[%s12047_s1 + $0x9c0] sm:$0xff]  ;;  %v2382_v25 = vld [vmem:[%s12047_s1 + $0x9f0] sm:$0xff] }
 0x285   :  { %v4374_v26 = vrot.slane %v1283_v4, %v7252_v23  ;;  %v4369_v27 = vrot.slane %v1280_v10, %v7264_v29  ;;  %6351 = vmatpush1.bf16.msra.mxu1 %v6350_v17  ;;  %6597 = vmatprep.subr.bf16.mxu0 %v6596_v37  ;;  %v6602_v2 = vpack.c.bf16 %v2378_v57, %v2376_v55  ;;  %v2381_v4 = vld [vmem:[%s12047_s1 + $0x9e8] sm:$0xff]  ;;  %v1449_v17 = vsel %vm527_vm0, %v322_v63, 0.0  ;;  %v323_v55 = vld [vmem:[%s12046_s0 + $0x9a0] sm:$0xff] }
 0x286   :  { %v448_v37 = vld [vmem:[%s12046_s0 + $0xd88] sm:$0xff]  ;;  %v1452_v63 = vsel %vm527_vm0, %v323_v55, 0.0 }
 0x287   :  { %v4370_v39 = vsel %vm3174_vm10, %v4369_v27, %v4365_v9  ;;  %1396 = vadd.xlane.f32.xlu1 %v1395_v14  ;;  %1393 = vadd.xlane.f32.xlu0 %v1392_v16  ;;  %v2383_v9 = vld [vmem:[%s12047_s1 + $0x9f8] sm:$0xff]  ;;  %v1824_v16 = vsel %vm527_vm0, %v447_v62, 0.0 }
 0x288   :  { %v1289_v45 = vpop.xlane.xlu1 %1288  ;;  %v4375_v48 = vsel %vm3181_vm11, %v4374_v26, %v4370_v39  ;;  %v1286_v51 = vpop.xlane.xlu0 %1285  ;;  %6599 = vmatpush1.bf16.msra.mxu0 %v6598_v38  ;;  %v6604_v20 = vpack.c.bf16 %v2383_v9, %v2381_v4  ;;  %v6606_v38 = vpack.c.bf16 %v2382_v25, %v2380_v24  ;;  %v449_v4 = vld [vmem:[%s12046_s0 + $0xd90] sm:$0xff]  ;;  %v432_v9 = vld [vmem:[%s12046_s0 + $0xd08] sm:$0xff] }
 0x289   :  { %v4384_v59 = vrot.slane %v1289_v45, %v7278_v47  ;;  %v4379_v15 = vrot.slane %v1286_v51, %v7272_v43  ;;  %6601 = vmatprep.subr.bf16.mxu0 %v6600_v54  ;;  %v1401_v45 = vsel %vm527_vm0, %v306_v30, 0.0  ;;  %v431_v54 = vld [vmem:[%s12046_s0 + $0xd00] sm:$0xff]  ;;  %v1779_v24 = vsel %vm527_vm0, %v432_v9, 0.0 }
 0x28a   :  { %v1776_v62 = vsel %vm527_vm0, %v431_v54, 0.0 }
 0x28b   :  { %v4380_v3 = vsel %vm3188_vm12, %v4379_v15, %v4375_v48  ;;  %1399 = vadd.xlane.f32.xlu1 %v1398_v52  ;;  %1447 = vadd.xlane.f32.xlu0 %v1446_v53  ;;  %v1827_v48 = vsel %vm527_vm0, %v448_v37, 0.0 }
 0x28c   :  { %v1295_v10 = vpop.xlane.xlu1 %1294  ;;  %v1292_v14 = vpop.xlane.xlu0 %1291  ;;  %v4385_v26 = vsel %vm3195_vm13, %v4384_v59, %v4380_v3  ;;  %6603 = vmatpush1.bf16.msra.mxu0 %v6602_v2 }
 0x28d   :  { %v4394_v27 = vrot.slane %v1295_v10, %v7297_v60  ;;  %v4389_v28 = vrot.slane %v1292_v14, %v7292_v58  ;;  %6605 = vmatprep.subr.bf16.mxu0 %v6604_v20  ;;  %v1830_v20 = vsel %vm527_vm0, %v449_v4, 0.0 }
 0x28f   :  { %1825 = vadd.xlane.f32.xlu1 %v1824_v16  ;;  %1450 = vadd.xlane.f32.xlu0 %v1449_v17  ;;  %v4390_v39 = vsel %vm12058_vm14, %v4389_v28, %v4385_v26  ;;  %v324_v26 = vld [vmem:[%s12046_s0 + $0x9a8] sm:$0xff] }
 0x290   :  { %v1301_v42 = vpop.xlane.xlu1 %1300  ;;  %v1298_v44 = vpop.xlane.xlu0 %1297  ;;  %v9160_v51 = vsel %vm3209_vm15, %v4394_v27, %v4390_v39  ;;  %6607 = vmatpush1.bf16.msra.mxu0 %v6606_v38  ;;  %v307_v27 = vld [vmem:[%s12046_s0 + $0x920] sm:$0xff]  ;;  %v1455_v38 = vsel %vm527_vm0, %v324_v26, 0.0 }
 0x291   :  { %12073 = vst [vmem:[#allocation19_spill] sm:$0xff] %v9160_v51  ;;  %v4403_v52 = vrot.slane %v1301_v42, %v7178_v33  ;;  %v4399_v53 = vrot.slane %v1298_v44, %v7172_v31  ;;  %v1404_v39 = vsel %vm527_vm0, %v307_v27, 0.0 }
 0x293   :  { %v4404_v57 = vsel %vm3111_vm1, %v4403_v52, %v4399_v53  ;;  %1402 = vadd.xlane.f32.xlu1 %v1401_v45  ;;  %1828 = vadd.xlane.f32.xlu0 %v1827_v48  ;;  %v450_v48 = vld [vmem:[%s12046_s0 + $0xd98] sm:$0xff]  ;;  %v433_v52 = vld [vmem:[%s12046_s0 + $0xd10] sm:$0xff] }
 0x294   :  { %v1307_v59 = vpop.xlane.xlu1 %1306  ;;  %v1304_v15 = vpop.xlane.xlu0 %1303 }
 0x295   :  { %v4413_v2 = vrot.slane %v1307_v59, %v7175_v32  ;;  %v4408_v3 = vrot.slane %v1304_v15, %v7184_v35  ;;  %v1833_v59 = vsel %vm527_vm0, %v450_v48, 0.0  ;;  %v1782_v15 = vsel %vm527_vm0, %v433_v52, 0.0  ;;  %v309_v48 = vld [vmem:[%s12046_s0 + $0x930] sm:$0xff] }
 0x297   :  { %v4409_v10 = vsel %vm3118_vm2, %v4408_v3, %v4404_v57  ;;  %1777 = vadd.xlane.f32.xlu1 %v1776_v62  ;;  %1453 = vadd.xlane.f32.xlu0 %v1452_v63  ;;  %v325_v63 = vld [vmem:[%s12046_s0 + $0x9b0] sm:$0xff] }
 0x298   :  { %v1346_v14 = vpop.xlane.xlu1 %1345  ;;  %v4414_v16 = vsel %vm3125_vm3, %v4413_v2, %v4409_v10  ;;  %v1310_v17 = vpop.xlane.xlu0 %1309  ;;  %v308_v2 = vld [vmem:[%s12046_s0 + $0x928] sm:$0xff]  ;;  %v1458_v10 = vsel %vm527_vm0, %v325_v63, 0.0  ;;  %v435_v63 = vld [vmem:[%s12046_s0 + $0xd20] sm:$0xff] }
 0x299   :  { %v4418_v25 = vrot.slane %v1310_v17, %v7192_v41  ;;  %v4478_v42 = vrot.slane %v1346_v14, %v7172_v31  ;;  %v1407_v14 = vsel %vm527_vm0, %v308_v2, 0.0 }
 0x29b   :  { %v9193_v28 = vsel %vm12056_vm4, %v4418_v25, %v4414_v16  ;;  %1831 = vadd.xlane.f32.xlu1 %v1830_v20  ;;  %1780 = vadd.xlane.f32.xlu0 %v1779_v24  ;;  %v451_v24 = vld [vmem:[%s12046_s0 + $0xda0] sm:$0xff]  ;;  %v434_v25 = vld [vmem:[%s12046_s0 + $0xd18] sm:$0xff] }
 0x29c   :  { %v1352_v30 = vpop.xlane.xlu1 %1351  ;;  %v1349_v37 = vpop.xlane.xlu0 %1348 }
 0x29d   :  { %v4487_v44 = vrot.slane %v1352_v30, %v7184_v35  ;;  %v4482_v45 = vrot.slane %v1349_v37, %v7178_v33 }
 0x29f   :  { %v4483_v53 = vsel %vm3111_vm1, %v4482_v45, %v4478_v42  ;;  %1456 = vadd.xlane.f32.xlu1 %v1455_v38  ;;  %1405 = vadd.xlane.f32.xlu0 %v1404_v39  ;;  %v1836_v38 = vsel %vm527_vm0, %v451_v24, 0.0  ;;  %v1785_v39 = vsel %vm527_vm0, %v434_v25, 0.0  ;;  %v326_v45 = vld [vmem:[%s12046_s0 + $0x9b8] sm:$0xff] }
 0x2a0   :  { %v1730_v54 = vpop.xlane.xlu1 %1729  ;;  %v4488_v55 = vsel %vm3118_vm2, %v4487_v44, %v4483_v53  ;;  %v1355_v57 = vpop.xlane.xlu0 %1354  ;;  %v310_v24 = vld [vmem:[%s12046_s0 + $0x938] sm:$0xff] }
 0x2a1   :  { %v4492_v62 = vrot.slane %v1355_v57, %v7175_v32  ;;  %v5110_v16 = vrot.slane %v1730_v54, %v7172_v31  ;;  %v1410_v57 = vsel %vm527_vm0, %v309_v48, 0.0 }
 0x2a3   :  { %v4493_v3 = vsel %vm3125_vm3, %v4492_v62, %v4488_v55  ;;  %1834 = vadd.xlane.f32.xlu1 %v1833_v59  ;;  %1783 = vadd.xlane.f32.xlu0 %v1782_v15  ;;  %v1461_v55 = vsel %vm527_vm0, %v326_v45, 0.0  ;;  %v452_v62 = vld [vmem:[%s12046_s0 + $0xda8] sm:$0xff] }
 0x2a4   :  { %v1358_v4 = vpop.xlane.xlu1 %1357  ;;  %v1733_v9 = vpop.xlane.xlu0 %1732 }
 0x2a5   :  { %v4497_v17 = vrot.slane %v1358_v4, %v7192_v41  ;;  %v5114_v20 = vrot.slane %v1733_v9, %v7178_v33 }
 0x2a7   :  { %v4498_v26 = vsel %vm12056_vm4, %v4497_v17, %v4493_v3  ;;  %v5115_v27 = vsel %vm3111_vm1, %v5114_v20, %v5110_v16  ;;  %1459 = vadd.xlane.f32.xlu1 %v1458_v10  ;;  %1408 = vadd.xlane.f32.xlu0 %v1407_v14  ;;  %v1839_v10 = vsel %vm527_vm0, %v452_v62, 0.0  ;;  %v1788_v14 = vsel %vm527_vm0, %v435_v63, 0.0  ;;  %v327_v20 = vld [vmem:[%s12046_s0 + $0x9c0] sm:$0xff] }
 0x2a8   :  { %v1685_v30 = vpop.xlane.xlu1 %1684  ;;  %v1682_v37 = vpop.xlane.xlu0 %1681 }
 0x2a9   :  { %v5035_v42 = vrot.slane %v1685_v30, %v7178_v33  ;;  %v5031_v44 = vrot.slane %v1682_v37, %v7172_v31  ;;  %v1464_v37 = vsel %vm527_vm0, %v327_v20, 0.0 }
 0x2ab   :  { %v5036_v52 = vsel %vm3111_vm1, %v5035_v42, %v5031_v44  ;;  %1837 = vadd.xlane.f32.xlu1 %v1836_v38  ;;  %1786 = vadd.xlane.f32.xlu0 %v1785_v39  ;;  %v1413_v38 = vsel %vm527_vm0, %v310_v24, 0.0  ;;  %v453_v42 = vld [vmem:[%s12046_s0 + $0xdb0] sm:$0xff]  ;;  %v436_v44 = vld [vmem:[%s12046_s0 + $0xd28] sm:$0xff] }
 0x2ac   :  { %v1361_v53 = vpop.xlane.xlu1 %1360  ;;  %v1736_v54 = vpop.xlane.xlu0 %1735 }
 0x2ad   :  { %v4502_v59 = vrot.slane %v1361_v53, %v7189_v40  ;;  %v5119_v15 = vrot.slane %v1736_v54, %v7184_v35  ;;  %v1842_v53 = vsel %vm527_vm0, %v453_v42, 0.0  ;;  %v1791_v54 = vsel %vm527_vm0, %v436_v44, 0.0 }
 0x2af   :  { %v9253_v2 = vsel %vm3139_vm5, %v4502_v59, %v4498_v26  ;;  %v5120_v3 = vsel %vm3118_vm2, %v5119_v15, %v5115_v27  ;;  %1462 = vadd.xlane.f32.xlu1 %v1461_v55  ;;  %1411 = vadd.xlane.f32.xlu0 %v1410_v57  ;;  %v328_v59 = vld [vmem:[%s12046_s0 + $0x9c8] sm:$0xff] }
 0x2b0   :  { %v1739_v4 = vpop.xlane.xlu1 %1738  ;;  %v1688_v9 = vpop.xlane.xlu0 %1687 }
 0x2b1   :  { %v5124_v16 = vrot.slane %v1739_v4, %v7175_v32  ;;  %v5040_v17 = vrot.slane %v1688_v9, %v7184_v35  ;;  %v1467_v4 = vsel %vm527_vm0, %v328_v59, 0.0 }
 0x2b3   :  { %v5125_v25 = vsel %vm3125_vm3, %v5124_v16, %v5120_v3  ;;  %v5041_v26 = vsel %vm3118_vm2, %v5040_v17, %v5036_v52  ;;  %1840 = vadd.xlane.f32.xlu1 %v1839_v10  ;;  %1789 = vadd.xlane.f32.xlu0 %v1788_v14  ;;  %v454_v10 = vld [vmem:[%s12046_s0 + $0xdb8] sm:$0xff]  ;;  %v437_v14 = vld [vmem:[%s12046_s0 + $0xd30] sm:$0xff] }
 0x2b4   :  { %v9268_v27 = vpop.xlane.xlu1 %1363  ;;  %v1313_v30 = vpop.xlane.xlu0 %1312  ;;  %v1845_v20 = vsel %vm527_vm0, %v454_v10, 0.0  ;;  %v1794_v24 = vsel %vm527_vm0, %v437_v14, 0.0  ;;  %v313_v10 = vld [vmem:[%s12046_s0 + $0x950] sm:$0xff] }
 0x2b5   :  { %v4423_v39 = vrot.slane %v1313_v30, %v7189_v40  ;;  %v329_v30 = vld [vmem:[%s12046_s0 + $0x9d0] sm:$0xff] }
 0x2b7   :  { %v9281_v45 = vsel %vm3139_vm5, %v4423_v39, %v9193_v28  ;;  %1465 = vadd.xlane.f32.xlu1 %v1464_v37  ;;  %1414 = vadd.xlane.f32.xlu0 %v1413_v38  ;;  %v311_v28 = vld [vmem:[%s12046_s0 + $0x940] sm:$0xff]  ;;  %v312_v37 = vld [vmem:[%s12046_s0 + $0x948] sm:$0xff] }
 0x2b8   :  { %v1742_v48 = vpop.xlane.xlu1 %1741  ;;  %v1691_v52 = vpop.xlane.xlu0 %1690  ;;  %v1416_v9 = vsel %vm527_vm0, %v311_v28, 0.0 }
 0x2b9   :  { %v5129_v55 = vrot.slane %v1742_v48, %v7192_v41  ;;  %v5045_v57 = vrot.slane %v1691_v52, %v7175_v32  ;;  %v1470_v48 = vsel %vm527_vm0, %v329_v30, 0.0  ;;  %v1419_v52 = vsel %vm527_vm0, %v312_v37, 0.0 }
 0x2bb   :  { %v5130_v15 = vsel %vm12056_vm4, %v5129_v55, %v5125_v25  ;;  %v5046_v62 = vsel %vm3125_vm3, %v5045_v57, %v5041_v26  ;;  %1843 = vadd.xlane.f32.xlu1 %v1842_v53  ;;  %1792 = vadd.xlane.f32.xlu0 %v1791_v54  ;;  %v455_v53 = vld [vmem:[%s12046_s0 + $0xdc0] sm:$0xff]  ;;  %v438_v54 = vld [vmem:[%s12046_s0 + $0xd38] sm:$0xff]  ;;  %v2129_v55 = vld [vmem:[%s12047_s1 + $0x208] sm:$0xff] }
 0x2bc   :  { %v9295_v63 = vpop.xlane.xlu1 %1366  ;;  %v9297_v3 = vpop.xlane.xlu0 %1315  ;;  %v2131_v57 = vld [vmem:[%s12047_s1 + $0x218] sm:$0xff] }
 0x2bd   :  { %v6352_v59 = vpack.c.bf16 %v2131_v57, %v2129_v55  ;;  %v314_v55 = vld [vmem:[%s12046_s0 + $0x958] sm:$0xff] }
 0x2bf   :  { %1468 = vadd.xlane.f32.xlu1 %v1467_v4  ;;  %1417 = vadd.xlane.f32.xlu0 %v1416_v9  ;;  %v1797_v4 = vsel %vm527_vm0, %v438_v54, 0.0  ;;  %v330_v9 = vld [vmem:[%s12046_s0 + $0x9d8] sm:$0xff]  ;;  %v331_v54 = vld [vmem:[%s12046_s0 + $0x9e0] sm:$0xff] }
 0x2c0   :  { %v1745_v16 = vpop.xlane.xlu1 %1744  ;;  %v1694_v17 = vpop.xlane.xlu0 %1693  ;;  %6353 = vmatprep.subr.bf16.mxu1 %v6352_v59 }
 0x2c1   :  { %v5134_v25 = vrot.slane %v1745_v16, %v7189_v40  ;;  %v5050_v26 = vrot.slane %v1694_v17, %v7192_v41  ;;  %v1473_v17 = vsel %vm527_vm0, %v330_v9, 0.0  ;;  %v1425_v9 = vsel %vm527_vm0, %v314_v55, 0.0 }
 0x2c3   :  { %v9318_v38 = vsel %vm3139_vm5, %v5134_v25, %v5130_v15  ;;  %v9321_v39 = vsel %vm12056_vm4, %v5050_v26, %v5046_v62  ;;  %1846 = vadd.xlane.f32.xlu1 %v1845_v20  ;;  %1795 = vadd.xlane.f32.xlu0 %v1794_v24  ;;  %v1848_v62 = vsel %vm527_vm0, %v455_v53, 0.0  ;;  %v1422_v20 = vsel %vm527_vm0, %v313_v10, 0.0  ;;  %v456_v24 = vld [vmem:[%s12046_s0 + $0xdc8] sm:$0xff]  ;;  %v439_v25 = vld [vmem:[%s12046_s0 + $0xd40] sm:$0xff]  ;;  %v2387_v53 = vld [vmem:[%s12047_s1 + $0xa18] sm:$0xff] }
 0x2c4   :  { %v9323_v42 = vpop.xlane.xlu1 %1369  ;;  %v9325_v44 = vpop.xlane.xlu0 %1318  ;;  %v2385_v26 = vld [vmem:[%s12047_s1 + $0xa08] sm:$0xff]  ;;  %v457_v10 = vld [vmem:[%s12046_s0 + $0xdd0] sm:$0xff]  ;;  %vm12057_vm4 = vcmask 1041409  }
 0x2c5   :  { %v6608_v57 = vpack.c.bf16 %v2387_v53, %v2385_v26 }
 0x2c7   :  { %1471 = vadd.xlane.f32.xlu1 %v1470_v48  ;;  %1420 = vadd.xlane.f32.xlu0 %v1419_v52  ;;  %v1851_v48 = vsel %vm527_vm0, %v456_v24, 0.0  ;;  %v1800_v52 = vsel %vm527_vm0, %v439_v25, 0.0  ;;  %v1854_v25 = vsel %vm527_vm0, %v457_v10, 0.0 }
 0x2c8   :  { %v9341_v28 = vpop.xlane.xlu1 %1747  ;;  %v9343_v15 = vpop.xlane.xlu0 %1696  ;;  %6609 = vmatprep.subr.bf16.mxu0 %v6608_v57 }
 0x2cb   :  { %1849 = vadd.xlane.f32.xlu1 %v1848_v62  ;;  %1798 = vadd.xlane.f32.xlu0 %v1797_v4  ;;  %v1476_v4 = vsel %vm527_vm0, %v331_v54, 0.0 }
 0x2cc   :  { %v9353_v14 = vpop.xlane.xlu1 %1372  ;;  %v9355_v16 = vpop.xlane.xlu0 %1321 }
 0x2cf   :  { %1474 = vadd.xlane.f32.xlu1 %v1473_v17  ;;  %1423 = vadd.xlane.f32.xlu0 %v1422_v20  ;;  %v440_v17 = vld [vmem:[%s12046_s0 + $0xd48] sm:$0xff] }
 0x2d0   :  { %v9368_v30 = vpop.xlane.xlu1 %1750  ;;  %v9370_v37 = vpop.xlane.xlu0 %1699  ;;  %v1803_v26 = vsel %vm527_vm0, %v440_v17, 0.0 }
 0x2d3   :  { %1852 = vadd.xlane.f32.xlu1 %v1851_v48  ;;  %1801 = vadd.xlane.f32.xlu0 %v1800_v52  ;;  %v332_v48 = vld [vmem:[%s12046_s0 + $0x9e8] sm:$0xff]  ;;  %v315_v52 = vld [vmem:[%s12046_s0 + $0x960] sm:$0xff] }
 0x2d4   :  { %v9383_v59 = vpop.xlane.xlu1 %1375  ;;  %v9385_v62 = vpop.xlane.xlu0 %1324  ;;  %v1479_v55 = vsel %vm527_vm0, %v332_v48, 0.0  ;;  %v1428_v57 = vsel %vm527_vm0, %v315_v52, 0.0  ;;  %v333_v48 = vld [vmem:[%s12046_s0 + $0x9f0] sm:$0xff]  ;;  %v316_v52 = vld [vmem:[%s12046_s0 + $0x968] sm:$0xff] }
 0x2d5   :  { %v1482_v18 = vsel %vm527_vm0, %v333_v48, 0.0  ;;  %v1809_v48 = vsel %vm527_vm0, %v442_v61, 0.0  ;;  %v460_v61 = vld [vmem:[%s12046_s0 + $0xde8] sm:$0xff] }
 0x2d6   :  { %v1863_v46 = vsel %vm527_vm0, %v460_v61, 0.0  ;;  %v4517_v61 = vrot.slane %v9323_v42, %v7244_v13  ;;  %v4527_v42 = vrot.slane %v9383_v59, %v7264_v29 }
 0x2d7   :  { %1477 = vadd.xlane.f32.xlu1 %v1476_v4  ;;  %1426 = vadd.xlane.f32.xlu0 %v1425_v9  ;;  %v458_v4 = vld [vmem:[%s12046_s0 + $0xdd8] sm:$0xff]  ;;  %v441_v9 = vld [vmem:[%s12046_s0 + $0xd50] sm:$0xff] }
 0x2d8   :  { %v9395_v20 = vpop.xlane.xlu1 %1753  ;;  %v9397_v24 = vpop.xlane.xlu0 %1702 }
 0x2db   :  { %1855 = vadd.xlane.f32.xlu1 %v1854_v25  ;;  %1804 = vadd.xlane.f32.xlu0 %v1803_v26  ;;  %v1857_v25 = vsel %vm527_vm0, %v458_v4, 0.0  ;;  %v1806_v26 = vsel %vm527_vm0, %v441_v9, 0.0  ;;  %v1431_v4 = vsel %vm527_vm0, %v316_v52, 0.0  ;;  %v459_v9 = vld [vmem:[%s12046_s0 + $0xde0] sm:$0xff]  ;;  %v334_v52 = vld [vmem:[%s12046_s0 + $0x9f8] sm:$0xff] }
 0x2dc   :  { %v9407_v53 = vpop.xlane.xlu1 %1378  ;;  %v9409_v54 = vpop.xlane.xlu0 %1327  ;;  %v1860_v51 = vsel %vm527_vm0, %v459_v9, 0.0  ;;  %v1485_v5 = vsel %vm527_vm0, %v334_v52, 0.0  ;;  %v1434_v9 = vsel %vm527_vm0, %v317_v8, 0.0  ;;  %v1812_v52 = vsel %vm527_vm0, %v443_v49, 0.0  ;;  %v444_v8 = vld [vmem:[%s12046_s0 + $0xd68] sm:$0xff] }
 0x2dd   :  { %v1815_v21 = vsel %vm527_vm0, %v444_v8, 0.0  ;;  %v4428_v8 = vrot.slane %v9297_v3, %v7225_v0  ;;  %v4532_v36 = vrot.slane %v9407_v53, %v7252_v23  ;;  %v1821_v53 = vsel %vm527_vm0, %v446_v22, 0.0 }
 0x2df   :  { %1480 = vadd.xlane.f32.xlu1 %v1479_v55  ;;  %1429 = vadd.xlane.f32.xlu0 %v1428_v57 }
 0x2e0   :  { %v9419_v10 = vpop.xlane.xlu1 %1756  ;;  %v9421_v17 = vpop.xlane.xlu0 %1705 }
 0x2e3   :  { %1858 = vadd.xlane.f32.xlu1 %v1857_v25  ;;  %1807 = vadd.xlane.f32.xlu0 %v1806_v26 }
 0x2e4   :  { %v9431_v55 = vpop.xlane.xlu1 %1381  ;;  %v9433_v57 = vpop.xlane.xlu0 %1330 }
 0x2e5   :  { %v4537_v41 = vrot.slane %v9431_v55, %v7272_v43 }
 0x2e7   :  { %1483 = vadd.xlane.f32.xlu1 %v1482_v18  ;;  %1432 = vadd.xlane.f32.xlu0 %v1431_v4 }
 0x2e8   :  { %v9443_v25 = vpop.xlane.xlu1 %1759  ;;  %v9445_v26 = vpop.xlane.xlu0 %1708 }
 0x2eb   :  { %1861 = vadd.xlane.f32.xlu1 %v1860_v51  ;;  %1810 = vadd.xlane.f32.xlu0 %v1809_v48 }
 0x2ec   :  { %v9455_v18 = vpop.xlane.xlu1 %1384  ;;  %v9457_v4 = vpop.xlane.xlu0 %1333 }
 0x2ef   :  { %1486 = vadd.xlane.f32.xlu1 %v1485_v5  ;;  %1435 = vadd.xlane.f32.xlu0 %v1434_v9  ;;  %v4507_v5 = vrot.slane %v9268_v27, %v7225_v0  ;;  %v4512_v9 = vrot.slane %v9295_v63, %v7211_v56  ;;  %v4522_v27 = vrot.slane %v9353_v14, %v7232_v7 }
 0x2f0   :  { %v9467_v51 = vpop.xlane.xlu1 %1762  ;;  %v9469_v48 = vpop.xlane.xlu0 %1711 }
 0x2f1   :  { %v4508_v63 = vsel %vm3146_vm6, %v4507_v5, %v9253_v2  ;;  %v1818_v2 = vsel %vm527_vm0, %v445_v50, 0.0  ;;  %v4433_v5 = vrot.slane %v9325_v44, %v7211_v56  ;;  %v351_v50 = vld [vmem:[%s12046_s0 + $0xa80] sm:$0xff]  ;;  %v4542_v44 = vrot.slane %v9455_v18, %v7278_v47 }
 0x2f2   :  { %v4513_v14 = vsel %vm3153_vm7, %v4512_v9, %v4508_v63 }
 0x2f3   :  { %1864 = vadd.xlane.f32.xlu1 %v1863_v46  ;;  %1813 = vadd.xlane.f32.xlu0 %v1812_v52  ;;  %v461_v46 = vld [vmem:[%s12046_s0 + $0xdf0] sm:$0xff]  ;;  %v462_v52 = vld [vmem:[%s12046_s0 + $0xdf8] sm:$0xff]  ;;  %v4518_v59 = vsel %vm3160_vm8, %v4517_v61, %v4513_v14  ;;  %v336_v61 = vld [vmem:[%s12046_s0 + $0xa08] sm:$0xff] }
 0x2f4   :  { %v1388_v49 = vpop.xlane.xlu1 %1387  ;;  %v9485_v12 = vpop.xlane.xlu0 %1336  ;;  %v1866_v3 = vsel %vm527_vm0, %v461_v46, 0.0  ;;  %v1869_v55 = vsel %vm527_vm0, %v462_v52, 0.0  ;;  %v4438_v46 = vrot.slane %v9355_v16, %v7244_v13  ;;  %v1536_v52 = vsel %vm527_vm0, %v351_v50, 0.0  ;;  %v9549_v16 = vld [vmem:[%s12047_s1 + $0x200] sm:$0xff] }
 0x2f5   :  { %v4547_v14 = vrot.slane %v1388_v49, %v7292_v58  ;;  %v9554_v49 = vld [vmem:[%s12047_s1 + $0x210] sm:$0xff]  ;;  %v4443_v50 = vrot.slane %v9385_v62, %v7232_v7  ;;  %v4453_v62 = vrot.slane %v9433_v57, %v7252_v23  ;;  %v5149_v57 = vrot.slane %v9395_v20, %v7244_v13 }
 0x2f6   :  { %v9615_v20 = vld [vmem:[%s12047_s1 + $0x230] sm:$0xff] }
 0x2f7   :  { %1816 = vadd.xlane.f32.xlu1 %v1815_v21  ;;  %1438 = vadd.xlane.f32.xlu0 %v1437_v34  ;;  %v352_v21 = vld [vmem:[%s12046_s0 + $0xa88] sm:$0xff]  ;;  %v4523_v34 = vsel %vm3167_vm9, %v4522_v27, %v4518_v59  ;;  %v4429_v27 = vsel %vm3146_vm6, %v4428_v8, %v9281_v45  ;;  %v1491_v59 = vsel %vm527_vm0, %v336_v61, 0.0 }
 0x2f8   :  { %v9518_v32 = vpop.xlane.xlu1 %1765  ;;  %v9520_v9 = vpop.xlane.xlu0 %1714  ;;  %v4528_v63 = vsel %vm3174_vm10, %v4527_v42, %v4523_v34  ;;  %v1539_v22 = vsel %vm527_vm0, %v352_v21, 0.0  ;;  %v4434_v45 = vsel %vm3153_vm7, %v4433_v5, %v4429_v27  ;;  %v5055_v21 = vrot.slane %v9343_v15, %v7189_v40 }
 0x2f9   :  { %v4533_v18 = vsel %vm3181_vm11, %v4532_v36, %v4528_v63  ;;  %v5139_v36 = vrot.slane %v9341_v28, %v7225_v0  ;;  %v4448_v34 = vrot.slane %v9409_v54, %v7264_v29  ;;  %v6354_v63 = vpack.c.bf16 %v9554_v49, %v9549_v16  ;;  %v9585_v54 = vld [vmem:[%s12047_s1 + $0x228] sm:$0xff] }
 0x2fa   :  { %v4538_v42 = vsel %vm3188_vm12, %v4537_v41, %v4533_v18  ;;  %v4439_v41 = vsel %vm3160_vm8, %v4438_v46, %v4434_v45  ;;  %v5144_v15 = vrot.slane %v9368_v30, %v7211_v56  ;;  %v5060_v30 = vrot.slane %v9370_v37, %v7225_v0  ;;  %v337_v45 = vld [vmem:[%s12046_s0 + $0xa10] sm:$0xff]  ;;  %v9610_v37 = vld [vmem:[%s12047_s1 + $0x220] sm:$0xff] }
 0x2fb   :  { %1819 = vadd.xlane.f32.xlu1 %v1818_v2  ;;  %1867 = vadd.xlane.f32.xlu0 %v1866_v3  ;;  %v335_v3 = vld [vmem:[%s12046_s0 + $0xa00] sm:$0xff]  ;;  %v4543_v5 = vsel %vm3195_vm13, %v4542_v44, %v4538_v42  ;;  %v4444_v42 = vsel %vm3167_vm9, %v4443_v50, %v4439_v41 }
 0x2fc   :  { %v1391_v8 = vpop.xlane.xlu1 %1390  ;;  %v1340_v2 = vpop.xlane.xlu0 %1339  ;;  %v4548_v61 = vsel %vm12058_vm14, %v4547_v14, %v4543_v5  ;;  %v1488_v46 = vsel %vm527_vm0, %v335_v3, 0.0  ;;  %v9590_v14 = vld [vmem:[%s12047_s1 + $0x238] sm:$0xff]  ;;  %v5065_v3 = vrot.slane %v9397_v24, %v7211_v56  ;;  %v4449_v5 = vsel %vm3174_vm10, %v4448_v34, %v4444_v42 }
 0x2fd   :  { %v4552_v28 = vrot.slane %v1391_v8, %v7297_v60  ;;  %v4463_v8 = vrot.slane %v9485_v12, %v7278_v47  ;;  %v6358_v12 = vpack.c.bf16 %v9615_v20, %v9610_v37  ;;  %v2139_v42 = vld [vmem:[%s12047_s1 + $0x258] sm:$0xff]  ;;  %v2140_v20 = vld [vmem:[%s12047_s1 + $0x260] sm:$0xff] }
 0x2ff   :  { %1822 = vadd.xlane.f32.xlu1 %v1821_v53  ;;  %1870 = vadd.xlane.f32.xlu0 %v1869_v55  ;;  %v4553_v44 = vsel %vm3209_vm15, %v4552_v28, %v4548_v61  ;;  %v4458_v53 = vrot.slane %v9457_v4, %v7272_v43  ;;  %v5140_v4 = vsel %vm3146_vm6, %v5139_v36, %v9318_v38  ;;  %v1494_v36 = vsel %vm527_vm0, %v337_v45, 0.0 }
 0x300   :  { %v9598_v55 = vpop.xlane.xlu1 %1768  ;;  %v9600_v27 = vpop.xlane.xlu0 %1717  ;;  %v5662_v18 = vsel %vm12057_vm4, %v4553_v44, %v7418_v1  ;;  %v5056_v1 = vsel %vm3139_vm5, %v5055_v21, %v9321_v39  ;;  %v4468_v28 = vrot.slane %v1340_v2, %v7292_v58  ;;  %v6356_v61 = vpack.c.bf16 %v9590_v14, %v9585_v54 }
 0x301   :  { %5757 = vmatprep.mubr.f32.mxu1 %v5662_v18  ;;  %v5145_v38 = vsel %vm3153_vm7, %v5144_v15, %v5140_v4  ;;  %v4454_v39 = vsel %vm3181_vm11, %v4453_v62, %v4449_v5  ;;  %v5061_v24 = vsel %vm3146_vm6, %v5060_v30, %v5056_v1  ;;  %v5070_v2 = vrot.slane %v9421_v17, %v7244_v13 }
 0x302   :  { %v5150_v21 = vsel %vm3160_vm8, %v5149_v57, %v5145_v38  ;;  %v4459_v50 = vsel %vm3188_vm12, %v4458_v53, %v4454_v39  ;;  %v5075_v15 = vrot.slane %v9445_v26, %v7232_v7  ;;  %v5066_v17 = vsel %vm3153_vm7, %v5065_v3, %v5061_v24  ;;  %v2136_v24 = vld [vmem:[%s12047_s1 + $0x240] sm:$0xff] }
 0x303   :  { %1540 = vadd.xlane.f32.xlu1 %v1539_v22  ;;  %1537 = vadd.xlane.f32.xlu0 %v1536_v52  ;;  %v353_v22 = vld [vmem:[%s12046_s0 + $0xa90] sm:$0xff]  ;;  %v5154_v52 = vrot.slane %v9419_v10, %v7232_v7  ;;  %v4464_v62 = vsel %vm3195_vm13, %v4463_v8, %v4459_v50  ;;  %v5159_v54 = vrot.slane %v9443_v25, %v7264_v29 }
 0x304   :  { %v1721_v41 = vpop.xlane.xlu1 %1720  ;;  %v1343_v34 = vpop.xlane.xlu0 %1342  ;;  %v5080_v14 = vrot.slane %v9469_v48, %v7264_v29  ;;  %v4469_v30 = vsel %vm12058_vm14, %v4468_v28, %v4464_v62  ;;  %v5164_v10 = vrot.slane %v9467_v51, %v7252_v23  ;;  %v5085_v26 = vrot.slane %v9520_v9, %v7252_v23  ;;  %v479_v9 = vld [vmem:[%s12046_s0 + $0xe80] sm:$0xff] }
 0x305   :  { %v4473_v44 = vrot.slane %v1343_v34, %v7297_v60  ;;  %v1542_v53 = vsel %vm527_vm0, %v353_v22, 0.0  ;;  %v5071_v18 = vsel %vm3160_vm8, %v5070_v2, %v5066_v17  ;;  %v5169_v25 = vrot.slane %v9518_v32, %v7272_v43  ;;  %v2384_v22 = vld [vmem:[%s12047_s1 + $0xa00] sm:$0xff]  ;;  %v2386_v17 = vld [vmem:[%s12047_s1 + $0xa10] sm:$0xff] }
 0x306   :  { %v5090_v48 = vrot.slane %v9600_v27, %v7272_v43  ;;  %v5174_v1 = vrot.slane %v9598_v55, %v7278_v47  ;;  %v5095_v32 = vrot.slane %v1721_v41, %v7278_v47  ;;  %v354_v27 = vld [vmem:[%s12046_s0 + $0xa98] sm:$0xff]  ;;  %v1920_v39 = vsel %vm527_vm0, %v479_v9, 0.0  ;;  %v480_v41 = vld [vmem:[%s12046_s0 + $0xe88] sm:$0xff]  ;;  %v463_v9 = vld [vmem:[%s12046_s0 + $0xe00] sm:$0xff] }
 0x307   :  { %1492 = vadd.xlane.f32.xlu1 %v1491_v59  ;;  %1489 = vadd.xlane.f32.xlu0 %v1488_v46  ;;  %v4474_v57 = vsel %vm3209_vm15, %v4473_v44, %v4469_v30  ;;  %v5155_v59 = vsel %vm3167_vm9, %v5154_v52, %v5150_v21  ;;  %v5076_v46 = vsel %vm3167_vm9, %v5075_v15, %v5071_v18  ;;  %v2138_v21 = vld [vmem:[%s12047_s1 + $0x250] sm:$0xff]  ;;  %v1545_v50 = vsel %vm527_vm0, %v354_v27, 0.0 }
 0x308   :  { %v1724_v45 = vpop.xlane.xlu1 %1723  ;;  %v1772_v4 = vpop.xlane.xlu0 %1771  ;;  %v5661_v51 = vsel %vm12057_vm4, %v4474_v57, %v7321_v19  ;;  %v2137_v19 = vld [vmem:[%s12047_s1 + $0x248] sm:$0xff]  ;;  %v5160_v8 = vsel %vm3174_vm10, %v5159_v54, %v5155_v59  ;;  %v5081_v3 = vsel %vm3174_vm10, %v5080_v14, %v5076_v46  ;;  %v2143_v54 = vld [vmem:[%s12047_s1 + $0x278] sm:$0xff]  ;;  %v1923_v37 = vsel %vm527_vm0, %v480_v41, 0.0  ;;  %v355_v59 = vld [vmem:[%s12046_s0 + $0xaa0] sm:$0xff] }
 0x309   :  { %5758 = vmatmul.mubr.f32.vlgmr.msra.gmra.mrb[0].mxu1 %v5661_v51  ;;  %v5100_v55 = vrot.slane %v1724_v45, %v7292_v58  ;;  %v5179_v5 = vrot.slane %v1772_v4, %v7292_v58  ;;  %v5165_v28 = vsel %vm3181_vm11, %v5164_v10, %v5160_v8  ;;  %v5086_v38 = vsel %vm3181_vm11, %v5085_v26, %v5081_v3  ;;  %v2389_v26 = vld [vmem:[%s12047_s1 + $0xa28] sm:$0xff]  ;;  %v2391_v57 = vld [vmem:[%s12047_s1 + $0xa38] sm:$0xff]  ;;  %v2392_v41 = vld [vmem:[%s12047_s1 + $0xa40] sm:$0xff] }
 0x30a   :  { %6355 = vmatpush1.bf16.msra.mxu1 %v6354_v63  ;;  %v5170_v2 = vsel %vm3188_vm12, %v5169_v25, %v5165_v28  ;;  %v5091_v16 = vsel %vm3188_vm12, %v5090_v48, %v5086_v38  ;;  %v6360_v34 = vpack.c.bf16 %v2139_v42, %v2137_v19  ;;  %v6362_v10 = vpack.c.bf16 %v2138_v21, %v2136_v24  ;;  %v2390_v19 = vld [vmem:[%s12047_s1 + $0xa30] sm:$0xff]  ;;  %v2145_v42 = vld [vmem:[%s12047_s1 + $0x288] sm:$0xff]  ;;  %v2147_v8 = vld [vmem:[%s12047_s1 + $0x298] sm:$0xff] }
 0x30b   :  { %1495 = vadd.xlane.f32.xlu1 %v1494_v36  ;;  %1543 = vadd.xlane.f32.xlu0 %v1542_v53  ;;  %v338_v36 = vld [vmem:[%s12046_s0 + $0xa18] sm:$0xff]  ;;  %v5175_v52 = vsel %vm3195_vm13, %v5174_v1, %v5170_v2  ;;  %v5096_v15 = vsel %vm3195_vm13, %v5095_v32, %v5091_v16  ;;  %v6610_v46 = vpack.c.bf16 %v2386_v17, %v2384_v22  ;;  %v2388_v32 = vld [vmem:[%s12047_s1 + $0xa20] sm:$0xff]  ;;  %v1872_v2 = vsel %vm527_vm0, %v463_v9, 0.0  ;;  %v2398_v9 = vld [vmem:[%s12047_s1 + $0xa70] sm:$0xff] }
 0x30c   :  { %v1727_v49 = vpop.xlane.xlu1 %1726  ;;  %v1775_v63 = vpop.xlane.xlu0 %1774  ;;  %6357 = vmatprep.subr.bf16.mxu1 %v6356_v61  ;;  %v2141_v61 = vld [vmem:[%s12047_s1 + $0x268] sm:$0xff]  ;;  %v5180_v14 = vsel %vm12058_vm14, %v5179_v5, %v5175_v52  ;;  %v5101_v30 = vsel %vm12058_vm14, %v5100_v55, %v5096_v15  ;;  %v1497_v25 = vsel %vm527_vm0, %v338_v36, 0.0  ;;  %v2395_v5 = vld [vmem:[%s12047_s1 + $0xa58] sm:$0xff]  ;;  %v2144_v38 = vld [vmem:[%s12047_s1 + $0x280] sm:$0xff]  ;;  %v1548_v16 = vsel %vm527_vm0, %v355_v59, 0.0 }
 0x30d   :  { %v5105_v62 = vrot.slane %v1727_v49, %v7297_v60  ;;  %v5184_v44 = vrot.slane %v1775_v63, %v7297_v60  ;;  %v6364_v1 = vpack.c.bf16 %v2143_v54, %v2141_v61  ;;  %v2393_v55 = vld [vmem:[%s12047_s1 + $0xa48] sm:$0xff]  ;;  %v481_v49 = vld [vmem:[%s12046_s0 + $0xe90] sm:$0xff]  ;;  %v6368_v36 = vpack.c.bf16 %v2147_v8, %v2145_v42  ;;  %v2399_v54 = vld [vmem:[%s12047_s1 + $0xa78] sm:$0xff] }
 0x30e   :  { %6359 = vmatpush1.bf16.msra.mxu1 %v6358_v12  ;;  %v2142_v12 = vld [vmem:[%s12047_s1 + $0x270] sm:$0xff]  ;;  %v464_v63 = vld [vmem:[%s12046_s0 + $0xe08] sm:$0xff]  ;;  %v6616_v52 = vpack.c.bf16 %v2395_v5, %v2393_v55 }
 0x30f   :  { %1921 = vadd.xlane.f32.xlu1 %v1920_v39  ;;  %1546 = vadd.xlane.f32.xlu0 %v1545_v50  ;;  %v5185_v53 = vsel %vm3209_vm15, %v5184_v44, %v5180_v14  ;;  %v5106_v18 = vsel %vm3209_vm15, %v5105_v62, %v5101_v30  ;;  %v6366_v3 = vpack.c.bf16 %v2142_v12, %v2140_v20  ;;  %v2146_v39 = vld [vmem:[%s12047_s1 + $0x290] sm:$0xff]  ;;  %v2149_v62 = vld [vmem:[%s12047_s1 + $0x2a8] sm:$0xff]  ;;  %v2151_v44 = vld [vmem:[%s12047_s1 + $0x2b8] sm:$0xff] }
 0x310   :  { %v1445_v48 = vpop.xlane.xlu1 %1444  ;;  %v1442_v45 = vpop.xlane.xlu0 %1441  ;;  %v5670_v4 = vsel %vm12057_vm4, %v5185_v53, %v8194_v11  ;;  %v5669_v51 = vsel %vm12057_vm4, %v5106_v18, %v8097_v6  ;;  %6361 = vmatprep.subr.bf16.mxu1 %v6360_v34  ;;  %v6612_v6 = vpack.c.bf16 %v2391_v57, %v2389_v26  ;;  %v6614_v50 = vpack.c.bf16 %v2390_v19, %v2388_v32  ;;  %v2394_v15 = vld [vmem:[%s12047_s1 + $0xa50] sm:$0xff]  ;;  %v2397_v61 = vld [vmem:[%s12047_s1 + $0xa68] sm:$0xff]  ;;  %v2148_v30 = vld [vmem:[%s12047_s1 + $0x2a0] sm:$0xff] }
 0x311   :  { %v4640_v11 = vrot.slane %v1445_v48, %v7178_v33  ;;  %v4636_v27 = vrot.slane %v1442_v45, %v7172_v31  ;;  %6041 = vmatprep.mubr.f32.mxu0 %v5670_v4  ;;  %v6370_v17 = vpack.c.bf16 %v2146_v39, %v2144_v38  ;;  %v1926_v53 = vsel %vm527_vm0, %v481_v49, 0.0  ;;  %v2396_v48 = vld [vmem:[%s12047_s1 + $0xa60] sm:$0xff]  ;;  %v2153_v59 = vld [vmem:[%s12047_s1 + $0x2c8] sm:$0xff]  ;;  %v2154_v42 = vld [vmem:[%s12047_s1 + $0x2d0] sm:$0xff] }
 0x312   :  { %6042 = vmatmul.mubr.f32.vlgmr.msra.gmra.mrb[0].mxu0 %v5669_v51  ;;  %6363 = vmatpush1.bf16.msra.mxu1 %v6362_v10  ;;  %v2150_v10 = vld [vmem:[%s12047_s1 + $0x2b0] sm:$0xff]  ;;  %v1875_v18 = vsel %vm527_vm0, %v464_v63, 0.0  ;;  %v6618_v20 = vpack.c.bf16 %v2394_v15, %v2392_v41  ;;  %v6372_v12 = vpack.c.bf16 %v2151_v44, %v2149_v62  ;;  %v6620_v51 = vpack.c.bf16 %v2399_v54, %v2397_v61  ;;  %v2401_v32 = vld [vmem:[%s12047_s1 + $0xa88] sm:$0xff]  ;;  %v2152_v19 = vld [vmem:[%s12047_s1 + $0x2c0] sm:$0xff] }
 0x313   :  { %v4641_v28 = vsel %vm3111_vm1, %v4640_v11, %v4636_v27  ;;  %1498 = vadd.xlane.f32.xlu1 %v1497_v25  ;;  %1924 = vadd.xlane.f32.xlu0 %v1923_v37  ;;  %v356_v25 = vld [vmem:[%s12046_s0 + $0xaa8] sm:$0xff]  ;;  %v339_v37 = vld [vmem:[%s12046_s0 + $0xa20] sm:$0xff]  ;;  %v2403_v11 = vld [vmem:[%s12047_s1 + $0xa98] sm:$0xff]  ;;  %v6622_v39 = vpack.c.bf16 %v2398_v9, %v2396_v48  ;;  %v6378_v41 = vpack.c.bf16 %v2154_v42, %v2152_v19  ;;  %vm12076_vm4 = vcmask 326912  }
 0x314   :  { %v1397_v24 = vpop.xlane.xlu1 %1396  ;;  %v1394_v21 = vpop.xlane.xlu0 %1393  ;;  %6611 = vmatpush1.bf16.msra.mxu0 %v6610_v46  ;;  %6365 = vmatprep.subr.bf16.mxu1 %v6364_v1  ;;  %v2155_v46 = vld [vmem:[%s12047_s1 + $0x2d8] sm:$0xff]  ;;  %v6374_v1 = vpack.c.bf16 %v2150_v10, %v2148_v30  ;;  %v1551_v55 = vsel %vm527_vm0, %v356_v25, 0.0  ;;  %v1500_v5 = vsel %vm527_vm0, %v339_v37, 0.0  ;;  %v465_v38 = vld [vmem:[%s12046_s0 + $0xe10] sm:$0xff]  ;;  %v6624_v49 = vpack.c.bf16 %v2403_v11, %v2401_v32  ;;  %v2156_v15 = vld [vmem:[%s12047_s1 + $0x2e0] sm:$0xff] }
 0x315   :  { %v4561_v34 = vrot.slane %v1397_v24, %v7178_v33  ;;  %v4557_v22 = vrot.slane %v1394_v21, %v7172_v31  ;;  %6613 = vmatprep.subr.bf16.mxu0 %v6612_v6  ;;  %v6376_v24 = vpack.c.bf16 %v2155_v46, %v2153_v59  ;;  %v2400_v21 = vld [vmem:[%s12047_s1 + $0xa80] sm:$0xff]  ;;  %v2402_v63 = vld [vmem:[%s12047_s1 + $0xa90] sm:$0xff]  ;;  %v1878_v54 = vsel %vm527_vm0, %v465_v38, 0.0  ;;  %v340_v30 = vld [vmem:[%s12046_s0 + $0xa28] sm:$0xff] }
 0x316   :  { %6367 = vmatpush1.bf16.msra.mxu1 %v6366_v3  ;;  %v2158_v62 = vld [vmem:[%s12047_s1 + $0x2f0] sm:$0xff]  ;;  %v6626_v10 = vpack.c.bf16 %v2402_v63, %v2400_v21  ;;  %v2163_v48 = vld [vmem:[%s12047_s1 + $0x318] sm:$0xff]  ;;  %v2160_v46 = vld [vmem:[%s12047_s1 + $0x300] sm:$0xff]  ;;  %v1503_v19 = vsel %vm527_vm0, %v340_v30, 0.0 }
 0x317   :  { %v4562_v14 = vsel %vm3111_vm1, %v4561_v34, %v4557_v22  ;;  %1873 = vadd.xlane.f32.xlu1 %v1872_v2  ;;  %1549 = vadd.xlane.f32.xlu0 %v1548_v16  ;;  %v12074_v2 = vld [vmem:[#allocation6_spill] sm:$0xff]  ;;  %v2407_v22 = vld [vmem:[%s12047_s1 + $0xab8] sm:$0xff] }
 0x318   :  { %v1400_v26 = vpop.xlane.xlu1 %1399  ;;  %v1448_v57 = vpop.xlane.xlu0 %1447  ;;  %6615 = vmatpush1.bf16.msra.mxu0 %v6614_v50  ;;  %6369 = vmatprep.subr.bf16.mxu1 %v6368_v36  ;;  %v2157_v50 = vld [vmem:[%s12047_s1 + $0x2e8] sm:$0xff]  ;;  %v2159_v36 = vld [vmem:[%s12047_s1 + $0x2f8] sm:$0xff] }
 0x319   :  { %v4566_v45 = vrot.slane %v1400_v26, %v7184_v35  ;;  %v4645_v4 = vrot.slane %v1448_v57, %v7184_v35  ;;  %6617 = vmatprep.subr.bf16.mxu0 %v6616_v52  ;;  %v2405_v34 = vld [vmem:[%s12047_s1 + $0xaa8] sm:$0xff]  ;;  %v6380_v26 = vpack.c.bf16 %v2159_v36, %v2157_v50  ;;  %v2404_v57 = vld [vmem:[%s12047_s1 + $0xaa0] sm:$0xff]  ;;  %v466_v42 = vld [vmem:[%s12046_s0 + $0xe18] sm:$0xff] }
 0x31a   :  { %6371 = vmatpush1.bf16.msra.mxu1 %v6370_v17  ;;  %v6628_v37 = vpack.c.bf16 %v2407_v22, %v2405_v34  ;;  %v2167_v21 = vld [vmem:[%s12047_s1 + $0x338] sm:$0xff]  ;;  %v2164_v36 = vld [vmem:[%s12047_s1 + $0x320] sm:$0xff] }
 0x31b   :  { %v4567_v27 = vsel %vm3118_vm2, %v4566_v45, %v4562_v14  ;;  %v4646_v6 = vsel %vm3118_vm2, %v4645_v4, %v4641_v28  ;;  %1927 = vadd.xlane.f32.xlu1 %v1926_v53  ;;  %1876 = vadd.xlane.f32.xlu0 %v1875_v18  ;;  %v482_v28 = vld [vmem:[%s12046_s0 + $0xe98] sm:$0xff]  ;;  %v357_v14 = vld [vmem:[%s12046_s0 + $0xab0] sm:$0xff]  ;;  %v6382_v45 = vpack.c.bf16 %v2158_v62, %v2156_v15  ;;  %v2409_v4 = vld [vmem:[%s12047_s1 + $0xac8] sm:$0xff]  ;;  %v1881_v62 = vsel %vm527_vm0, %v466_v42, 0.0 }
 0x31c   :  { %v1826_v8 = vpop.xlane.xlu1 %1825  ;;  %v1451_v3 = vpop.xlane.xlu0 %1450  ;;  %6619 = vmatpush1.bf16.msra.mxu0 %v6618_v20  ;;  %6373 = vmatprep.subr.bf16.mxu1 %v6372_v12  ;;  %v1929_v61 = vsel %vm527_vm0, %v482_v28, 0.0  ;;  %v2406_v20 = vld [vmem:[%s12047_s1 + $0xab0] sm:$0xff]  ;;  %v2161_v12 = vld [vmem:[%s12047_s1 + $0x308] sm:$0xff]  ;;  %v2415_v63 = vld [vmem:[%s12047_s1 + $0xaf8] sm:$0xff] }
 0x31d   :  { %v4650_v16 = vrot.slane %v1451_v3, %v12074_v2  ;;  %6621 = vmatprep.subr.bf16.mxu0 %v6620_v51  ;;  %v5268_v53 = vrot.slane %v1826_v8, %v7172_v31  ;;  %v2411_v51 = vld [vmem:[%s12047_s1 + $0xad8] sm:$0xff]  ;;  %v6630_v8 = vpack.c.bf16 %v2406_v20, %v2404_v57  ;;  %v6384_v3 = vpack.c.bf16 %v2163_v48, %v2161_v12  ;;  %v2414_v57 = vld [vmem:[%s12047_s1 + $0xaf0] sm:$0xff] }
 0x31e   :  { %6375 = vmatpush1.bf16.msra.mxu1 %v6374_v1  ;;  %v2162_v1 = vld [vmem:[%s12047_s1 + $0x310] sm:$0xff]  ;;  %v6632_v38 = vpack.c.bf16 %v2411_v51, %v2409_v4  ;;  %v2419_v20 = vld [vmem:[%s12047_s1 + $0xb18] sm:$0xff] }
 0x31f   :  { %v4651_v52 = vsel %vm3125_vm3, %v4650_v16, %v4646_v6  ;;  %1552 = vadd.xlane.f32.xlu1 %v1551_v55  ;;  %1501 = vadd.xlane.f32.xlu0 %v1500_v5  ;;  %v1554_v6 = vsel %vm527_vm0, %v357_v14, 0.0  ;;  %v2408_v55 = vld [vmem:[%s12047_s1 + $0xac0] sm:$0xff]  ;;  %v12075_v5 = vld [vmem:[#allocation7_spill] sm:$0xff]  ;;  %v6386_v16 = vpack.c.bf16 %v2162_v1, %v2160_v46 }
 0x320   :  { %v1403_v44 = vpop.xlane.xlu1 %1402  ;;  %v1829_v17 = vpop.xlane.xlu0 %1828  ;;  %6623 = vmatpush1.bf16.msra.mxu0 %v6622_v39  ;;  %6377 = vmatprep.subr.bf16.mxu1 %v6376_v24  ;;  %v2410_v39 = vld [vmem:[%s12047_s1 + $0xad0] sm:$0xff]  ;;  %v2165_v24 = vld [vmem:[%s12047_s1 + $0x328] sm:$0xff] }
 0x321   :  { %v4571_v18 = vrot.slane %v1403_v44, %v12074_v2  ;;  %v5272_v25 = vrot.slane %v1829_v17, %v7178_v33  ;;  %6625 = vmatprep.subr.bf16.mxu0 %v6624_v49  ;;  %v2413_v49 = vld [vmem:[%s12047_s1 + $0xae8] sm:$0xff]  ;;  %v341_v44 = vld [vmem:[%s12046_s0 + $0xa30] sm:$0xff]  ;;  %v6634_v17 = vpack.c.bf16 %v2410_v39, %v2408_v55 }
 0x322   :  { %6379 = vmatpush1.bf16.msra.mxu1 %v6378_v41  ;;  %v2166_v41 = vld [vmem:[%s12047_s1 + $0x330] sm:$0xff] }
 0x323   :  { %v9919_v9 = vsel %vm3125_vm3, %v4571_v18, %v4567_v27  ;;  %v5273_v59 = vsel %vm3111_vm1, %v5272_v25, %v5268_v53  ;;  %1930 = vadd.xlane.f32.xlu1 %v1929_v61  ;;  %1879 = vadd.xlane.f32.xlu0 %v1878_v54  ;;  %v483_v27 = vld [vmem:[%s12046_s0 + $0xea0] sm:$0xff]  ;;  %v6388_v61 = vpack.c.bf16 %v2167_v21, %v2165_v24  ;;  %v2169_v53 = vld [vmem:[%s12047_s1 + $0x348] sm:$0xff]  ;;  %v2171_v18 = vld [vmem:[%s12047_s1 + $0x358] sm:$0xff] }
 0x324   :  { %v1778_v32 = vpop.xlane.xlu1 %1777  ;;  %v1454_v11 = vpop.xlane.xlu0 %1453  ;;  %6627 = vmatpush1.bf16.msra.mxu0 %v6626_v10  ;;  %6381 = vmatprep.subr.bf16.mxu1 %v6380_v26  ;;  %v1932_v15 = vsel %vm527_vm0, %v483_v27, 0.0  ;;  %v2412_v54 = vld [vmem:[%s12047_s1 + $0xae0] sm:$0xff]  ;;  %v6636_v26 = vpack.c.bf16 %v2415_v63, %v2413_v49  ;;  %v6390_v25 = vpack.c.bf16 %v2166_v41, %v2164_v36  ;;  %v2170_v4 = vld [vmem:[%s12047_s1 + $0x350] sm:$0xff]  ;;  %v2421_v24 = vld [vmem:[%s12047_s1 + $0xb28] sm:$0xff] }
 0x325   :  { %v4655_v28 = vrot.slane %v1454_v11, %v12075_v5  ;;  %6629 = vmatprep.subr.bf16.mxu0 %v6628_v37  ;;  %v5189_v14 = vrot.slane %v1778_v32, %v7172_v31  ;;  %v2417_v37 = vld [vmem:[%s12047_s1 + $0xb08] sm:$0xff]  ;;  %v1506_v32 = vsel %vm527_vm0, %v341_v44, 0.0  ;;  %v467_v11 = vld [vmem:[%s12046_s0 + $0xe20] sm:$0xff]  ;;  %v2418_v55 = vld [vmem:[%s12047_s1 + $0xb10] sm:$0xff] }
 0x326   :  { %6383 = vmatpush1.bf16.msra.mxu1 %v6382_v45  ;;  %v2168_v45 = vld [vmem:[%s12047_s1 + $0x340] sm:$0xff]  ;;  %v2423_v21 = vld [vmem:[%s12047_s1 + $0xb38] sm:$0xff]  ;;  %v2174_v36 = vld [vmem:[%s12047_s1 + $0x370] sm:$0xff] }
 0x327   :  { %v4656_v50 = vsel %vm12076_vm4, %v4655_v28, %v4651_v52  ;;  %1555 = vadd.xlane.f32.xlu1 %v1554_v6  ;;  %1504 = vadd.xlane.f32.xlu0 %v1503_v19  ;;  %v358_v52 = vld [vmem:[%s12046_s0 + $0xab8] sm:$0xff]  ;;  %v6638_v6 = vpack.c.bf16 %v2414_v57, %v2412_v54  ;;  %v6392_v19 = vpack.c.bf16 %v2171_v18, %v2169_v53  ;;  %v2416_v27 = vld [vmem:[%s12047_s1 + $0xb00] sm:$0xff]  ;;  %v2173_v28 = vld [vmem:[%s12047_s1 + $0x368] sm:$0xff] }
 0x328   :  { %v1832_v34 = vpop.xlane.xlu1 %1831  ;;  %v1781_v22 = vpop.xlane.xlu0 %1780  ;;  %6631 = vmatpush1.bf16.msra.mxu0 %v6630_v8  ;;  %6385 = vmatprep.subr.bf16.mxu1 %v6384_v3  ;;  %v1557_v1 = vsel %vm527_vm0, %v358_v52, 0.0  ;;  %v6640_v3 = vpack.c.bf16 %v2419_v20, %v2417_v37  ;;  %v6394_v39 = vpack.c.bf16 %v2170_v4, %v2168_v45  ;;  %v2172_v63 = vld [vmem:[%s12047_s1 + $0x360] sm:$0xff]  ;;  %v6644_v54 = vpack.c.bf16 %v2423_v21, %v2421_v24  ;;  %v2425_v57 = vld [vmem:[%s12047_s1 + $0xb48] sm:$0xff]  ;;  %v2427_v53 = vld [vmem:[%s12047_s1 + $0xb58] sm:$0xff] }
 0x329   :  { %v5277_v30 = vrot.slane %v1832_v34, %v7184_v35  ;;  %v5193_v10 = vrot.slane %v1781_v22, %v7178_v33  ;;  %6633 = vmatprep.subr.bf16.mxu0 %v6632_v38  ;;  %v2175_v38 = vld [vmem:[%s12047_s1 + $0x378] sm:$0xff]  ;;  %v2420_v44 = vld [vmem:[%s12047_s1 + $0xb20] sm:$0xff]  ;;  %v2178_v20 = vld [vmem:[%s12047_s1 + $0x390] sm:$0xff] }
 0x32a   :  { %6387 = vmatpush1.bf16.msra.mxu1 %v6386_v16  ;;  %v6396_v52 = vpack.c.bf16 %v2175_v38, %v2173_v28  ;;  %v2176_v37 = vld [vmem:[%s12047_s1 + $0x380] sm:$0xff] }
 0x32b   :  { %v5278_v12 = vsel %vm3118_vm2, %v5277_v30, %v5273_v59  ;;  %v5194_v48 = vsel %vm3111_vm1, %v5193_v10, %v5189_v14  ;;  %1933 = vadd.xlane.f32.xlu1 %v1932_v15  ;;  %1882 = vadd.xlane.f32.xlu0 %v1881_v62  ;;  %v484_v59 = vld [vmem:[%s12046_s0 + $0xea8] sm:$0xff]  ;;  %v342_v15 = vld [vmem:[%s12046_s0 + $0xa38] sm:$0xff]  ;;  %v6642_v62 = vpack.c.bf16 %v2418_v55, %v2416_v27  ;;  %v2422_v14 = vld [vmem:[%s12047_s1 + $0xb30] sm:$0xff] }
 0x32c   :  { %v1457_v51 = vpop.xlane.xlu1 %1456  ;;  %v1406_v46 = vpop.xlane.xlu0 %1405  ;;  %6635 = vmatpush1.bf16.msra.mxu0 %v6634_v17  ;;  %6389 = vmatprep.subr.bf16.mxu1 %v6388_v61  ;;  %v1935_v22 = vsel %vm527_vm0, %v484_v59, 0.0  ;;  %v2177_v30 = vld [vmem:[%s12047_s1 + $0x388] sm:$0xff]  ;;  %v2179_v10 = vld [vmem:[%s12047_s1 + $0x398] sm:$0xff]  ;;  %v2424_v59 = vld [vmem:[%s12047_s1 + $0xb40] sm:$0xff] }
 0x32d   :  { %v4660_v42 = vrot.slane %v1457_v51, %v7189_v40  ;;  %v4576_v8 = vrot.slane %v1406_v46, %v12075_v5  ;;  %6637 = vmatprep.subr.bf16.mxu0 %v6636_v26  ;;  %v6398_v26 = vpack.c.bf16 %v2174_v36, %v2172_v63  ;;  %v1509_v46 = vsel %vm527_vm0, %v342_v15, 0.0  ;;  %v2181_v27 = vld [vmem:[%s12047_s1 + $0x3a8] sm:$0xff]  ;;  %v2431_v55 = vld [vmem:[%s12047_s1 + $0xb78] sm:$0xff]  ;;  %v2180_v38 = vld [vmem:[%s12047_s1 + $0x3a0] sm:$0xff] }
 0x32e   :  { %6391 = vmatpush1.bf16.msra.mxu1 %v6390_v25 }
 0x32f   :  { %v10028_v16 = vsel %vm3139_vm5, %v4660_v42, %v4656_v50  ;;  %v4577_v49 = vsel %vm12076_vm4, %v4576_v8, %v9919_v9  ;;  %1558 = vadd.xlane.f32.xlu1 %v1557_v1  ;;  %1507 = vadd.xlane.f32.xlu0 %v1506_v32  ;;  %v1884_v50 = vsel %vm527_vm0, %v467_v11, 0.0  ;;  %v359_v9 = vld [vmem:[%s12046_s0 + $0xac0] sm:$0xff]  ;;  %v6646_v1 = vpack.c.bf16 %v2422_v14, %v2420_v44  ;;  %v2183_v42 = vld [vmem:[%s12047_s1 + $0x3b8] sm:$0xff]  ;;  %v2185_v44 = vld [vmem:[%s12047_s1 + $0x3c8] sm:$0xff] }
 0x330   :  { %v1835_v41 = vpop.xlane.xlu1 %1834  ;;  %v1784_v34 = vpop.xlane.xlu0 %1783  ;;  %6639 = vmatpush1.bf16.msra.mxu0 %v6638_v6  ;;  %6393 = vmatprep.subr.bf16.mxu1 %v6392_v19  ;;  %v1560_v51 = vsel %vm527_vm0, %v359_v9, 0.0  ;;  %v6400_v32 = vpack.c.bf16 %v2179_v10, %v2177_v30  ;;  %v6648_v6 = vpack.c.bf16 %v2427_v53, %v2425_v57  ;;  %v2426_v19 = vld [vmem:[%s12047_s1 + $0xb50] sm:$0xff]  ;;  %v6402_v8 = vpack.c.bf16 %v2178_v20, %v2176_v37  ;;  %v2435_v14 = vld [vmem:[%s12047_s1 + $0xb98] sm:$0xff] }
 0x331   :  { %v5282_v17 = vrot.slane %v1835_v41, %v12074_v2  ;;  %v5198_v61 = vrot.slane %v1784_v34, %v7184_v35  ;;  %6641 = vmatprep.subr.bf16.mxu0 %v6640_v3  ;;  %v2429_v3 = vld [vmem:[%s12047_s1 + $0xb68] sm:$0xff]  ;;  %v343_v41 = vld [vmem:[%s12046_s0 + $0xa40] sm:$0xff]  ;;  %v6650_v34 = vpack.c.bf16 %v2426_v19, %v2424_v59  ;;  %v2186_v57 = vld [vmem:[%s12047_s1 + $0x3d0] sm:$0xff] }
 0x332   :  { %6395 = vmatpush1.bf16.msra.mxu1 %v6394_v39  ;;  %v2182_v39 = vld [vmem:[%s12047_s1 + $0x3b0] sm:$0xff]  ;;  %v2191_v59 = vld [vmem:[%s12047_s1 + $0x3f8] sm:$0xff] }
 0x333   :  { %v5283_v18 = vsel %vm3125_vm3, %v5282_v17, %v5278_v12  ;;  %v5199_v25 = vsel %vm3118_vm2, %v5198_v61, %v5194_v48  ;;  %1936 = vadd.xlane.f32.xlu1 %v1935_v22  ;;  %1885 = vadd.xlane.f32.xlu0 %v1884_v50  ;;  %v485_v12 = vld [vmem:[%s12046_s0 + $0xeb0] sm:$0xff]  ;;  %v468_v48 = vld [vmem:[%s12046_s0 + $0xe28] sm:$0xff]  ;;  %v6404_v22 = vpack.c.bf16 %v2183_v42, %v2181_v27  ;;  %v2428_v50 = vld [vmem:[%s12047_s1 + $0xb60] sm:$0xff] }
 0x334   :  { %v10074_v45 = vpop.xlane.xlu1 %1459  ;;  %v1409_v4 = vpop.xlane.xlu0 %1408  ;;  %6643 = vmatpush1.bf16.msra.mxu0 %v6642_v62  ;;  %6397 = vmatprep.subr.bf16.mxu1 %v6396_v52  ;;  %v1938_v63 = vsel %vm527_vm0, %v485_v12, 0.0  ;;  %v1887_v36 = vsel %vm527_vm0, %v468_v48, 0.0  ;;  %v6652_v62 = vpack.c.bf16 %v2431_v55, %v2429_v3  ;;  %v2430_v52 = vld [vmem:[%s12047_s1 + $0xb70] sm:$0xff]  ;;  %v2187_v17 = vld [vmem:[%s12047_s1 + $0x3d8] sm:$0xff]  ;;  %v6406_v61 = vpack.c.bf16 %v2182_v39, %v2180_v38  ;;  %v2432_v12 = vld [vmem:[%s12047_s1 + $0xb80] sm:$0xff] }
 0x335   :  { %v4581_v11 = vrot.slane %v1409_v4, %v7189_v40  ;;  %6645 = vmatprep.subr.bf16.mxu0 %v6644_v54  ;;  %v2433_v54 = vld [vmem:[%s12047_s1 + $0xb88] sm:$0xff]  ;;  %v469_v4 = vld [vmem:[%s12046_s0 + $0xe30] sm:$0xff]  ;;  %v2439_v19 = vld [vmem:[%s12047_s1 + $0xbb8] sm:$0xff] }
 0x336   :  { %6399 = vmatpush1.bf16.msra.mxu1 %v6398_v26  ;;  %v2184_v26 = vld [vmem:[%s12047_s1 + $0x3c0] sm:$0xff]  ;;  %v6656_v48 = vpack.c.bf16 %v2435_v14, %v2433_v54  ;;  %v2190_v42 = vld [vmem:[%s12047_s1 + $0x3f0] sm:$0xff]  ;;  %v1890_v38 = vsel %vm527_vm0, %v469_v4, 0.0  ;;  %v2193_v4 = vld [vmem:[%s12047_s1 + $0x408] sm:$0xff] }
 0x337   :  { %v10104_v28 = vsel %vm3139_vm5, %v4581_v11, %v4577_v49  ;;  %1561 = vadd.xlane.f32.xlu1 %v1560_v51  ;;  %1510 = vadd.xlane.f32.xlu0 %v1509_v46  ;;  %v360_v49 = vld [vmem:[%s12046_s0 + $0xac8] sm:$0xff]  ;;  %v6654_v51 = vpack.c.bf16 %v2430_v52, %v2428_v50  ;;  %v6408_v46 = vpack.c.bf16 %v2187_v17, %v2185_v44  ;;  %v2188_v27 = vld [vmem:[%s12047_s1 + $0x3e0] sm:$0xff]  ;;  %v361_v39 = vld [vmem:[%s12046_s0 + $0xad0] sm:$0xff] }
 0x338   :  { %v1838_v24 = vpop.xlane.xlu1 %1837  ;;  %v1787_v21 = vpop.xlane.xlu0 %1786  ;;  %6647 = vmatpush1.bf16.msra.mxu0 %v6646_v1  ;;  %6401 = vmatprep.subr.bf16.mxu1 %v6400_v32  ;;  %v1563_v20 = vsel %vm527_vm0, %v360_v49, 0.0  ;;  %v2434_v1 = vld [vmem:[%s12047_s1 + $0xb90] sm:$0xff]  ;;  %v2189_v32 = vld [vmem:[%s12047_s1 + $0x3e8] sm:$0xff]  ;;  %v6410_v11 = vpack.c.bf16 %v2186_v57, %v2184_v26  ;;  %v6414_v50 = vpack.c.bf16 %v2190_v42, %v2188_v27  ;;  %v487_v14 = vld [vmem:[%s12046_s0 + $0xec0] sm:$0xff] }
 0x339   :  { %v5287_v9 = vrot.slane %v1838_v24, %v12075_v5  ;;  %v5203_v15 = vrot.slane %v1787_v21, %v12074_v2  ;;  %6649 = vmatprep.subr.bf16.mxu0 %v6648_v6  ;;  %v2437_v6 = vld [vmem:[%s12047_s1 + $0xba8] sm:$0xff]  ;;  %v6658_v24 = vpack.c.bf16 %v2434_v1, %v2432_v12  ;;  %v6412_v21 = vpack.c.bf16 %v2191_v59, %v2189_v32  ;;  %v2440_v57 = vld [vmem:[%s12047_s1 + $0xbc0] sm:$0xff]  ;;  %v362_v59 = vld [vmem:[%s12046_s0 + $0xad8] sm:$0xff] }
 0x33a   :  { %6403 = vmatpush1.bf16.msra.mxu1 %v6402_v8  ;;  %v344_v49 = vld [vmem:[%s12046_s0 + $0xa48] sm:$0xff]  ;;  %v1944_v1 = vsel %vm527_vm0, %v487_v14, 0.0  ;;  %v2444_v27 = vld [vmem:[%s12047_s1 + $0xbe0] sm:$0xff]  ;;  %v2446_v42 = vld [vmem:[%s12047_s1 + $0xbf0] sm:$0xff] }
 0x33b   :  { %v5288_v30 = vsel %vm12076_vm4, %v5287_v9, %v5283_v18  ;;  %v5204_v10 = vsel %vm3125_vm3, %v5203_v15, %v5199_v25  ;;  %1939 = vadd.xlane.f32.xlu1 %v1938_v63  ;;  %1888 = vadd.xlane.f32.xlu0 %v1887_v36  ;;  %v1512_v18 = vsel %vm527_vm0, %v343_v41, 0.0  ;;  %v486_v25 = vld [vmem:[%s12046_s0 + $0xeb8] sm:$0xff]  ;;  %v6660_v41 = vpack.c.bf16 %v2439_v19, %v2437_v6  ;;  %v2441_v9 = vld [vmem:[%s12047_s1 + $0xbc8] sm:$0xff]  ;;  %v345_v6 = vld [vmem:[%s12046_s0 + $0xa50] sm:$0xff] }
 0x33c   :  { %v10148_v53 = vpop.xlane.xlu1 %1462  ;;  %v10150_v37 = vpop.xlane.xlu0 %1411  ;;  %6651 = vmatpush1.bf16.msra.mxu0 %v6650_v34  ;;  %6405 = vmatprep.subr.bf16.mxu1 %v6404_v22  ;;  %v1941_v55 = vsel %vm527_vm0, %v486_v25, 0.0  ;;  %v2436_v34 = vld [vmem:[%s12047_s1 + $0xba0] sm:$0xff]  ;;  %v2438_v22 = vld [vmem:[%s12047_s1 + $0xbb0] sm:$0xff]  ;;  %v2443_v15 = vld [vmem:[%s12047_s1 + $0xbd8] sm:$0xff]  ;;  %v1515_v54 = vsel %vm527_vm0, %v344_v49, 0.0 }
 0x33d   :  { %6653 = vmatprep.subr.bf16.mxu0 %v6652_v62  ;;  %v6664_v26 = vpack.c.bf16 %v2443_v15, %v2441_v9  ;;  %v2447_v25 = vld [vmem:[%s12047_s1 + $0xbf8] sm:$0xff] }
 0x33e   :  { %6407 = vmatpush1.bf16.msra.mxu1 %v6406_v61  ;;  %v1566_v61 = vsel %vm527_vm0, %v361_v39, 0.0  ;;  %v6670_v39 = vpack.c.bf16 %v2446_v42, %v2444_v27  ;;  %v346_v9 = vld [vmem:[%s12046_s0 + $0xa58] sm:$0xff] }
 0x33f   :  { %1564 = vadd.xlane.f32.xlu1 %v1563_v20  ;;  %1513 = vadd.xlane.f32.xlu0 %v1512_v18  ;;  %v2442_v20 = vld [vmem:[%s12047_s1 + $0xbd0] sm:$0xff]  ;;  %v2445_v18 = vld [vmem:[%s12047_s1 + $0xbe8] sm:$0xff] }
 0x340   :  { %v1841_v8 = vpop.xlane.xlu1 %1840  ;;  %v1790_v3 = vpop.xlane.xlu0 %1789  ;;  %6655 = vmatpush1.bf16.msra.mxu0 %v6654_v51  ;;  %6409 = vmatprep.subr.bf16.mxu1 %v6408_v46  ;;  %v2195_v51 = vld [vmem:[%s12047_s1 + $0x418] sm:$0xff]  ;;  %v6668_v19 = vpack.c.bf16 %v2447_v25, %v2445_v18 }
 0x341   :  { %v5292_v63 = vrot.slane %v1841_v8, %v7189_v40  ;;  %v5208_v36 = vrot.slane %v1790_v3, %v12075_v5  ;;  %6657 = vmatprep.subr.bf16.mxu0 %v6656_v48  ;;  %v6416_v46 = vpack.c.bf16 %v2195_v51, %v2193_v4  ;;  %v364_v4 = vld [vmem:[%s12046_s0 + $0xae8] sm:$0xff]  ;;  %v347_v51 = vld [vmem:[%s12046_s0 + $0xa60] sm:$0xff] }
 0x342   :  { %6411 = vmatpush1.bf16.msra.mxu1 %v6410_v11  ;;  %v6666_v11 = vpack.c.bf16 %v2442_v20, %v2440_v57 }
 0x343   :  { %v10207_v62 = vsel %vm3139_vm5, %v5292_v63, %v5288_v30  ;;  %v10210_v52 = vsel %vm12076_vm4, %v5208_v36, %v5204_v10  ;;  %1942 = vadd.xlane.f32.xlu1 %v1941_v55  ;;  %1891 = vadd.xlane.f32.xlu0 %v1890_v38  ;;  %v470_v30 = vld [vmem:[%s12046_s0 + $0xe38] sm:$0xff]  ;;  %v6662_v10 = vpack.c.bf16 %v2438_v22, %v2436_v34  ;;  %v1569_v55 = vsel %vm527_vm0, %v362_v59, 0.0  ;;  %v2449_v63 = vld [vmem:[%s12047_s1 + $0xc08] sm:$0xff] }
 0x344   :  { %v10212_v44 = vpop.xlane.xlu1 %1465  ;;  %v10214_v17 = vpop.xlane.xlu0 %1414  ;;  %6659 = vmatpush1.bf16.msra.mxu0 %v6658_v24  ;;  %6413 = vmatprep.subr.bf16.mxu1 %v6412_v21  ;;  %v1893_v32 = vsel %vm527_vm0, %v470_v30, 0.0  ;;  %v1518_v38 = vsel %vm527_vm0, %v345_v6, 0.0  ;;  %v488_v24 = vld [vmem:[%s12046_s0 + $0xec8] sm:$0xff]  ;;  %v471_v21 = vld [vmem:[%s12046_s0 + $0xe40] sm:$0xff]  ;;  %v2451_v22 = vld [vmem:[%s12047_s1 + $0xc18] sm:$0xff]  ;;  %v1521_v30 = vsel %vm527_vm0, %v346_v9, 0.0 }
 0x345   :  { %6661 = vmatprep.subr.bf16.mxu0 %v6660_v41  ;;  %v1947_v41 = vsel %vm527_vm0, %v488_v24, 0.0  ;;  %v1896_v34 = vsel %vm527_vm0, %v471_v21, 0.0  ;;  %v6672_v15 = vpack.c.bf16 %v2451_v22, %v2449_v63  ;;  %v1524_v59 = vsel %vm527_vm0, %v347_v51, 0.0  ;;  %v473_v6 = vld [vmem:[%s12046_s0 + $0xe50] sm:$0xff]  ;;  %v474_v22 = vld [vmem:[%s12046_s0 + $0xe58] sm:$0xff]  ;;  %v492_v51 = vld [vmem:[%s12046_s0 + $0xee8] sm:$0xff] }
 0x346   :  { %6415 = vmatpush1.bf16.msra.mxu1 %v6414_v50  ;;  %v363_v50 = vld [vmem:[%s12046_s0 + $0xae0] sm:$0xff]  ;;  %vm12078_vm4 = vcmask 1041409  }
 0x347   :  { %1567 = vadd.xlane.f32.xlu1 %v1566_v61  ;;  %1516 = vadd.xlane.f32.xlu0 %v1515_v54  ;;  %v1572_v14 = vsel %vm527_vm0, %v363_v50, 0.0 }
 0x348   :  { %v10242_v12 = vpop.xlane.xlu1 %1843  ;;  %v10244_v48 = vpop.xlane.xlu0 %1792  ;;  %6663 = vmatpush1.bf16.msra.mxu0 %v6662_v10  ;;  %6417 = vmatprep.subr.bf16.mxu1 %v6416_v46  ;;  %v489_v10 = vld [vmem:[%s12046_s0 + $0xed0] sm:$0xff] }
 0x349   :  { %6665 = vmatprep.subr.bf16.mxu0 %v6664_v26  ;;  %v472_v26 = vld [vmem:[%s12046_s0 + $0xe48] sm:$0xff]  ;;  %v1950_v18 = vsel %vm527_vm0, %v489_v10, 0.0  ;;  %v349_v10 = vld [vmem:[%s12046_s0 + $0xa70] sm:$0xff] }
 0x34a   :  { %v1899_v25 = vsel %vm527_vm0, %v472_v26, 0.0 }
 0x34b   :  { %1945 = vadd.xlane.f32.xlu1 %v1944_v1  ;;  %1894 = vadd.xlane.f32.xlu0 %v1893_v32  ;;  %v1575_v32 = vsel %vm527_vm0, %v364_v4, 0.0  ;;  %v1530_v4 = vsel %vm527_vm0, %v349_v10, 0.0 }
 0x34c   :  { %v10260_v8 = vpop.xlane.xlu1 %1468  ;;  %v10262_v3 = vpop.xlane.xlu0 %1417  ;;  %6667 = vmatpush1.bf16.msra.mxu0 %v6666_v11  ;;  %v490_v11 = vld [vmem:[%s12046_s0 + $0xed8] sm:$0xff] }
 0x34d   :  { %6669 = vmatprep.subr.bf16.mxu0 %v6668_v19  ;;  %v1953_v42 = vsel %vm527_vm0, %v490_v11, 0.0 }
 0x34f   :  { %1570 = vadd.xlane.f32.xlu1 %v1569_v55  ;;  %1519 = vadd.xlane.f32.xlu0 %v1518_v38  ;;  %v1902_v55 = vsel %vm527_vm0, %v473_v6, 0.0  ;;  %v365_v38 = vld [vmem:[%s12046_s0 + $0xaf0] sm:$0xff]  ;;  %v1959_v6 = vsel %vm527_vm0, %v492_v51, 0.0  ;;  %v4586_v51 = vrot.slane %v10150_v37, %v7225_v0 }
 0x350   :  { %v10275_v36 = vpop.xlane.xlu1 %1846  ;;  %v10277_v49 = vpop.xlane.xlu0 %1795  ;;  %6671 = vmatpush1.bf16.msra.mxu0 %v6670_v39  ;;  %v348_v39 = vld [vmem:[%s12046_s0 + $0xa68] sm:$0xff]  ;;  %v1578_v63 = vsel %vm527_vm0, %v365_v38, 0.0  ;;  %v350_v38 = vld [vmem:[%s12046_s0 + $0xa78] sm:$0xff] }
 0x351   :  { %6673 = vmatprep.subr.bf16.mxu0 %v6672_v15 }
 0x353   :  { %1948 = vadd.xlane.f32.xlu1 %v1947_v41  ;;  %1897 = vadd.xlane.f32.xlu0 %v1896_v34  ;;  %v1527_v41 = vsel %vm527_vm0, %v348_v39, 0.0  ;;  %v491_v34 = vld [vmem:[%s12046_s0 + $0xee0] sm:$0xff]  ;;  %v4665_v39 = vrot.slane %v10074_v45, %v7225_v0  ;;  %v4680_v45 = vrot.slane %v10260_v8, %v7232_v7 }
 0x354   :  { %v10290_v61 = vpop.xlane.xlu1 %1471  ;;  %v10292_v54 = vpop.xlane.xlu0 %1420  ;;  %v1956_v15 = vsel %vm527_vm0, %v491_v34, 0.0 }
 0x355   :  { %v4685_v10 = vrot.slane %v10290_v61, %v7264_v29 }
 0x357   :  { %1573 = vadd.xlane.f32.xlu1 %v1572_v14  ;;  %1522 = vadd.xlane.f32.xlu0 %v1521_v30  ;;  %v1905_v14 = vsel %vm527_vm0, %v474_v22, 0.0  ;;  %v366_v30 = vld [vmem:[%s12046_s0 + $0xaf8] sm:$0xff] }
 0x358   :  { %v10302_v57 = vpop.xlane.xlu1 %1849  ;;  %v10304_v20 = vpop.xlane.xlu0 %1798 }
 0x35b   :  { %1951 = vadd.xlane.f32.xlu1 %v1950_v18  ;;  %1900 = vadd.xlane.f32.xlu0 %v1899_v25  ;;  %v1581_v25 = vsel %vm527_vm0, %v366_v30, 0.0  ;;  %v477_v30 = vld [vmem:[%s12046_s0 + $0xe70] sm:$0xff] }
 0x35c   :  { %v10314_v46 = vpop.xlane.xlu1 %1474  ;;  %v10316_v1 = vpop.xlane.xlu0 %1423 }
 0x35d   :  { %v4690_v8 = vrot.slane %v10314_v46, %v7252_v23 }
 0x35f   :  { %1576 = vadd.xlane.f32.xlu1 %v1575_v32  ;;  %1525 = vadd.xlane.f32.xlu0 %v1524_v59  ;;  %v475_v32 = vld [vmem:[%s12046_s0 + $0xe60] sm:$0xff] }
 0x360   :  { %v10326_v19 = vpop.xlane.xlu1 %1852  ;;  %v10328_v27 = vpop.xlane.xlu0 %1801 }
 0x363   :  { %1954 = vadd.xlane.f32.xlu1 %v1953_v42  ;;  %1903 = vadd.xlane.f32.xlu0 %v1902_v55  ;;  %v1908_v42 = vsel %vm527_vm0, %v475_v32, 0.0  ;;  %v476_v55 = vld [vmem:[%s12046_s0 + $0xe68] sm:$0xff]  ;;  %v1914_v32 = vsel %vm527_vm0, %v477_v30, 0.0 }
 0x364   :  { %v10338_v24 = vpop.xlane.xlu1 %1477  ;;  %v10340_v21 = vpop.xlane.xlu0 %1426 }
 0x367   :  { %1579 = vadd.xlane.f32.xlu1 %v1578_v63  ;;  %1528 = vadd.xlane.f32.xlu0 %v1527_v41  ;;  %v4670_v63 = vrot.slane %v10148_v53, %v7211_v56  ;;  %v4675_v41 = vrot.slane %v10212_v44, %v7244_v13  ;;  %v493_v53 = vld [vmem:[%s12046_s0 + $0xef0] sm:$0xff]  ;;  %v4666_v44 = vsel %vm3146_vm6, %v4665_v39, %v10028_v16  ;;  %v494_v16 = vld [vmem:[%s12046_s0 + $0xef8] sm:$0xff]  ;;  %v383_v39 = vld [vmem:[%s12046_s0 + $0xb80] sm:$0xff] }
 0x368   :  { %v10350_v50 = vpop.xlane.xlu1 %1855  ;;  %v10352_v9 = vpop.xlane.xlu0 %1804  ;;  %v1962_v46 = vsel %vm527_vm0, %v493_v53, 0.0  ;;  %v1965_v53 = vsel %vm527_vm0, %v494_v16, 0.0  ;;  %v367_v16 = vld [vmem:[%s12046_s0 + $0xb00] sm:$0xff] }
 0x36b   :  { %1957 = vadd.xlane.f32.xlu1 %v1956_v15  ;;  %1906 = vadd.xlane.f32.xlu0 %v1905_v14  ;;  %v1911_v15 = vsel %vm527_vm0, %v476_v55, 0.0  ;;  %v1533_v14 = vsel %vm527_vm0, %v350_v38, 0.0  ;;  %v384_v38 = vld [vmem:[%s12046_s0 + $0xb88] sm:$0xff] }
 0x36c   :  { %v10362_v26 = vpop.xlane.xlu1 %1480  ;;  %v10364_v18 = vpop.xlane.xlu0 %1429 }
 0x36f   :  { %1582 = vadd.xlane.f32.xlu1 %v1581_v25  ;;  %1531 = vadd.xlane.f32.xlu0 %v1530_v4  ;;  %v478_v25 = vld [vmem:[%s12046_s0 + $0xe78] sm:$0xff]  ;;  %v4671_v4 = vsel %vm3153_vm7, %v4670_v63, %v4666_v44  ;;  %v1635_v44 = vsel %vm527_vm0, %v384_v38, 0.0  ;;  %v4606_v38 = vrot.slane %v10316_v1, %v7264_v29  ;;  %v10492_v1 = vld [vmem:[%s12047_s1 + $0x428] sm:$0xff] }
 0x370   :  { %v10374_v59 = vpop.xlane.xlu1 %1858  ;;  %v10376_v11 = vpop.xlane.xlu0 %1807  ;;  %v4676_v61 = vsel %vm3160_vm8, %v4675_v41, %v4671_v4  ;;  %v368_v41 = vld [vmem:[%s12046_s0 + $0xb08] sm:$0xff] }
 0x371   :  { %v4681_v63 = vsel %vm3167_vm9, %v4680_v45, %v4676_v61  ;;  %v4587_v45 = vsel %vm3146_vm6, %v4586_v51, %v10104_v28  ;;  %v5213_v61 = vrot.slane %v10244_v48, %v7189_v40  ;;  %v5302_v48 = vrot.slane %v10275_v36, %v7211_v56 }
 0x372   :  { %v5218_v36 = vrot.slane %v10277_v49, %v7225_v0  ;;  %v10517_v49 = vld [vmem:[%s12047_s1 + $0x420] sm:$0xff] }
 0x373   :  { %1960 = vadd.xlane.f32.xlu1 %v1959_v6  ;;  %1909 = vadd.xlane.f32.xlu0 %v1908_v42  ;;  %v4591_v6 = vrot.slane %v10214_v17, %v7211_v56  ;;  %v4695_v42 = vrot.slane %v10338_v24, %v7272_v43  ;;  %v4700_v17 = vrot.slane %v10362_v26, %v7278_v47  ;;  %v1917_v24 = vsel %vm527_vm0, %v478_v25, 0.0 }
 0x374   :  { %v1484_v34 = vpop.xlane.xlu1 %1483  ;;  %v10392_v22 = vpop.xlane.xlu0 %1432  ;;  %v1632_v25 = vsel %vm527_vm0, %v383_v39, 0.0 }
 0x375   :  { %v4705_v30 = vrot.slane %v1484_v34, %v7292_v58  ;;  %v10461_v34 = vld [vmem:[%s12047_s1 + $0x410] sm:$0xff]  ;;  %v4592_v28 = vsel %vm3153_vm7, %v4591_v6, %v4587_v45 }
 0x377   :  { %1912 = vadd.xlane.f32.xlu1 %v1911_v15  ;;  %1534 = vadd.xlane.f32.xlu0 %v1533_v14  ;;  %v4596_v15 = vrot.slane %v10262_v3, %v7244_v13  ;;  %v4686_v14 = vsel %vm3174_vm10, %v4685_v10, %v4681_v63  ;;  %v10456_v3 = vld [vmem:[%s12047_s1 + $0x400] sm:$0xff]  ;;  %v5297_v10 = vrot.slane %v10242_v12, %v7225_v0 }
 0x378   :  { %v10425_v37 = vpop.xlane.xlu1 %1861  ;;  %v10427_v55 = vpop.xlane.xlu0 %1810  ;;  %v4691_v26 = vsel %vm3181_vm11, %v4690_v8, %v4686_v14  ;;  %v6418_v63 = vpack.c.bf16 %v10461_v34, %v10456_v3 }
 0x379   :  { %v4696_v4 = vsel %vm3188_vm12, %v4695_v42, %v4691_v26  ;;  %v4597_v42 = vsel %vm3160_vm8, %v4596_v15, %v4592_v28  ;;  %v10497_v15 = vld [vmem:[%s12047_s1 + $0x438] sm:$0xff]  ;;  %v369_v26 = vld [vmem:[%s12046_s0 + $0xb10] sm:$0xff]  ;;  %v5214_v28 = vsel %vm3139_vm5, %v5213_v61, %v10210_v52 }
 0x37a   :  { %v4701_v6 = vsel %vm3195_vm13, %v4700_v17, %v4696_v4 }
 0x37b   :  { %1915 = vadd.xlane.f32.xlu1 %v1914_v32  ;;  %1963 = vadd.xlane.f32.xlu0 %v1962_v46  ;;  %v1587_v32 = vsel %vm527_vm0, %v368_v41, 0.0  ;;  %v4601_v46 = vrot.slane %v10292_v54, %v7232_v7  ;;  %v4706_v39 = vsel %vm12058_vm14, %v4705_v30, %v4701_v6  ;;  %v4611_v54 = vrot.slane %v10340_v21, %v7252_v23 }
 0x37c   :  { %v1487_v51 = vpop.xlane.xlu1 %1486  ;;  %v1436_v8 = vpop.xlane.xlu0 %1435  ;;  %v1584_v41 = vsel %vm527_vm0, %v367_v16, 0.0  ;;  %v5307_v21 = vrot.slane %v10302_v57, %v7244_v13  ;;  %v10522_v57 = vld [vmem:[%s12047_s1 + $0x430] sm:$0xff]  ;;  %v5223_v16 = vrot.slane %v10304_v20, %v7211_v56  ;;  %v5219_v20 = vsel %vm3146_vm6, %v5218_v36, %v5214_v28 }
 0x37d   :  { %v4710_v12 = vrot.slane %v1487_v51, %v7297_v60  ;;  %v4602_v4 = vsel %vm3167_vm9, %v4601_v46, %v4597_v42  ;;  %v4621_v51 = vrot.slane %v10392_v22, %v7278_v47  ;;  %v6422_v22 = vpack.c.bf16 %v10522_v57, %v10517_v49  ;;  %v2204_v57 = vld [vmem:[%s12047_s1 + $0x460] sm:$0xff] }
 0x37e   :  { %v4607_v6 = vsel %vm3174_vm10, %v4606_v38, %v4602_v4  ;;  %v2201_v4 = vld [vmem:[%s12047_s1 + $0x448] sm:$0xff] }
 0x37f   :  { %1918 = vadd.xlane.f32.xlu1 %v1917_v24  ;;  %1966 = vadd.xlane.f32.xlu0 %v1965_v53  ;;  %v4711_v17 = vsel %vm3209_vm15, %v4710_v12, %v4706_v39  ;;  %v4616_v24 = vrot.slane %v10364_v18, %v7272_v43  ;;  %v12077_v53 = vld [vmem:[#allocation9_spill] sm:$0xff]  ;;  %v5298_v18 = vsel %vm3146_vm6, %v5297_v10, %v10207_v62  ;;  %v1590_v10 = vsel %vm527_vm0, %v369_v26, 0.0 }
 0x380   :  { %v10505_v14 = vpop.xlane.xlu1 %1864  ;;  %v10507_v30 = vpop.xlane.xlu0 %1813  ;;  %v5664_v45 = vsel %vm12078_vm4, %v4711_v17, %v12077_v53  ;;  %v4626_v12 = vrot.slane %v1436_v8, %v7292_v58  ;;  %v6420_v39 = vpack.c.bf16 %v10497_v15, %v10492_v1  ;;  %v5303_v62 = vsel %vm3153_vm7, %v5302_v48, %v5298_v18 }
 0x381   :  { %5828 = vmatprep.mubr.f32.mxu1 %v5664_v45  ;;  %v4612_v52 = vsel %vm3181_vm11, %v4611_v54, %v4607_v6  ;;  %v5308_v61 = vsel %vm3160_vm8, %v5307_v21, %v5303_v62  ;;  %v5228_v8 = vrot.slane %v10328_v27, %v7244_v13  ;;  %v5233_v48 = vrot.slane %v10352_v9, %v7232_v7 }
 0x382   :  { %v4617_v46 = vsel %vm3188_vm12, %v4616_v24, %v4612_v52  ;;  %v5224_v27 = vsel %vm3153_vm7, %v5223_v16, %v5219_v20  ;;  %v5317_v1 = vrot.slane %v10350_v50, %v7264_v29  ;;  %v5238_v15 = vrot.slane %v10376_v11, %v7264_v29 }
 0x383   :  { %1636 = vadd.xlane.f32.xlu1 %v1635_v44  ;;  %1633 = vadd.xlane.f32.xlu0 %v1632_v25  ;;  %v385_v44 = vld [vmem:[%s12046_s0 + $0xb90] sm:$0xff]  ;;  %v5312_v25 = vrot.slane %v10326_v19, %v7232_v7  ;;  %v4622_v54 = vsel %vm3195_vm13, %v4621_v51, %v4617_v46  ;;  %v5322_v19 = vrot.slane %v10374_v59, %v7252_v23  ;;  %v12079_v59 = vld [vmem:[#allocation8_spill] sm:$0xff] }
 0x384   :  { %v1817_v42 = vpop.xlane.xlu1 %1816  ;;  %v1439_v38 = vpop.xlane.xlu0 %1438  ;;  %v4627_v36 = vsel %vm12058_vm14, %v4626_v12, %v4622_v54  ;;  %v5243_v9 = vrot.slane %v10427_v55, %v7252_v23  ;;  %v1638_v24 = vsel %vm527_vm0, %v385_v44, 0.0  ;;  %v5229_v53 = vsel %vm3160_vm8, %v5228_v8, %v5224_v27  ;;  %v511_v55 = vld [vmem:[%s12046_s0 + $0xf80] sm:$0xff]  ;;  %v2203_v51 = vld [vmem:[%s12047_s1 + $0x458] sm:$0xff]  ;;  %v2202_v8 = vld [vmem:[%s12047_s1 + $0x450] sm:$0xff] }
 0x385   :  { %v4631_v17 = vrot.slane %v1439_v38, %v7297_v60  ;;  %v5327_v50 = vrot.slane %v10425_v37, %v7272_v43  ;;  %v5248_v11 = vrot.slane %v10507_v30, %v7272_v43  ;;  %v5332_v28 = vrot.slane %v10505_v14, %v7278_v47  ;;  %v386_v30 = vld [vmem:[%s12046_s0 + $0xb98] sm:$0xff]  ;;  %v512_v38 = vld [vmem:[%s12046_s0 + $0xf88] sm:$0xff] }
 0x386   :  { %v5253_v37 = vrot.slane %v1817_v42, %v7278_v47  ;;  %v2016_v20 = vsel %vm527_vm0, %v511_v55, 0.0  ;;  %v1641_v42 = vsel %vm527_vm0, %v386_v30, 0.0  ;;  %v6424_v44 = vpack.c.bf16 %v2203_v51, %v2201_v4  ;;  %v12081_v55 = vld [vmem:[#allocation14_spill] sm:$0xff]  ;;  %v2452_v4 = vld [vmem:[%s12047_s1 + $0xc20] sm:$0xff] }
 0x387   :  { %1588 = vadd.xlane.f32.xlu1 %v1587_v32  ;;  %1585 = vadd.xlane.f32.xlu0 %v1584_v41  ;;  %v4632_v21 = vsel %vm3209_vm15, %v4631_v17, %v4627_v36  ;;  %v5313_v32 = vsel %vm3167_vm9, %v5312_v25, %v5308_v61  ;;  %v5234_v41 = vsel %vm3167_vm9, %v5233_v48, %v5229_v53  ;;  %v2200_v61 = vld [vmem:[%s12047_s1 + $0x440] sm:$0xff]  ;;  %v2019_v49 = vsel %vm527_vm0, %v512_v38, 0.0  ;;  %v513_v38 = vld [vmem:[%s12046_s0 + $0xf90] sm:$0xff] }
 0x388   :  { %v1820_v45 = vpop.xlane.xlu1 %1819  ;;  %v1868_v26 = vpop.xlane.xlu0 %1867  ;;  %v5663_v18 = vsel %vm12078_vm4, %v4632_v21, %v12079_v59  ;;  %v5318_v16 = vsel %vm3174_vm10, %v5317_v1, %v5313_v32  ;;  %v5239_v6 = vsel %vm3174_vm10, %v5238_v15, %v5234_v41  ;;  %v2448_v25 = vld [vmem:[%s12047_s1 + $0xc00] sm:$0xff]  ;;  %v2450_v1 = vld [vmem:[%s12047_s1 + $0xc10] sm:$0xff]  ;;  %v2207_v15 = vld [vmem:[%s12047_s1 + $0x478] sm:$0xff] }
 0x389   :  { %5829 = vmatmul.mubr.f32.vlgmr.msra.gmra.mrb[0].mxu1 %v5663_v18  ;;  %v5258_v14 = vrot.slane %v1820_v45, %v7292_v58  ;;  %v5337_v12 = vrot.slane %v1868_v26, %v7292_v58  ;;  %v5323_v62 = vsel %vm3181_vm11, %v5322_v19, %v5318_v16  ;;  %v5244_v52 = vsel %vm3181_vm11, %v5243_v9, %v5239_v6  ;;  %v2453_v21 = vld [vmem:[%s12047_s1 + $0xc28] sm:$0xff]  ;;  %v12080_v59 = vld [vmem:[#allocation15_spill] sm:$0xff]  ;;  %v495_v41 = vld [vmem:[%s12046_s0 + $0xf00] sm:$0xff] }
 0x38a   :  { %6419 = vmatpush1.bf16.msra.mxu1 %v6418_v63  ;;  %v5328_v46 = vsel %vm3188_vm12, %v5327_v50, %v5323_v62  ;;  %v5249_v3 = vsel %vm3188_vm12, %v5248_v11, %v5244_v52  ;;  %v6426_v9 = vpack.c.bf16 %v2202_v8, %v2200_v61  ;;  %v2211_v62 = vld [vmem:[%s12047_s1 + $0x498] sm:$0xff] }
 0x38b   :  { %1591 = vadd.xlane.f32.xlu1 %v1590_v10  ;;  %1639 = vadd.xlane.f32.xlu0 %v1638_v24  ;;  %v370_v10 = vld [vmem:[%s12046_s0 + $0xb18] sm:$0xff]  ;;  %v5333_v48 = vsel %vm3195_vm13, %v5332_v28, %v5328_v46  ;;  %v5254_v54 = vsel %vm3195_vm13, %v5253_v37, %v5249_v3  ;;  %v387_v28 = vld [vmem:[%s12046_s0 + $0xba0] sm:$0xff]  ;;  %v6674_v37 = vpack.c.bf16 %v2450_v1, %v2448_v25  ;;  %v2210_v3 = vld [vmem:[%s12047_s1 + $0x490] sm:$0xff] }
 0x38c   :  { %v1823_v34 = vpop.xlane.xlu1 %1822  ;;  %v1871_v63 = vpop.xlane.xlu0 %1870  ;;  %6421 = vmatprep.subr.bf16.mxu1 %v6420_v39  ;;  %v2205_v39 = vld [vmem:[%s12047_s1 + $0x468] sm:$0xff]  ;;  %v5259_v36 = vsel %vm12058_vm14, %v5258_v14, %v5254_v54  ;;  %v5338_v19 = vsel %vm12058_vm14, %v5337_v12, %v5333_v48  ;;  %v2455_v24 = vld [vmem:[%s12047_s1 + $0xc38] sm:$0xff]  ;;  %v1593_v11 = vsel %vm527_vm0, %v370_v10, 0.0  ;;  %vm12082_vm14 = vmmov %vm12078_vm4  ;;  %v1644_v10 = vsel %vm527_vm0, %v387_v28, 0.0 }
 0x38d   :  { %v5263_v17 = vrot.slane %v1823_v34, %v7297_v60  ;;  %v5342_v27 = vrot.slane %v1871_v63, %v7297_v60  ;;  %v6428_v30 = vpack.c.bf16 %v2207_v15, %v2205_v39  ;;  %v6676_v6 = vpack.c.bf16 %v2455_v24, %v2453_v21  ;;  %v2454_v14 = vld [vmem:[%s12047_s1 + $0xc30] sm:$0xff]  ;;  %v2209_v12 = vld [vmem:[%s12047_s1 + $0x488] sm:$0xff]  ;;  %v2459_v61 = vld [vmem:[%s12047_s1 + $0xc58] sm:$0xff] }
 0x38e   :  { %6423 = vmatpush1.bf16.msra.mxu1 %v6422_v22  ;;  %v2206_v22 = vld [vmem:[%s12047_s1 + $0x470] sm:$0xff]  ;;  %v2208_v46 = vld [vmem:[%s12047_s1 + $0x480] sm:$0xff]  ;;  %v6678_v25 = vpack.c.bf16 %v2454_v14, %v2452_v4  ;;  %v6432_v48 = vpack.c.bf16 %v2211_v62, %v2209_v12  ;;  %v2213_v15 = vld [vmem:[%s12047_s1 + $0x4a8] sm:$0xff] }
 0x38f   :  { %2017 = vadd.xlane.f32.xlu1 %v2016_v20  ;;  %1642 = vadd.xlane.f32.xlu0 %v1641_v42  ;;  %v5343_v53 = vsel %vm3209_vm15, %v5342_v27, %v5338_v19  ;;  %v5264_v50 = vsel %vm3209_vm15, %v5263_v17, %v5259_v36  ;;  %v6430_v52 = vpack.c.bf16 %v2206_v22, %v2204_v57  ;;  %v2457_v20 = vld [vmem:[%s12047_s1 + $0xc48] sm:$0xff]  ;;  %v1968_v42 = vsel %vm527_vm0, %v495_v41, 0.0  ;;  %v2456_v54 = vld [vmem:[%s12047_s1 + $0xc40] sm:$0xff]  ;;  %v2458_v39 = vld [vmem:[%s12047_s1 + $0xc50] sm:$0xff] }
 0x390   :  { %v1541_v45 = vpop.xlane.xlu1 %1540  ;;  %v1538_v26 = vpop.xlane.xlu0 %1537  ;;  %v5672_v18 = vsel %vm12078_vm4, %v5343_v53, %v12080_v59  ;;  %v5671_v32 = vsel %vm12082_vm14, %v5264_v50, %v12081_v55  ;;  %6425 = vmatprep.subr.bf16.mxu1 %v6424_v44  ;;  %v496_v44 = vld [vmem:[%s12046_s0 + $0xf08] sm:$0xff]  ;;  %v6680_v1 = vpack.c.bf16 %v2459_v61, %v2457_v20  ;;  %v2215_v36 = vld [vmem:[%s12047_s1 + $0x4b8] sm:$0xff]  ;;  %v6434_v19 = vpack.c.bf16 %v2210_v3, %v2208_v46  ;;  %v2212_v53 = vld [vmem:[%s12047_s1 + $0x4a0] sm:$0xff] }
 0x391   :  { %v4798_v51 = vrot.slane %v1541_v45, %v7178_v33  ;;  %v4794_v16 = vrot.slane %v1538_v26, %v7172_v31  ;;  %6112 = vmatprep.mubr.f32.mxu0 %v5672_v18  ;;  %v2463_v21 = vld [vmem:[%s12047_s1 + $0xc78] sm:$0xff]  ;;  %v2214_v50 = vld [vmem:[%s12047_s1 + $0x4b0] sm:$0xff]  ;;  %v2022_v57 = vsel %vm527_vm0, %v513_v38, 0.0  ;;  %v1971_v22 = vsel %vm527_vm0, %v496_v44, 0.0  ;;  %v388_v45 = vld [vmem:[%s12046_s0 + $0xba8] sm:$0xff] }
 0x392   :  { %6113 = vmatmul.mubr.f32.vlgmr.msra.gmra.mrb[0].mxu0 %v5671_v32  ;;  %6427 = vmatpush1.bf16.msra.mxu1 %v6426_v9  ;;  %v2461_v9 = vld [vmem:[%s12047_s1 + $0xc68] sm:$0xff]  ;;  %v371_v26 = vld [vmem:[%s12046_s0 + $0xb20] sm:$0xff]  ;;  %v6682_v59 = vpack.c.bf16 %v2458_v39, %v2456_v54  ;;  %v6436_v18 = vpack.c.bf16 %v2215_v36, %v2213_v15  ;;  %v2219_v4 = vld [vmem:[%s12047_s1 + $0x4d8] sm:$0xff]  ;;  %v1647_v46 = vsel %vm527_vm0, %v388_v45, 0.0  ;;  %vm12083_vm14 = vcmask 326912  }
 0x393   :  { %v4799_v8 = vsel %vm3111_vm1, %v4798_v51, %v4794_v16  ;;  %1594 = vadd.xlane.f32.xlu1 %v1593_v11  ;;  %2020 = vadd.xlane.f32.xlu0 %v2019_v49  ;;  %v2460_v55 = vld [vmem:[%s12047_s1 + $0xc60] sm:$0xff]  ;;  %v6684_v28 = vpack.c.bf16 %v2463_v21, %v2461_v9  ;;  %v6438_v51 = vpack.c.bf16 %v2214_v50, %v2212_v53  ;;  %v2465_v16 = vld [vmem:[%s12047_s1 + $0xc88] sm:$0xff]  ;;  %v1596_v3 = vsel %vm527_vm0, %v371_v26, 0.0  ;;  %v2223_v54 = vld [vmem:[%s12047_s1 + $0x4f8] sm:$0xff] }
 0x394   :  { %v1493_v34 = vpop.xlane.xlu1 %1492  ;;  %v1490_v63 = vpop.xlane.xlu0 %1489  ;;  %6675 = vmatpush1.bf16.msra.mxu0 %v6674_v37  ;;  %6429 = vmatprep.subr.bf16.mxu1 %v6428_v30  ;;  %v2462_v37 = vld [vmem:[%s12047_s1 + $0xc70] sm:$0xff]  ;;  %v2217_v30 = vld [vmem:[%s12047_s1 + $0x4c8] sm:$0xff]  ;;  %v2216_v62 = vld [vmem:[%s12047_s1 + $0x4c0] sm:$0xff] }
 0x395   :  { %v4719_v17 = vrot.slane %v1493_v34, %v7178_v33  ;;  %v4715_v27 = vrot.slane %v1490_v63, %v7172_v31  ;;  %6677 = vmatprep.subr.bf16.mxu0 %v6676_v6  ;;  %v2467_v6 = vld [vmem:[%s12047_s1 + $0xc98] sm:$0xff]  ;;  %v497_v34 = vld [vmem:[%s12046_s0 + $0xf10] sm:$0xff]  ;;  %v6686_v63 = vpack.c.bf16 %v2462_v37, %v2460_v55  ;;  %v2220_v15 = vld [vmem:[%s12047_s1 + $0x4e0] sm:$0xff] }
 0x396   :  { %6431 = vmatpush1.bf16.msra.mxu1 %v6430_v52  ;;  %v2218_v52 = vld [vmem:[%s12047_s1 + $0x4d0] sm:$0xff]  ;;  %v6688_v44 = vpack.c.bf16 %v2467_v6, %v2465_v16  ;;  %v372_v50 = vld [vmem:[%s12046_s0 + $0xb28] sm:$0xff]  ;;  %v2475_v37 = vld [vmem:[%s12047_s1 + $0xcd8] sm:$0xff] }
 0x397   :  { %v4720_v24 = vsel %vm3111_vm1, %v4719_v17, %v4715_v27  ;;  %1969 = vadd.xlane.f32.xlu1 %v1968_v42  ;;  %1645 = vadd.xlane.f32.xlu0 %v1644_v10  ;;  %v6440_v42 = vpack.c.bf16 %v2219_v4, %v2217_v30  ;;  %v2464_v10 = vld [vmem:[%s12047_s1 + $0xc80] sm:$0xff]  ;;  %v6442_v17 = vpack.c.bf16 %v2218_v52, %v2216_v62  ;;  %v2469_v27 = vld [vmem:[%s12047_s1 + $0xca8] sm:$0xff]  ;;  %v2222_v36 = vld [vmem:[%s12047_s1 + $0x4f0] sm:$0xff]  ;;  %v1599_v52 = vsel %vm527_vm0, %v372_v50, 0.0 }
 0x398   :  { %v1496_v11 = vpop.xlane.xlu1 %1495  ;;  %v1544_v49 = vpop.xlane.xlu0 %1543  ;;  %6679 = vmatpush1.bf16.msra.mxu0 %v6678_v25  ;;  %6433 = vmatprep.subr.bf16.mxu1 %v6432_v48  ;;  %v2466_v25 = vld [vmem:[%s12047_s1 + $0xc90] sm:$0xff]  ;;  %v2221_v48 = vld [vmem:[%s12047_s1 + $0x4e8] sm:$0xff]  ;;  %vm12084_vm4 = vmmov %vm12083_vm14 }
 0x399   :  { %v4724_v32 = vrot.slane %v1496_v11, %v7184_v35  ;;  %v4803_v41 = vrot.slane %v1544_v49, %v7184_v35  ;;  %6681 = vmatprep.subr.bf16.mxu0 %v6680_v1  ;;  %v2471_v1 = vld [vmem:[%s12047_s1 + $0xcb8] sm:$0xff]  ;;  %v389_v53 = vld [vmem:[%s12046_s0 + $0xbb0] sm:$0xff]  ;;  %v6690_v11 = vpack.c.bf16 %v2466_v25, %v2464_v10  ;;  %v6444_v49 = vpack.c.bf16 %v2223_v54, %v2221_v48  ;;  %v2225_v55 = vld [vmem:[%s12047_s1 + $0x508] sm:$0xff] }
 0x39a   :  { %6435 = vmatpush1.bf16.msra.mxu1 %v6434_v19  ;;  %v2226_v16 = vld [vmem:[%s12047_s1 + $0x510] sm:$0xff]  ;;  %v1650_v62 = vsel %vm527_vm0, %v389_v53, 0.0  ;;  %v2231_v10 = vld [vmem:[%s12047_s1 + $0x538] sm:$0xff]  ;;  %v2228_v54 = vld [vmem:[%s12047_s1 + $0x520] sm:$0xff] }
 0x39b   :  { %v4725_v14 = vsel %vm3118_vm2, %v4724_v32, %v4720_v24  ;;  %v4804_v12 = vsel %vm3118_vm2, %v4803_v41, %v4799_v8  ;;  %2023 = vadd.xlane.f32.xlu1 %v2022_v57  ;;  %1972 = vadd.xlane.f32.xlu0 %v1971_v22  ;;  %v514_v8 = vld [vmem:[%s12046_s0 + $0xf98] sm:$0xff]  ;;  %v1974_v24 = vsel %vm527_vm0, %v497_v34, 0.0  ;;  %v2468_v57 = vld [vmem:[%s12047_s1 + $0xca0] sm:$0xff]  ;;  %v6446_v41 = vpack.c.bf16 %v2222_v36, %v2220_v15 }
 0x39c   :  { %v1922_v20 = vpop.xlane.xlu1 %1921  ;;  %v1547_v61 = vpop.xlane.xlu0 %1546  ;;  %6683 = vmatpush1.bf16.msra.mxu0 %v6682_v59  ;;  %6437 = vmatprep.subr.bf16.mxu1 %v6436_v18  ;;  %v2025_v21 = vsel %vm527_vm0, %v514_v8, 0.0  ;;  %v6692_v59 = vpack.c.bf16 %v2471_v1, %v2469_v27  ;;  %v2470_v18 = vld [vmem:[%s12047_s1 + $0xcb0] sm:$0xff]  ;;  %v2227_v32 = vld [vmem:[%s12047_s1 + $0x518] sm:$0xff] }
 0x39d   :  { %v4808_v38 = vrot.slane %v1547_v61, %v12074_v2  ;;  %6685 = vmatprep.subr.bf16.mxu0 %v6684_v28  ;;  %v5426_v22 = vrot.slane %v1922_v20, %v7172_v31  ;;  %v2473_v28 = vld [vmem:[%s12047_s1 + $0xcc8] sm:$0xff]  ;;  %v498_v20 = vld [vmem:[%s12046_s0 + $0xf18] sm:$0xff]  ;;  %v6694_v61 = vpack.c.bf16 %v2470_v18, %v2468_v57  ;;  %v2478_v57 = vld [vmem:[%s12047_s1 + $0xcf0] sm:$0xff] }
 0x39e   :  { %6439 = vmatpush1.bf16.msra.mxu1 %v6438_v51  ;;  %v2224_v51 = vld [vmem:[%s12047_s1 + $0x500] sm:$0xff]  ;;  %v6696_v34 = vpack.c.bf16 %v2475_v37, %v2473_v28  ;;  %v2479_v25 = vld [vmem:[%s12047_s1 + $0xcf8] sm:$0xff]  ;;  %v1977_v36 = vsel %vm527_vm0, %v498_v20, 0.0  ;;  %v2234_v28 = vld [vmem:[%s12047_s1 + $0x550] sm:$0xff] }
 0x39f   :  { %v4809_v39 = vsel %vm3125_vm3, %v4808_v38, %v4804_v12  ;;  %1648 = vadd.xlane.f32.xlu1 %v1647_v46  ;;  %1597 = vadd.xlane.f32.xlu0 %v1596_v3  ;;  %v6448_v46 = vpack.c.bf16 %v2227_v32, %v2225_v55  ;;  %v2472_v3 = vld [vmem:[%s12047_s1 + $0xcc0] sm:$0xff]  ;;  %v6450_v38 = vpack.c.bf16 %v2226_v16, %v2224_v51  ;;  %v2483_v18 = vld [vmem:[%s12047_s1 + $0xd18] sm:$0xff] }
 0x3a0   :  { %v1499_v19 = vpop.xlane.xlu1 %1498  ;;  %v1925_v9 = vpop.xlane.xlu0 %1924  ;;  %6687 = vmatpush1.bf16.msra.mxu0 %v6686_v63  ;;  %6441 = vmatprep.subr.bf16.mxu1 %v6440_v42  ;;  %v2474_v63 = vld [vmem:[%s12047_s1 + $0xcd0] sm:$0xff]  ;;  %v2229_v42 = vld [vmem:[%s12047_s1 + $0x528] sm:$0xff] }
 0x3a1   :  { %v4729_v45 = vrot.slane %v1499_v19, %v12074_v2  ;;  %v5430_v26 = vrot.slane %v1925_v9, %v7178_v33  ;;  %6689 = vmatprep.subr.bf16.mxu0 %v6688_v44  ;;  %v2477_v44 = vld [vmem:[%s12047_s1 + $0xce8] sm:$0xff]  ;;  %v373_v19 = vld [vmem:[%s12046_s0 + $0xb30] sm:$0xff]  ;;  %v6698_v9 = vpack.c.bf16 %v2474_v63, %v2472_v3 }
 0x3a2   :  { %6443 = vmatpush1.bf16.msra.mxu1 %v6442_v17  ;;  %v2230_v17 = vld [vmem:[%s12047_s1 + $0x530] sm:$0xff] }
 0x3a3   :  { %v10826_v30 = vsel %vm3125_vm3, %v4729_v45, %v4725_v14  ;;  %v5431_v4 = vsel %vm3111_vm1, %v5430_v26, %v5426_v22  ;;  %2026 = vadd.xlane.f32.xlu1 %v2025_v21  ;;  %1975 = vadd.xlane.f32.xlu0 %v1974_v24  ;;  %v515_v14 = vld [vmem:[%s12046_s0 + $0xfa0] sm:$0xff]  ;;  %v6452_v21 = vpack.c.bf16 %v2231_v10, %v2229_v42  ;;  %v2233_v22 = vld [vmem:[%s12047_s1 + $0x548] sm:$0xff]  ;;  %v2235_v45 = vld [vmem:[%s12047_s1 + $0x558] sm:$0xff] }
 0x3a4   :  { %v1874_v6 = vpop.xlane.xlu1 %1873  ;;  %v1550_v12 = vpop.xlane.xlu0 %1549  ;;  %6691 = vmatpush1.bf16.msra.mxu0 %v6690_v11  ;;  %6445 = vmatprep.subr.bf16.mxu1 %v6444_v49  ;;  %v2028_v15 = vsel %vm527_vm0, %v515_v14, 0.0  ;;  %v2476_v24 = vld [vmem:[%s12047_s1 + $0xce0] sm:$0xff]  ;;  %v6700_v49 = vpack.c.bf16 %v2479_v25, %v2477_v44  ;;  %v6454_v26 = vpack.c.bf16 %v2230_v17, %v2228_v54  ;;  %v2482_v3 = vld [vmem:[%s12047_s1 + $0xd10] sm:$0xff]  ;;  %v2485_v42 = vld [vmem:[%s12047_s1 + $0xd28] sm:$0xff] }
 0x3a5   :  { %v4813_v8 = vrot.slane %v1550_v12, %v12075_v5  ;;  %6693 = vmatprep.subr.bf16.mxu0 %v6692_v59  ;;  %v5347_v53 = vrot.slane %v1874_v6, %v7172_v31  ;;  %v2481_v59 = vld [vmem:[%s12047_s1 + $0xd08] sm:$0xff]  ;;  %v1602_v6 = vsel %vm527_vm0, %v373_v19, 0.0  ;;  %v499_v12 = vld [vmem:[%s12046_s0 + $0xf20] sm:$0xff]  ;;  %v2487_v10 = vld [vmem:[%s12047_s1 + $0xd38] sm:$0xff] }
 0x3a6   :  { %6447 = vmatpush1.bf16.msra.mxu1 %v6446_v41  ;;  %v2232_v41 = vld [vmem:[%s12047_s1 + $0x540] sm:$0xff]  ;;  %v2238_v54 = vld [vmem:[%s12047_s1 + $0x570] sm:$0xff] }
 0x3a7   :  { %v4814_v48 = vsel %vm12083_vm14, %v4813_v8, %v4809_v39  ;;  %1651 = vadd.xlane.f32.xlu1 %v1650_v62  ;;  %1600 = vadd.xlane.f32.xlu0 %v1599_v52  ;;  %v390_v39 = vld [vmem:[%s12046_s0 + $0xbb8] sm:$0xff]  ;;  %v6702_v62 = vpack.c.bf16 %v2478_v57, %v2476_v24  ;;  %v6456_v52 = vpack.c.bf16 %v2235_v45, %v2233_v22  ;;  %v2480_v14 = vld [vmem:[%s12047_s1 + $0xd00] sm:$0xff]  ;;  %v2237_v8 = vld [vmem:[%s12047_s1 + $0x568] sm:$0xff] }
 0x3a8   :  { %v1928_v27 = vpop.xlane.xlu1 %1927  ;;  %v1877_v1 = vpop.xlane.xlu0 %1876  ;;  %6695 = vmatpush1.bf16.msra.mxu0 %v6694_v61  ;;  %6449 = vmatprep.subr.bf16.mxu1 %v6448_v46  ;;  %v1653_v16 = vsel %vm527_vm0, %v390_v39, 0.0  ;;  %v6704_v46 = vpack.c.bf16 %v2483_v18, %v2481_v59  ;;  %v6458_v63 = vpack.c.bf16 %v2234_v28, %v2232_v41  ;;  %v2236_v25 = vld [vmem:[%s12047_s1 + $0x560] sm:$0xff]  ;;  %v6708_v24 = vpack.c.bf16 %v2487_v10, %v2485_v42  ;;  %v2489_v57 = vld [vmem:[%s12047_s1 + $0xd48] sm:$0xff]  ;;  %v2491_v22 = vld [vmem:[%s12047_s1 + $0xd58] sm:$0xff] }
 0x3a9   :  { %v5435_v50 = vrot.slane %v1928_v27, %v7184_v35  ;;  %v5351_v11 = vrot.slane %v1877_v1, %v7178_v33  ;;  %6697 = vmatprep.subr.bf16.mxu0 %v6696_v34  ;;  %v2239_v34 = vld [vmem:[%s12047_s1 + $0x578] sm:$0xff]  ;;  %v2484_v19 = vld [vmem:[%s12047_s1 + $0xd20] sm:$0xff]  ;;  %v2242_v18 = vld [vmem:[%s12047_s1 + $0x590] sm:$0xff] }
 0x3aa   :  { %6451 = vmatpush1.bf16.msra.mxu1 %v6450_v38  ;;  %v6460_v39 = vpack.c.bf16 %v2239_v34, %v2237_v8  ;;  %v2240_v59 = vld [vmem:[%s12047_s1 + $0x580] sm:$0xff]  ;;  %vm12085_vm14 = vmmov %vm12084_vm4 }
 0x3ab   :  { %v5436_v55 = vsel %vm3118_vm2, %v5435_v50, %v5431_v4  ;;  %v5352_v32 = vsel %vm3111_vm1, %v5351_v11, %v5347_v53  ;;  %2029 = vadd.xlane.f32.xlu1 %v2028_v15  ;;  %1978 = vadd.xlane.f32.xlu0 %v1977_v36  ;;  %v516_v4 = vld [vmem:[%s12046_s0 + $0xfa8] sm:$0xff]  ;;  %v374_v15 = vld [vmem:[%s12046_s0 + $0xb38] sm:$0xff]  ;;  %v6706_v36 = vpack.c.bf16 %v2482_v3, %v2480_v14  ;;  %v2486_v53 = vld [vmem:[%s12047_s1 + $0xd30] sm:$0xff] }
 0x3ac   :  { %v1553_v37 = vpop.xlane.xlu1 %1552  ;;  %v1502_v51 = vpop.xlane.xlu0 %1501  ;;  %6699 = vmatpush1.bf16.msra.mxu0 %v6698_v9  ;;  %6453 = vmatprep.subr.bf16.mxu1 %v6452_v21  ;;  %v2031_v1 = vsel %vm527_vm0, %v516_v4, 0.0  ;;  %v2241_v50 = vld [vmem:[%s12047_s1 + $0x588] sm:$0xff]  ;;  %v2243_v11 = vld [vmem:[%s12047_s1 + $0x598] sm:$0xff]  ;;  %v2488_v4 = vld [vmem:[%s12047_s1 + $0xd40] sm:$0xff] }
 0x3ad   :  { %v4818_v20 = vrot.slane %v1553_v37, %v7189_v40  ;;  %v4734_v61 = vrot.slane %v1502_v51, %v12075_v5  ;;  %6701 = vmatprep.subr.bf16.mxu0 %v6700_v49  ;;  %v6462_v49 = vpack.c.bf16 %v2238_v54, %v2236_v25  ;;  %v1605_v51 = vsel %vm527_vm0, %v374_v15, 0.0  ;;  %v2245_v14 = vld [vmem:[%s12047_s1 + $0x5a8] sm:$0xff]  ;;  %v2495_v3 = vld [vmem:[%s12047_s1 + $0xd78] sm:$0xff]  ;;  %v2244_v34 = vld [vmem:[%s12047_s1 + $0x5a0] sm:$0xff] }
 0x3ae   :  { %6455 = vmatpush1.bf16.msra.mxu1 %v6454_v26 }
 0x3af   :  { %v10935_v38 = vsel %vm3139_vm5, %v4818_v20, %v4814_v48  ;;  %v4735_v44 = vsel %vm12084_vm4, %v4734_v61, %v10826_v30  ;;  %1654 = vadd.xlane.f32.xlu1 %v1653_v16  ;;  %1603 = vadd.xlane.f32.xlu0 %v1602_v6  ;;  %v1980_v48 = vsel %vm527_vm0, %v499_v12, 0.0  ;;  %v391_v30 = vld [vmem:[%s12046_s0 + $0xbc0] sm:$0xff]  ;;  %v6710_v16 = vpack.c.bf16 %v2486_v53, %v2484_v19  ;;  %v2247_v20 = vld [vmem:[%s12047_s1 + $0x5b8] sm:$0xff]  ;;  %v2249_v19 = vld [vmem:[%s12047_s1 + $0x5c8] sm:$0xff] }
 0x3b0   :  { %v1931_v17 = vpop.xlane.xlu1 %1930  ;;  %v1880_v27 = vpop.xlane.xlu0 %1879  ;;  %6703 = vmatpush1.bf16.msra.mxu0 %v6702_v62  ;;  %6457 = vmatprep.subr.bf16.mxu1 %v6456_v52  ;;  %v1656_v37 = vsel %vm527_vm0, %v391_v30, 0.0  ;;  %v6464_v6 = vpack.c.bf16 %v2243_v11, %v2241_v50  ;;  %v6712_v62 = vpack.c.bf16 %v2491_v22, %v2489_v57  ;;  %v2490_v52 = vld [vmem:[%s12047_s1 + $0xd50] sm:$0xff]  ;;  %v6466_v61 = vpack.c.bf16 %v2242_v18, %v2240_v59  ;;  %v2499_v53 = vld [vmem:[%s12047_s1 + $0xd98] sm:$0xff] }
 0x3b1   :  { %v5440_v9 = vrot.slane %v1931_v17, %v12074_v2  ;;  %v5356_v21 = vrot.slane %v1880_v27, %v7184_v35  ;;  %6705 = vmatprep.subr.bf16.mxu0 %v6704_v46  ;;  %v2493_v46 = vld [vmem:[%s12047_s1 + $0xd68] sm:$0xff]  ;;  %v375_v17 = vld [vmem:[%s12046_s0 + $0xb40] sm:$0xff]  ;;  %v6714_v27 = vpack.c.bf16 %v2490_v52, %v2488_v4  ;;  %v2250_v57 = vld [vmem:[%s12047_s1 + $0x5d0] sm:$0xff] }
 0x3b2   :  { %6459 = vmatpush1.bf16.msra.mxu1 %v6458_v63  ;;  %v2246_v63 = vld [vmem:[%s12047_s1 + $0x5b0] sm:$0xff]  ;;  %v2255_v4 = vld [vmem:[%s12047_s1 + $0x5f8] sm:$0xff] }
 0x3b3   :  { %v5441_v45 = vsel %vm3125_vm3, %v5440_v9, %v5436_v55  ;;  %v5357_v26 = vsel %vm3118_vm2, %v5356_v21, %v5352_v32  ;;  %2032 = vadd.xlane.f32.xlu1 %v2031_v1  ;;  %1981 = vadd.xlane.f32.xlu0 %v1980_v48  ;;  %v517_v55 = vld [vmem:[%s12046_s0 + $0xfb0] sm:$0xff]  ;;  %v500_v32 = vld [vmem:[%s12046_s0 + $0xf28] sm:$0xff]  ;;  %v6468_v1 = vpack.c.bf16 %v2247_v20, %v2245_v14  ;;  %v2492_v48 = vld [vmem:[%s12047_s1 + $0xd60] sm:$0xff] }
 0x3b4   :  { %v10981_v41 = vpop.xlane.xlu1 %1555  ;;  %v1505_v28 = vpop.xlane.xlu0 %1504  ;;  %6707 = vmatpush1.bf16.msra.mxu0 %v6706_v36  ;;  %6461 = vmatprep.subr.bf16.mxu1 %v6460_v39  ;;  %v2034_v25 = vsel %vm527_vm0, %v517_v55, 0.0  ;;  %v1983_v54 = vsel %vm527_vm0, %v500_v32, 0.0  ;;  %v6716_v36 = vpack.c.bf16 %v2495_v3, %v2493_v46  ;;  %v2494_v39 = vld [vmem:[%s12047_s1 + $0xd70] sm:$0xff]  ;;  %v2251_v9 = vld [vmem:[%s12047_s1 + $0x5d8] sm:$0xff]  ;;  %v6470_v21 = vpack.c.bf16 %v2246_v63, %v2244_v34  ;;  %v2496_v55 = vld [vmem:[%s12047_s1 + $0xd80] sm:$0xff] }
 0x3b5   :  { %v4739_v12 = vrot.slane %v1505_v28, %v7189_v40  ;;  %6709 = vmatprep.subr.bf16.mxu0 %v6708_v24  ;;  %v2497_v24 = vld [vmem:[%s12047_s1 + $0xd88] sm:$0xff]  ;;  %v501_v28 = vld [vmem:[%s12046_s0 + $0xf30] sm:$0xff]  ;;  %v2503_v52 = vld [vmem:[%s12047_s1 + $0xdb8] sm:$0xff] }
 0x3b6   :  { %6463 = vmatpush1.bf16.msra.mxu1 %v6462_v49  ;;  %v2248_v49 = vld [vmem:[%s12047_s1 + $0x5c0] sm:$0xff]  ;;  %v6720_v32 = vpack.c.bf16 %v2499_v53, %v2497_v24  ;;  %v2254_v20 = vld [vmem:[%s12047_s1 + $0x5f0] sm:$0xff]  ;;  %v1986_v34 = vsel %vm527_vm0, %v501_v28, 0.0  ;;  %v2257_v28 = vld [vmem:[%s12047_s1 + $0x608] sm:$0xff] }
 0x3b7   :  { %v11011_v8 = vsel %vm3139_vm5, %v4739_v12, %v4735_v44  ;;  %1657 = vadd.xlane.f32.xlu1 %v1656_v37  ;;  %1606 = vadd.xlane.f32.xlu0 %v1605_v51  ;;  %v392_v44 = vld [vmem:[%s12046_s0 + $0xbc8] sm:$0xff]  ;;  %v6718_v37 = vpack.c.bf16 %v2494_v39, %v2492_v48  ;;  %v6472_v51 = vpack.c.bf16 %v2251_v9, %v2249_v19  ;;  %v2252_v14 = vld [vmem:[%s12047_s1 + $0x5e0] sm:$0xff]  ;;  %v393_v63 = vld [vmem:[%s12046_s0 + $0xbd0] sm:$0xff] }
 0x3b8   :  { %v1934_v42 = vpop.xlane.xlu1 %1933  ;;  %v1883_v10 = vpop.xlane.xlu0 %1882  ;;  %6711 = vmatpush1.bf16.msra.mxu0 %v6710_v16  ;;  %6465 = vmatprep.subr.bf16.mxu1 %v6464_v6  ;;  %v1659_v18 = vsel %vm527_vm0, %v392_v44, 0.0  ;;  %v2498_v16 = vld [vmem:[%s12047_s1 + $0xd90] sm:$0xff]  ;;  %v2253_v6 = vld [vmem:[%s12047_s1 + $0x5e8] sm:$0xff]  ;;  %v6474_v12 = vpack.c.bf16 %v2250_v57, %v2248_v49  ;;  %v6478_v48 = vpack.c.bf16 %v2254_v20, %v2252_v14  ;;  %v519_v53 = vld [vmem:[%s12046_s0 + $0xfc0] sm:$0xff] }
 0x3b9   :  { %v5445_v30 = vrot.slane %v1934_v42, %v12075_v5  ;;  %v5361_v15 = vrot.slane %v1883_v10, %v12074_v2  ;;  %6713 = vmatprep.subr.bf16.mxu0 %v6712_v62  ;;  %v2501_v62 = vld [vmem:[%s12047_s1 + $0xda8] sm:$0xff]  ;;  %v6722_v42 = vpack.c.bf16 %v2498_v16, %v2496_v55  ;;  %v6476_v10 = vpack.c.bf16 %v2255_v4, %v2253_v6  ;;  %v2504_v57 = vld [vmem:[%s12047_s1 + $0xdc0] sm:$0xff]  ;;  %v394_v4 = vld [vmem:[%s12046_s0 + $0xbd8] sm:$0xff] }
 0x3ba   :  { %6467 = vmatpush1.bf16.msra.mxu1 %v6466_v61  ;;  %v376_v44 = vld [vmem:[%s12046_s0 + $0xb48] sm:$0xff]  ;;  %v2040_v16 = vsel %vm527_vm0, %v519_v53, 0.0  ;;  %v2508_v14 = vld [vmem:[%s12047_s1 + $0xde0] sm:$0xff]  ;;  %v2510_v20 = vld [vmem:[%s12047_s1 + $0xdf0] sm:$0xff] }
 0x3bb   :  { %v5446_v50 = vsel %vm12085_vm14, %v5445_v30, %v5441_v45  ;;  %v5362_v11 = vsel %vm3125_vm3, %v5361_v15, %v5357_v26  ;;  %2035 = vadd.xlane.f32.xlu1 %v2034_v25  ;;  %1984 = vadd.xlane.f32.xlu0 %v1983_v54  ;;  %v1608_v45 = vsel %vm527_vm0, %v375_v17, 0.0  ;;  %v518_v26 = vld [vmem:[%s12046_s0 + $0xfb8] sm:$0xff]  ;;  %v6724_v17 = vpack.c.bf16 %v2503_v52, %v2501_v62  ;;  %v2505_v30 = vld [vmem:[%s12047_s1 + $0xdc8] sm:$0xff]  ;;  %v377_v62 = vld [vmem:[%s12046_s0 + $0xb50] sm:$0xff] }
 0x3bc   :  { %v11055_v22 = vpop.xlane.xlu1 %1558  ;;  %v11057_v59 = vpop.xlane.xlu0 %1507  ;;  %6715 = vmatpush1.bf16.msra.mxu0 %v6714_v27  ;;  %6469 = vmatprep.subr.bf16.mxu1 %v6468_v1  ;;  %v2037_v3 = vsel %vm527_vm0, %v518_v26, 0.0  ;;  %v2500_v27 = vld [vmem:[%s12047_s1 + $0xda0] sm:$0xff]  ;;  %v2502_v1 = vld [vmem:[%s12047_s1 + $0xdb0] sm:$0xff]  ;;  %v2507_v15 = vld [vmem:[%s12047_s1 + $0xdd8] sm:$0xff]  ;;  %v1611_v24 = vsel %vm527_vm0, %v376_v44, 0.0  ;;  %vm12086_vm14 = vcmask 982912  }
 0x3bd   :  { %6717 = vmatprep.subr.bf16.mxu0 %v6716_v36  ;;  %v6728_v49 = vpack.c.bf16 %v2507_v15, %v2505_v30  ;;  %v2511_v26 = vld [vmem:[%s12047_s1 + $0xdf8] sm:$0xff] }
 0x3be   :  { %6471 = vmatpush1.bf16.msra.mxu1 %v6470_v21  ;;  %v1662_v21 = vsel %vm527_vm0, %v393_v63, 0.0  ;;  %v6734_v63 = vpack.c.bf16 %v2510_v20, %v2508_v14  ;;  %v378_v30 = vld [vmem:[%s12046_s0 + $0xb58] sm:$0xff] }
 0x3bf   :  { %1660 = vadd.xlane.f32.xlu1 %v1659_v18  ;;  %1609 = vadd.xlane.f32.xlu0 %v1608_v45  ;;  %v2506_v18 = vld [vmem:[%s12047_s1 + $0xdd0] sm:$0xff]  ;;  %v2509_v45 = vld [vmem:[%s12047_s1 + $0xde8] sm:$0xff] }
 0x3c0   :  { %v1937_v61 = vpop.xlane.xlu1 %1936  ;;  %v1886_v46 = vpop.xlane.xlu0 %1885  ;;  %6719 = vmatpush1.bf16.msra.mxu0 %v6718_v37  ;;  %6473 = vmatprep.subr.bf16.mxu1 %v6472_v51  ;;  %v2259_v37 = vld [vmem:[%s12047_s1 + $0x618] sm:$0xff]  ;;  %v6732_v52 = vpack.c.bf16 %v2511_v26, %v2509_v45 }
 0x3c1   :  { %v5450_v25 = vrot.slane %v1937_v61, %v7189_v40  ;;  %v5366_v54 = vrot.slane %v1886_v46, %v12075_v5  ;;  %6721 = vmatprep.subr.bf16.mxu0 %v6720_v32  ;;  %v6480_v51 = vpack.c.bf16 %v2259_v37, %v2257_v28  ;;  %v396_v28 = vld [vmem:[%s12046_s0 + $0xbe8] sm:$0xff]  ;;  %v379_v37 = vld [vmem:[%s12046_s0 + $0xb60] sm:$0xff] }
 0x3c2   :  { %6475 = vmatpush1.bf16.msra.mxu1 %v6474_v12  ;;  %v6730_v12 = vpack.c.bf16 %v2506_v18, %v2504_v57 }
 0x3c3   :  { %v11114_v36 = vsel %vm3139_vm5, %v5450_v25, %v5446_v50  ;;  %v11117_v39 = vsel %vm12084_vm4, %v5366_v54, %v5362_v11  ;;  %2038 = vadd.xlane.f32.xlu1 %v2037_v3  ;;  %1987 = vadd.xlane.f32.xlu0 %v1986_v34  ;;  %v502_v50 = vld [vmem:[%s12046_s0 + $0xf38] sm:$0xff]  ;;  %v6726_v11 = vpack.c.bf16 %v2502_v1, %v2500_v27  ;;  %v1665_v3 = vsel %vm527_vm0, %v394_v4, 0.0  ;;  %v2513_v25 = vld [vmem:[%s12047_s1 + $0xe08] sm:$0xff]  ;;  %vm12089_vm4 = vmmov %vm12086_vm14 }
 0x3c4   :  { %v11119_v19 = vpop.xlane.xlu1 %1561  ;;  %v11121_v9 = vpop.xlane.xlu0 %1510  ;;  %6723 = vmatpush1.bf16.msra.mxu0 %v6722_v42  ;;  %6477 = vmatprep.subr.bf16.mxu1 %v6476_v10  ;;  %v1989_v6 = vsel %vm527_vm0, %v502_v50, 0.0  ;;  %v1614_v34 = vsel %vm527_vm0, %v377_v62, 0.0  ;;  %v520_v42 = vld [vmem:[%s12046_s0 + $0xfc8] sm:$0xff]  ;;  %v503_v10 = vld [vmem:[%s12046_s0 + $0xf40] sm:$0xff]  ;;  %v2515_v1 = vld [vmem:[%s12047_s1 + $0xe18] sm:$0xff]  ;;  %v1617_v50 = vsel %vm527_vm0, %v378_v30, 0.0 }
 0x3c5   :  { %6725 = vmatprep.subr.bf16.mxu0 %v6724_v17  ;;  %v2043_v17 = vsel %vm527_vm0, %v520_v42, 0.0  ;;  %v1992_v27 = vsel %vm527_vm0, %v503_v10, 0.0  ;;  %v6736_v15 = vpack.c.bf16 %v2515_v1, %v2513_v25  ;;  %v1620_v4 = vsel %vm527_vm0, %v379_v37, 0.0  ;;  %v505_v62 = vld [vmem:[%s12046_s0 + $0xf50] sm:$0xff]  ;;  %v506_v1 = vld [vmem:[%s12046_s0 + $0xf58] sm:$0xff]  ;;  %v524_v37 = vld [vmem:[%s12046_s0 + $0xfe8] sm:$0xff] }
 0x3c6   :  { %6479 = vmatpush1.bf16.msra.mxu1 %v6478_v48  ;;  %v395_v48 = vld [vmem:[%s12046_s0 + $0xbe0] sm:$0xff] }
 0x3c7   :  { %1663 = vadd.xlane.f32.xlu1 %v1662_v21  ;;  %1612 = vadd.xlane.f32.xlu0 %v1611_v24  ;;  %v1668_v53 = vsel %vm527_vm0, %v395_v48, 0.0 }
 0x3c8   :  { %v11149_v55 = vpop.xlane.xlu1 %1939  ;;  %v11151_v32 = vpop.xlane.xlu0 %1888  ;;  %6727 = vmatpush1.bf16.msra.mxu0 %v6726_v11  ;;  %6481 = vmatprep.subr.bf16.mxu1 %v6480_v51  ;;  %v521_v11 = vld [vmem:[%s12046_s0 + $0xfd0] sm:$0xff] }
 0x3c9   :  { %6729 = vmatprep.subr.bf16.mxu0 %v6728_v49  ;;  %v504_v49 = vld [vmem:[%s12046_s0 + $0xf48] sm:$0xff]  ;;  %v2046_v45 = vsel %vm527_vm0, %v521_v11, 0.0  ;;  %v381_v11 = vld [vmem:[%s12046_s0 + $0xb70] sm:$0xff] }
 0x3ca   :  { %v1995_v26 = vsel %vm527_vm0, %v504_v49, 0.0 }
 0x3cb   :  { %2041 = vadd.xlane.f32.xlu1 %v2040_v16  ;;  %1990 = vadd.xlane.f32.xlu0 %v1989_v6  ;;  %v1671_v6 = vsel %vm527_vm0, %v396_v28, 0.0  ;;  %v1626_v28 = vsel %vm527_vm0, %v381_v11, 0.0 }
 0x3cc   :  { %v11167_v61 = vpop.xlane.xlu1 %1564  ;;  %v11169_v46 = vpop.xlane.xlu0 %1513  ;;  %6731 = vmatpush1.bf16.msra.mxu0 %v6730_v12  ;;  %v522_v12 = vld [vmem:[%s12046_s0 + $0xfd8] sm:$0xff] }
 0x3cd   :  { %6733 = vmatprep.subr.bf16.mxu0 %v6732_v52  ;;  %v2049_v20 = vsel %vm527_vm0, %v522_v12, 0.0 }
 0x3cf   :  { %1666 = vadd.xlane.f32.xlu1 %v1665_v3  ;;  %1615 = vadd.xlane.f32.xlu0 %v1614_v34  ;;  %v1998_v3 = vsel %vm527_vm0, %v505_v62, 0.0  ;;  %v397_v34 = vld [vmem:[%s12046_s0 + $0xbf0] sm:$0xff]  ;;  %v2055_v62 = vsel %vm527_vm0, %v524_v37, 0.0 }
 0x3d0   :  { %v11182_v54 = vpop.xlane.xlu1 %1942  ;;  %v11184_v44 = vpop.xlane.xlu0 %1891  ;;  %6735 = vmatpush1.bf16.msra.mxu0 %v6734_v63  ;;  %v380_v63 = vld [vmem:[%s12046_s0 + $0xb68] sm:$0xff]  ;;  %v1674_v25 = vsel %vm527_vm0, %v397_v34, 0.0  ;;  %v382_v34 = vld [vmem:[%s12046_s0 + $0xb78] sm:$0xff] }
 0x3d1   :  { %6737 = vmatprep.subr.bf16.mxu0 %v6736_v15 }
 0x3d3   :  { %2044 = vadd.xlane.f32.xlu1 %v2043_v17  ;;  %1993 = vadd.xlane.f32.xlu0 %v1992_v27  ;;  %v1623_v17 = vsel %vm527_vm0, %v380_v63, 0.0  ;;  %v523_v27 = vld [vmem:[%s12046_s0 + $0xfe0] sm:$0xff]  ;;  %v4823_v63 = vrot.slane %v10981_v41, %v7225_v0  ;;  %v4838_v41 = vrot.slane %v11167_v61, %v7232_v7  ;;  %v4744_v61 = vrot.slane %v11057_v59, %v7225_v0  ;;  %v526_v59 = vld [vmem:[%s12046_s0 + $0xff8] sm:$0xff] }
 0x3d4   :  { %v11197_v21 = vpop.xlane.xlu1 %1567  ;;  %v11199_v24 = vpop.xlane.xlu0 %1516  ;;  %v2052_v15 = vsel %vm527_vm0, %v523_v27, 0.0 }
 0x3d5   :  { %v4843_v11 = vrot.slane %v11197_v21, %v7264_v29 }
 0x3d7   :  { %1669 = vadd.xlane.f32.xlu1 %v1668_v53  ;;  %1618 = vadd.xlane.f32.xlu0 %v1617_v50  ;;  %v2001_v53 = vsel %vm527_vm0, %v506_v1, 0.0  ;;  %v398_v50 = vld [vmem:[%s12046_s0 + $0xbf8] sm:$0xff] }
 0x3d8   :  { %v11209_v57 = vpop.xlane.xlu1 %1945  ;;  %v11211_v18 = vpop.xlane.xlu0 %1894 }
 0x3db   :  { %2047 = vadd.xlane.f32.xlu1 %v2046_v45  ;;  %1996 = vadd.xlane.f32.xlu0 %v1995_v26  ;;  %v1677_v26 = vsel %vm527_vm0, %v398_v50, 0.0  ;;  %v509_v50 = vld [vmem:[%s12046_s0 + $0xf70] sm:$0xff] }
 0x3dc   :  { %v11221_v51 = vpop.xlane.xlu1 %1570  ;;  %v11223_v16 = vpop.xlane.xlu0 %1519  ;;  %v2010_v37 = vsel %vm527_vm0, %v509_v50, 0.0 }
 0x3df   :  { %1672 = vadd.xlane.f32.xlu1 %v1671_v6  ;;  %1621 = vadd.xlane.f32.xlu0 %v1620_v4  ;;  %v507_v6 = vld [vmem:[%s12046_s0 + $0xf60] sm:$0xff] }
 0x3e0   :  { %v11233_v52 = vpop.xlane.xlu1 %1948  ;;  %v11235_v14 = vpop.xlane.xlu0 %1897 }
 0x3e3   :  { %2050 = vadd.xlane.f32.xlu1 %v2049_v20  ;;  %1999 = vadd.xlane.f32.xlu0 %v1998_v3  ;;  %v2004_v20 = vsel %vm527_vm0, %v507_v6, 0.0  ;;  %v508_v3 = vld [vmem:[%s12046_s0 + $0xf68] sm:$0xff] }
 0x3e4   :  { %v11245_v42 = vpop.xlane.xlu1 %1573  ;;  %v11247_v10 = vpop.xlane.xlu0 %1522 }
 0x3e7   :  { %1675 = vadd.xlane.f32.xlu1 %v1674_v25  ;;  %1624 = vadd.xlane.f32.xlu0 %v1623_v17  ;;  %v4828_v25 = vrot.slane %v11055_v22, %v7211_v56  ;;  %v4833_v17 = vrot.slane %v11119_v19, %v7244_v13  ;;  %v525_v22 = vld [vmem:[%s12046_s0 + $0xff0] sm:$0xff]  ;;  %v4824_v19 = vsel %vm3146_vm6, %v4823_v63, %v10935_v38 }
 0x3e8   :  { %v11257_v48 = vpop.xlane.xlu1 %1951  ;;  %v11259_v30 = vpop.xlane.xlu0 %1900  ;;  %v4853_v38 = vrot.slane %v11245_v42, %v7272_v43  ;;  %v4749_v42 = vrot.slane %v11121_v9, %v7211_v56 }
 0x3eb   :  { %2053 = vadd.xlane.f32.xlu1 %v2052_v15  ;;  %2002 = vadd.xlane.f32.xlu0 %v2001_v53  ;;  %v2007_v15 = vsel %vm527_vm0, %v508_v3, 0.0  ;;  %v1629_v53 = vsel %vm527_vm0, %v382_v34, 0.0  ;;  %v510_v34 = vld [vmem:[%s12046_s0 + $0xf78] sm:$0xff] }
 0x3ec   :  { %v1577_v49 = vpop.xlane.xlu1 %1576  ;;  %v11269_v45 = vpop.xlane.xlu0 %1525  ;;  %v2013_v9 = vsel %vm527_vm0, %v510_v34, 0.0  ;;  %v12087_v34 = vld [vmem:[#allocation11_spill] sm:$0xff] }
 0x3ed   :  { %v4858_v3 = vrot.slane %v1577_v49, %v7278_v47 }
 0x3ef   :  { %1678 = vadd.xlane.f32.xlu1 %v1677_v26  ;;  %1627 = vadd.xlane.f32.xlu0 %v1626_v28  ;;  %v4829_v26 = vsel %vm3153_vm7, %v4828_v25, %v4824_v19  ;;  %v4848_v28 = vrot.slane %v11221_v51, %v7252_v23 }
 0x3f0   :  { %v11279_v4 = vpop.xlane.xlu1 %1954  ;;  %v11281_v12 = vpop.xlane.xlu0 %1903  ;;  %v4834_v6 = vsel %vm3160_vm8, %v4833_v17, %v4829_v26  ;;  %v4754_v17 = vrot.slane %v11169_v46, %v7244_v13  ;;  %v4759_v46 = vrot.slane %v11199_v24, %v7232_v7  ;;  %v5371_v26 = vrot.slane %v11151_v32, %v7189_v40  ;;  %v11367_v24 = vld [vmem:[%s12047_s1 + $0x610] sm:$0xff] }
 0x3f1   :  { %v4839_v51 = vsel %vm3167_vm9, %v4838_v41, %v4834_v6  ;;  %v4769_v32 = vrot.slane %v11247_v10, %v7252_v23  ;;  %v2261_v6 = vld [vmem:[%s12047_s1 + $0x628] sm:$0xff] }
 0x3f2   :  { %v4844_v63 = vsel %vm3174_vm10, %v4843_v11, %v4839_v51  ;;  %v4774_v51 = vrot.slane %v11269_v45, %v7272_v43 }
 0x3f3   :  { %2056 = vadd.xlane.f32.xlu1 %v2055_v62  ;;  %2005 = vadd.xlane.f32.xlu0 %v2004_v20  ;;  %v2058_v20 = vsel %vm527_vm0, %v525_v22, 0.0  ;;  %v4849_v49 = vsel %vm3181_vm11, %v4848_v28, %v4844_v63  ;;  %v2061_v22 = vsel %vm527_vm0, %v526_v59, 0.0  ;;  %v4764_v28 = vrot.slane %v11223_v16, %v7264_v29 }
 0x3f4   :  { %v1580_v27 = vpop.xlane.xlu1 %1579  ;;  %v11297_v1 = vpop.xlane.xlu0 %1528  ;;  %vm12088_vm0 = vcmask 1041409  }
 0x3f5   :  { %v4863_v25 = vrot.slane %v1580_v27, %v7292_v58  ;;  %v5455_v27 = vrot.slane %v11149_v55, %v7225_v0  ;;  %v11362_v55 = vld [vmem:[%s12047_s1 + $0x600] sm:$0xff] }
 0x3f7   :  { %2008 = vadd.xlane.f32.xlu1 %v2007_v15  ;;  %1630 = vadd.xlane.f32.xlu0 %v1629_v53  ;;  %v4745_v15 = vsel %vm3146_vm6, %v4744_v61, %v11011_v8  ;;  %v4854_v53 = vsel %vm3188_vm12, %v4853_v38, %v4849_v49  ;;  %v5460_v38 = vrot.slane %v11182_v54, %v7211_v56  ;;  %v11394_v54 = vld [vmem:[%s12047_s1 + $0x620] sm:$0xff] }
 0x3f8   :  { %v11322_v62 = vpop.xlane.xlu1 %1957  ;;  %v11324_v21 = vpop.xlane.xlu0 %1906  ;;  %v4859_v19 = vsel %vm3195_vm13, %v4858_v3, %v4854_v53  ;;  %v4750_v8 = vsel %vm3153_vm7, %v4749_v42, %v4745_v15  ;;  %v2263_v42 = vld [vmem:[%s12047_s1 + $0x638] sm:$0xff]  ;;  %v5456_v45 = vsel %vm3146_vm6, %v5455_v27, %v11114_v36  ;;  %v5372_v49 = vsel %vm3139_vm5, %v5371_v26, %v11117_v39 }
 0x3f9   :  { %v4755_v61 = vsel %vm3160_vm8, %v4754_v17, %v4750_v8  ;;  %v6482_v17 = vpack.c.bf16 %v11367_v24, %v11362_v55  ;;  %v5465_v15 = vrot.slane %v11209_v57, %v7244_v13  ;;  %v5381_v36 = vrot.slane %v11211_v18, %v7211_v56 }
 0x3fa   :  { %v4760_v63 = vsel %vm3167_vm9, %v4759_v46, %v4755_v61  ;;  %v5461_v27 = vsel %vm3153_vm7, %v5460_v38, %v5456_v45  ;;  %v5386_v57 = vrot.slane %v11235_v14, %v7244_v13  ;;  %v5470_v18 = vrot.slane %v11233_v52, %v7232_v7  ;;  %v12090_v38 = vld [vmem:[#allocation10_spill] sm:$0xff] }
 0x3fb   :  { %2011 = vadd.xlane.f32.xlu1 %v2010_v37  ;;  %2059 = vadd.xlane.f32.xlu0 %v2058_v20  ;;  %v4864_v37 = vsel %vm12086_vm14, %v4863_v25, %v4859_v19  ;;  %v5376_v20 = vrot.slane %v11184_v44, %v7225_v0  ;;  %v11399_v44 = vld [vmem:[%s12047_s1 + $0x630] sm:$0xff]  ;;  %v4779_v25 = vrot.slane %v11297_v1, %v7278_v47  ;;  %vm12091_vm14 = vmmov %vm12088_vm0 }
 0x3fc   :  { %v1583_v50 = vpop.xlane.xlu1 %1582  ;;  %v1532_v41 = vpop.xlane.xlu0 %1531  ;;  %v4765_v53 = vsel %vm3174_vm10, %v4764_v28, %v4760_v63  ;;  %v6484_v1 = vpack.c.bf16 %v2263_v42, %v2261_v6  ;;  %v5466_v28 = vsel %vm3160_vm8, %v5465_v15, %v5461_v27  ;;  %v5396_v14 = vrot.slane %v11281_v12, %v7264_v29  ;;  %v2512_v15 = vld [vmem:[%s12047_s1 + $0xe00] sm:$0xff]  ;;  %v2271_v27 = vld [vmem:[%s12047_s1 + $0x678] sm:$0xff] }
 0x3fd   :  { %v4868_v11 = vrot.slane %v1583_v50, %v7297_v60  ;;  %v4784_v50 = vrot.slane %v1532_v41, %v7292_v58  ;;  %v5377_v39 = vsel %vm3146_vm6, %v5376_v20, %v5372_v49  ;;  %v5480_v52 = vrot.slane %v11279_v4, %v7252_v23  ;;  %v2265_v4 = vld [vmem:[%s12047_s1 + $0x648] sm:$0xff]  ;;  %v2266_v49 = vld [vmem:[%s12047_s1 + $0x650] sm:$0xff] }
 0x3fe   :  { %v5382_v24 = vsel %vm3153_vm7, %v5381_v36, %v5377_v39 }
 0x3ff   :  { %2014 = vadd.xlane.f32.xlu1 %v2013_v9  ;;  %2062 = vadd.xlane.f32.xlu0 %v2061_v22  ;;  %v4869_v16 = vsel %vm3209_vm15, %v4868_v11, %v4864_v37  ;;  %v4770_v9 = vsel %vm3181_vm11, %v4769_v32, %v4765_v53  ;;  %v6486_v22 = vpack.c.bf16 %v11399_v44, %v11394_v54 }
 0x400   :  { %v11382_v3 = vpop.xlane.xlu1 %1960  ;;  %v11384_v10 = vpop.xlane.xlu0 %1909  ;;  %v5666_v59 = vsel %vm12088_vm0, %v4869_v16, %v12087_v34  ;;  %v4775_v46 = vsel %vm3188_vm12, %v4774_v51, %v4770_v9  ;;  %v5391_v11 = vrot.slane %v11259_v30, %v7232_v7  ;;  %v5475_v37 = vrot.slane %v11257_v48, %v7264_v29  ;;  %v2514_v9 = vld [vmem:[%s12047_s1 + $0xe10] sm:$0xff]  ;;  %vm12092_vm0 = vmmov %vm12089_vm4 }
 0x401   :  { %5899 = vmatprep.mubr.f32.mxu1 %v5666_v59  ;;  %v4780_v8 = vsel %vm3195_vm13, %v4779_v25, %v4775_v46  ;;  %v5401_v30 = vrot.slane %v11324_v21, %v7252_v23  ;;  %v5387_v32 = vsel %vm3160_vm8, %v5386_v57, %v5382_v24  ;;  %v5485_v48 = vrot.slane %v11322_v62, %v7272_v43  ;;  %v2267_v21 = vld [vmem:[%s12047_s1 + $0x658] sm:$0xff]  ;;  %v2268_v24 = vld [vmem:[%s12047_s1 + $0x660] sm:$0xff] }
 0x402   :  { %v4785_v55 = vsel %vm12089_vm4, %v4784_v50, %v4780_v8  ;;  %v5406_v12 = vrot.slane %v11384_v10, %v7272_v43  ;;  %v5471_v51 = vsel %vm3167_vm9, %v5470_v18, %v5466_v28  ;;  %v5392_v62 = vsel %vm3167_vm9, %v5391_v11, %v5387_v32  ;;  %v2519_v18 = vld [vmem:[%s12047_s1 + $0xe38] sm:$0xff]  ;;  %vm12093_vm4 = vmmov %vm12092_vm0  ;;  %v12094_v32 = vld [vmem:[#allocation17_spill] sm:$0xff] }
 0x403   :  { %v5490_v10 = vrot.slane %v11382_v3, %v7278_v47  ;;  %v5476_v59 = vsel %vm3174_vm10, %v5475_v37, %v5471_v51  ;;  %v5397_v42 = vsel %vm3174_vm10, %v5396_v14, %v5392_v62  ;;  %v6488_v25 = vpack.c.bf16 %v2267_v21, %v2265_v4  ;;  %v2264_v3 = vld [vmem:[%s12047_s1 + $0x640] sm:$0xff]  ;;  %v2275_v4 = vld [vmem:[%s12047_s1 + $0x698] sm:$0xff]  ;;  %v2521_v62 = vld [vmem:[%s12047_s1 + $0xe48] sm:$0xff] }
 0x404   :  { %v1913_v19 = vpop.xlane.xlu1 %1912  ;;  %v1535_v41 = vpop.xlane.xlu0 %1534  ;;  %v5481_v45 = vsel %vm3181_vm11, %v5480_v52, %v5476_v59  ;;  %v5402_v63 = vsel %vm3181_vm11, %v5401_v30, %v5397_v42  ;;  %v6738_v14 = vpack.c.bf16 %v2514_v9, %v2512_v15  ;;  %v2270_v52 = vld [vmem:[%s12047_s1 + $0x670] sm:$0xff]  ;;  %v2525_v9 = vld [vmem:[%s12047_s1 + $0xe68] sm:$0xff] }
 0x405   :  { %v4789_v26 = vrot.slane %v1535_v41, %v7297_v60  ;;  %v5411_v34 = vrot.slane %v1913_v19, %v7278_v47  ;;  %v5407_v53 = vsel %vm3188_vm12, %v5406_v12, %v5402_v63  ;;  %v2517_v41 = vld [vmem:[%s12047_s1 + $0xe28] sm:$0xff]  ;;  %v12095_v12 = vld [vmem:[#allocation16_spill] sm:$0xff]  ;;  %v2522_v15 = vld [vmem:[%s12047_s1 + $0xe50] sm:$0xff] }
 0x406   :  { %v2520_v63 = vld [vmem:[%s12047_s1 + $0xe40] sm:$0xff] }
 0x407   :  { %v4790_v61 = vsel %vm3209_vm15, %v4789_v26, %v4785_v55  ;;  %v5412_v57 = vsel %vm3195_vm13, %v5411_v34, %v5407_v53  ;;  %v6490_v26 = vpack.c.bf16 %v2266_v49, %v2264_v3  ;;  %v6494_v34 = vpack.c.bf16 %v2270_v52, %v2268_v24  ;;  %v2279_v53 = vld [vmem:[%s12047_s1 + $0x6b8] sm:$0xff]  ;;  %v2529_v52 = vld [vmem:[%s12047_s1 + $0xe88] sm:$0xff] }
 0x408   :  { %v1916_v16 = vpop.xlane.xlu1 %1915  ;;  %v1964_v6 = vpop.xlane.xlu0 %1963  ;;  %v5665_v20 = vsel %vm12091_vm14, %v4790_v61, %v12090_v38  ;;  %v2518_v38 = vld [vmem:[%s12047_s1 + $0xe30] sm:$0xff] }
 0x409   :  { %5900 = vmatmul.mubr.f32.vlgmr.msra.gmra.mrb[0].mxu1 %v5665_v20  ;;  %v5416_v54 = vrot.slane %v1916_v16, %v7292_v58  ;;  %v5495_v44 = vrot.slane %v1964_v6, %v7292_v58  ;;  %v6740_v6 = vpack.c.bf16 %v2519_v18, %v2517_v41  ;;  %v2273_v20 = vld [vmem:[%s12047_s1 + $0x688] sm:$0xff]  ;;  %v2278_v41 = vld [vmem:[%s12047_s1 + $0x6b0] sm:$0xff]  ;;  %v2524_v18 = vld [vmem:[%s12047_s1 + $0xe60] sm:$0xff] }
 0x40a   :  { %6483 = vmatpush1.bf16.msra.mxu1 %v6482_v17  ;;  %v5486_v17 = vsel %vm3188_vm12, %v5485_v48, %v5481_v45  ;;  %v2274_v45 = vld [vmem:[%s12047_s1 + $0x690] sm:$0xff] }
 0x40b   :  { %6485 = vmatprep.subr.bf16.mxu1 %v6484_v1  ;;  %v2269_v1 = vld [vmem:[%s12047_s1 + $0x668] sm:$0xff]  ;;  %v5491_v39 = vsel %vm3195_vm13, %v5490_v10, %v5486_v17  ;;  %v5417_v11 = vsel %vm12092_vm0, %v5416_v54, %v5412_v57  ;;  %vm12096_vm0 = vmmov %vm12091_vm14  ;;  %v2523_v10 = vld [vmem:[%s12047_s1 + $0xe58] sm:$0xff]  ;;  %v6496_v54 = vpack.c.bf16 %v2275_v4, %v2273_v20 }
 0x40c   :  { %v1919_v50 = vpop.xlane.xlu1 %1918  ;;  %v1967_v36 = vpop.xlane.xlu0 %1966  ;;  %v5496_v8 = vsel %vm12093_vm4, %v5495_v44, %v5491_v39  ;;  %v6492_v55 = vpack.c.bf16 %v2271_v27, %v2269_v1  ;;  %v2272_v44 = vld [vmem:[%s12047_s1 + $0x680] sm:$0xff]  ;;  %v6744_v49 = vpack.c.bf16 %v2523_v10, %v2521_v62  ;;  %v2277_v17 = vld [vmem:[%s12047_s1 + $0x6a8] sm:$0xff]  ;;  %v2527_v1 = vld [vmem:[%s12047_s1 + $0xe78] sm:$0xff]  ;;  %vm12097_vm4 = vcmask 326912  }
 0x40d   :  { %v5421_v46 = vrot.slane %v1919_v50, %v7297_v60  ;;  %v5500_v19 = vrot.slane %v1967_v36, %v7297_v60  ;;  %v6498_v27 = vpack.c.bf16 %v2274_v45, %v2272_v44  ;;  %v2276_v39 = vld [vmem:[%s12047_s1 + $0x6a0] sm:$0xff]  ;;  %v2285_v62 = vld [vmem:[%s12047_s1 + $0x6e8] sm:$0xff]  ;;  %v2287_v10 = vld [vmem:[%s12047_s1 + $0x6f8] sm:$0xff] }
 0x40e   :  { %6487 = vmatpush1.bf16.msra.mxu1 %v6486_v22  ;;  %v2516_v22 = vld [vmem:[%s12047_s1 + $0xe20] sm:$0xff] }
 0x40f   :  { %v5422_v28 = vsel %vm3209_vm15, %v5421_v46, %v5417_v11  ;;  %v5501_v37 = vsel %vm3209_vm15, %v5500_v19, %v5496_v8  ;;  %6489 = vmatprep.subr.bf16.mxu1 %v6488_v25  ;;  %v6742_v42 = vpack.c.bf16 %v2518_v38, %v2516_v22  ;;  %v6746_v46 = vpack.c.bf16 %v2522_v15, %v2520_v63  ;;  %v2526_v11 = vld [vmem:[%s12047_s1 + $0xe70] sm:$0xff]  ;;  %v2531_v22 = vld [vmem:[%s12047_s1 + $0xe98] sm:$0xff]  ;;  %v2528_v38 = vld [vmem:[%s12047_s1 + $0xe80] sm:$0xff] }
 0x410   :  { %v1637_v30 = vpop.xlane.xlu1 %1636  ;;  %v1634_v61 = vpop.xlane.xlu0 %1633  ;;  %v5674_v48 = vsel %vm12091_vm14, %v5501_v37, %v12094_v32  ;;  %v5673_v16 = vsel %vm12096_vm0, %v5422_v28, %v12095_v12  ;;  %v6500_v19 = vpack.c.bf16 %v2279_v53, %v2277_v17  ;;  %v6748_v28 = vpack.c.bf16 %v2527_v1, %v2525_v9  ;;  %v2281_v37 = vld [vmem:[%s12047_s1 + $0x6c8] sm:$0xff]  ;;  %v2284_v44 = vld [vmem:[%s12047_s1 + $0x6e0] sm:$0xff]  ;;  %v2534_v15 = vld [vmem:[%s12047_s1 + $0xeb0] sm:$0xff] }
 0x411   :  { %v4956_v21 = vrot.slane %v1637_v30, %v7178_v33  ;;  %v4952_v51 = vrot.slane %v1634_v61, %v7172_v31  ;;  %6183 = vmatprep.mubr.f32.mxu0 %v5674_v48  ;;  %v6502_v30 = vpack.c.bf16 %v2278_v41, %v2276_v39  ;;  %v6750_v61 = vpack.c.bf16 %v2526_v11, %v2524_v18  ;;  %v2291_v9 = vld [vmem:[%s12047_s1 + $0x718] sm:$0xff] }
 0x412   :  { %6184 = vmatmul.mubr.f32.vlgmr.msra.gmra.mrb[0].mxu0 %v5673_v16  ;;  %6491 = vmatpush1.bf16.msra.mxu1 %v6490_v26  ;;  %v2280_v16 = vld [vmem:[%s12047_s1 + $0x6c0] sm:$0xff]  ;;  %vm12101_vm14 = vcmask 982912  }
 0x413   :  { %v4957_v59 = vsel %vm3111_vm1, %v4956_v21, %v4952_v51  ;;  %6739 = vmatpush1.bf16.msra.mxu0 %v6738_v14  ;;  %6493 = vmatprep.subr.bf16.mxu1 %v6492_v55  ;;  %v2283_v14 = vld [vmem:[%s12047_s1 + $0x6d8] sm:$0xff]  ;;  %v6752_v21 = vpack.c.bf16 %v2531_v22, %v2529_v52  ;;  %v2530_v51 = vld [vmem:[%s12047_s1 + $0xe90] sm:$0xff]  ;;  %v2293_v22 = vld [vmem:[%s12047_s1 + $0x728] sm:$0xff] }
 0x414   :  { %v1589_v25 = vpop.xlane.xlu1 %1588  ;;  %v1586_v3 = vpop.xlane.xlu0 %1585  ;;  %6741 = vmatprep.subr.bf16.mxu0 %v6740_v6  ;;  %v6504_v12 = vpack.c.bf16 %v2283_v14, %v2281_v37  ;;  %v2282_v6 = vld [vmem:[%s12047_s1 + $0x6d0] sm:$0xff]  ;;  %v6754_v63 = vpack.c.bf16 %v2530_v51, %v2528_v38  ;;  %v2536_v37 = vld [vmem:[%s12047_s1 + $0xec0] sm:$0xff] }
 0x415   :  { %v4877_v50 = vrot.slane %v1589_v25, %v7178_v33  ;;  %v4873_v36 = vrot.slane %v1586_v3, %v7172_v31  ;;  %v6508_v25 = vpack.c.bf16 %v2287_v10, %v2285_v62  ;;  %v2286_v3 = vld [vmem:[%s12047_s1 + $0x6f0] sm:$0xff] }
 0x416   :  { %6495 = vmatpush1.bf16.msra.mxu1 %v6494_v34  ;;  %v2538_v52 = vld [vmem:[%s12047_s1 + $0xed0] sm:$0xff] }
 0x417   :  { %v4878_v57 = vsel %vm3111_vm1, %v4877_v50, %v4873_v36  ;;  %6743 = vmatpush1.bf16.msra.mxu0 %v6742_v42  ;;  %6497 = vmatprep.subr.bf16.mxu1 %v6496_v54  ;;  %v2535_v42 = vld [vmem:[%s12047_s1 + $0xeb8] sm:$0xff]  ;;  %v6506_v54 = vpack.c.bf16 %v2282_v6, %v2280_v16  ;;  %v2289_v36 = vld [vmem:[%s12047_s1 + $0x708] sm:$0xff]  ;;  %v2292_v16 = vld [vmem:[%s12047_s1 + $0x720] sm:$0xff]  ;;  %v6762_v38 = vpack.c.bf16 %v2538_v52, %v2536_v37 }
 0x418   :  { %v1592_v8 = vpop.xlane.xlu1 %1591  ;;  %v1640_v26 = vpop.xlane.xlu0 %1639  ;;  %6745 = vmatprep.subr.bf16.mxu0 %v6744_v49  ;;  %v2532_v49 = vld [vmem:[%s12047_s1 + $0xea0] sm:$0xff]  ;;  %v2542_v51 = vld [vmem:[%s12047_s1 + $0xef0] sm:$0xff] }
 0x419   :  { %v4882_v55 = vrot.slane %v1592_v8, %v7184_v35  ;;  %v4961_v24 = vrot.slane %v1640_v26, %v7184_v35  ;;  %v6758_v41 = vpack.c.bf16 %v2534_v15, %v2532_v49  ;;  %v6512_v8 = vpack.c.bf16 %v2291_v9, %v2289_v36  ;;  %v2288_v26 = vld [vmem:[%s12047_s1 + $0x700] sm:$0xff]  ;;  %v2546_v36 = vld [vmem:[%s12047_s1 + $0xf10] sm:$0xff] }
 0x41a   :  { %6499 = vmatpush1.bf16.msra.mxu1 %v6498_v27  ;;  %v2296_v15 = vld [vmem:[%s12047_s1 + $0x740] sm:$0xff] }
 0x41b   :  { %v4883_v32 = vsel %vm3118_vm2, %v4882_v55, %v4878_v57  ;;  %v4962_v48 = vsel %vm3118_vm2, %v4961_v24, %v4957_v59  ;;  %6747 = vmatpush1.bf16.msra.mxu0 %v6746_v46  ;;  %6501 = vmatprep.subr.bf16.mxu1 %v6500_v19  ;;  %v2533_v59 = vld [vmem:[%s12047_s1 + $0xea8] sm:$0xff]  ;;  %v2539_v46 = vld [vmem:[%s12047_s1 + $0xed8] sm:$0xff]  ;;  %v6510_v19 = vpack.c.bf16 %v2286_v3, %v2284_v44  ;;  %v2548_v52 = vld [vmem:[%s12047_s1 + $0xf20] sm:$0xff] }
 0x41c   :  { %v2018_v20 = vpop.xlane.xlu1 %2017  ;;  %v1643_v4 = vpop.xlane.xlu0 %1642  ;;  %6749 = vmatprep.subr.bf16.mxu0 %v6748_v28  ;;  %v6756_v50 = vpack.c.bf16 %v2535_v42, %v2533_v59  ;;  %v2537_v57 = vld [vmem:[%s12047_s1 + $0xec8] sm:$0xff]  ;;  %v2290_v28 = vld [vmem:[%s12047_s1 + $0x710] sm:$0xff]  ;;  %v2299_v42 = vld [vmem:[%s12047_s1 + $0x758] sm:$0xff] }
 0x41d   :  { %v4966_v34 = vrot.slane %v1643_v4, %v12074_v2  ;;  %v5584_v1 = vrot.slane %v2018_v20, %v7172_v31  ;;  %v6760_v24 = vpack.c.bf16 %v2539_v46, %v2537_v57  ;;  %v2294_v4 = vld [vmem:[%s12047_s1 + $0x730] sm:$0xff]  ;;  %v2297_v59 = vld [vmem:[%s12047_s1 + $0x748] sm:$0xff]  ;;  %v2303_v57 = vld [vmem:[%s12047_s1 + $0x778] sm:$0xff] }
 0x41e   :  { %6503 = vmatpush1.bf16.msra.mxu1 %v6502_v30  ;;  %v2295_v30 = vld [vmem:[%s12047_s1 + $0x738] sm:$0xff]  ;;  %v6518_v3 = vpack.c.bf16 %v2294_v4, %v2292_v16 }
 0x41f   :  { %v4967_v45 = vsel %vm3125_vm3, %v4966_v34, %v4962_v48  ;;  %6751 = vmatpush1.bf16.msra.mxu0 %v6750_v61  ;;  %6505 = vmatprep.subr.bf16.mxu1 %v6504_v12  ;;  %v2543_v48 = vld [vmem:[%s12047_s1 + $0xef8] sm:$0xff]  ;;  %v6514_v12 = vpack.c.bf16 %v2290_v28, %v2288_v26  ;;  %v6516_v20 = vpack.c.bf16 %v2295_v30, %v2293_v22  ;;  %v2300_v28 = vld [vmem:[%s12047_s1 + $0x760] sm:$0xff]  ;;  %v2550_v22 = vld [vmem:[%s12047_s1 + $0xf30] sm:$0xff] }
 0x420   :  { %v1595_v17 = vpop.xlane.xlu1 %1594  ;;  %v2021_v53 = vpop.xlane.xlu0 %2020  ;;  %6753 = vmatprep.subr.bf16.mxu0 %v6752_v21  ;;  %v2540_v21 = vld [vmem:[%s12047_s1 + $0xee0] sm:$0xff]  ;;  %v6774_v4 = vpack.c.bf16 %v2550_v22, %v2548_v52  ;;  %v2314_v52 = vld [vmem:[%s12047_s1 + $0x7d0] sm:$0xff] }
 0x421   :  { %v4887_v27 = vrot.slane %v1595_v17, %v12074_v2  ;;  %v5588_v39 = vrot.slane %v2021_v53, %v7178_v33  ;;  %v6766_v49 = vpack.c.bf16 %v2542_v51, %v2540_v21  ;;  %v2298_v53 = vld [vmem:[%s12047_s1 + $0x750] sm:$0xff]  ;;  %v2560_v22 = vld [vmem:[%s12047_s1 + $0xf80] sm:$0xff] }
 0x422   :  { %6507 = vmatpush1.bf16.msra.mxu1 %v6506_v54 }
 0x423   :  { %v11640_v18 = vsel %vm3125_vm3, %v4887_v27, %v4883_v32  ;;  %v5589_v11 = vsel %vm3111_vm1, %v5588_v39, %v5584_v1  ;;  %6755 = vmatpush1.bf16.msra.mxu0 %v6754_v63  ;;  %6509 = vmatprep.subr.bf16.mxu1 %v6508_v25  ;;  %v2541_v32 = vld [vmem:[%s12047_s1 + $0xee8] sm:$0xff]  ;;  %v2547_v25 = vld [vmem:[%s12047_s1 + $0xf18] sm:$0xff] }
 0x424   :  { %v1970_v14 = vpop.xlane.xlu1 %1969  ;;  %v1646_v55 = vpop.xlane.xlu0 %1645  ;;  %6757 = vmatprep.subr.bf16.mxu0 %v6756_v50  ;;  %v6764_v34 = vpack.c.bf16 %v2543_v48, %v2541_v32  ;;  %v2545_v63 = vld [vmem:[%s12047_s1 + $0xf08] sm:$0xff]  ;;  %v2544_v50 = vld [vmem:[%s12047_s1 + $0xf00] sm:$0xff]  ;;  %v2307_v48 = vld [vmem:[%s12047_s1 + $0x798] sm:$0xff] }
 0x425   :  { %v4971_v61 = vrot.slane %v1646_v55, %v12075_v5  ;;  %v5505_v54 = vrot.slane %v1970_v14, %v7172_v31  ;;  %v6768_v27 = vpack.c.bf16 %v2547_v25, %v2545_v63  ;;  %v2301_v39 = vld [vmem:[%s12047_s1 + $0x768] sm:$0xff]  ;;  %v6770_v26 = vpack.c.bf16 %v2546_v36, %v2544_v50  ;;  %v2311_v63 = vld [vmem:[%s12047_s1 + $0x7b8] sm:$0xff]  ;;  %v2310_v50 = vld [vmem:[%s12047_s1 + $0x7b0] sm:$0xff] }
 0x426   :  { %6511 = vmatpush1.bf16.msra.mxu1 %v6510_v19  ;;  %v6524_v55 = vpack.c.bf16 %v2303_v57, %v2301_v39  ;;  %v2556_v36 = vld [vmem:[%s12047_s1 + $0xf60] sm:$0xff]  ;;  %v2313_v57 = vld [vmem:[%s12047_s1 + $0x7c8] sm:$0xff] }
 0x427   :  { %v4972_v6 = vsel %vm12097_vm4, %v4971_v61, %v4967_v45  ;;  %6759 = vmatpush1.bf16.msra.mxu0 %v6758_v41  ;;  %6513 = vmatprep.subr.bf16.mxu1 %v6512_v8  ;;  %v2549_v41 = vld [vmem:[%s12047_s1 + $0xf28] sm:$0xff]  ;;  %v6522_v8 = vpack.c.bf16 %v2298_v53, %v2296_v15 }
 0x428   :  { %v2024_v62 = vpop.xlane.xlu1 %2023  ;;  %v1973_v10 = vpop.xlane.xlu0 %1972  ;;  %6761 = vmatprep.subr.bf16.mxu0 %v6760_v24  ;;  %v2302_v24 = vld [vmem:[%s12047_s1 + $0x770] sm:$0xff] }
 0x429   :  { %v5593_v44 = vrot.slane %v2024_v62, %v7184_v35  ;;  %v5509_v45 = vrot.slane %v1973_v10, %v7178_v33  ;;  %v6520_v33 = vpack.c.bf16 %v2299_v42, %v2297_v59  ;;  %v2306_v10 = vld [vmem:[%s12047_s1 + $0x790] sm:$0xff] }
 0x42a   :  { %6515 = vmatpush1.bf16.msra.mxu1 %v6514_v12 }
 0x42b   :  { %v5594_v31 = vsel %vm3118_vm2, %v5593_v44, %v5589_v11  ;;  %v5510_v17 = vsel %vm3111_vm1, %v5509_v45, %v5505_v54  ;;  %6763 = vmatpush1.bf16.msra.mxu0 %v6762_v38  ;;  %6517 = vmatprep.subr.bf16.mxu1 %v6516_v20  ;;  %v2551_v11 = vld [vmem:[%s12047_s1 + $0xf38] sm:$0xff]  ;;  %vm12098_vm1 = vmmov %vm12097_vm4  ;;  %v6526_v20 = vpack.c.bf16 %v2302_v24, %v2300_v28  ;;  %v2554_v44 = vld [vmem:[%s12047_s1 + $0xf50] sm:$0xff] }
 0x42c   :  { %v1649_v9 = vpop.xlane.xlu1 %1648  ;;  %v1598_v1 = vpop.xlane.xlu0 %1597  ;;  %6765 = vmatprep.subr.bf16.mxu0 %v6764_v34  ;;  %v6772_v32 = vpack.c.bf16 %v2551_v11, %v2549_v41  ;;  %v2555_v38 = vld [vmem:[%s12047_s1 + $0xf58] sm:$0xff]  ;;  %v2552_v34 = vld [vmem:[%s12047_s1 + $0xf40] sm:$0xff]  ;;  %v2309_v45 = vld [vmem:[%s12047_s1 + $0x7a8] sm:$0xff] }
 0x42d   :  { %v4976_v46 = vrot.slane %v1649_v9, %v7189_v40  ;;  %v4892_v19 = vrot.slane %v1598_v1, %v12075_v5  ;;  %v6532_v53 = vpack.c.bf16 %v2311_v63, %v2309_v45  ;;  %v2558_v9 = vld [vmem:[%s12047_s1 + $0xf70] sm:$0xff]  ;;  %v2561_v11 = vld [vmem:[%s12047_s1 + $0xf88] sm:$0xff]  ;;  %v2571_v63 = vld [vmem:[%s12047_s1 + $0xfd8] sm:$0xff] }
 0x42e   :  { %6519 = vmatpush1.bf16.msra.mxu1 %v6518_v3  ;;  %v2557_v3 = vld [vmem:[%s12047_s1 + $0xf68] sm:$0xff]  ;;  %v6782_v28 = vpack.c.bf16 %v2558_v9, %v2556_v36  ;;  %v2575_v9 = vld [vmem:[%s12047_s1 + $0xff8] sm:$0xff] }
 0x42f   :  { %v11728_v37 = vsel %vm3139_vm5, %v4976_v46, %v4972_v6  ;;  %v4893_v14 = vsel %vm12098_vm1, %v4892_v19, %v11640_v18  ;;  %6767 = vmatpush1.bf16.msra.mxu0 %v6766_v49  ;;  %6521 = vmatprep.subr.bf16.mxu1 %v6520_v33  ;;  %v2305_v18 = vld [vmem:[%s12047_s1 + $0x788] sm:$0xff]  ;;  %v2559_v49 = vld [vmem:[%s12047_s1 + $0xf78] sm:$0xff]  ;;  %v6778_v33 = vpack.c.bf16 %v2554_v44, %v2552_v34  ;;  %v2564_v34 = vld [vmem:[%s12047_s1 + $0xfa0] sm:$0xff] }
 0x430   :  { %v2027_v30 = vpop.xlane.xlu1 %2026  ;;  %v1976_v61 = vpop.xlane.xlu0 %1975  ;;  %6769 = vmatprep.subr.bf16.mxu0 %v6768_v27  ;;  %v2553_v6 = vld [vmem:[%s12047_s1 + $0xf48] sm:$0xff]  ;;  %v6528_v62 = vpack.c.bf16 %v2307_v48, %v2305_v18  ;;  %v6780_v39 = vpack.c.bf16 %v2559_v49, %v2557_v3  ;;  %v2315_v46 = vld [vmem:[%s12047_s1 + $0x7d8] sm:$0xff]  ;;  %v2562_v18 = vld [vmem:[%s12047_s1 + $0xf90] sm:$0xff] }
 0x431   :  { %v5598_v12 = vrot.slane %v2027_v30, %v12074_v2  ;;  %v5514_v16 = vrot.slane %v1976_v61, %v7184_v35  ;;  %v2304_v35 = vld [vmem:[%s12047_s1 + $0x780] sm:$0xff]  ;;  %v6776_v54 = vpack.c.bf16 %v2555_v38, %v2553_v6  ;;  %v6536_v24 = vpack.c.bf16 %v2315_v46, %v2313_v57  ;;  %v2317_v48 = vld [vmem:[%s12047_s1 + $0x7e8] sm:$0xff]  ;;  %v2567_v6 = vld [vmem:[%s12047_s1 + $0xfb8] sm:$0xff] }
 0x432   :  { %6523 = vmatpush1.bf16.msra.mxu1 %v6522_v8  ;;  %v6530_v15 = vpack.c.bf16 %v2306_v10, %v2304_v35  ;;  %v2563_v8 = vld [vmem:[%s12047_s1 + $0xf98] sm:$0xff]  ;;  %v2569_v45 = vld [vmem:[%s12047_s1 + $0xfc8] sm:$0xff]  ;;  %v2572_v46 = vld [vmem:[%s12047_s1 + $0xfe0] sm:$0xff] }
 0x433   :  { %v5599_v21 = vsel %vm3125_vm3, %v5598_v12, %v5594_v31  ;;  %v5515_v51 = vsel %vm3118_vm2, %v5514_v16, %v5510_v17  ;;  %6771 = vmatpush1.bf16.msra.mxu0 %v6770_v26  ;;  %6525 = vmatprep.subr.bf16.mxu1 %v6524_v55  ;;  %v2308_v31 = vld [vmem:[%s12047_s1 + $0x7a0] sm:$0xff]  ;;  %vm12099_vm2 = vmmov %vm12098_vm1  ;;  %v2319_v12 = vld [vmem:[%s12047_s1 + $0x7f8] sm:$0xff] }
 0x434   :  { %v11766_v59 = vpop.xlane.xlu1 %1651  ;;  %v1601_v42 = vpop.xlane.xlu0 %1600  ;;  %6773 = vmatprep.subr.bf16.mxu0 %v6772_v32  ;;  %v6534_v26 = vpack.c.bf16 %v2310_v50, %v2308_v31  ;;  %v6784_v32 = vpack.c.bf16 %v2563_v8, %v2561_v11  ;;  %v2565_v16 = vld [vmem:[%s12047_s1 + $0xfa8] sm:$0xff]  ;;  %v2570_v50 = vld [vmem:[%s12047_s1 + $0xfd0] sm:$0xff] }
 0x435   :  { %v4897_v25 = vrot.slane %v1601_v42, %v7189_v40  ;;  %v6788_v10 = vpack.c.bf16 %v2567_v6, %v2565_v16  ;;  %v2566_v42 = vld [vmem:[%s12047_s1 + $0xfb0] sm:$0xff]  ;;  %v2573_v36 = vld [vmem:[%s12047_s1 + $0xfe8] sm:$0xff] }
 0x436   :  { %6527 = vmatpush1.bf16.msra.mxu1 %v6526_v20  ;;  %v6786_v20 = vpack.c.bf16 %v2562_v18, %v2560_v22  ;;  %v6796_v57 = vpack.c.bf16 %v2575_v9, %v2573_v36 }
 0x437   :  { %v11788_v17 = vsel %vm3139_vm5, %v4897_v25, %v4893_v14  ;;  %6775 = vmatpush1.bf16.msra.mxu0 %v6774_v4  ;;  %6529 = vmatprep.subr.bf16.mxu1 %v6528_v62  ;;  %v6540_v4 = vpack.c.bf16 %v2319_v12, %v2317_v48 }
 0x438   :  { %v2030_v1 = vpop.xlane.xlu1 %2029  ;;  %v1979_v27 = vpop.xlane.xlu0 %1978  ;;  %6777 = vmatprep.subr.bf16.mxu0 %v6776_v54 }
 0x439   :  { %v5603_v19 = vrot.slane %v2030_v1, %v12075_v5  ;;  %v5519_v41 = vrot.slane %v1979_v27, %v12074_v2  ;;  %v2312_v2 = vld [vmem:[%s12047_s1 + $0x7c0] sm:$0xff] }
 0x43a   :  { %6531 = vmatpush1.bf16.msra.mxu1 %v6530_v15  ;;  %v6538_v38 = vpack.c.bf16 %v2314_v52, %v2312_v2  ;;  %v6790_v15 = vpack.c.bf16 %v2566_v42, %v2564_v34 }
 0x43b   :  { %v5604_v14 = vsel %vm12099_vm2, %v5603_v19, %v5599_v21  ;;  %v5520_v55 = vsel %vm3125_vm3, %v5519_v41, %v5515_v51  ;;  %6779 = vmatpush1.bf16.msra.mxu0 %v6778_v33  ;;  %6533 = vmatprep.subr.bf16.mxu1 %v6532_v53  ;;  %v2316_v21 = vld [vmem:[%s12047_s1 + $0x7e0] sm:$0xff]  ;;  %v2318_v51 = vld [vmem:[%s12047_s1 + $0x7f0] sm:$0xff]  ;;  %vm12100_vm3 = vmmov %vm12098_vm1  ;;  %v6792_v33 = vpack.c.bf16 %v2571_v63, %v2569_v45 }
 0x43c   :  { %v11824_v30 = vpop.xlane.xlu1 %1654  ;;  %v11826_v61 = vpop.xlane.xlu0 %1603  ;;  %6781 = vmatprep.subr.bf16.mxu0 %v6780_v39  ;;  %v6542_v25 = vpack.c.bf16 %v2318_v51, %v2316_v21  ;;  %v2568_v53 = vld [vmem:[%s12047_s1 + $0xfc0] sm:$0xff]  ;;  %v2574_v19 = vld [vmem:[%s12047_s1 + $0xff0] sm:$0xff]  ;;  %v4981_v51 = vrot.slane %v11766_v59, %v7225_v0 }
 0x43d   :  { %v6794_v1 = vpack.c.bf16 %v2570_v50, %v2568_v53  ;;  %v6798_v41 = vpack.c.bf16 %v2574_v19, %v2572_v46 }
 0x43e   :  { %6535 = vmatpush1.bf16.msra.mxu1 %v6534_v26 }
 0x43f   :  { %6783 = vmatpush1.bf16.msra.mxu0 %v6782_v28  ;;  %6537 = vmatprep.subr.bf16.mxu1 %v6536_v24 }
 0x440   :  { %v2033_v62 = vpop.xlane.xlu1 %2032  ;;  %v1982_v35 = vpop.xlane.xlu0 %1981  ;;  %6785 = vmatprep.subr.bf16.mxu0 %v6784_v32 }
 0x441   :  { %v5608_v54 = vrot.slane %v2033_v62, %v7189_v40  ;;  %v5524_v44 = vrot.slane %v1982_v35, %v12075_v5  ;;  %v4986_v62 = vrot.slane %v11824_v30, %v7211_v56 }
 0x442   :  { %6539 = vmatpush1.bf16.msra.mxu1 %v6538_v38 }
 0x443   :  { %v11864_v3 = vsel %vm3139_vm5, %v5608_v54, %v5604_v14  ;;  %v11867_v49 = vsel %vm12100_vm3, %v5524_v44, %v5520_v55  ;;  %6787 = vmatpush1.bf16.msra.mxu0 %v6786_v20  ;;  %6541 = vmatprep.subr.bf16.mxu1 %v6540_v4  ;;  %v4982_v54 = vsel %vm3146_vm6, %v4981_v51, %v11728_v37 }
 0x444   :  { %v1658_v5 = vpop.xlane.xlu1 %1657  ;;  %v11869_v31 = vpop.xlane.xlu0 %1606  ;;  %6789 = vmatprep.subr.bf16.mxu0 %v6788_v10  ;;  %v4987_v45 = vsel %vm3153_vm7, %v4986_v62, %v4982_v54 }
 0x445   :  { %v4991_v35 = vrot.slane %v1658_v5, %v7244_v13  ;;  %v4902_v5 = vrot.slane %v11826_v61, %v7225_v0  ;;  %v4907_v53 = vrot.slane %v11869_v31, %v7211_v56 }
 0x446   :  { %6543 = vmatpush1.bf16.msra.mxu1 %v6542_v25 }
 0x447   :  { %6791 = vmatpush1.bf16.msra.mxu0 %v6790_v15  ;;  %v4992_v59 = vsel %vm3160_vm8, %v4991_v35, %v4987_v45  ;;  %v4903_v61 = vsel %vm3146_vm6, %v4902_v5, %v11788_v17 }
 0x448   :  { %v11883_v27 = vpop.xlane.xlu1 %2035  ;;  %v11885_v39 = vpop.xlane.xlu0 %1984  ;;  %6793 = vmatprep.subr.bf16.mxu0 %v6792_v33 }
 0x44b   :  { %6795 = vmatpush1.bf16.msra.mxu0 %v6794_v1 }
 0x44c   :  { %v1661_v11 = vpop.xlane.xlu1 %1660  ;;  %v1610_v8 = vpop.xlane.xlu0 %1609  ;;  %6797 = vmatprep.subr.bf16.mxu0 %v6796_v57 }
 0x44d   :  { %v4996_v42 = vrot.slane %v1661_v11, %v7232_v7  ;;  %v4912_v9 = vrot.slane %v1610_v8, %v7244_v13  ;;  %v5613_v8 = vrot.slane %v11883_v27, %v7225_v0 }
 0x44f   :  { %6799 = vmatpush1.bf16.msra.mxu0 %v6798_v41  ;;  %v4997_v33 = vsel %vm3167_vm9, %v4996_v42, %v4992_v59  ;;  %v12102_v42 = vld [vmem:[#allocation13_spill] sm:$0xff] }
 0x450   :  { %v11893_v26 = vpop.xlane.xlu1 %2038  ;;  %v11895_v28 = vpop.xlane.xlu0 %1987 }
 0x451   :  { %v5618_v62 = vrot.slane %v11893_v26, %v7211_v56  ;;  %v5534_v35 = vrot.slane %v11895_v28, %v7225_v0  ;;  %v5614_v0 = vsel %vm3146_vm6, %v5613_v8, %v11864_v3 }
 0x454   :  { %v1664_v14 = vpop.xlane.xlu1 %1663  ;;  %v1613_v55 = vpop.xlane.xlu0 %1612 }
 0x455   :  { %v5001_v44 = vrot.slane %v1664_v14, %v7264_v29  ;;  %v4917_v41 = vrot.slane %v1613_v55, %v7232_v7  ;;  %v4908_v14 = vsel %vm3153_vm7, %v4907_v53, %v4903_v61 }
 0x456   :  { %v4913_v17 = vsel %vm3160_vm8, %v4912_v9, %v4908_v14  ;;  %v12104_v9 = vld [vmem:[#allocation12_spill] sm:$0xff] }
 0x457   :  { %v5002_v50 = vsel %vm3174_vm10, %v5001_v44, %v4997_v33 }
 0x458   :  { %v11897_v24 = vpop.xlane.xlu1 %2041  ;;  %v11899_v2 = vpop.xlane.xlu0 %1990 }
 0x45c   :  { %v1667_v52 = vpop.xlane.xlu1 %1666  ;;  %v1616_v22 = vpop.xlane.xlu0 %1615 }
 0x45d   :  { %v5006_v63 = vrot.slane %v1667_v52, %v7252_v23  ;;  %v4922_v52 = vrot.slane %v1616_v22, %v7264_v29 }
 0x45f   :  { %v5007_v1 = vsel %vm3181_vm11, %v5006_v63, %v5002_v50 }
 0x460   :  { %v11901_v32 = vpop.xlane.xlu1 %2044  ;;  %v11903_v18 = vpop.xlane.xlu0 %1993 }
 0x461   :  { %v5628_v3 = vrot.slane %v11901_v32, %v7232_v7 }
 0x464   :  { %v1670_v48 = vpop.xlane.xlu1 %1669  ;;  %v1619_v12 = vpop.xlane.xlu0 %1618 }
 0x465   :  { %v5011_v25 = vrot.slane %v1670_v48, %v7272_v43  ;;  %v4927_v55 = vrot.slane %v1619_v12, %v7252_v23  ;;  %v5623_v12 = vrot.slane %v11897_v24, %v7244_v13  ;;  %v5544_v24 = vrot.slane %v11903_v18, %v7244_v13 }
 0x467   :  { %v5012_v57 = vsel %vm3188_vm12, %v5011_v25, %v5007_v1 }
 0x468   :  { %v11905_v16 = vpop.xlane.xlu1 %2047  ;;  %v11907_v6 = vpop.xlane.xlu0 %1996 }
 0x46c   :  { %v1673_v38 = vpop.xlane.xlu1 %1672  ;;  %v1622_v20 = vpop.xlane.xlu0 %1621 }
 0x46d   :  { %v5016_v37 = vrot.slane %v1673_v38, %v7278_v47  ;;  %v5529_v38 = vrot.slane %v11885_v39, %v7189_v40  ;;  %v4932_v27 = vrot.slane %v1622_v20, %v7272_v43  ;;  %v4918_v40 = vsel %vm3167_vm9, %v4917_v41, %v4913_v17 }
 0x46e   :  { %v4923_v26 = vsel %vm3174_vm10, %v4922_v52, %v4918_v40  ;;  %v5539_v20 = vrot.slane %v11899_v2, %v7211_v56 }
 0x46f   :  { %v5017_v11 = vsel %vm3195_vm13, %v5016_v37, %v5012_v57  ;;  %v5530_v28 = vsel %vm3139_vm5, %v5529_v38, %v11867_v49  ;;  %v4928_v45 = vsel %vm3181_vm11, %v4927_v55, %v4923_v26  ;;  %v5549_v49 = vrot.slane %v11907_v6, %v7232_v7  ;;  %vm12103_vm5 = vmmov %vm12101_vm14 }
 0x470   :  { %v11909_v4 = vpop.xlane.xlu1 %2050  ;;  %v11911_v21 = vpop.xlane.xlu0 %1999  ;;  %v5535_v63 = vsel %vm3146_vm6, %v5534_v35, %v5530_v28  ;;  %v4933_v59 = vsel %vm3188_vm12, %v4932_v27, %v4928_v45  ;;  %v5633_v37 = vrot.slane %v11905_v16, %v7264_v29  ;;  %vm12105_vm6 = vmmov %vm12096_vm0  ;;  %v12110_v27 = vld [vmem:[#allocation18_spill] sm:$0xff] }
 0x471   :  { %v5554_v13 = vrot.slane %v11911_v21, %v7264_v29  ;;  %v5540_v53 = vsel %vm3153_vm7, %v5539_v20, %v5535_v63  ;;  %v5638_v32 = vrot.slane %v11909_v4, %v7252_v23 }
 0x472   :  { %v5545_v50 = vsel %vm3160_vm8, %v5544_v24, %v5540_v53 }
 0x473   :  { %v5550_v4 = vsel %vm3167_vm9, %v5549_v49, %v5545_v50 }
 0x474   :  { %v1676_v10 = vpop.xlane.xlu1 %1675  ;;  %v1625_v34 = vpop.xlane.xlu0 %1624 }
 0x475   :  { %v5021_v36 = vrot.slane %v1676_v10, %v7292_v58  ;;  %v4937_v39 = vrot.slane %v1625_v34, %v7278_v47  ;;  %v5619_v34 = vsel %vm3153_vm7, %v5618_v62, %v5614_v0  ;;  %vm12106_vm7 = vmmov %vm12103_vm5  ;;  %v12108_v62 = vld [vmem:[#allocation19_spill] sm:$0xff] }
 0x476   :  { %v5624_v33 = vsel %vm3160_vm8, %v5623_v12, %v5619_v34  ;;  %vm12107_vm8 = vmmov %vm12103_vm5 }
 0x477   :  { %v5022_v48 = vsel %vm12101_vm14, %v5021_v36, %v5017_v11  ;;  %v4938_v56 = vsel %vm3195_vm13, %v4937_v39, %v4933_v59  ;;  %v5629_v57 = vsel %vm3167_vm9, %v5628_v3, %v5624_v33  ;;  %vm12109_vm9 = vmmov %vm12096_vm0 }
 0x478   :  { %v11926_v30 = vpop.xlane.xlu1 %2053  ;;  %v11928_v15 = vpop.xlane.xlu0 %2002 }
 0x479   :  { %v5559_v7 = vrot.slane %v11928_v15, %v7252_v23  ;;  %v5643_v16 = vrot.slane %v11926_v30, %v7272_v43  ;;  %v5555_v30 = vsel %vm3174_vm10, %v5554_v13, %v5550_v4 }
 0x47b   :  { %v5560_v41 = vsel %vm3181_vm11, %v5559_v7, %v5555_v30 }
 0x47c   :  { %v1679_v46 = vpop.xlane.xlu1 %1678  ;;  %v1628_v19 = vpop.xlane.xlu0 %1627 }
 0x47d   :  { %v5026_v31 = vrot.slane %v1679_v46, %v7297_v60  ;;  %v4942_v44 = vrot.slane %v1628_v19, %v7292_v58  ;;  %v5634_v46 = vsel %vm3174_vm10, %v5633_v37, %v5629_v57  ;;  %vm12111_vm10 = vmmov %vm12096_vm0 }
 0x47e   :  { %v5639_v61 = vsel %vm3181_vm11, %v5638_v32, %v5634_v46 }
 0x47f   :  { %v5027_v51 = vsel %vm3209_vm15, %v5026_v31, %v5022_v48  ;;  %v4943_v18 = vsel %vm12103_vm5, %v4942_v44, %v4938_v56  ;;  %v5644_v11 = vsel %vm3188_vm12, %v5643_v16, %v5639_v61 }
 0x480   :  { %v2057_v22 = vpop.xlane.xlu1 %2056  ;;  %v2006_v10 = vpop.xlane.xlu0 %2005  ;;  %v5668_v54 = vsel %vm12096_vm0, %v5027_v51, %v12102_v42 }
 0x481   :  { %5970 = vmatprep.mubr.f32.mxu1 %v5668_v54  ;;  %v5564_v36 = vrot.slane %v2006_v10, %v7272_v43  ;;  %v5648_v23 = vrot.slane %v2057_v22, %v7278_v47  ;;  %v12112_v10 = vld [vmem:[#allocation5_spill] sm:$0xff] }
 0x482   :  { %v2580_v42 = vsub.s32 0, %v12112_v10  ;;  %v2584_v40 = vsub.s32 1, %v12112_v10 }
 0x483   :  { %v5565_v31 = vsel %vm3188_vm12, %v5564_v36, %v5560_v41 }
 0x484   :  { %v2009_v25 = vpop.xlane.xlu1 %2008  ;;  %v1631_v5 = vpop.xlane.xlu0 %1630 }
 0x485   :  { %v4947_v2 = vrot.slane %v1631_v5, %v7297_v60  ;;  %v5569_v15 = vrot.slane %v2009_v25, %v7278_v47  ;;  %v5649_v47 = vsel %vm3195_vm13, %v5648_v23, %v5644_v11 }
 0x487   :  { %v4948_v6 = vsel %vm3209_vm15, %v4947_v2, %v4943_v18  ;;  %v5570_v52 = vsel %vm3195_vm13, %v5569_v15, %v5565_v31 }
 0x488   :  { %v2012_v29 = vpop.xlane.xlu1 %2011  ;;  %v2060_v21 = vpop.xlane.xlu0 %2059  ;;  %v5667_v1 = vsel %vm12105_vm6, %v4948_v6, %v12104_v9 }
 0x489   :  { %5971 = vmatmul.mubr.f32.vlgmr.msra.gmra.mrb[0].mxu1 %v5667_v1  ;;  %v5574_v43 = vrot.slane %v2012_v29, %v7292_v58  ;;  %v5653_v19 = vrot.slane %v2060_v21, %v7292_v58 }
 0x48b   :  { %v5575_v58 = vsel %vm12106_vm7, %v5574_v43, %v5570_v52  ;;  %v5654_v17 = vsel %vm12107_vm8, %v5653_v19, %v5649_v47 }
 0x48c   :  { %v2015_v14 = vpop.xlane.xlu1 %2014  ;;  %v2063_v8 = vpop.xlane.xlu0 %2062 }
 0x48d   :  { %v5579_v48 = vrot.slane %v2015_v14, %v7297_v60  ;;  %v5658_v38 = vrot.slane %v2063_v8, %v7297_v60  ;;  %v2576_v60 = vld [vmem:[%s12048_s2] sm:$0x3] }
 0x48e   :  { %v2581_v12 = vrot.slane %v2576_v60, %v2580_v42  ;;  %v2585_v26 = vrot.slane %v2576_v60, %v2584_v40 }
 0x48f   :  { %v5580_v55 = vsel %vm3209_vm15, %v5579_v48, %v5575_v58  ;;  %v5659_v51 = vsel %vm3209_vm15, %v5658_v38, %v5654_v17 }
 0x490   :  { %v5676_v35 = vsel %vm12109_vm9, %v5659_v51, %v12108_v62  ;;  %v5675_v22 = vsel %vm12111_vm10, %v5580_v55, %v12110_v27 }
 0x491   :  { %6254 = vmatprep.mubr.f32.mxu0 %v5676_v35 }
 0x492   :  { %6255 = vmatmul.mubr.f32.vlgmr.msra.gmra.mrb[0].mxu0 %v5675_v22 }
 0x55c   :  { %v5972_v54 = vpop.f32.mrb[0].mxu1 }
 0x55d   :  { %v5974_v39 = vpop.f32.mrb[1].mxu1  ;;  %v6800_v44 = vadd.f32 %v5972_v54, %v2581_v12 }
 0x55e   :  { %v6802_v0 = vadd.f32 %v5974_v39, %v2585_v26 }
 0x565   :  { %v6256_v28 = vpop.f32.mrb[0].mxu0 }
 0x566   :  { %v6801_v20 = vadd.f32 %v6800_v44, %v6256_v28  ;;  %v6258_v45 = vpop.f32.mrb[1].mxu0 }
 0x567   :  { %v6803_v34 = vadd.f32 %v6802_v0, %v6258_v45 }
 0x569   :  { %v6263_v63 = vcombine.low %v6801_v20, %v6803_v34 }
 0x56b   :  { %6287 = vst.sshfl [vmem:[#allocation2] sm:$0x33 pattern:$0x76325410] %v6263_v63 }
 0x56c   :  { %6828 = shalt.err (!%p6825_p4)
}
 0x56d   :  { %s6829_s30 = scalar_lea.hbm %s12049_s3, 64 }
 0x56e   :  { %p6830_p5 = scmp.ne.s32.totalorder %s12049_s3, %s6829_s30  ;;  %p6833_p6 = scmp.lt.u32.totalorder %s6829_s30, %s12049_s3 }
 0x570   :  { %p6835_p7 = pnand %p6833_p6, %p6830_p5 }
 0x572   :  { %6838 = shalt.err (!%p6835_p7)
}
 0x573   :  { %6282 = dma.vmem_to_hbm [thread:$0]  %s6280_s28, 64, %s12049_s3, [#allocation3]  }
 0x574   :  { %6839 = dma.done.wait [#allocation3], 64  }
 0x575   :  { %6840 = vsyncadd [#allocation3], 4294967232 }
 0x576   :  { %6286 = vsyncpa [#allocation3], 1 }

</bundles_post_ra>
